<compile_context>
chip_gen: v7x
topology: tpu7x:2x2x1
jax: 0.10.0
libtpu: 0.0.40
codegen_flags: <defaults>
</compile_context>

<pallas_src>
import jax
import jax.numpy as jnp
from jax.experimental import pallas as pl
from jax.experimental.pallas import tpu as pltpu

HID = 20            # true hidden width of the PyTorch module
PAD = 256           # packed lane width (matches v6e/v7x 256x256 MXU datapath)
GROUPS = 12         # samples packed per PAD-lane row (12 * 20 = 240 <= 256)
GROUPS_PAD = 16     # padded output width (>= GROUPS, sublane-friendly store)
KPAD = 16           # sublane-padded packed-input width (>= GROUPS)
N_HIDDEN = 9        # number of hidden Linear(20,20) layers
TM = 512            # packed rows per grid step  (= TM*GROUPS samples / tile)
HALF = TM // 2      # two interleaved row streams


def _mlp_kernel(x_ref, wf_ref, bf_ref, wh_ref, bh_ref, wl_ref, bl_ref, o_ref):
    wf = wf_ref[...]                    # (KPAD, PAD)  packed input-layer weight
    bf = bf_ref[...]                    # (1, PAD)     packed input-layer bias
    # ---- input layer + tanh: tiny-K matmul scatters x_g into its 20-lane group
    hA = jnp.tanh(
        jnp.dot(x_ref[pl.ds(0, HALF), :], wf,
                preferred_element_type=jnp.float32) + bf)
    hB = jnp.tanh(
        jnp.dot(x_ref[pl.ds(HALF, HALF), :], wf,
                preferred_element_type=jnp.float32) + bf)
    # ---- 9 hidden layers + tanh; two independent streams fill MXU/EUP bubbles
    for l in range(N_HIDDEN):
        w = wh_ref[l]                   # (PAD, PAD) block-diagonal hidden weight
        b = bh_ref[pl.ds(l, 1), :]      # (1, PAD)   per-group replicated bias
        zA = jnp.dot(hA, w, preferred_element_type=jnp.float32) + b
        zB = jnp.dot(hB, w, preferred_element_type=jnp.float32) + b
        hA = jnp.tanh(zA)
        hB = jnp.tanh(zB)
    # ---- output layer: column g of (h @ wl) is packed sample g's scalar output
    wl = wl_ref[...]                    # (PAD, PAD), only cols [0, GROUPS) used
    bl = bl_ref[...]                    # (1, PAD)
    outA = jnp.dot(hA, wl, preferred_element_type=jnp.float32) + bl
    outB = jnp.dot(hB, wl, preferred_element_type=jnp.float32) + bl
    # Store GROUPS_PAD lanes (cols GROUPS..GROUPS_PAD are exact zeros).
    o_ref[pl.ds(0, HALF), :] = outA[:, :GROUPS_PAD].astype(o_ref.dtype)
    o_ref[pl.ds(HALF, HALF), :] = outB[:, :GROUPS_PAD].astype(o_ref.dtype)


@jax.jit
def function_approximator(x, packed_params):
    """x: (N, 1) float32. Returns (N, 1) float32."""
    wf, bf, wh, bh, wl, bl = packed_params
    N = x.shape[0]
    rows = -(-N // GROUPS)              # ceil(N / 12) packed rows
    rows_pad = -(-rows // TM) * TM      # whole number of TM-row tiles
    # Pack 12 samples per row; zero-pad the tail (padded outputs discarded).
    x_flat = jnp.pad(x[:, 0], (0, rows_pad * GROUPS - N))
    x_packed = jnp.pad(x_flat.reshape(rows_pad, GROUPS),
                       ((0, 0), (0, KPAD - GROUPS)))

    out = pl.pallas_call(
        _mlp_kernel,
        out_shape=jax.ShapeDtypeStruct((rows_pad, GROUPS_PAD), jnp.float32),
        grid_spec=pltpu.PrefetchScalarGridSpec(
            num_scalar_prefetch=0,
            grid=(rows_pad // TM,),
            in_specs=[
                pl.BlockSpec((TM, KPAD), lambda i: (i, 0)),               # x
                pl.BlockSpec((KPAD, PAD), lambda i: (0, 0)),              # W_in
                pl.BlockSpec((1, PAD), lambda i: (0, 0)),                 # b_in
                pl.BlockSpec((N_HIDDEN, PAD, PAD), lambda i: (0, 0, 0)),  # W_h
                pl.BlockSpec((N_HIDDEN, PAD), lambda i: (0, 0)),          # b_h
                pl.BlockSpec((PAD, PAD), lambda i: (0, 0)),               # W_out
                pl.BlockSpec((1, PAD), lambda i: (0, 0)),                 # b_out
            ],
            out_specs=pl.BlockSpec((TM, GROUPS_PAD), lambda i: (i, 0)),
        ),
        compiler_params=pltpu.CompilerParams(
            dimension_semantics=("parallel",)),   # megacore-sharded on v7x
    )(x_packed, wf, bf, wh, bh, wl, bl)

    # Row-major (rows_pad, GROUPS) == packed sample order; drop batch padding.
    return out[:, :GROUPS].reshape(rows_pad * GROUPS, 1)[:N]


def pack_params(params):
    """One-time block-diagonal packing of the true (unpadded) parameters."""
    w_in, b_in, w_h, b_h, w_out, b_out = params
    # Input layer: row g of wf scatters x_g into lane group [g*20, (g+1)*20).
    wf = jnp.zeros((KPAD, PAD), jnp.float32)
    bf = jnp.zeros((1, PAD), jnp.float32)
    # Hidden layers: GROUPS copies of the 20x20 weight along the diagonal.
    wh = jnp.zeros((N_HIDDEN, PAD, PAD), jnp.float32)
    bh = jnp.zeros((N_HIDDEN, PAD), jnp.float32)
    # Output layer: column g reduces lane group g against w_out.
    wl = jnp.zeros((PAD, PAD), jnp.float32)
    bl = jnp.zeros((1, PAD), jnp.float32).at[0, :GROUPS].set(b_out[0, 0])
    for g in range(GROUPS):
        lo, hi = g * HID, (g + 1) * HID
        wf = wf.at[g, lo:hi].set(w_in[0])
        bf = bf.at[0, lo:hi].set(b_in[0])
        wh = wh.at[:, lo:hi, lo:hi].set(w_h)
        bh = bh.at[:, lo:hi].set(b_h)
        wl = wl.at[lo:hi, g].set(w_out[:, 0])
    return (wf, bf, wh, bh, wl, bl)


def init_params(key):
    """Deterministic init mirroring nn.Linear shapes (uniform +-1/sqrt(fan_in))."""
    ks = jax.random.split(key, 6)

    def unif(k, shape, fan_in):
        bound = 1.0 / jnp.sqrt(fan_in)
        return jax.random.uniform(k, shape, jnp.float32, -bound, bound)

    w_in = unif(ks[0], (1, HID), 1.0)               # Linear(1, 20) weight^T
    b_in = unif(ks[1], (1, HID), 1.0)
    w_h = unif(ks[2], (N_HIDDEN, HID, HID), 20.0)   # 9 x Linear(20,20) weight^T
    b_h = unif(ks[3], (N_HIDDEN, HID), 20.0)
    w_out = unif(ks[4], (HID, 1), 20.0)             # Linear(20, 1) weight^T
    b_out = unif(ks[5], (1, 1), 20.0)
    return (w_in, b_in, w_h, b_h, w_out, b_out)


def reference(x, params):
    w_in, b_in, w_h, b_h, w_out, b_out = params
    h = jnp.tanh(x @ w_in + b_in)
    for l in range(N_HIDDEN):
        h = jnp.tanh(h @ w_h[l] + b_h[l][None, :])
    return h @ w_out + b_out


if __name__ == "__main__":
    key = jax.random.PRNGKey(0)
    kx, kp = jax.random.split(key)
    # Not a multiple of 12 or TM*12 -> exercises sample padding AND a 2-step
    # grid (even tile count balances both TensorCores on v7x).
    N = 6200
    x = jax.random.uniform(kx, (N, 1), jnp.float32, -1.0, 1.0)
    params = init_params(kp)
    packed = pack_params(params)   # one-time packing, outside the jitted call

    y = function_approximator(x, packed)
    y = jax.block_until_ready(y)

    y_ref = reference(x, params)
    assert y.shape == (N, 1)
    assert jnp.allclose(y, y_ref, atol=1e-5, rtol=1e-5)
    print("KERNEL_OK")
</pallas_src>

<mosaic_0001>
module attributes {stable_mosaic.version = 11 : i64} {
  func.func @_mlp_kernel(%arg0: i32, %arg1: memref<512x16xf32, #tpu.memory_space<vmem>>, %arg2: memref<16x256xf32, #tpu.memory_space<vmem>>, %arg3: memref<1x256xf32, #tpu.memory_space<vmem>>, %arg4: memref<9x256x256xf32, #tpu.memory_space<vmem>>, %arg5: memref<9x256xf32, #tpu.memory_space<vmem>>, %arg6: memref<256x256xf32, #tpu.memory_space<vmem>>, %arg7: memref<1x256xf32, #tpu.memory_space<vmem>>, %arg8: memref<512x16xf32, #tpu.memory_space<vmem>>) attributes {dimension_semantics = [#tpu.dimension_semantics<parallel>], iteration_bounds = array<i64: 2>, scalar_prefetch = 0 : i64, scratch_operands = 0 : i64, tpu.core_type = #tpu.core_type<tc>, window_params = [{transform_indices = @transform_0, window_bounds = array<i64: 512, 16>}, {pipeline_mode = #tpu.pipeline_mode<synchronous>, transform_indices = @transform_1, window_bounds = array<i64: 16, 256>}, {pipeline_mode = #tpu.pipeline_mode<synchronous>, transform_indices = @transform_2, window_bounds = array<i64: 1, 256>}, {pipeline_mode = #tpu.pipeline_mode<synchronous>, transform_indices = @transform_3, window_bounds = array<i64: 9, 256, 256>}, {pipeline_mode = #tpu.pipeline_mode<synchronous>, transform_indices = @transform_4, window_bounds = array<i64: 9, 256>}, {pipeline_mode = #tpu.pipeline_mode<synchronous>, transform_indices = @transform_5, window_bounds = array<i64: 256, 256>}, {pipeline_mode = #tpu.pipeline_mode<synchronous>, transform_indices = @transform_6, window_bounds = array<i64: 1, 256>}, {transform_indices = @transform_7, window_bounds = array<i64: 512, 16>}]} {
    %c0 = arith.constant 0 : index
    %c0_0 = arith.constant 0 : index
    %0 = vector.load %arg2[%c0, %c0_0] : memref<16x256xf32, #tpu.memory_space<vmem>>, vector<16x256xf32>
    %c0_1 = arith.constant 0 : index
    %c0_2 = arith.constant 0 : index
    %1 = vector.load %arg3[%c0_1, %c0_2] : memref<1x256xf32, #tpu.memory_space<vmem>>, vector<1x256xf32>
    %c0_3 = arith.constant 0 : index
    %c0_4 = arith.constant 0 : index
    %2 = vector.load %arg1[%c0_3, %c0_4] : memref<512x16xf32, #tpu.memory_space<vmem>>, vector<256x16xf32>
    %cst = arith.constant dense<0.000000e+00> : vector<256x256xf32>
    %3 = tpu.matmul %2, %0, %cst {dimension_numbers = #tpu.dot_dimension_numbers<[1], [0], [0], [1], [0, 0, 1, 1], [], []>} : vector<256x16xf32>, vector<16x256xf32>, vector<256x256xf32> -> vector<256x256xf32>
    %4 = vector.broadcast %1 : vector<1x256xf32> to vector<256x256xf32>
    %5 = arith.addf %3, %4 : vector<256x256xf32>
    %6 = math.tanh %5 : vector<256x256xf32>
    %c256 = arith.constant 256 : index
    %c0_5 = arith.constant 0 : index
    %7 = vector.load %arg1[%c256, %c0_5] : memref<512x16xf32, #tpu.memory_space<vmem>>, vector<256x16xf32>
    %cst_6 = arith.constant dense<0.000000e+00> : vector<256x256xf32>
    %8 = tpu.matmul %7, %0, %cst_6 {dimension_numbers = #tpu.dot_dimension_numbers<[1], [0], [0], [1], [0, 0, 1, 1], [], []>} : vector<256x16xf32>, vector<16x256xf32>, vector<256x256xf32> -> vector<256x256xf32>
    %9 = vector.broadcast %1 : vector<1x256xf32> to vector<256x256xf32>
    %10 = arith.addf %8, %9 : vector<256x256xf32>
    %11 = math.tanh %10 : vector<256x256xf32>
    %c0_7 = arith.constant 0 : index
    %c0_8 = arith.constant 0 : index
    %c0_9 = arith.constant 0 : index
    %12 = vector.load %arg4[%c0_7, %c0_8, %c0_9] : memref<9x256x256xf32, #tpu.memory_space<vmem>>, vector<1x256x256xf32>
    %13 = vector.shape_cast %12 : vector<1x256x256xf32> to vector<256x256xf32>
    %c0_10 = arith.constant 0 : index
    %c0_11 = arith.constant 0 : index
    %14 = vector.load %arg5[%c0_10, %c0_11] : memref<9x256xf32, #tpu.memory_space<vmem>>, vector<1x256xf32>
    %cst_12 = arith.constant dense<0.000000e+00> : vector<256x256xf32>
    %15 = tpu.matmul %6, %13, %cst_12 {dimension_numbers = #tpu.dot_dimension_numbers<[1], [0], [0], [1], [0, 0, 1, 1], [], []>} : vector<256x256xf32>, vector<256x256xf32>, vector<256x256xf32> -> vector<256x256xf32>
    %16 = vector.broadcast %14 : vector<1x256xf32> to vector<256x256xf32>
    %17 = arith.addf %15, %16 : vector<256x256xf32>
    %cst_13 = arith.constant dense<0.000000e+00> : vector<256x256xf32>
    %18 = tpu.matmul %11, %13, %cst_13 {dimension_numbers = #tpu.dot_dimension_numbers<[1], [0], [0], [1], [0, 0, 1, 1], [], []>} : vector<256x256xf32>, vector<256x256xf32>, vector<256x256xf32> -> vector<256x256xf32>
    %19 = vector.broadcast %14 : vector<1x256xf32> to vector<256x256xf32>
    %20 = arith.addf %18, %19 : vector<256x256xf32>
    %21 = math.tanh %17 : vector<256x256xf32>
    %22 = math.tanh %20 : vector<256x256xf32>
    %c1 = arith.constant 1 : index
    %c0_14 = arith.constant 0 : index
    %c0_15 = arith.constant 0 : index
    %23 = vector.load %arg4[%c1, %c0_14, %c0_15] : memref<9x256x256xf32, #tpu.memory_space<vmem>>, vector<1x256x256xf32>
    %24 = vector.shape_cast %23 : vector<1x256x256xf32> to vector<256x256xf32>
    %c1_16 = arith.constant 1 : index
    %c0_17 = arith.constant 0 : index
    %25 = vector.load %arg5[%c1_16, %c0_17] : memref<9x256xf32, #tpu.memory_space<vmem>>, vector<1x256xf32>
    %cst_18 = arith.constant dense<0.000000e+00> : vector<256x256xf32>
    %26 = tpu.matmul %21, %24, %cst_18 {dimension_numbers = #tpu.dot_dimension_numbers<[1], [0], [0], [1], [0, 0, 1, 1], [], []>} : vector<256x256xf32>, vector<256x256xf32>, vector<256x256xf32> -> vector<256x256xf32>
    %27 = vector.broadcast %25 : vector<1x256xf32> to vector<256x256xf32>
    %28 = arith.addf %26, %27 : vector<256x256xf32>
    %cst_19 = arith.constant dense<0.000000e+00> : vector<256x256xf32>
    %29 = tpu.matmul %22, %24, %cst_19 {dimension_numbers = #tpu.dot_dimension_numbers<[1], [0], [0], [1], [0, 0, 1, 1], [], []>} : vector<256x256xf32>, vector<256x256xf32>, vector<256x256xf32> -> vector<256x256xf32>
    %30 = vector.broadcast %25 : vector<1x256xf32> to vector<256x256xf32>
    %31 = arith.addf %29, %30 : vector<256x256xf32>
    %32 = math.tanh %28 : vector<256x256xf32>
    %33 = math.tanh %31 : vector<256x256xf32>
    %c2 = arith.constant 2 : index
    %c0_20 = arith.constant 0 : index
    %c0_21 = arith.constant 0 : index
    %34 = vector.load %arg4[%c2, %c0_20, %c0_21] : memref<9x256x256xf32, #tpu.memory_space<vmem>>, vector<1x256x256xf32>
    %35 = vector.shape_cast %34 : vector<1x256x256xf32> to vector<256x256xf32>
    %c2_22 = arith.constant 2 : index
    %c0_23 = arith.constant 0 : index
    %36 = vector.load %arg5[%c2_22, %c0_23] : memref<9x256xf32, #tpu.memory_space<vmem>>, vector<1x256xf32>
    %cst_24 = arith.constant dense<0.000000e+00> : vector<256x256xf32>
    %37 = tpu.matmul %32, %35, %cst_24 {dimension_numbers = #tpu.dot_dimension_numbers<[1], [0], [0], [1], [0, 0, 1, 1], [], []>} : vector<256x256xf32>, vector<256x256xf32>, vector<256x256xf32> -> vector<256x256xf32>
    %38 = vector.broadcast %36 : vector<1x256xf32> to vector<256x256xf32>
    %39 = arith.addf %37, %38 : vector<256x256xf32>
    %cst_25 = arith.constant dense<0.000000e+00> : vector<256x256xf32>
    %40 = tpu.matmul %33, %35, %cst_25 {dimension_numbers = #tpu.dot_dimension_numbers<[1], [0], [0], [1], [0, 0, 1, 1], [], []>} : vector<256x256xf32>, vector<256x256xf32>, vector<256x256xf32> -> vector<256x256xf32>
    %41 = vector.broadcast %36 : vector<1x256xf32> to vector<256x256xf32>
    %42 = arith.addf %40, %41 : vector<256x256xf32>
    %43 = math.tanh %39 : vector<256x256xf32>
    %44 = math.tanh %42 : vector<256x256xf32>
    %c3 = arith.constant 3 : index
    %c0_26 = arith.constant 0 : index
    %c0_27 = arith.constant 0 : index
    %45 = vector.load %arg4[%c3, %c0_26, %c0_27] : memref<9x256x256xf32, #tpu.memory_space<vmem>>, vector<1x256x256xf32>
    %46 = vector.shape_cast %45 : vector<1x256x256xf32> to vector<256x256xf32>
    %c3_28 = arith.constant 3 : index
    %c0_29 = arith.constant 0 : index
    %47 = vector.load %arg5[%c3_28, %c0_29] : memref<9x256xf32, #tpu.memory_space<vmem>>, vector<1x256xf32>
    %cst_30 = arith.constant dense<0.000000e+00> : vector<256x256xf32>
    %48 = tpu.matmul %43, %46, %cst_30 {dimension_numbers = #tpu.dot_dimension_numbers<[1], [0], [0], [1], [0, 0, 1, 1], [], []>} : vector<256x256xf32>, vector<256x256xf32>, vector<256x256xf32> -> vector<256x256xf32>
    %49 = vector.broadcast %47 : vector<1x256xf32> to vector<256x256xf32>
    %50 = arith.addf %48, %49 : vector<256x256xf32>
    %cst_31 = arith.constant dense<0.000000e+00> : vector<256x256xf32>
    %51 = tpu.matmul %44, %46, %cst_31 {dimension_numbers = #tpu.dot_dimension_numbers<[1], [0], [0], [1], [0, 0, 1, 1], [], []>} : vector<256x256xf32>, vector<256x256xf32>, vector<256x256xf32> -> vector<256x256xf32>
    %52 = vector.broadcast %47 : vector<1x256xf32> to vector<256x256xf32>
    %53 = arith.addf %51, %52 : vector<256x256xf32>
    %54 = math.tanh %50 : vector<256x256xf32>
    %55 = math.tanh %53 : vector<256x256xf32>
    %c4 = arith.constant 4 : index
    %c0_32 = arith.constant 0 : index
    %c0_33 = arith.constant 0 : index
    %56 = vector.load %arg4[%c4, %c0_32, %c0_33] : memref<9x256x256xf32, #tpu.memory_space<vmem>>, vector<1x256x256xf32>
    %57 = vector.shape_cast %56 : vector<1x256x256xf32> to vector<256x256xf32>
    %c4_34 = arith.constant 4 : index
    %c0_35 = arith.constant 0 : index
    %58 = vector.load %arg5[%c4_34, %c0_35] : memref<9x256xf32, #tpu.memory_space<vmem>>, vector<1x256xf32>
    %cst_36 = arith.constant dense<0.000000e+00> : vector<256x256xf32>
    %59 = tpu.matmul %54, %57, %cst_36 {dimension_numbers = #tpu.dot_dimension_numbers<[1], [0], [0], [1], [0, 0, 1, 1], [], []>} : vector<256x256xf32>, vector<256x256xf32>, vector<256x256xf32> -> vector<256x256xf32>
    %60 = vector.broadcast %58 : vector<1x256xf32> to vector<256x256xf32>
    %61 = arith.addf %59, %60 : vector<256x256xf32>
    %cst_37 = arith.constant dense<0.000000e+00> : vector<256x256xf32>
    %62 = tpu.matmul %55, %57, %cst_37 {dimension_numbers = #tpu.dot_dimension_numbers<[1], [0], [0], [1], [0, 0, 1, 1], [], []>} : vector<256x256xf32>, vector<256x256xf32>, vector<256x256xf32> -> vector<256x256xf32>
    %63 = vector.broadcast %58 : vector<1x256xf32> to vector<256x256xf32>
    %64 = arith.addf %62, %63 : vector<256x256xf32>
    %65 = math.tanh %61 : vector<256x256xf32>
    %66 = math.tanh %64 : vector<256x256xf32>
    %c5 = arith.constant 5 : index
    %c0_38 = arith.constant 0 : index
    %c0_39 = arith.constant 0 : index
    %67 = vector.load %arg4[%c5, %c0_38, %c0_39] : memref<9x256x256xf32, #tpu.memory_space<vmem>>, vector<1x256x256xf32>
    %68 = vector.shape_cast %67 : vector<1x256x256xf32> to vector<256x256xf32>
    %c5_40 = arith.constant 5 : index
    %c0_41 = arith.constant 0 : index
    %69 = vector.load %arg5[%c5_40, %c0_41] : memref<9x256xf32, #tpu.memory_space<vmem>>, vector<1x256xf32>
    %cst_42 = arith.constant dense<0.000000e+00> : vector<256x256xf32>
    %70 = tpu.matmul %65, %68, %cst_42 {dimension_numbers = #tpu.dot_dimension_numbers<[1], [0], [0], [1], [0, 0, 1, 1], [], []>} : vector<256x256xf32>, vector<256x256xf32>, vector<256x256xf32> -> vector<256x256xf32>
    %71 = vector.broadcast %69 : vector<1x256xf32> to vector<256x256xf32>
    %72 = arith.addf %70, %71 : vector<256x256xf32>
    %cst_43 = arith.constant dense<0.000000e+00> : vector<256x256xf32>
    %73 = tpu.matmul %66, %68, %cst_43 {dimension_numbers = #tpu.dot_dimension_numbers<[1], [0], [0], [1], [0, 0, 1, 1], [], []>} : vector<256x256xf32>, vector<256x256xf32>, vector<256x256xf32> -> vector<256x256xf32>
    %74 = vector.broadcast %69 : vector<1x256xf32> to vector<256x256xf32>
    %75 = arith.addf %73, %74 : vector<256x256xf32>
    %76 = math.tanh %72 : vector<256x256xf32>
    %77 = math.tanh %75 : vector<256x256xf32>
    %c6 = arith.constant 6 : index
    %c0_44 = arith.constant 0 : index
    %c0_45 = arith.constant 0 : index
    %78 = vector.load %arg4[%c6, %c0_44, %c0_45] : memref<9x256x256xf32, #tpu.memory_space<vmem>>, vector<1x256x256xf32>
    %79 = vector.shape_cast %78 : vector<1x256x256xf32> to vector<256x256xf32>
    %c6_46 = arith.constant 6 : index
    %c0_47 = arith.constant 0 : index
    %80 = vector.load %arg5[%c6_46, %c0_47] : memref<9x256xf32, #tpu.memory_space<vmem>>, vector<1x256xf32>
    %cst_48 = arith.constant dense<0.000000e+00> : vector<256x256xf32>
    %81 = tpu.matmul %76, %79, %cst_48 {dimension_numbers = #tpu.dot_dimension_numbers<[1], [0], [0], [1], [0, 0, 1, 1], [], []>} : vector<256x256xf32>, vector<256x256xf32>, vector<256x256xf32> -> vector<256x256xf32>
    %82 = vector.broadcast %80 : vector<1x256xf32> to vector<256x256xf32>
    %83 = arith.addf %81, %82 : vector<256x256xf32>
    %cst_49 = arith.constant dense<0.000000e+00> : vector<256x256xf32>
    %84 = tpu.matmul %77, %79, %cst_49 {dimension_numbers = #tpu.dot_dimension_numbers<[1], [0], [0], [1], [0, 0, 1, 1], [], []>} : vector<256x256xf32>, vector<256x256xf32>, vector<256x256xf32> -> vector<256x256xf32>
    %85 = vector.broadcast %80 : vector<1x256xf32> to vector<256x256xf32>
    %86 = arith.addf %84, %85 : vector<256x256xf32>
    %87 = math.tanh %83 : vector<256x256xf32>
    %88 = math.tanh %86 : vector<256x256xf32>
    %c7 = arith.constant 7 : index
    %c0_50 = arith.constant 0 : index
    %c0_51 = arith.constant 0 : index
    %89 = vector.load %arg4[%c7, %c0_50, %c0_51] : memref<9x256x256xf32, #tpu.memory_space<vmem>>, vector<1x256x256xf32>
    %90 = vector.shape_cast %89 : vector<1x256x256xf32> to vector<256x256xf32>
    %c7_52 = arith.constant 7 : index
    %c0_53 = arith.constant 0 : index
    %91 = vector.load %arg5[%c7_52, %c0_53] : memref<9x256xf32, #tpu.memory_space<vmem>>, vector<1x256xf32>
    %cst_54 = arith.constant dense<0.000000e+00> : vector<256x256xf32>
    %92 = tpu.matmul %87, %90, %cst_54 {dimension_numbers = #tpu.dot_dimension_numbers<[1], [0], [0], [1], [0, 0, 1, 1], [], []>} : vector<256x256xf32>, vector<256x256xf32>, vector<256x256xf32> -> vector<256x256xf32>
    %93 = vector.broadcast %91 : vector<1x256xf32> to vector<256x256xf32>
    %94 = arith.addf %92, %93 : vector<256x256xf32>
    %cst_55 = arith.constant dense<0.000000e+00> : vector<256x256xf32>
    %95 = tpu.matmul %88, %90, %cst_55 {dimension_numbers = #tpu.dot_dimension_numbers<[1], [0], [0], [1], [0, 0, 1, 1], [], []>} : vector<256x256xf32>, vector<256x256xf32>, vector<256x256xf32> -> vector<256x256xf32>
    %96 = vector.broadcast %91 : vector<1x256xf32> to vector<256x256xf32>
    %97 = arith.addf %95, %96 : vector<256x256xf32>
    %98 = math.tanh %94 : vector<256x256xf32>
    %99 = math.tanh %97 : vector<256x256xf32>
    %c8 = arith.constant 8 : index
    %c0_56 = arith.constant 0 : index
    %c0_57 = arith.constant 0 : index
    %100 = vector.load %arg4[%c8, %c0_56, %c0_57] : memref<9x256x256xf32, #tpu.memory_space<vmem>>, vector<1x256x256xf32>
    %101 = vector.shape_cast %100 : vector<1x256x256xf32> to vector<256x256xf32>
    %c8_58 = arith.constant 8 : index
    %c0_59 = arith.constant 0 : index
    %102 = vector.load %arg5[%c8_58, %c0_59] : memref<9x256xf32, #tpu.memory_space<vmem>>, vector<1x256xf32>
    %cst_60 = arith.constant dense<0.000000e+00> : vector<256x256xf32>
    %103 = tpu.matmul %98, %101, %cst_60 {dimension_numbers = #tpu.dot_dimension_numbers<[1], [0], [0], [1], [0, 0, 1, 1], [], []>} : vector<256x256xf32>, vector<256x256xf32>, vector<256x256xf32> -> vector<256x256xf32>
    %104 = vector.broadcast %102 : vector<1x256xf32> to vector<256x256xf32>
    %105 = arith.addf %103, %104 : vector<256x256xf32>
    %cst_61 = arith.constant dense<0.000000e+00> : vector<256x256xf32>
    %106 = tpu.matmul %99, %101, %cst_61 {dimension_numbers = #tpu.dot_dimension_numbers<[1], [0], [0], [1], [0, 0, 1, 1], [], []>} : vector<256x256xf32>, vector<256x256xf32>, vector<256x256xf32> -> vector<256x256xf32>
    %107 = vector.broadcast %102 : vector<1x256xf32> to vector<256x256xf32>
    %108 = arith.addf %106, %107 : vector<256x256xf32>
    %109 = math.tanh %105 : vector<256x256xf32>
    %110 = math.tanh %108 : vector<256x256xf32>
    %c0_62 = arith.constant 0 : index
    %c0_63 = arith.constant 0 : index
    %111 = vector.load %arg6[%c0_62, %c0_63] : memref<256x256xf32, #tpu.memory_space<vmem>>, vector<256x256xf32>
    %c0_64 = arith.constant 0 : index
    %c0_65 = arith.constant 0 : index
    %112 = vector.load %arg7[%c0_64, %c0_65] : memref<1x256xf32, #tpu.memory_space<vmem>>, vector<1x256xf32>
    %cst_66 = arith.constant dense<0.000000e+00> : vector<256x256xf32>
    %113 = tpu.matmul %109, %111, %cst_66 {dimension_numbers = #tpu.dot_dimension_numbers<[1], [0], [0], [1], [0, 0, 1, 1], [], []>} : vector<256x256xf32>, vector<256x256xf32>, vector<256x256xf32> -> vector<256x256xf32>
    %114 = vector.broadcast %112 : vector<1x256xf32> to vector<256x256xf32>
    %115 = arith.addf %113, %114 : vector<256x256xf32>
    %cst_67 = arith.constant dense<0.000000e+00> : vector<256x256xf32>
    %116 = tpu.matmul %110, %111, %cst_67 {dimension_numbers = #tpu.dot_dimension_numbers<[1], [0], [0], [1], [0, 0, 1, 1], [], []>} : vector<256x256xf32>, vector<256x256xf32>, vector<256x256xf32> -> vector<256x256xf32>
    %117 = vector.broadcast %112 : vector<1x256xf32> to vector<256x256xf32>
    %118 = arith.addf %116, %117 : vector<256x256xf32>
    %119 = vector.extract_strided_slice %115 {offsets = [0, 0], sizes = [256, 16], strides = [1, 1]} : vector<256x256xf32> to vector<256x16xf32>
    %c0_68 = arith.constant 0 : index
    %c0_69 = arith.constant 0 : index
    %120 = vector.load %arg8[%c0_68, %c0_69] : memref<512x16xf32, #tpu.memory_space<vmem>>, vector<256x16xf32>
    tpu.vector_store %arg8[%c0_68, %c0_69], %119 {strides = array<i32>} : memref<512x16xf32, #tpu.memory_space<vmem>>, vector<256x16xf32>,
    %121 = vector.extract_strided_slice %118 {offsets = [0, 0], sizes = [256, 16], strides = [1, 1]} : vector<256x256xf32> to vector<256x16xf32>
    %c256_70 = arith.constant 256 : index
    %c0_71 = arith.constant 0 : index
    %122 = vector.load %arg8[%c256_70, %c0_71] : memref<512x16xf32, #tpu.memory_space<vmem>>, vector<256x16xf32>
    tpu.vector_store %arg8[%c256_70, %c0_71], %121 {strides = array<i32>} : memref<512x16xf32, #tpu.memory_space<vmem>>, vector<256x16xf32>,
    return
  }
  func.func @transform_0(%arg0: i32) -> (i32, i32) {
    %c0_i32 = arith.constant 0 : i32
    %c0_i32_0 = arith.constant 0 : i32
    return %arg0, %c0_i32 : i32, i32
  }
  func.func @transform_1(%arg0: i32) -> (i32, i32) {
    %c0_i32 = arith.constant 0 : i32
    %c0_i32_0 = arith.constant 0 : i32
    %c0_i32_1 = arith.constant 0 : i32
    return %c0_i32, %c0_i32_0 : i32, i32
  }
  func.func @transform_2(%arg0: i32) -> (i32, i32) {
    %c0_i32 = arith.constant 0 : i32
    %c0_i32_0 = arith.constant 0 : i32
    %c0_i32_1 = arith.constant 0 : i32
    return %c0_i32, %c0_i32_0 : i32, i32
  }
  func.func @transform_3(%arg0: i32) -> (i32, i32, i32) {
    %c0_i32 = arith.constant 0 : i32
    %c0_i32_0 = arith.constant 0 : i32
    %c0_i32_1 = arith.constant 0 : i32
    %c0_i32_2 = arith.constant 0 : i32
    return %c0_i32, %c0_i32_0, %c0_i32_1 : i32, i32, i32
  }
  func.func @transform_4(%arg0: i32) -> (i32, i32) {
    %c0_i32 = arith.constant 0 : i32
    %c0_i32_0 = arith.constant 0 : i32
    %c0_i32_1 = arith.constant 0 : i32
    return %c0_i32, %c0_i32_0 : i32, i32
  }
  func.func @transform_5(%arg0: i32) -> (i32, i32) {
    %c0_i32 = arith.constant 0 : i32
    %c0_i32_0 = arith.constant 0 : i32
    %c0_i32_1 = arith.constant 0 : i32
    return %c0_i32, %c0_i32_0 : i32, i32
  }
  func.func @transform_6(%arg0: i32) -> (i32, i32) {
    %c0_i32 = arith.constant 0 : i32
    %c0_i32_0 = arith.constant 0 : i32
    %c0_i32_1 = arith.constant 0 : i32
    return %c0_i32, %c0_i32_0 : i32, i32
  }
  func.func @transform_7(%arg0: i32) -> (i32, i32) {
    %c0_i32 = arith.constant 0 : i32
    %c0_i32_0 = arith.constant 0 : i32
    return %arg0, %c0_i32 : i32, i32
  }
}

</mosaic_0001>

<bundles_post_ra>
// kernel: function_approximator.1
= control target key start
LH: loop header
LB: loop body
LE: loop exit
PB: predicated region body
PF: predicated region fallthrough
CT: control target
= control target key end

     0   :  { %12 = vsyncpa [#allocation3], 0  ;;  %s14655_s0 = inlined_call_operand.vmem [shape: f32[1024,16], index: 0, kind: input, shape index: {}]   ;;  %s14656_s1 = inlined_call_operand.hbm [shape: f32[16,256], index: 1, kind: input, shape index: {}]   ;;  %s14657_s2 = inlined_call_operand.hbm [shape: f32[1,256], index: 2, kind: input, shape index: {}]   ;;  %s14658_s3 = inlined_call_operand.hbm [shape: f32[9,256,256], index: 3, kind: input, shape index: {}]   ;;  %s14659_s4 = inlined_call_operand.hbm [shape: f32[9,256], index: 4, kind: input, shape index: {}]   ;;  %s14660_s5 = inlined_call_operand.hbm [shape: f32[256,256], index: 5, kind: input, shape index: {}]   ;;  %s14661_s6 = inlined_call_operand.hbm [shape: f32[1,256], index: 6, kind: input, shape index: {}]   ;;  %s14662_s7 = inlined_call_operand.vmem [shape: f32[1024,16], index: 7, kind: output, shape index: {}]  }
   0x1   :  { %13 = vsyncpa [#allocation5], 0 }
   0x2   :  { %14 = vsyncpa [#allocation8], 0 }
   0x3   :  { %15 = vsyncpa [#allocation11], 0  ;;  %s12708_s24 = smov 0  }
   0x4 LB: > { %s12659_s25 = smov [#allocation4]   ;;  %s8460_s27 = sadd.s32 4294967295, %s12657_s24   ;;  %s12657_s24 = sphi %s12708_s24, %s21_s24  }
   0x5   : > { %s230_s26 = sshll.u32 %s12659_s25, 4  ;;  %p8462_p0 = scmp.ge.s32.totalorder %s12657_s24, 1  ;;  %s12722_s26 = int_to_ptr.vmem [resolvable:$true] %s230_s26 }
   0x6   : > { %p204_p1 = scmp.lt.s32.totalorder %s12657_s24, 3  ;;  %p12718_p2 = scmp.eq.s32.totalorder %s8460_s27, 0 }
   0x7   : > { %s12660_s30 = smov [#allocation7]   ;;  %s12661_s10 = smov [#allocation2]  }
   0x8   : > { %s14666_s28 = scalar_select %p12718_p2, 1, 0 }
   0x9   : > { %p12724_p3 = pnand %p8462_p0, %p204_p1  ;;  %s253_s8 = sshll.u32 %s12660_s30, 4  ;;  %s12730_s8 = int_to_ptr.vmem [resolvable:$true] %s253_s8 }
   0xa   : > { %s216_s11 = sshll.u32 %s12661_s10, 4  ;;  %s12662_s12 = smov [#allocation6]   ;;  %s12738_s11 = int_to_ptr.vmem [resolvable:$true] %s216_s11 }
   0xb   : > { %s14667_s29 = scalar_select %p12724_p3, 1, 0 }
   0xc   : > { %p9859_p4 = pneg %p12724_p3  ;;  %s12740_s13 = sshll.u32 %s12662_s12, 4  ;;  %s241_s13 = int_to_ptr.vmem [resolvable:$true] %s12740_s13 }
   0xd   : > { %s12467_s16 = scalar_lea.hbm %s14657_s2, 32 }
   0xe   : > { %p12734_p5 = pnand %p12718_p2, %p9859_p4  ;;  %p12468_p6 = scmp.ne.s32.totalorder %s14657_s2, %s12467_s16 }
   0xf   : > { %p12474_p10 = scmp.lt.u32.totalorder %s12467_s16, %s14657_s2 }
  0x10   : > { %p12750_p7 = pneg %p12734_p5 }
  0x12   : > { %p12470_p8 = pnand %p12750_p7, %p12468_p6 }
  0x14   : > { %p12471_p9 = pneg %p12470_p8 }
  0x16   : > { %p12476_p11 = pnand %p12474_p10, %p12471_p9 }
  0x18   : > { %12479 = shalt.err (!%p12476_p11)
}
  0x19   : > { %s12480_s22 = scalar_lea.vmem %s12722_s26, 32  ;;  %p12488_p1 = scmp.lt.s32.totalorder %s12722_s26, %s12722_s26 }
  0x1a   : > { %p12481_p12 = scmp.ne.s32.totalorder %s12722_s26, %s12480_s22  ;;  %p12489_p4 = scmp.lt.s32.totalorder %s12480_s22, %s12480_s22 }
  0x1c   : > { %p12483_p13 = pnand %p12481_p12, %p12750_p7  ;;  %p12490_p6 = por %p12489_p4, %p12488_p1 }
  0x1e   : > { %p12484_p0 = pneg %p12483_p13 }
  0x20   : > { %p12491_p8 = pnand %p12490_p6, %p12484_p0 }
  0x22   : > { %12494 = shalt.err (!%p12491_p8)
}
  0x23   : > { %9865 = dma.hbm_to_vmem [thread:$0]  (!%p12734_p5), %s14657_s2, 32, %s12722_s26, [#allocation5]  }
  0x24   : > { %s12495_s12 = scalar_lea.hbm %s14659_s4, 512 }
  0x25   : > { %p12496_p9 = scmp.ne.s32.totalorder %s14659_s4, %s12495_s12  ;;  %p12502_p12 = scmp.lt.u32.totalorder %s12495_s12, %s14659_s4 }
  0x27   : > { %p12498_p10 = pnand %p12496_p9, %p12750_p7 }
  0x29   : > { %p12499_p11 = pneg %p12498_p10 }
  0x2b   : > { %p12504_p13 = pnand %p12502_p12, %p12499_p11 }
  0x2d   : > { %12507 = shalt.err (!%p12504_p13)
}
  0x2e   : > { %s12508_s26 = scalar_lea.vmem %s12730_s8, 512  ;;  %p12516_p6 = scmp.lt.s32.totalorder %s12730_s8, %s12730_s8 }
  0x2f   : > { %p12509_p0 = scmp.ne.s32.totalorder %s12730_s8, %s12508_s26  ;;  %p12517_p8 = scmp.lt.s32.totalorder %s12508_s26, %s12508_s26 }
  0x31   : > { %p12511_p1 = pnand %p12509_p0, %p12750_p7  ;;  %p12518_p9 = por %p12517_p8, %p12516_p6 }
  0x33   : > { %p12512_p4 = pneg %p12511_p1 }
  0x35   : > { %p12519_p10 = pnand %p12518_p9, %p12512_p4 }
  0x37   : > { %12522 = shalt.err (!%p12519_p10)
}
  0x38   : > { %s12663_s18 = smov 256   ;;  %s12664_s20 = smov 16  }
  0x39   : > { %9871 = dma.hbm_to_vmem [thread:$0]  (!%p12734_p5), %s14659_s4, 512, %s12730_s8, [#allocation8], %s12663_s18, %s12663_s18, %s12664_s20  }
  0x3a   : > { %s12523_s30 = scalar_lea.hbm %s14656_s1, 512 }
  0x3b   : > { %p12524_p11 = scmp.ne.s32.totalorder %s14656_s1, %s12523_s30  ;;  %p12530_p0 = scmp.lt.u32.totalorder %s12523_s30, %s14656_s1 }
  0x3d   : > { %p12526_p12 = pnand %p12524_p11, %p12750_p7 }
  0x3f   : > { %p12527_p13 = pneg %p12526_p12 }
  0x41   : > { %p12532_p1 = pnand %p12530_p0, %p12527_p13 }
  0x43   : > { %12535 = shalt.err (!%p12532_p1)
}
  0x44   : > { %s12536_s8 = scalar_lea.vmem %s12738_s11, 512  ;;  %p12544_p9 = scmp.lt.s32.totalorder %s12738_s11, %s12738_s11 }
  0x45   : > { %p12537_p4 = scmp.ne.s32.totalorder %s12738_s11, %s12536_s8  ;;  %p12545_p10 = scmp.lt.s32.totalorder %s12536_s8, %s12536_s8 }
  0x47   : > { %p12539_p6 = pnand %p12537_p4, %p12750_p7  ;;  %p12546_p11 = por %p12545_p10, %p12544_p9 }
  0x49   : > { %p12540_p8 = pneg %p12539_p6 }
  0x4b   : > { %p12547_p12 = pnand %p12546_p11, %p12540_p8 }
  0x4d   : > { %12550 = shalt.err (!%p12547_p12)
}
  0x4e   : > { %9862 = dma.hbm_to_vmem [thread:$0]  (!%p12734_p5), %s14656_s1, 512, %s12738_s11, [#allocation3], %s12663_s18, %s12663_s18, %s12664_s20  }
  0x4f   : > { %s12551_s22 = scalar_lea.hbm %s14658_s3, 73728 }
  0x50   : > { %p12552_p13 = scmp.ne.s32.totalorder %s14658_s3, %s12551_s22  ;;  %p12558_p4 = scmp.lt.u32.totalorder %s12551_s22, %s14658_s3 }
  0x52   : > { %p12554_p0 = pnand %p12552_p13, %p12750_p7 }
  0x54   : > { %p12555_p1 = pneg %p12554_p0 }
  0x56   : > { %p12560_p6 = pnand %p12558_p4, %p12555_p1 }
  0x58   : > { %12563 = shalt.err (!%p12560_p6)
}
  0x59   : > { %s12564_s12 = scalar_lea.vmem %s241_s13, 73728  ;;  %p12572_p11 = scmp.lt.s32.totalorder %s241_s13, %s241_s13 }
  0x5a   : > { %p12565_p8 = scmp.ne.s32.totalorder %s241_s13, %s12564_s12  ;;  %p12573_p12 = scmp.lt.s32.totalorder %s12564_s12, %s12564_s12 }
  0x5c   : > { %p12567_p9 = pnand %p12565_p8, %p12750_p7  ;;  %p12574_p2 = por %p12573_p12, %p12572_p11 }
  0x5e   : > { %p12568_p10 = pneg %p12567_p9 }
  0x60   : > { %p12575_p3 = pnand %p12574_p2, %p12568_p10 }
  0x62   : > { %12578 = shalt.err (!%p12575_p3)
}
  0x63   : > { %9868 = dma.hbm_to_vmem [thread:$0]  (!%p12734_p5), %s14658_s3, 73728, %s241_s13, [#allocation5], %s12663_s18, %s12663_s18, %s12664_s20  }
  0x64   : > { %s12665_s15 = smov [#allocation9]   ;;  %s12666_s16 = smov [#allocation10]  }
  0x65   : > { %s266_s8 = sshll.u32 %s12665_s15, 4  ;;  %s280_s17 = sshll.u32 %s12666_s16, 4  ;;  %s267_s8 = int_to_ptr.vmem [resolvable:$true] %s266_s8  ;;  %s281_s17 = int_to_ptr.vmem [resolvable:$true] %s280_s17 }
  0x66   : > { %s12579_s22 = scalar_lea.hbm %s14660_s5, 8192 }
  0x67   : > { %p12580_p2 = scmp.ne.s32.totalorder %s14660_s5, %s12579_s22  ;;  %p12586_p0 = scmp.lt.u32.totalorder %s12579_s22, %s14660_s5 }
  0x69   : > { %p12582_p3 = pnand %p12580_p2, %p12750_p7 }
  0x6b   : > { %p12583_p13 = pneg %p12582_p3 }
  0x6d   : > { %p12588_p1 = pnand %p12586_p0, %p12583_p13 }
  0x6f   : > { %12591 = shalt.err (!%p12588_p1)
}
  0x70   : > { %s12592_s13 = scalar_lea.vmem %s267_s8, 8192  ;;  %p12600_p9 = scmp.lt.s32.totalorder %s267_s8, %s267_s8 }
  0x71   : > { %p12593_p4 = scmp.ne.s32.totalorder %s267_s8, %s12592_s13  ;;  %p12601_p10 = scmp.lt.s32.totalorder %s12592_s13, %s12592_s13 }
  0x73   : > { %p12595_p6 = pnand %p12593_p4, %p12750_p7  ;;  %p12602_p11 = por %p12601_p10, %p12600_p9 }
  0x75   : > { %p12596_p8 = pneg %p12595_p6 }
  0x77   : > { %p12603_p12 = pnand %p12602_p11, %p12596_p8 }
  0x79   : > { %12606 = shalt.err (!%p12603_p12)
}
  0x7a   : > { %9874 = dma.hbm_to_vmem [thread:$0]  (!%p12734_p5), %s14660_s5, 8192, %s267_s8, [#allocation8], %s12663_s18, %s12663_s18, %s12664_s20  }
  0x7b   : > { %s12607_s16 = scalar_lea.hbm %s14661_s6, 32 }
  0x7c   : > { %p12608_p2 = scmp.ne.s32.totalorder %s14661_s6, %s12607_s16  ;;  %p12614_p0 = scmp.lt.u32.totalorder %s12607_s16, %s14661_s6 }
  0x7e   : > { %p12610_p3 = pnand %p12608_p2, %p12750_p7 }
  0x80   : > { %p12611_p13 = pneg %p12610_p3 }
  0x82   : > { %p12616_p1 = pnand %p12614_p0, %p12611_p13 }
  0x84   : > { %12619 = shalt.err (!%p12616_p1)
}
  0x85   : > { %s12620_s25 = scalar_lea.vmem %s281_s17, 32  ;;  %p12628_p9 = scmp.lt.s32.totalorder %s281_s17, %s281_s17 }
  0x86   : > { %p12621_p4 = scmp.ne.s32.totalorder %s281_s17, %s12620_s25  ;;  %p12629_p10 = scmp.lt.s32.totalorder %s12620_s25, %s12620_s25 }
  0x88   : > { %p12623_p6 = pnand %p12621_p4, %p12750_p7  ;;  %p12630_p11 = por %p12629_p10, %p12628_p9 }
  0x8a   : > { %p12624_p8 = pneg %p12623_p6 }
  0x8c   : > { %p12631_p12 = pnand %p12630_p11, %p12624_p8 }
  0x8e   : > { %12634 = shalt.err (!%p12631_p12)
}
  0x8f   : > { %9877 = dma.hbm_to_vmem [thread:$0]  (!%p12734_p5), %s14661_s6, 32, %s281_s17, [#allocation11]  }
  0x90   : > { %p14670_p2 = scmp.ne.s32.totalorder %s14667_s29, 0 }
  0x91   : > { %p14671_p3 = scmp.ne.s32.totalorder (!%p14670_p2), %s14666_s28, 0 }
  0x92   : > { %302 = sbr.rel (%p14670_p2) target bundleno = 2788 (0xae4), region = 48 }
  0x99   : > { %12640 = dma.done.wait (%p14671_p3), [#allocation3], 512  }
  0x9a   : > { %12642 = vsyncadd (%p14671_p3), [#allocation3], 4294966784 }
  0x9b   : > { %12644 = dma.done.wait (%p14671_p3), [#allocation5], 73760  }
  0x9c   : > { %12646 = vsyncadd (%p14671_p3), [#allocation5], 4294893536 }
  0x9d   : > { %12648 = dma.done.wait (%p14671_p3), [#allocation8], 8704  }
  0x9e   : > { %12650 = vsyncadd (%p14671_p3), [#allocation8], 4294958592 }
  0x9f   : > { %12652 = dma.done.wait (%p14671_p3), [#allocation11], 32  }
  0xa0   : > { %12654 = vsyncadd (%p14671_p3), [#allocation11], 4294967264  ;;  %s8477_s29 = sshll.u32 %s8460_s27, 6  ;;  %v12667_v0 = vmov 0.0   ;;  %v367_v1 = vld [vmem:[#allocation2 + $0x8] sm:$0xff]  ;;  %v369_v2 = vld [vmem:[#allocation2 + $0x18] sm:$0xff] }
  0xa1   : > { %575 = vmatprep.mubr.f32.mxu0 %v12667_v0  ;;  %1024 = vmatprep.mubr.f32.mxu1 %v12667_v0  ;;  %p355_p5 = scmp.lt.s32.totalorder %s8477_s29, 127  ;;  %v366_v3 = vld [vmem:[#allocation2] sm:$0xff]  ;;  %v8547_v4 = vpack.c.bf16 %v369_v2, %v367_v1  ;;  %v368_v5 = vld [vmem:[#allocation2 + $0x10] sm:$0xff]  ;;  %vm414_vm0 = vcmask 130048  }
  0xa2   : > { %v8549_v6 = vpack.c.bf16 %v368_v5, %v366_v3  ;;  %v1282_v15 = vld [vmem:[#allocation6 + $0x8] sm:$0xff]  ;;  %v1284_v16 = vld [vmem:[#allocation6 + $0x18] sm:$0xff]  ;;  %v1281_v17 = vld [vmem:[#allocation6] sm:$0xff] }
  0xa3   : > { %s14673_s29 = smov (!%p355_p5, %s8477_s29), 127  ;;  %8548 = vmatprep.subr.bf16.mxu0 %v8547_v4  ;;  %8552 = vmatprep.subr.bf16.mxu1 %v8547_v4  ;;  %v8555_v18 = vpack.c.bf16 %v1284_v16, %v1282_v15  ;;  %v1283_v19 = vld [vmem:[#allocation6 + $0x10] sm:$0xff]  ;;  %v1286_v23 = vld [vmem:[#allocation6 + $0x28] sm:$0xff]  ;;  %v1288_v24 = vld [vmem:[#allocation6 + $0x38] sm:$0xff] }
  0xa4   : > { %s8478_s9 = sshll.u32 %s14673_s29, 3  ;;  %8550 = vmatpush1.bf16.msra.mxu0 %v8549_v6  ;;  %8554 = vmatpush1.bf16.msra.mxu1 %v8549_v6  ;;  %v8557_v22 = vpack.c.bf16 %v1283_v19, %v1281_v17  ;;  %v1285_v25 = vld [vmem:[#allocation6 + $0x20] sm:$0xff]  ;;  %v1287_v26 = vld [vmem:[#allocation6 + $0x30] sm:$0xff]  ;;  %v8559_v27 = vpack.c.bf16 %v1288_v24, %v1286_v23  ;;  %v1290_v30 = vld [vmem:[#allocation6 + $0x48] sm:$0xff] }
  0xa5   : > { %s12914_s27 = scalar_lea.vmem %s14655_s0, %s8478_s9  ;;  %8556 = vmatprep.subr.bf16.mxu0 %v8555_v18  ;;  %8620 = vmatprep.subr.bf16.mxu1 %v8555_v18  ;;  %v8561_v28 = vpack.c.bf16 %v1287_v26, %v1285_v25  ;;  %v1292_v31 = vld [vmem:[#allocation6 + $0x58] sm:$0xff]  ;;  %v1289_v33 = vld [vmem:[#allocation6 + $0x40] sm:$0xff]  ;;  %v1291_v34 = vld [vmem:[#allocation6 + $0x50] sm:$0xff]  ;;  %s14458_s30 = scalar_lea.vmem %s14662_s7, %s8478_s9 }
  0xa6   : > { %v371_v7 = vld [vmem:[%s12914_s27] sm:$0xff]  ;;  %v372_v9 = vld [vmem:[%s12914_s27 + $0x8] sm:$0xff]  ;;  %v373_v11 = vld [vmem:[%s12914_s27 + $0x10] sm:$0xff]  ;;  %v8563_v35 = vpack.c.bf16 %v1292_v31, %v1290_v30  ;;  %v8565_v36 = vpack.c.bf16 %v1291_v34, %v1289_v33 }
  0xa7   : > { %v832_v8 = vld [vmem:[%s12914_s27 + $0x100] sm:$0xff]  ;;  %8481 = vmatmul.mubr.msk.f32.vlgmr.msra.gmra.mrb[0].mxu0 %vm414_vm0, %v371_v7  ;;  %v833_v10 = vld [vmem:[%s12914_s27 + $0x108] sm:$0xff]  ;;  %v834_v12 = vld [vmem:[%s12914_s27 + $0x110] sm:$0xff] }
  0xa8   : > { %8513 = vmatmul.mubr.msk.f32.vlgmr.msra.gmra.mrb[0].mxu1 %vm414_vm0, %v832_v8  ;;  %581 = vmatprep.mubr.f32.mxu0 %v12667_v0  ;;  %v374_v13 = vld [vmem:[%s12914_s27 + $0x18] sm:$0xff]  ;;  %v375_v20 = vld [vmem:[%s12914_s27 + $0x20] sm:$0xff]  ;;  %v376_v29 = vld [vmem:[%s12914_s27 + $0x28] sm:$0xff] }
  0xa9   : > { %1030 = vmatprep.mubr.f32.mxu1 %v12667_v0  ;;  %v835_v14 = vld [vmem:[%s12914_s27 + $0x118] sm:$0xff]  ;;  %v836_v21 = vld [vmem:[%s12914_s27 + $0x120] sm:$0xff]  ;;  %8558 = vmatpush1.bf16.msra.mxu0 %v8557_v22  ;;  %v837_v32 = vld [vmem:[%s12914_s27 + $0x128] sm:$0xff] }
  0xaa   : > { %8622 = vmatpush1.bf16.msra.mxu1 %v8557_v22  ;;  %8560 = vmatprep.subr.bf16.mxu0 %v8559_v27  ;;  %v1294_v37 = vld [vmem:[#allocation6 + $0x68] sm:$0xff]  ;;  %v1296_v38 = vld [vmem:[#allocation6 + $0x78] sm:$0xff]  ;;  %v1293_v39 = vld [vmem:[#allocation6 + $0x60] sm:$0xff] }
  0xab   : > { %8482 = vmatmul.mubr.msk.f32.gmra.mrb[2].mxu0 %vm414_vm0, %v372_v9  ;;  %8624 = vmatprep.subr.bf16.mxu1 %v8559_v27  ;;  %v1295_v40 = vld [vmem:[#allocation6 + $0x70] sm:$0xff]  ;;  %v8567_v43 = vpack.c.bf16 %v1296_v38, %v1294_v37  ;;  %v1298_v45 = vld [vmem:[#allocation6 + $0x88] sm:$0xff]  ;;  %v1300_v46 = vld [vmem:[#allocation6 + $0x98] sm:$0xff] }
  0xac   : > { %8514 = vmatmul.mubr.msk.f32.gmra.mrb[2].mxu1 %vm414_vm0, %v833_v10  ;;  %587 = vmatprep.mubr.f32.mxu0 %v12667_v0  ;;  %v377_v41 = vld [vmem:[%s12914_s27 + $0x30] sm:$0xff]  ;;  %v8569_v44 = vpack.c.bf16 %v1295_v40, %v1293_v39  ;;  %v1297_v47 = vld [vmem:[#allocation6 + $0x80] sm:$0xff]  ;;  %v378_v49 = vld [vmem:[%s12914_s27 + $0x38] sm:$0xff]  ;;  %v8571_v51 = vpack.c.bf16 %v1300_v46, %v1298_v45 }
  0xad   : > { %1036 = vmatprep.mubr.f32.mxu1 %v12667_v0  ;;  %8562 = vmatpush1.bf16.msra.mxu0 %v8561_v28  ;;  %v838_v42 = vld [vmem:[%s12914_s27 + $0x130] sm:$0xff]  ;;  %v839_v50 = vld [vmem:[%s12914_s27 + $0x138] sm:$0xff]  ;;  %v1301_v55 = vld [vmem:[#allocation6 + $0xa0] sm:$0xff] }
  0xae   : > { %8626 = vmatpush1.bf16.msra.mxu1 %v8561_v28  ;;  %8564 = vmatprep.subr.bf16.mxu0 %v8563_v35  ;;  %v1299_v48 = vld [vmem:[#allocation6 + $0x90] sm:$0xff]  ;;  %v1302_v53 = vld [vmem:[#allocation6 + $0xa8] sm:$0xff]  ;;  %v1304_v54 = vld [vmem:[#allocation6 + $0xb8] sm:$0xff] }
  0xaf   : > { %8483 = vmatmul.mubr.msk.f32.gmra.mrb[4].mxu0 %vm414_vm0, %v373_v11  ;;  %8628 = vmatprep.subr.bf16.mxu1 %v8563_v35  ;;  %v8573_v52 = vpack.c.bf16 %v1299_v48, %v1297_v47  ;;  %v1303_v56 = vld [vmem:[#allocation6 + $0xb0] sm:$0xff]  ;;  %v379_v57 = vld [vmem:[%s12914_s27 + $0x40] sm:$0xff]  ;;  %v8575_v59 = vpack.c.bf16 %v1304_v54, %v1302_v53  ;;  %v1306_v61 = vld [vmem:[#allocation6 + $0xc8] sm:$0xff] }
  0xb0   : > { %8515 = vmatmul.mubr.msk.f32.gmra.mrb[4].mxu1 %vm414_vm0, %v834_v12  ;;  %593 = vmatprep.mubr.f32.mxu0 %v12667_v0  ;;  %v840_v58 = vld [vmem:[%s12914_s27 + $0x140] sm:$0xff]  ;;  %v8577_v60 = vpack.c.bf16 %v1303_v56, %v1301_v55  ;;  %v1307_v1 = vld [vmem:[#allocation6 + $0xd0] sm:$0xff]  ;;  %v380_v2 = vld [vmem:[%s12914_s27 + $0x48] sm:$0xff] }
  0xb1   : > { %1042 = vmatprep.mubr.f32.mxu1 %v12667_v0  ;;  %8566 = vmatpush1.bf16.msra.mxu0 %v8565_v36  ;;  %v1308_v62 = vld [vmem:[#allocation6 + $0xd8] sm:$0xff]  ;;  %v1305_v63 = vld [vmem:[#allocation6 + $0xc0] sm:$0xff]  ;;  %v1310_v6 = vld [vmem:[#allocation6 + $0xe8] sm:$0xff] }
  0xb2   : > { %8630 = vmatpush1.bf16.msra.mxu1 %v8565_v36  ;;  %8568 = vmatprep.subr.bf16.mxu0 %v8567_v43  ;;  %v841_v3 = vld [vmem:[%s12914_s27 + $0x148] sm:$0xff]  ;;  %v8579_v4 = vpack.c.bf16 %v1308_v62, %v1306_v61  ;;  %v8581_v5 = vpack.c.bf16 %v1307_v1, %v1305_v63  ;;  %v1312_v7 = vld [vmem:[#allocation6 + $0xf8] sm:$0xff]  ;;  %v1311_v9 = vld [vmem:[#allocation6 + $0xf0] sm:$0xff] }
  0xb3   : > { %8484 = vmatmul.mubr.msk.f32.gmra.mrb[6].mxu0 %vm414_vm0, %v374_v13  ;;  %8632 = vmatprep.subr.bf16.mxu1 %v8567_v43  ;;  %v1309_v8 = vld [vmem:[#allocation6 + $0xe0] sm:$0xff]  ;;  %v381_v10 = vld [vmem:[%s12914_s27 + $0x50] sm:$0xff]  ;;  %v8583_v12 = vpack.c.bf16 %v1312_v7, %v1310_v6  ;;  %v1316_v15 = vld [vmem:[#allocation6 + $0x118] sm:$0xff] }
  0xb4   : > { %8516 = vmatmul.mubr.msk.f32.gmra.mrb[6].mxu1 %vm414_vm0, %v835_v14  ;;  %599 = vmatprep.mubr.f32.mxu0 %v12667_v0  ;;  %v842_v11 = vld [vmem:[%s12914_s27 + $0x150] sm:$0xff]  ;;  %v8585_v13 = vpack.c.bf16 %v1311_v9, %v1309_v8  ;;  %v1313_v16 = vld [vmem:[#allocation6 + $0x100] sm:$0xff]  ;;  %v382_v18 = vld [vmem:[%s12914_s27 + $0x58] sm:$0xff] }
  0xb5   : > { %1048 = vmatprep.mubr.f32.mxu1 %v12667_v0  ;;  %8570 = vmatpush1.bf16.msra.mxu0 %v8569_v44  ;;  %v1314_v14 = vld [vmem:[#allocation6 + $0x108] sm:$0xff]  ;;  %v1315_v17 = vld [vmem:[#allocation6 + $0x110] sm:$0xff]  ;;  %v1320_v23 = vld [vmem:[#allocation6 + $0x138] sm:$0xff] }
  0xb6   : > { %8634 = vmatpush1.bf16.msra.mxu1 %v8569_v44  ;;  %8572 = vmatprep.subr.bf16.mxu0 %v8571_v51  ;;  %v843_v19 = vld [vmem:[%s12914_s27 + $0x158] sm:$0xff]  ;;  %v1318_v22 = vld [vmem:[#allocation6 + $0x128] sm:$0xff]  ;;  %v1317_v24 = vld [vmem:[#allocation6 + $0x120] sm:$0xff] }
  0xb7   : > { %8485 = vmatmul.mubr.msk.f32.gmra.mrb[8].mxu0 %vm414_vm0, %v375_v20  ;;  %8636 = vmatprep.subr.bf16.mxu1 %v8571_v51  ;;  %v8587_v20 = vpack.c.bf16 %v1316_v15, %v1314_v14  ;;  %v1319_v25 = vld [vmem:[#allocation6 + $0x130] sm:$0xff]  ;;  %v383_v26 = vld [vmem:[%s12914_s27 + $0x60] sm:$0xff]  ;;  %v8591_v28 = vpack.c.bf16 %v1320_v23, %v1318_v22  ;;  %v1322_v30 = vld [vmem:[#allocation6 + $0x148] sm:$0xff] }
  0xb8   : > { %8517 = vmatmul.mubr.msk.f32.gmra.mrb[8].mxu1 %vm414_vm0, %v836_v21  ;;  %605 = vmatprep.mubr.f32.mxu0 %v12667_v0  ;;  %v8589_v21 = vpack.c.bf16 %v1315_v17, %v1313_v16  ;;  %v844_v27 = vld [vmem:[%s12914_s27 + $0x160] sm:$0xff]  ;;  %v1323_v33 = vld [vmem:[#allocation6 + $0x150] sm:$0xff]  ;;  %v384_v34 = vld [vmem:[%s12914_s27 + $0x68] sm:$0xff] }
  0xb9   : > { %1054 = vmatprep.mubr.f32.mxu1 %v12667_v0  ;;  %8574 = vmatpush1.bf16.msra.mxu0 %v8573_v52  ;;  %v1324_v31 = vld [vmem:[#allocation6 + $0x158] sm:$0xff]  ;;  %v845_v35 = vld [vmem:[%s12914_s27 + $0x168] sm:$0xff]  ;;  %v846_v43 = vld [vmem:[%s12914_s27 + $0x170] sm:$0xff] }
  0xba   : > { %8638 = vmatpush1.bf16.msra.mxu1 %v8573_v52  ;;  %8576 = vmatprep.subr.bf16.mxu0 %v8575_v59  ;;  %v8595_v36 = vpack.c.bf16 %v1324_v31, %v1322_v30  ;;  %v1326_v38 = vld [vmem:[#allocation6 + $0x168] sm:$0xff]  ;;  %v1328_v39 = vld [vmem:[#allocation6 + $0x178] sm:$0xff]  ;;  %v1325_v40 = vld [vmem:[#allocation6 + $0x160] sm:$0xff] }
  0xbb   : > { %8486 = vmatmul.mubr.msk.f32.gmra.mrb[10].mxu0 %vm414_vm0, %v376_v29  ;;  %8640 = vmatprep.subr.bf16.mxu1 %v8575_v59  ;;  %v8593_v29 = vpack.c.bf16 %v1319_v25, %v1317_v24  ;;  %v8599_v44 = vpack.c.bf16 %v1328_v39, %v1326_v38  ;;  %v1330_v46 = vld [vmem:[#allocation6 + $0x188] sm:$0xff]  ;;  %v1332_v47 = vld [vmem:[#allocation6 + $0x198] sm:$0xff]  ;;  %v1329_v48 = vld [vmem:[#allocation6 + $0x180] sm:$0xff] }
  0xbc   : > { %8518 = vmatmul.mubr.msk.f32.gmra.mrb[10].mxu1 %vm414_vm0, %v837_v32  ;;  %611 = vmatprep.mubr.f32.mxu0 %v12667_v0  ;;  %v1321_v32 = vld [vmem:[#allocation6 + $0x140] sm:$0xff]  ;;  %v847_v51 = vld [vmem:[%s12914_s27 + $0x178] sm:$0xff]  ;;  %v8603_v52 = vpack.c.bf16 %v1332_v47, %v1330_v46  ;;  %v1334_v54 = vld [vmem:[#allocation6 + $0x1a8] sm:$0xff] }
  0xbd   : > { %1060 = vmatprep.mubr.f32.mxu1 %v12667_v0  ;;  %8578 = vmatpush1.bf16.msra.mxu0 %v8577_v60  ;;  %v8597_v37 = vpack.c.bf16 %v1323_v33, %v1321_v32  ;;  %v1336_v55 = vld [vmem:[#allocation6 + $0x1b8] sm:$0xff]  ;;  %v1333_v56 = vld [vmem:[#allocation6 + $0x1a0] sm:$0xff]  ;;  %v1338_v62 = vld [vmem:[#allocation6 + $0x1c8] sm:$0xff] }
  0xbe   : > { %8642 = vmatpush1.bf16.msra.mxu1 %v8577_v60  ;;  %8580 = vmatprep.subr.bf16.mxu0 %v8579_v4  ;;  %v848_v59 = vld [vmem:[%s12914_s27 + $0x180] sm:$0xff]  ;;  %v8607_v60 = vpack.c.bf16 %v1336_v55, %v1334_v54  ;;  %v388_v1 = vld [vmem:[%s12914_s27 + $0x88] sm:$0xff]  ;;  %v390_v6 = vld [vmem:[%s12914_s27 + $0x98] sm:$0xff] }
  0xbf   : > { %8487 = vmatmul.mubr.msk.f32.gmra.mrb[12].mxu0 %vm414_vm0, %v377_v41  ;;  %8644 = vmatprep.subr.bf16.mxu1 %v8579_v4  ;;  %v1327_v41 = vld [vmem:[#allocation6 + $0x170] sm:$0xff]  ;;  %v1340_v63 = vld [vmem:[#allocation6 + $0x1d8] sm:$0xff]  ;;  %v1337_v14 = vld [vmem:[#allocation6 + $0x1c0] sm:$0xff] }
  0xc0   : > { %8519 = vmatmul.mubr.msk.f32.gmra.mrb[12].mxu1 %vm414_vm0, %v838_v42  ;;  %617 = vmatprep.mubr.f32.mxu0 %v12667_v0  ;;  %v385_v42 = vld [vmem:[%s12914_s27 + $0x70] sm:$0xff]  ;;  %v8601_v45 = vpack.c.bf16 %v1327_v41, %v1325_v40  ;;  %v851_v7 = vld [vmem:[%s12914_s27 + $0x198] sm:$0xff]  ;;  %v391_v8 = vld [vmem:[%s12914_s27 + $0xa0] sm:$0xff]  ;;  %v404_v41 = vlaneseq }
  0xc1   : > { %1066 = vmatprep.mubr.f32.mxu1 %v12667_v0  ;;  %8582 = vmatpush1.bf16.msra.mxu0 %v8581_v5  ;;  %v389_v4 = vld [vmem:[%s12914_s27 + $0x90] sm:$0xff]  ;;  %v852_v9 = vld [vmem:[%s12914_s27 + $0x1a0] sm:$0xff]  ;;  %v394_v17 = vld [vmem:[%s12914_s27 + $0xb8] sm:$0xff] }
  0xc2   : > { %8646 = vmatpush1.bf16.msra.mxu1 %v8581_v5  ;;  %8584 = vmatprep.subr.bf16.mxu0 %v8583_v12  ;;  %v850_v5 = vld [vmem:[%s12914_s27 + $0x190] sm:$0xff]  ;;  %v1344_v22 = vld [vmem:[#allocation6 + $0x1f8] sm:$0xff]  ;;  %v1341_v24 = vld [vmem:[#allocation6 + $0x1e0] sm:$0xff] }
  0xc3   : > { %8488 = vmatmul.mubr.msk.f32.gmra.mrb[14].mxu0 %vm414_vm0, %v378_v49  ;;  %8648 = vmatprep.subr.bf16.mxu1 %v8583_v12  ;;  %v1331_v49 = vld [vmem:[#allocation6 + $0x190] sm:$0xff]  ;;  %v399_v33 = vld [vmem:[%s12914_s27 + $0xe0] sm:$0xff] }
  0xc4   : > { %8520 = vmatmul.mubr.msk.f32.gmra.mrb[14].mxu1 %vm414_vm0, %v839_v50  ;;  %623 = vmatprep.mubr.f32.mxu0 %v12667_v0  ;;  %v386_v50 = vld [vmem:[%s12914_s27 + $0x78] sm:$0xff]  ;;  %v8605_v53 = vpack.c.bf16 %v1331_v49, %v1329_v48  ;;  %v393_v12 = vld [vmem:[%s12914_s27 + $0xb0] sm:$0xff]  ;;  %v370_v47 = vld [vmem:[#allocation4] sm:$0x3] }
  0xc5   : > { %1072 = vmatprep.mubr.f32.mxu1 %v12667_v0  ;;  %8586 = vmatpush1.bf16.msra.mxu0 %v8585_v13  ;;  %v1339_v15 = vld [vmem:[#allocation6 + $0x1d0] sm:$0xff] }
  0xc6   : > { %8650 = vmatpush1.bf16.msra.mxu1 %v8585_v13  ;;  %8588 = vmatprep.subr.bf16.mxu0 %v8587_v20  ;;  %v854_v13 = vld [vmem:[%s12914_s27 + $0x1b0] sm:$0xff]  ;;  %v8613_v16 = vpack.c.bf16 %v1339_v15, %v1337_v14  ;;  %v398_v31 = vld [vmem:[%s12914_s27 + $0xd8] sm:$0xff] }
  0xc7   : > { %8489 = vmatmul.mubr.msk.f32.gmra.mrb[16].mxu0 %vm414_vm0, %v379_v57  ;;  %8652 = vmatprep.subr.bf16.mxu1 %v8587_v20  ;;  %v1335_v57 = vld [vmem:[#allocation6 + $0x1b0] sm:$0xff]  ;;  %v856_v20 = vld [vmem:[%s12914_s27 + $0x1c0] sm:$0xff]  ;;  %v2005_v15 = vld [vmem:[#allocation6 + $0x228] sm:$0xff] }
  0xc8   : > { %8521 = vmatmul.mubr.msk.f32.gmra.mrb[16].mxu1 %vm414_vm0, %v840_v58  ;;  %629 = vmatprep.mubr.f32.mxu0 %v12667_v0  ;;  %v387_v58 = vld [vmem:[%s12914_s27 + $0x80] sm:$0xff]  ;;  %v8609_v61 = vpack.c.bf16 %v1335_v57, %v1333_v56  ;;  %v1343_v25 = vld [vmem:[#allocation6 + $0x1f0] sm:$0xff] }
  0xc9   : > { %1078 = vmatprep.mubr.f32.mxu1 %v12667_v0  ;;  %8590 = vmatpush1.bf16.msra.mxu0 %v8589_v21  ;;  %v858_v30 = vld [vmem:[%s12914_s27 + $0x1d0] sm:$0xff]  ;;  %v859_v32 = vld [vmem:[%s12914_s27 + $0x1d8] sm:$0xff] }
  0xca   : > { %8654 = vmatpush1.bf16.msra.mxu1 %v8589_v21  ;;  %8592 = vmatprep.subr.bf16.mxu0 %v8591_v28  ;;  %v1342_v21 = vld [vmem:[#allocation6 + $0x1e8] sm:$0xff]  ;;  %v402_v39 = vld [vmem:[%s12914_s27 + $0xf8] sm:$0xff] }
  0xcb   : > { %8490 = vmatmul.mubr.msk.f32.gmra.mrb[18].mxu0 %vm414_vm0, %v380_v2  ;;  %8656 = vmatprep.subr.bf16.mxu1 %v8591_v28  ;;  %v849_v2 = vld [vmem:[%s12914_s27 + $0x188] sm:$0xff]  ;;  %v8615_v23 = vpack.c.bf16 %v1344_v22, %v1342_v21  ;;  %v862_v38 = vld [vmem:[%s12914_s27 + $0x1f0] sm:$0xff]  ;;  %v863_v40 = vld [vmem:[%s12914_s27 + $0x1f8] sm:$0xff] }
  0xcc   : > { %8522 = vmatmul.mubr.msk.f32.gmra.mrb[18].mxu1 %vm414_vm0, %v841_v3  ;;  %635 = vmatprep.mubr.f32.mxu0 %v12667_v0  ;;  %v8611_v3 = vpack.c.bf16 %v1340_v63, %v1338_v62  ;;  %v857_v28 = vld [vmem:[%s12914_s27 + $0x1c8] sm:$0xff] }
  0xcd   : > { %1084 = vmatprep.mubr.f32.mxu1 %v12667_v0  ;;  %8594 = vmatpush1.bf16.msra.mxu0 %v8593_v29 }
  0xce   : > { %8658 = vmatpush1.bf16.msra.mxu1 %v8593_v29  ;;  %8596 = vmatprep.subr.bf16.mxu0 %v8595_v36  ;;  %v397_v29 = vld [vmem:[%s12914_s27 + $0xd0] sm:$0xff] }
  0xcf   : > { %8491 = vmatmul.mubr.msk.f32.gmra.mrb[20].mxu0 %vm414_vm0, %v381_v10  ;;  %8660 = vmatprep.subr.bf16.mxu1 %v8595_v36  ;;  %v392_v10 = vld [vmem:[%s12914_s27 + $0xa8] sm:$0xff] }
  0xd0   : > { %8523 = vmatmul.mubr.msk.f32.gmra.mrb[20].mxu1 %vm414_vm0, %v842_v11  ;;  %641 = vmatprep.mubr.f32.mxu0 %v12667_v0  ;;  %v853_v11 = vld [vmem:[%s12914_s27 + $0x1a8] sm:$0xff] }
  0xd1   : > { %1090 = vmatprep.mubr.f32.mxu1 %v12667_v0  ;;  %8598 = vmatpush1.bf16.msra.mxu0 %v8597_v37  ;;  %v861_v36 = vld [vmem:[%s12914_s27 + $0x1e8] sm:$0xff] }
  0xd2   : > { %8662 = vmatpush1.bf16.msra.mxu1 %v8597_v37  ;;  %8600 = vmatprep.subr.bf16.mxu0 %v8599_v44  ;;  %v401_v37 = vld [vmem:[%s12914_s27 + $0xf0] sm:$0xff] }
  0xd3   : > { %8492 = vmatmul.mubr.msk.f32.gmra.mrb[22].mxu0 %vm414_vm0, %v382_v18  ;;  %8664 = vmatprep.subr.bf16.mxu1 %v8599_v44  ;;  %v855_v18 = vld [vmem:[%s12914_s27 + $0x1b8] sm:$0xff] }
  0xd4   : > { %8524 = vmatmul.mubr.msk.f32.gmra.mrb[22].mxu1 %vm414_vm0, %v843_v19  ;;  %647 = vmatprep.mubr.f32.mxu0 %v12667_v0  ;;  %v395_v19 = vld [vmem:[%s12914_s27 + $0xc0] sm:$0xff] }
  0xd5   : > { %1096 = vmatprep.mubr.f32.mxu1 %v12667_v0  ;;  %8602 = vmatpush1.bf16.msra.mxu0 %v8601_v45  ;;  %v2003_v44 = vld [vmem:[#allocation6 + $0x218] sm:$0xff] }
  0xd6   : > { %8666 = vmatpush1.bf16.msra.mxu1 %v8601_v45  ;;  %8604 = vmatprep.subr.bf16.mxu0 %v8603_v52 }
  0xd7   : > { %8493 = vmatmul.mubr.msk.f32.gmra.mrb[24].mxu0 %vm414_vm0, %v383_v26  ;;  %8668 = vmatprep.subr.bf16.mxu1 %v8603_v52  ;;  %v8617_v26 = vpack.c.bf16 %v1343_v25, %v1341_v24 }
  0xd8   : > { %8525 = vmatmul.mubr.msk.f32.gmra.mrb[24].mxu1 %vm414_vm0, %v844_v27  ;;  %653 = vmatprep.mubr.f32.mxu0 %v12667_v0  ;;  %v396_v27 = vld [vmem:[%s12914_s27 + $0xc8] sm:$0xff] }
  0xd9   : > { %1102 = vmatprep.mubr.f32.mxu1 %v12667_v0  ;;  %8606 = vmatpush1.bf16.msra.mxu0 %v8605_v53 }
  0xda   : > { %8670 = vmatpush1.bf16.msra.mxu1 %v8605_v53  ;;  %8608 = vmatprep.subr.bf16.mxu0 %v8607_v60 }
  0xdb   : > { %8494 = vmatmul.mubr.msk.f32.gmra.mrb[26].mxu0 %vm414_vm0, %v384_v34  ;;  %8672 = vmatprep.subr.bf16.mxu1 %v8607_v60  ;;  %v860_v34 = vld [vmem:[%s12914_s27 + $0x1e0] sm:$0xff] }
  0xdc   : > { %8526 = vmatmul.mubr.msk.f32.gmra.mrb[26].mxu1 %vm414_vm0, %v845_v35  ;;  %659 = vmatprep.mubr.f32.mxu0 %v12667_v0  ;;  %v400_v35 = vld [vmem:[%s12914_s27 + $0xe8] sm:$0xff] }
  0xdd   : > { %1108 = vmatprep.mubr.f32.mxu1 %v12667_v0  ;;  %8610 = vmatpush1.bf16.msra.mxu0 %v8609_v61 }
  0xde   : > { %8674 = vmatpush1.bf16.msra.mxu1 %v8609_v61  ;;  %8612 = vmatprep.subr.bf16.mxu0 %v8611_v3 }
  0xdf   : > { %8495 = vmatmul.mubr.msk.f32.gmra.mrb[28].mxu0 %vm414_vm0, %v385_v42  ;;  %8676 = vmatprep.subr.bf16.mxu1 %v8611_v3  ;;  %v405_v42 = vshrl.u32 %v404_v41, 7 }
  0xe0   : > { %8527 = vmatmul.mubr.msk.f32.gmra.mrb[28].mxu1 %vm414_vm0, %v846_v43  ;;  %665 = vmatprep.mubr.f32.mxu0 %v12667_v0  ;;  %v2001_v43 = vld [vmem:[#allocation6 + $0x208] sm:$0xff] }
  0xe1   : > { %1114 = vmatprep.mubr.f32.mxu1 %v12667_v0  ;;  %8614 = vmatpush1.bf16.msra.mxu0 %v8613_v16  ;;  %v8683_v45 = vpack.c.bf16 %v2003_v44, %v2001_v43  ;;  %v13106_v46 = vsub.s32 0, %v405_v42  ;;  %v13108_v48 = vsub.s32 1, %v405_v42 }
  0xe2   : > { %8678 = vmatpush1.bf16.msra.mxu1 %v8613_v16  ;;  %8616 = vmatprep.subr.bf16.mxu0 %v8615_v23  ;;  %v2007_v16 = vld [vmem:[#allocation6 + $0x238] sm:$0xff] }
  0xe3   : > { %8496 = vmatmul.mubr.msk.f32.gmra.mrb[30].mxu0 %vm414_vm0, %v386_v50  ;;  %8680 = vmatprep.subr.bf16.mxu1 %v8615_v23  ;;  %v13114_v49 = vrot.slane %v370_v47, %v13108_v48 }
  0xe4   : > { %8528 = vmatmul.mubr.msk.f32.gmra.mrb[30].mxu1 %vm414_vm0, %v847_v51  ;;  %671 = vmatprep.mubr.f32.mxu0 %v12667_v0 }
  0xe5   : > { %1120 = vmatprep.mubr.f32.mxu1 %v12667_v0  ;;  %8618 = vmatpush1.bf16.msra.mxu0 %v8617_v26 }
  0xe6   : > { %8682 = vmatpush1.bf16.msra.mxu1 %v8617_v26  ;;  %8684 = vmatprep.subr.bf16.mxu0 %v8683_v45  ;;  %v8687_v26 = vpack.c.bf16 %v2007_v16, %v2005_v15 }
  0xe7   : > { %8497 = vmatmul.mubr.msk.f32.gmra.mrb[32].mxu0 %vm414_vm0, %v387_v58  ;;  %8748 = vmatprep.subr.bf16.mxu1 %v8683_v45  ;;  %v2008_v45 = vld [vmem:[#allocation6 + $0x240] sm:$0xff] }
  0xe8   : > { %8529 = vmatmul.mubr.msk.f32.gmra.mrb[32].mxu1 %vm414_vm0, %v848_v59  ;;  %677 = vmatprep.mubr.f32.mxu0 %v12667_v0 }
  0xe9   : > { %1126 = vmatprep.mubr.f32.mxu1 %v12667_v0 }
  0xeb   : > { %8498 = vmatmul.mubr.msk.f32.gmra.mrb[34].mxu0 %vm414_vm0, %v388_v1 }
  0xec   : > { %8530 = vmatmul.mubr.msk.f32.gmra.mrb[34].mxu1 %vm414_vm0, %v849_v2  ;;  %683 = vmatprep.mubr.f32.mxu0 %v12667_v0 }
  0xed   : > { %1132 = vmatprep.mubr.f32.mxu1 %v12667_v0 }
  0xef   : > { %8499 = vmatmul.mubr.msk.f32.gmra.mrb[36].mxu0 %vm414_vm0, %v389_v4 }
  0xf0   : > { %8531 = vmatmul.mubr.msk.f32.gmra.mrb[36].mxu1 %vm414_vm0, %v850_v5  ;;  %689 = vmatprep.mubr.f32.mxu0 %v12667_v0 }
  0xf1   : > { %1138 = vmatprep.mubr.f32.mxu1 %v12667_v0 }
  0xf3   : > { %8500 = vmatmul.mubr.msk.f32.gmra.mrb[38].mxu0 %vm414_vm0, %v390_v6 }
  0xf4   : > { %8532 = vmatmul.mubr.msk.f32.gmra.mrb[38].mxu1 %vm414_vm0, %v851_v7  ;;  %695 = vmatprep.mubr.f32.mxu0 %v12667_v0 }
  0xf5   : > { %1144 = vmatprep.mubr.f32.mxu1 %v12667_v0 }
  0xf7   : > { %8501 = vmatmul.mubr.msk.f32.gmra.mrb[40].mxu0 %vm414_vm0, %v391_v8 }
  0xf8   : > { %8533 = vmatmul.mubr.msk.f32.gmra.mrb[40].mxu1 %vm414_vm0, %v852_v9  ;;  %701 = vmatprep.mubr.f32.mxu0 %v12667_v0 }
  0xf9   : > { %1150 = vmatprep.mubr.f32.mxu1 %v12667_v0 }
  0xfb   : > { %8502 = vmatmul.mubr.msk.f32.gmra.mrb[42].mxu0 %vm414_vm0, %v392_v10 }
  0xfc   : > { %8534 = vmatmul.mubr.msk.f32.gmra.mrb[42].mxu1 %vm414_vm0, %v853_v11  ;;  %707 = vmatprep.mubr.f32.mxu0 %v12667_v0  ;;  %v2000_v11 = vld [vmem:[#allocation6 + $0x200] sm:$0xff] }
  0xfd   : > { %1156 = vmatprep.mubr.f32.mxu1 %v12667_v0 }
  0xff   : > { %8503 = vmatmul.mubr.msk.f32.gmra.mrb[44].mxu0 %vm414_vm0, %v393_v12  ;;  %v2002_v12 = vld [vmem:[#allocation6 + $0x210] sm:$0xff] }
 0x100   : > { %8535 = vmatmul.mubr.msk.f32.gmra.mrb[44].mxu1 %vm414_vm0, %v854_v13  ;;  %713 = vmatprep.mubr.f32.mxu0 %v12667_v0  ;;  %v8685_v23 = vpack.c.bf16 %v2002_v12, %v2000_v11 }
 0x101   : > { %1162 = vmatprep.mubr.f32.mxu1 %v12667_v0 }
 0x103   : > { %8504 = vmatmul.mubr.msk.f32.gmra.mrb[46].mxu0 %vm414_vm0, %v394_v17 }
 0x104   : > { %8536 = vmatmul.mubr.msk.f32.gmra.mrb[46].mxu1 %vm414_vm0, %v855_v18  ;;  %719 = vmatprep.mubr.f32.mxu0 %v12667_v0 }
 0x105   : > { %1168 = vmatprep.mubr.f32.mxu1 %v12667_v0 }
 0x107   : > { %8505 = vmatmul.mubr.msk.f32.gmra.mrb[48].mxu0 %vm414_vm0, %v395_v19 }
 0x108   : > { %8537 = vmatmul.mubr.msk.f32.gmra.mrb[48].mxu1 %vm414_vm0, %v856_v20  ;;  %725 = vmatprep.mubr.f32.mxu0 %v12667_v0 }
 0x109   : > { %1174 = vmatprep.mubr.f32.mxu1 %v12667_v0 }
 0x10b   : > { %8506 = vmatmul.mubr.msk.f32.gmra.mrb[50].mxu0 %vm414_vm0, %v396_v27  ;;  %v2004_v27 = vld [vmem:[#allocation6 + $0x220] sm:$0xff] }
 0x10c   : > { %8538 = vmatmul.mubr.msk.f32.gmra.mrb[50].mxu1 %vm414_vm0, %v857_v28  ;;  %731 = vmatprep.mubr.f32.mxu0 %v12667_v0  ;;  %v2006_v28 = vld [vmem:[#allocation6 + $0x230] sm:$0xff] }
 0x10d   : > { %1180 = vmatprep.mubr.f32.mxu1 %v12667_v0  ;;  %v8689_v41 = vpack.c.bf16 %v2006_v28, %v2004_v27  ;;  %v2023_v27 = vld [vmem:[#allocation6 + $0x2b8] sm:$0xff] }
 0x10f   : > { %8507 = vmatmul.mubr.msk.f32.gmra.mrb[52].mxu0 %vm414_vm0, %v397_v29 }
 0x110   : > { %8539 = vmatmul.mubr.msk.f32.gmra.mrb[52].mxu1 %vm414_vm0, %v858_v30  ;;  %737 = vmatprep.mubr.f32.mxu0 %v12667_v0 }
 0x111   : > { %1186 = vmatprep.mubr.f32.mxu1 %v12667_v0 }
 0x113   : > { %8508 = vmatmul.mubr.msk.f32.gmra.mrb[54].mxu0 %vm414_vm0, %v398_v31 }
 0x114   : > { %8540 = vmatmul.mubr.msk.f32.gmra.mrb[54].mxu1 %vm414_vm0, %v859_v32  ;;  %743 = vmatprep.mubr.f32.mxu0 %v12667_v0  ;;  %v2009_v32 = vld [vmem:[#allocation6 + $0x248] sm:$0xff] }
 0x115   : > { %1192 = vmatprep.mubr.f32.mxu1 %v12667_v0 }
 0x117   : > { %8509 = vmatmul.mubr.msk.f32.gmra.mrb[56].mxu0 %vm414_vm0, %v399_v33  ;;  %v2011_v33 = vld [vmem:[#allocation6 + $0x258] sm:$0xff] }
 0x118   : > { %8541 = vmatmul.mubr.msk.f32.gmra.mrb[56].mxu1 %vm414_vm0, %v860_v34  ;;  %749 = vmatprep.mubr.f32.mxu0 %v12667_v0  ;;  %v8691_v44 = vpack.c.bf16 %v2011_v33, %v2009_v32 }
 0x119   : > { %1198 = vmatprep.mubr.f32.mxu1 %v12667_v0 }
 0x11b   : > { %8510 = vmatmul.mubr.msk.f32.gmra.mrb[58].mxu0 %vm414_vm0, %v400_v35 }
 0x11c   : > { %8542 = vmatmul.mubr.msk.f32.gmra.mrb[58].mxu1 %vm414_vm0, %v861_v36  ;;  %755 = vmatprep.mubr.f32.mxu0 %v12667_v0 }
 0x11d   : > { %1204 = vmatprep.mubr.f32.mxu1 %v12667_v0 }
 0x11f   : > { %8511 = vmatmul.mubr.msk.f32.gmra.mrb[60].mxu0 %vm414_vm0, %v401_v37 }
 0x120   : > { %8543 = vmatmul.mubr.msk.f32.gmra.mrb[60].mxu1 %vm414_vm0, %v862_v38  ;;  %761 = vmatprep.mubr.f32.mxu0 %v12667_v0 }
 0x121   : > { %1210 = vmatprep.mubr.f32.mxu1 %v12667_v0  ;;  %v13111_v0 = vrot.slane %v370_v47, %v13106_v46  ;;  %v2010_v47 = vld [vmem:[#allocation6 + $0x250] sm:$0xff] }
 0x123   : > { %8512 = vmatmul.mubr.msk.f32.gmra.mrb[62].mxu0 %vm414_vm0, %v402_v39 }
 0x124   : > { %8544 = vmatmul.mubr.msk.f32.gmra.mrb[62].mxu1 %vm414_vm0, %v863_v40 }
 0x17a   : > { %v577_v50 = vpop.f32.mrb[0].mxu0 }
 0x17b   : > { %v1026_v51 = vpop.f32.mrb[0].mxu1  ;;  %v578_v52 = vadd.f32 %v577_v50, %v13111_v0  ;;  %v579_v53 = vpop.f32.mrb[1].mxu0 }
 0x17c   : > { %v1028_v54 = vpop.f32.mrb[1].mxu1  ;;  %v580_v55 = vadd.f32 %v579_v53, %v13114_v49  ;;  %v1027_v57 = vadd.f32 %v1026_v51, %v13111_v0  ;;  %v2013_v53 = vld [vmem:[#allocation6 + $0x268] sm:$0xff] }
 0x17d   : > { %v1029_v56 = vadd.f32 %v1028_v54, %v13114_v49  ;;  %9907 = vtanh.f32 %v578_v52  ;;  %v2015_v54 = vld [vmem:[#allocation6 + $0x278] sm:$0xff] }
 0x17e   : > { %v583_v58 = vpop.f32.mrb[2].mxu0  ;;  %9909 = vtanh.f32 %v580_v55 }
 0x17f   : > { %v1032_v59 = vpop.f32.mrb[2].mxu1  ;;  %v584_v60 = vadd.f32 %v583_v58, %v13111_v0  ;;  %v585_v61 = vpop.f32.mrb[3].mxu0  ;;  %9911 = vtanh.f32 %v1029_v56 }
 0x180   : > { %v1034_v62 = vpop.f32.mrb[3].mxu1  ;;  %v586_v63 = vadd.f32 %v585_v61, %v13114_v49  ;;  %9913 = vtanh.f32 %v1027_v57  ;;  %v1033_v2 = vadd.f32 %v1032_v59, %v13111_v0 }
 0x181   : > { %v1035_v1 = vadd.f32 %v1034_v62, %v13114_v49  ;;  %9915 = vtanh.f32 %v584_v60  ;;  %v8693_v62 = vpack.c.bf16 %v2010_v47, %v2008_v45  ;;  %v2027_v45 = vld [vmem:[#allocation6 + $0x2d8] sm:$0xff] }
 0x182   : > { %v589_v3 = vpop.f32.mrb[4].mxu0  ;;  %9917 = vtanh.f32 %v586_v63 }
 0x183   : > { %v1038_v4 = vpop.f32.mrb[4].mxu1  ;;  %v590_v5 = vadd.f32 %v589_v3, %v13111_v0  ;;  %v591_v6 = vpop.f32.mrb[5].mxu0  ;;  %9919 = vtanh.f32 %v1035_v1  ;;  %v2012_v3 = vld [vmem:[#allocation6 + $0x260] sm:$0xff] }
 0x184   : > { %v1040_v7 = vpop.f32.mrb[5].mxu1  ;;  %v592_v8 = vadd.f32 %v591_v6, %v13114_v49  ;;  %9921 = vtanh.f32 %v1033_v2  ;;  %v1039_v10 = vadd.f32 %v1038_v4, %v13111_v0  ;;  %v8695_v2 = vpack.c.bf16 %v2015_v54, %v2013_v53  ;;  %v2014_v4 = vld [vmem:[#allocation6 + $0x270] sm:$0xff] }
 0x185   : > { %v1041_v9 = vadd.f32 %v1040_v7, %v13114_v49  ;;  %9923 = vtanh.f32 %v590_v5 }
 0x186   : > { %v595_v13 = vpop.f32.mrb[6].mxu0  ;;  %9925 = vtanh.f32 %v592_v8  ;;  %v2017_v8 = vld [vmem:[#allocation6 + $0x288] sm:$0xff] }
 0x187   : > { %v1044_v14 = vpop.f32.mrb[6].mxu1  ;;  %v596_v17 = vadd.f32 %v595_v13, %v13111_v0  ;;  %v597_v18 = vpop.f32.mrb[7].mxu0  ;;  %9927 = vtanh.f32 %v1041_v9  ;;  %v2019_v9 = vld [vmem:[#allocation6 + $0x298] sm:$0xff] }
 0x188   : > { %v1046_v19 = vpop.f32.mrb[7].mxu1  ;;  %v9908_v20 = vpop.eup %9907  ;;  %v598_v21 = vadd.f32 %v597_v18, %v13114_v49  ;;  %9929 = vtanh.f32 %v1039_v10  ;;  %v1045_v25 = vadd.f32 %v1044_v14, %v13111_v0 }
 0x189   : > { %v1047_v22 = vadd.f32 %v1046_v19, %v13114_v49  ;;  %v9910_v24 = vpop.eup %9909  ;;  %9931 = vtanh.f32 %v596_v17  ;;  %v8697_v17 = vpack.c.bf16 %v2014_v4, %v2012_v3  ;;  %v2031_v3 = vld [vmem:[#allocation6 + $0x2f8] sm:$0xff] }
 0x18a   : > { %v9912_v29 = vpop.eup %9911  ;;  %1421 = vmatprep.mubr.f32.mxu0 %v9910_v24  ;;  %v601_v30 = vpop.f32.mrb[8].mxu0  ;;  %9933 = vtanh.f32 %v598_v21  ;;  %v2016_v21 = vld [vmem:[#allocation6 + $0x280] sm:$0xff] }
 0x18b   : > { %v1050_v31 = vpop.f32.mrb[8].mxu1  ;;  %v9914_v34 = vpop.eup %9913  ;;  %1678 = vmatprep.mubr.f32.mxu1 %v9912_v29  ;;  %v602_v35 = vadd.f32 %v601_v30, %v13111_v0  ;;  %1422 = vmatmul.mubr.f32.vlgmr.msra.gmra.mrb[64].mxu0 %v9908_v20  ;;  %9935 = vtanh.f32 %v1047_v22  ;;  %v8699_v20 = vpack.c.bf16 %v2019_v9, %v2017_v8  ;;  %v2018_v22 = vld [vmem:[#allocation6 + $0x290] sm:$0xff] }
 0x18c   : > { %v603_v36 = vpop.f32.mrb[9].mxu0  ;;  %v1052_v37 = vpop.f32.mrb[9].mxu1  ;;  %1679 = vmatmul.mubr.f32.vlgmr.msra.gmra.mrb[64].mxu1 %v9914_v34  ;;  %8686 = vmatpush1.bf16.msra.mxu0 %v8685_v23  ;;  %9937 = vtanh.f32 %v1045_v25  ;;  %v1051_v43 = vadd.f32 %v1050_v31, %v13111_v0 }
 0x18d   : > { %v9916_v38 = vpop.eup %9915  ;;  %v604_v39 = vadd.f32 %v603_v36, %v13114_v49  ;;  %v1053_v40 = vadd.f32 %v1052_v37, %v13114_v49  ;;  %8750 = vmatpush1.bf16.msra.mxu1 %v8685_v23  ;;  %8688 = vmatprep.subr.bf16.mxu0 %v8687_v26  ;;  %9939 = vtanh.f32 %v602_v35  ;;  %v8701_v35 = vpack.c.bf16 %v2018_v22, %v2016_v21  ;;  %v2035_v21 = vld [vmem:[#allocation6 + $0x318] sm:$0xff] }
 0x18e   : > { %v9918_v42 = vpop.eup %9917  ;;  %v607_v51 = vpop.f32.mrb[10].mxu0  ;;  %8752 = vmatprep.subr.bf16.mxu1 %v8687_v26  ;;  %v2021_v26 = vld [vmem:[#allocation6 + $0x2a8] sm:$0xff] }
 0x18f   : > { %v9920_v50 = vpop.eup %9919  ;;  %1427 = vmatprep.mubr.f32.mxu0 %v9918_v42  ;;  %v1056_v52 = vpop.f32.mrb[10].mxu1  ;;  %9941 = vtanh.f32 %v604_v39  ;;  %v608_v56 = vadd.f32 %v607_v51, %v13111_v0  ;;  %v2020_v39 = vld [vmem:[#allocation6 + $0x2a0] sm:$0xff] }
 0x190   : > { %v9922_v55 = vpop.eup %9921  ;;  %1684 = vmatprep.mubr.f32.mxu1 %v9920_v50  ;;  %1428 = vmatmul.mubr.f32.gmra.mrb[66].mxu0 %v9916_v38  ;;  %v609_v57 = vpop.f32.mrb[11].mxu0  ;;  %9943 = vtanh.f32 %v1053_v40  ;;  %v1057_v1 = vadd.f32 %v1056_v52, %v13111_v0  ;;  %v8703_v38 = vpack.c.bf16 %v2023_v27, %v2021_v26  ;;  %v2022_v40 = vld [vmem:[#allocation6 + $0x2b0] sm:$0xff] }
 0x191   : > { %v1058_v58 = vpop.f32.mrb[11].mxu1  ;;  %v9924_v59 = vpop.eup %9923  ;;  %1685 = vmatmul.mubr.f32.gmra.mrb[66].mxu1 %v9922_v55  ;;  %v610_v60 = vadd.f32 %v609_v57, %v13114_v49  ;;  %8690 = vmatpush1.bf16.msra.mxu0 %v8689_v41  ;;  %9945 = vtanh.f32 %v1051_v43 }
 0x192   : > { %v1059_v61 = vadd.f32 %v1058_v58, %v13114_v49  ;;  %v9926_v63 = vpop.eup %9925  ;;  %8754 = vmatpush1.bf16.msra.mxu1 %v8689_v41  ;;  %8692 = vmatprep.subr.bf16.mxu0 %v8691_v44  ;;  %9947 = vtanh.f32 %v608_v56  ;;  %v613_v6 = vpop.f32.mrb[12].mxu0  ;;  %v8705_v56 = vpack.c.bf16 %v2022_v40, %v2020_v39  ;;  %v2039_v39 = vld [vmem:[#allocation6 + $0x338] sm:$0xff] }
 0x193   : > { %v9928_v5 = vpop.eup %9927  ;;  %1433 = vmatprep.mubr.f32.mxu0 %v9926_v63  ;;  %v1062_v7 = vpop.f32.mrb[12].mxu1  ;;  %8756 = vmatprep.subr.bf16.mxu1 %v8691_v44  ;;  %9949 = vtanh.f32 %v610_v60  ;;  %v614_v11 = vadd.f32 %v613_v6, %v13111_v0  ;;  %v2025_v44 = vld [vmem:[#allocation6 + $0x2c8] sm:$0xff]  ;;  %v2024_v60 = vld [vmem:[#allocation6 + $0x2c0] sm:$0xff] }
 0x194   : > { %v9930_v10 = vpop.eup %9929  ;;  %1690 = vmatprep.mubr.f32.mxu1 %v9928_v5  ;;  %1434 = vmatmul.mubr.f32.gmra.mrb[68].mxu0 %v9924_v59  ;;  %v615_v12 = vpop.f32.mrb[13].mxu0  ;;  %9951 = vtanh.f32 %v1059_v61  ;;  %v1063_v19 = vadd.f32 %v1062_v7, %v13111_v0  ;;  %v8707_v59 = vpack.c.bf16 %v2027_v45, %v2025_v44  ;;  %v2026_v61 = vld [vmem:[#allocation6 + $0x2d0] sm:$0xff] }
 0x195   : > { %v1064_v13 = vpop.f32.mrb[13].mxu1  ;;  %v9932_v14 = vpop.eup %9931  ;;  %1691 = vmatmul.mubr.f32.gmra.mrb[68].mxu1 %v9930_v10  ;;  %v616_v15 = vadd.f32 %v615_v12, %v13114_v49  ;;  %8694 = vmatpush1.bf16.msra.mxu0 %v8693_v62  ;;  %9953 = vtanh.f32 %v1057_v1 }
 0x196   : > { %v1065_v16 = vadd.f32 %v1064_v13, %v13114_v49  ;;  %v9934_v18 = vpop.eup %9933  ;;  %8758 = vmatpush1.bf16.msra.mxu1 %v8693_v62  ;;  %8696 = vmatprep.subr.bf16.mxu0 %v8695_v2  ;;  %9955 = vtanh.f32 %v614_v11  ;;  %v619_v24 = vpop.f32.mrb[14].mxu0  ;;  %v8709_v11 = vpack.c.bf16 %v2026_v61, %v2024_v60  ;;  %v2043_v60 = vld [vmem:[#allocation6 + $0x358] sm:$0xff] }
 0x197   : > { %v9936_v23 = vpop.eup %9935  ;;  %1439 = vmatprep.mubr.f32.mxu0 %v9934_v18  ;;  %v1068_v25 = vpop.f32.mrb[14].mxu1  ;;  %8760 = vmatprep.subr.bf16.mxu1 %v8695_v2  ;;  %9957 = vtanh.f32 %v616_v15  ;;  %v620_v29 = vadd.f32 %v619_v24, %v13111_v0  ;;  %v2029_v2 = vld [vmem:[#allocation6 + $0x2e8] sm:$0xff]  ;;  %v2028_v15 = vld [vmem:[#allocation6 + $0x2e0] sm:$0xff] }
 0x198   : > { %v9938_v28 = vpop.eup %9937  ;;  %1696 = vmatprep.mubr.f32.mxu1 %v9936_v23  ;;  %1440 = vmatmul.mubr.f32.gmra.mrb[70].mxu0 %v9932_v14  ;;  %v621_v30 = vpop.f32.mrb[15].mxu0  ;;  %9959 = vtanh.f32 %v1065_v16  ;;  %v1069_v37 = vadd.f32 %v1068_v25, %v13111_v0  ;;  %v8711_v14 = vpack.c.bf16 %v2031_v3, %v2029_v2  ;;  %v2030_v16 = vld [vmem:[#allocation6 + $0x2f0] sm:$0xff] }
 0x199   : > { %v1070_v31 = vpop.f32.mrb[15].mxu1  ;;  %v9940_v32 = vpop.eup %9939  ;;  %1697 = vmatmul.mubr.f32.gmra.mrb[70].mxu1 %v9938_v28  ;;  %v622_v33 = vadd.f32 %v621_v30, %v13114_v49  ;;  %8698 = vmatpush1.bf16.msra.mxu0 %v8697_v17  ;;  %9961 = vtanh.f32 %v1063_v19 }
 0x19a   : > { %v1071_v34 = vadd.f32 %v1070_v31, %v13114_v49  ;;  %v9942_v36 = vpop.eup %9941  ;;  %8762 = vmatpush1.bf16.msra.mxu1 %v8697_v17  ;;  %8700 = vmatprep.subr.bf16.mxu0 %v8699_v20  ;;  %9963 = vtanh.f32 %v620_v29  ;;  %v625_v42 = vpop.f32.mrb[16].mxu0  ;;  %v8713_v29 = vpack.c.bf16 %v2030_v16, %v2028_v15  ;;  %v2047_v15 = vld [vmem:[#allocation6 + $0x378] sm:$0xff] }
 0x19b   : > { %v9944_v41 = vpop.eup %9943  ;;  %1445 = vmatprep.mubr.f32.mxu0 %v9942_v36  ;;  %v1074_v43 = vpop.f32.mrb[16].mxu1  ;;  %8764 = vmatprep.subr.bf16.mxu1 %v8699_v20  ;;  %9965 = vtanh.f32 %v622_v33  ;;  %v626_v50 = vadd.f32 %v625_v42, %v13111_v0  ;;  %v2033_v20 = vld [vmem:[#allocation6 + $0x308] sm:$0xff]  ;;  %v2032_v33 = vld [vmem:[#allocation6 + $0x300] sm:$0xff] }
 0x19c   : > { %v9946_v47 = vpop.eup %9945  ;;  %1702 = vmatprep.mubr.f32.mxu1 %v9944_v41  ;;  %1446 = vmatmul.mubr.f32.gmra.mrb[72].mxu0 %v9940_v32  ;;  %v627_v51 = vpop.f32.mrb[17].mxu0  ;;  %9967 = vtanh.f32 %v1071_v34  ;;  %v1075_v58 = vadd.f32 %v1074_v43, %v13111_v0  ;;  %v8715_v32 = vpack.c.bf16 %v2035_v21, %v2033_v20  ;;  %v2034_v34 = vld [vmem:[#allocation6 + $0x310] sm:$0xff] }
 0x19d   : > { %v1076_v52 = vpop.f32.mrb[17].mxu1  ;;  %v9948_v53 = vpop.eup %9947  ;;  %1703 = vmatmul.mubr.f32.gmra.mrb[72].mxu1 %v9946_v47  ;;  %v628_v54 = vadd.f32 %v627_v51, %v13114_v49  ;;  %8702 = vmatpush1.bf16.msra.mxu0 %v8701_v35  ;;  %9969 = vtanh.f32 %v1069_v37 }
 0x19e   : > { %v1077_v55 = vadd.f32 %v1076_v52, %v13114_v49  ;;  %v9950_v57 = vpop.eup %9949  ;;  %8766 = vmatpush1.bf16.msra.mxu1 %v8701_v35  ;;  %8704 = vmatprep.subr.bf16.mxu0 %v8703_v38  ;;  %9971 = vtanh.f32 %v626_v50  ;;  %v631_v63 = vpop.f32.mrb[18].mxu0  ;;  %v8717_v50 = vpack.c.bf16 %v2034_v34, %v2032_v33  ;;  %v2051_v33 = vld [vmem:[#allocation6 + $0x398] sm:$0xff] }
 0x19f   : > { %v9952_v62 = vpop.eup %9951  ;;  %1451 = vmatprep.mubr.f32.mxu0 %v9950_v57  ;;  %v1080_v1 = vpop.f32.mrb[18].mxu1  ;;  %8768 = vmatprep.subr.bf16.mxu1 %v8703_v38  ;;  %9973 = vtanh.f32 %v628_v54  ;;  %v632_v5 = vadd.f32 %v631_v63, %v13111_v0  ;;  %v2037_v38 = vld [vmem:[#allocation6 + $0x328] sm:$0xff]  ;;  %v2036_v54 = vld [vmem:[#allocation6 + $0x320] sm:$0xff] }
 0x1a0   : > { %v9954_v4 = vpop.eup %9953  ;;  %1708 = vmatprep.mubr.f32.mxu1 %v9952_v62  ;;  %1452 = vmatmul.mubr.f32.gmra.mrb[74].mxu0 %v9948_v53  ;;  %v633_v6 = vpop.f32.mrb[19].mxu0  ;;  %9975 = vtanh.f32 %v1077_v55  ;;  %v1081_v13 = vadd.f32 %v1080_v1, %v13111_v0  ;;  %v8719_v53 = vpack.c.bf16 %v2039_v39, %v2037_v38  ;;  %v2038_v55 = vld [vmem:[#allocation6 + $0x330] sm:$0xff] }
 0x1a1   : > { %v1082_v7 = vpop.f32.mrb[19].mxu1  ;;  %v9956_v8 = vpop.eup %9955  ;;  %1709 = vmatmul.mubr.f32.gmra.mrb[74].mxu1 %v9954_v4  ;;  %v634_v9 = vadd.f32 %v633_v6, %v13114_v49  ;;  %8706 = vmatpush1.bf16.msra.mxu0 %v8705_v56  ;;  %9977 = vtanh.f32 %v1075_v58 }
 0x1a2   : > { %v1083_v10 = vadd.f32 %v1082_v7, %v13114_v49  ;;  %v9958_v12 = vpop.eup %9957  ;;  %8770 = vmatpush1.bf16.msra.mxu1 %v8705_v56  ;;  %8708 = vmatprep.subr.bf16.mxu0 %v8707_v59  ;;  %9979 = vtanh.f32 %v632_v5  ;;  %v637_v18 = vpop.f32.mrb[20].mxu0  ;;  %v8721_v5 = vpack.c.bf16 %v2038_v55, %v2036_v54  ;;  %v2055_v54 = vld [vmem:[#allocation6 + $0x3b8] sm:$0xff] }
 0x1a3   : > { %v9960_v17 = vpop.eup %9959  ;;  %1457 = vmatprep.mubr.f32.mxu0 %v9958_v12  ;;  %v1086_v19 = vpop.f32.mrb[20].mxu1  ;;  %8772 = vmatprep.subr.bf16.mxu1 %v8707_v59  ;;  %9981 = vtanh.f32 %v634_v9  ;;  %v638_v23 = vadd.f32 %v637_v18, %v13111_v0  ;;  %v2041_v59 = vld [vmem:[#allocation6 + $0x348] sm:$0xff]  ;;  %v2040_v9 = vld [vmem:[#allocation6 + $0x340] sm:$0xff] }
 0x1a4   : > { %v9962_v22 = vpop.eup %9961  ;;  %1714 = vmatprep.mubr.f32.mxu1 %v9960_v17  ;;  %1458 = vmatmul.mubr.f32.gmra.mrb[76].mxu0 %v9956_v8  ;;  %v639_v24 = vpop.f32.mrb[21].mxu0  ;;  %9983 = vtanh.f32 %v1083_v10  ;;  %v1087_v31 = vadd.f32 %v1086_v19, %v13111_v0  ;;  %v8723_v8 = vpack.c.bf16 %v2043_v60, %v2041_v59  ;;  %v2042_v10 = vld [vmem:[#allocation6 + $0x350] sm:$0xff] }
 0x1a5   : > { %v1088_v25 = vpop.f32.mrb[21].mxu1  ;;  %v9964_v26 = vpop.eup %9963  ;;  %1715 = vmatmul.mubr.f32.gmra.mrb[76].mxu1 %v9962_v22  ;;  %v640_v27 = vadd.f32 %v639_v24, %v13114_v49  ;;  %8710 = vmatpush1.bf16.msra.mxu0 %v8709_v11  ;;  %9985 = vtanh.f32 %v1081_v13 }
 0x1a6   : > { %v1089_v28 = vadd.f32 %v1088_v25, %v13114_v49  ;;  %v9966_v30 = vpop.eup %9965  ;;  %8774 = vmatpush1.bf16.msra.mxu1 %v8709_v11  ;;  %8712 = vmatprep.subr.bf16.mxu0 %v8711_v14  ;;  %9987 = vtanh.f32 %v638_v23  ;;  %v643_v36 = vpop.f32.mrb[22].mxu0  ;;  %v8725_v23 = vpack.c.bf16 %v2042_v10, %v2040_v9  ;;  %v2059_v9 = vld [vmem:[#allocation6 + $0x3d8] sm:$0xff] }
 0x1a7   : > { %v9968_v35 = vpop.eup %9967  ;;  %1463 = vmatprep.mubr.f32.mxu0 %v9966_v30  ;;  %v1092_v37 = vpop.f32.mrb[22].mxu1  ;;  %8776 = vmatprep.subr.bf16.mxu1 %v8711_v14  ;;  %9989 = vtanh.f32 %v640_v27  ;;  %v644_v41 = vadd.f32 %v643_v36, %v13111_v0  ;;  %v2045_v14 = vld [vmem:[#allocation6 + $0x368] sm:$0xff]  ;;  %v2044_v27 = vld [vmem:[#allocation6 + $0x360] sm:$0xff] }
 0x1a8   : > { %v9970_v40 = vpop.eup %9969  ;;  %1720 = vmatprep.mubr.f32.mxu1 %v9968_v35  ;;  %1464 = vmatmul.mubr.f32.gmra.mrb[78].mxu0 %v9964_v26  ;;  %v645_v42 = vpop.f32.mrb[23].mxu0  ;;  %9991 = vtanh.f32 %v1089_v28  ;;  %v1093_v52 = vadd.f32 %v1092_v37, %v13111_v0  ;;  %v8727_v26 = vpack.c.bf16 %v2047_v15, %v2045_v14  ;;  %v2046_v28 = vld [vmem:[#allocation6 + $0x370] sm:$0xff] }
 0x1a9   : > { %v1094_v43 = vpop.f32.mrb[23].mxu1  ;;  %v9972_v44 = vpop.eup %9971  ;;  %1721 = vmatmul.mubr.f32.gmra.mrb[78].mxu1 %v9970_v40  ;;  %v646_v45 = vadd.f32 %v645_v42, %v13114_v49  ;;  %8714 = vmatpush1.bf16.msra.mxu0 %v8713_v29  ;;  %9993 = vtanh.f32 %v1087_v31 }
 0x1aa   : > { %v1095_v47 = vadd.f32 %v1094_v43, %v13114_v49  ;;  %v9974_v51 = vpop.eup %9973  ;;  %8778 = vmatpush1.bf16.msra.mxu1 %v8713_v29  ;;  %8716 = vmatprep.subr.bf16.mxu0 %v8715_v32  ;;  %9995 = vtanh.f32 %v644_v41  ;;  %v649_v57 = vpop.f32.mrb[24].mxu0  ;;  %v8729_v41 = vpack.c.bf16 %v2046_v28, %v2044_v27 }
 0x1ab   : > { %v9976_v56 = vpop.eup %9975  ;;  %1469 = vmatprep.mubr.f32.mxu0 %v9974_v51  ;;  %v1098_v58 = vpop.f32.mrb[24].mxu1  ;;  %8780 = vmatprep.subr.bf16.mxu1 %v8715_v32  ;;  %9997 = vtanh.f32 %v646_v45  ;;  %v650_v62 = vadd.f32 %v649_v57, %v13111_v0  ;;  %v2049_v32 = vld [vmem:[#allocation6 + $0x388] sm:$0xff]  ;;  %v2048_v45 = vld [vmem:[#allocation6 + $0x380] sm:$0xff] }
 0x1ac   : > { %v9978_v61 = vpop.eup %9977  ;;  %1726 = vmatprep.mubr.f32.mxu1 %v9976_v56  ;;  %1470 = vmatmul.mubr.f32.gmra.mrb[80].mxu0 %v9972_v44  ;;  %v651_v63 = vpop.f32.mrb[25].mxu0  ;;  %9999 = vtanh.f32 %v1095_v47  ;;  %v1099_v7 = vadd.f32 %v1098_v58, %v13111_v0  ;;  %v8731_v44 = vpack.c.bf16 %v2051_v33, %v2049_v32  ;;  %v2050_v47 = vld [vmem:[#allocation6 + $0x390] sm:$0xff] }
 0x1ad   : > { %v1100_v1 = vpop.f32.mrb[25].mxu1  ;;  %v9980_v2 = vpop.eup %9979  ;;  %1727 = vmatmul.mubr.f32.gmra.mrb[80].mxu1 %v9978_v61  ;;  %v652_v3 = vadd.f32 %v651_v63, %v13114_v49  ;;  %8718 = vmatpush1.bf16.msra.mxu0 %v8717_v50  ;;  %10001 = vtanh.f32 %v1093_v52 }
 0x1ae   : > { %v1101_v4 = vadd.f32 %v1100_v1, %v13114_v49  ;;  %v9982_v6 = vpop.eup %9981  ;;  %8782 = vmatpush1.bf16.msra.mxu1 %v8717_v50  ;;  %8720 = vmatprep.subr.bf16.mxu0 %v8719_v53  ;;  %10003 = vtanh.f32 %v650_v62  ;;  %v655_v12 = vpop.f32.mrb[26].mxu0  ;;  %v8733_v62 = vpack.c.bf16 %v2050_v47, %v2048_v45 }
 0x1af   : > { %v9984_v11 = vpop.eup %9983  ;;  %1475 = vmatprep.mubr.f32.mxu0 %v9982_v6  ;;  %v1104_v13 = vpop.f32.mrb[26].mxu1  ;;  %8784 = vmatprep.subr.bf16.mxu1 %v8719_v53  ;;  %10005 = vtanh.f32 %v652_v3  ;;  %v656_v17 = vadd.f32 %v655_v12, %v13111_v0  ;;  %v2053_v53 = vld [vmem:[#allocation6 + $0x3a8] sm:$0xff]  ;;  %v2052_v3 = vld [vmem:[#allocation6 + $0x3a0] sm:$0xff] }
 0x1b0   : > { %v9986_v16 = vpop.eup %9985  ;;  %1732 = vmatprep.mubr.f32.mxu1 %v9984_v11  ;;  %1476 = vmatmul.mubr.f32.gmra.mrb[82].mxu0 %v9980_v2  ;;  %v657_v18 = vpop.f32.mrb[27].mxu0  ;;  %10007 = vtanh.f32 %v1101_v4  ;;  %v1105_v25 = vadd.f32 %v1104_v13, %v13111_v0  ;;  %v8735_v2 = vpack.c.bf16 %v2055_v54, %v2053_v53  ;;  %v2054_v4 = vld [vmem:[#allocation6 + $0x3b0] sm:$0xff] }
 0x1b1   : > { %v1106_v19 = vpop.f32.mrb[27].mxu1  ;;  %v9988_v20 = vpop.eup %9987  ;;  %1733 = vmatmul.mubr.f32.gmra.mrb[82].mxu1 %v9986_v16  ;;  %v658_v21 = vadd.f32 %v657_v18, %v13114_v49  ;;  %8722 = vmatpush1.bf16.msra.mxu0 %v8721_v5  ;;  %10009 = vtanh.f32 %v1099_v7 }
 0x1b2   : > { %v1107_v22 = vadd.f32 %v1106_v19, %v13114_v49  ;;  %v9990_v24 = vpop.eup %9989  ;;  %8786 = vmatpush1.bf16.msra.mxu1 %v8721_v5  ;;  %8724 = vmatprep.subr.bf16.mxu0 %v8723_v8  ;;  %10011 = vtanh.f32 %v656_v17  ;;  %v661_v30 = vpop.f32.mrb[28].mxu0  ;;  %v8737_v17 = vpack.c.bf16 %v2054_v4, %v2052_v3 }
 0x1b3   : > { %v9992_v29 = vpop.eup %9991  ;;  %1481 = vmatprep.mubr.f32.mxu0 %v9990_v24  ;;  %v1110_v31 = vpop.f32.mrb[28].mxu1  ;;  %8788 = vmatprep.subr.bf16.mxu1 %v8723_v8  ;;  %10013 = vtanh.f32 %v658_v21  ;;  %v662_v35 = vadd.f32 %v661_v30, %v13111_v0  ;;  %v2057_v8 = vld [vmem:[#allocation6 + $0x3c8] sm:$0xff] }
 0x1b4   : > { %v9994_v34 = vpop.eup %9993  ;;  %1738 = vmatprep.mubr.f32.mxu1 %v9992_v29  ;;  %1482 = vmatmul.mubr.f32.gmra.mrb[84].mxu0 %v9988_v20  ;;  %v663_v36 = vpop.f32.mrb[29].mxu0  ;;  %10015 = vtanh.f32 %v1107_v22  ;;  %v1111_v43 = vadd.f32 %v1110_v31, %v13111_v0  ;;  %v8739_v20 = vpack.c.bf16 %v2059_v9, %v2057_v8 }
 0x1b5   : > { %v1112_v37 = vpop.f32.mrb[29].mxu1  ;;  %v9996_v38 = vpop.eup %9995  ;;  %1739 = vmatmul.mubr.f32.gmra.mrb[84].mxu1 %v9994_v34  ;;  %v664_v39 = vadd.f32 %v663_v36, %v13114_v49  ;;  %8726 = vmatpush1.bf16.msra.mxu0 %v8725_v23  ;;  %10017 = vtanh.f32 %v1105_v25 }
 0x1b6   : > { %v1113_v40 = vadd.f32 %v1112_v37, %v13114_v49  ;;  %v9998_v42 = vpop.eup %9997  ;;  %8790 = vmatpush1.bf16.msra.mxu1 %v8725_v23  ;;  %8728 = vmatprep.subr.bf16.mxu0 %v8727_v26  ;;  %10019 = vtanh.f32 %v662_v35  ;;  %v667_v51 = vpop.f32.mrb[30].mxu0 }
 0x1b7   : > { %v10000_v50 = vpop.eup %9999  ;;  %1487 = vmatprep.mubr.f32.mxu0 %v9998_v42  ;;  %v1116_v52 = vpop.f32.mrb[30].mxu1  ;;  %8792 = vmatprep.subr.bf16.mxu1 %v8727_v26  ;;  %10021 = vtanh.f32 %v664_v39  ;;  %v668_v56 = vadd.f32 %v667_v51, %v13111_v0 }
 0x1b8   : > { %v10002_v55 = vpop.eup %10001  ;;  %1744 = vmatprep.mubr.f32.mxu1 %v10000_v50  ;;  %1488 = vmatmul.mubr.f32.gmra.mrb[86].mxu0 %v9996_v38  ;;  %v669_v57 = vpop.f32.mrb[31].mxu0  ;;  %10023 = vtanh.f32 %v1113_v40  ;;  %v1117_v1 = vadd.f32 %v1116_v52, %v13111_v0 }
 0x1b9   : > { %v1118_v58 = vpop.f32.mrb[31].mxu1  ;;  %v10004_v59 = vpop.eup %10003  ;;  %1745 = vmatmul.mubr.f32.gmra.mrb[86].mxu1 %v10002_v55  ;;  %v670_v60 = vadd.f32 %v669_v57, %v13114_v49  ;;  %8730 = vmatpush1.bf16.msra.mxu0 %v8729_v41  ;;  %10025 = vtanh.f32 %v1111_v43 }
 0x1ba   : > { %v1119_v61 = vadd.f32 %v1118_v58, %v13114_v49  ;;  %v10006_v63 = vpop.eup %10005  ;;  %8794 = vmatpush1.bf16.msra.mxu1 %v8729_v41  ;;  %8732 = vmatprep.subr.bf16.mxu0 %v8731_v44  ;;  %10027 = vtanh.f32 %v668_v56  ;;  %v673_v6 = vpop.f32.mrb[32].mxu0 }
 0x1bb   : > { %v10008_v5 = vpop.eup %10007  ;;  %1493 = vmatprep.mubr.f32.mxu0 %v10006_v63  ;;  %v1122_v7 = vpop.f32.mrb[32].mxu1  ;;  %8796 = vmatprep.subr.bf16.mxu1 %v8731_v44  ;;  %10029 = vtanh.f32 %v670_v60  ;;  %v674_v11 = vadd.f32 %v673_v6, %v13111_v0 }
 0x1bc   : > { %v10010_v10 = vpop.eup %10009  ;;  %1750 = vmatprep.mubr.f32.mxu1 %v10008_v5  ;;  %1494 = vmatmul.mubr.f32.gmra.mrb[88].mxu0 %v10004_v59  ;;  %v675_v12 = vpop.f32.mrb[33].mxu0  ;;  %10031 = vtanh.f32 %v1119_v61  ;;  %v1123_v19 = vadd.f32 %v1122_v7, %v13111_v0 }
 0x1bd   : > { %v1124_v13 = vpop.f32.mrb[33].mxu1  ;;  %v10012_v14 = vpop.eup %10011  ;;  %1751 = vmatmul.mubr.f32.gmra.mrb[88].mxu1 %v10010_v10  ;;  %v676_v15 = vadd.f32 %v675_v12, %v13114_v49  ;;  %8734 = vmatpush1.bf16.msra.mxu0 %v8733_v62  ;;  %10033 = vtanh.f32 %v1117_v1 }
 0x1be   : > { %v1125_v16 = vadd.f32 %v1124_v13, %v13114_v49  ;;  %v10014_v18 = vpop.eup %10013  ;;  %8798 = vmatpush1.bf16.msra.mxu1 %v8733_v62  ;;  %8736 = vmatprep.subr.bf16.mxu0 %v8735_v2  ;;  %10035 = vtanh.f32 %v674_v11  ;;  %v679_v22 = vpop.f32.mrb[34].mxu0 }
 0x1bf   : > { %v10016_v21 = vpop.eup %10015  ;;  %1499 = vmatprep.mubr.f32.mxu0 %v10014_v18  ;;  %v1128_v23 = vpop.f32.mrb[34].mxu1  ;;  %8800 = vmatprep.subr.bf16.mxu1 %v8735_v2  ;;  %10037 = vtanh.f32 %v676_v15  ;;  %v680_v25 = vadd.f32 %v679_v22, %v13111_v0 }
 0x1c0   : > { %v10018_v24 = vpop.eup %10017  ;;  %1756 = vmatprep.mubr.f32.mxu1 %v10016_v21  ;;  %1500 = vmatmul.mubr.f32.gmra.mrb[90].mxu0 %v10012_v14  ;;  %v681_v26 = vpop.f32.mrb[35].mxu0  ;;  %10039 = vtanh.f32 %v1125_v16  ;;  %v1129_v32 = vadd.f32 %v1128_v23, %v13111_v0 }
 0x1c1   : > { %v1130_v27 = vpop.f32.mrb[35].mxu1  ;;  %v10020_v28 = vpop.eup %10019  ;;  %1757 = vmatmul.mubr.f32.gmra.mrb[90].mxu1 %v10018_v24  ;;  %v682_v29 = vadd.f32 %v681_v26, %v13114_v49  ;;  %8738 = vmatpush1.bf16.msra.mxu0 %v8737_v17  ;;  %10041 = vtanh.f32 %v1123_v19 }
 0x1c2   : > { %v1131_v30 = vadd.f32 %v1130_v27, %v13114_v49  ;;  %v10022_v31 = vpop.eup %10021  ;;  %8802 = vmatpush1.bf16.msra.mxu1 %v8737_v17  ;;  %8740 = vmatprep.subr.bf16.mxu0 %v8739_v20  ;;  %10043 = vtanh.f32 %v680_v25  ;;  %v685_v34 = vpop.f32.mrb[36].mxu0 }
 0x1c3   : > { %v10024_v33 = vpop.eup %10023  ;;  %1505 = vmatprep.mubr.f32.mxu0 %v10022_v31  ;;  %v1134_v35 = vpop.f32.mrb[36].mxu1  ;;  %8804 = vmatprep.subr.bf16.mxu1 %v8739_v20  ;;  %10045 = vtanh.f32 %v682_v29  ;;  %v686_v37 = vadd.f32 %v685_v34, %v13111_v0 }
 0x1c4   : > { %v10026_v36 = vpop.eup %10025  ;;  %1762 = vmatprep.mubr.f32.mxu1 %v10024_v33  ;;  %1506 = vmatmul.mubr.f32.gmra.mrb[92].mxu0 %v10020_v28  ;;  %v687_v38 = vpop.f32.mrb[37].mxu0  ;;  %10047 = vtanh.f32 %v1131_v30  ;;  %v1135_v44 = vadd.f32 %v1134_v35, %v13111_v0 }
 0x1c5   : > { %v1136_v39 = vpop.f32.mrb[37].mxu1  ;;  %v10028_v40 = vpop.eup %10027  ;;  %1763 = vmatmul.mubr.f32.gmra.mrb[92].mxu1 %v10026_v36  ;;  %v688_v41 = vadd.f32 %v687_v38, %v13114_v49  ;;  %10049 = vtanh.f32 %v1129_v32 }
 0x1c6   : > { %v1137_v42 = vadd.f32 %v1136_v39, %v13114_v49  ;;  %v10030_v43 = vpop.eup %10029  ;;  %10051 = vtanh.f32 %v686_v37  ;;  %v691_v47 = vpop.f32.mrb[38].mxu0 }
 0x1c7   : > { %v10032_v45 = vpop.eup %10031  ;;  %1511 = vmatprep.mubr.f32.mxu0 %v10030_v43  ;;  %v1140_v50 = vpop.f32.mrb[38].mxu1  ;;  %10053 = vtanh.f32 %v688_v41  ;;  %v692_v52 = vadd.f32 %v691_v47, %v13111_v0 }
 0x1c8   : > { %v10034_v51 = vpop.eup %10033  ;;  %1768 = vmatprep.mubr.f32.mxu1 %v10032_v45  ;;  %1512 = vmatmul.mubr.f32.gmra.mrb[94].mxu0 %v10028_v40  ;;  %v693_v53 = vpop.f32.mrb[39].mxu0  ;;  %10055 = vtanh.f32 %v1137_v42  ;;  %v1141_v59 = vadd.f32 %v1140_v50, %v13111_v0 }
 0x1c9   : > { %v1142_v54 = vpop.f32.mrb[39].mxu1  ;;  %v10036_v55 = vpop.eup %10035  ;;  %1769 = vmatmul.mubr.f32.gmra.mrb[94].mxu1 %v10034_v51  ;;  %v694_v56 = vadd.f32 %v693_v53, %v13114_v49  ;;  %10057 = vtanh.f32 %v1135_v44 }
 0x1ca   : > { %v1143_v57 = vadd.f32 %v1142_v54, %v13114_v49  ;;  %v10038_v58 = vpop.eup %10037  ;;  %10059 = vtanh.f32 %v692_v52  ;;  %v697_v61 = vpop.f32.mrb[40].mxu0 }
 0x1cb   : > { %v10040_v60 = vpop.eup %10039  ;;  %1517 = vmatprep.mubr.f32.mxu0 %v10038_v58  ;;  %v1146_v62 = vpop.f32.mrb[40].mxu1  ;;  %10061 = vtanh.f32 %v694_v56  ;;  %v698_v1 = vadd.f32 %v697_v61, %v13111_v0 }
 0x1cc   : > { %v10042_v63 = vpop.eup %10041  ;;  %1774 = vmatprep.mubr.f32.mxu1 %v10040_v60  ;;  %1518 = vmatmul.mubr.f32.gmra.mrb[96].mxu0 %v10036_v55  ;;  %v699_v2 = vpop.f32.mrb[41].mxu0  ;;  %10063 = vtanh.f32 %v1143_v57  ;;  %v1147_v8 = vadd.f32 %v1146_v62, %v13111_v0 }
 0x1cd   : > { %v1148_v3 = vpop.f32.mrb[41].mxu1  ;;  %v10044_v4 = vpop.eup %10043  ;;  %1775 = vmatmul.mubr.f32.gmra.mrb[96].mxu1 %v10042_v63  ;;  %v700_v5 = vadd.f32 %v699_v2, %v13114_v49  ;;  %10065 = vtanh.f32 %v1141_v59 }
 0x1ce   : > { %v1149_v6 = vadd.f32 %v1148_v3, %v13114_v49  ;;  %v10046_v7 = vpop.eup %10045  ;;  %10067 = vtanh.f32 %v698_v1  ;;  %v703_v10 = vpop.f32.mrb[42].mxu0 }
 0x1cf   : > { %v10048_v9 = vpop.eup %10047  ;;  %1523 = vmatprep.mubr.f32.mxu0 %v10046_v7  ;;  %v1152_v11 = vpop.f32.mrb[42].mxu1  ;;  %10069 = vtanh.f32 %v700_v5  ;;  %v704_v13 = vadd.f32 %v703_v10, %v13111_v0 }
 0x1d0   : > { %v10050_v12 = vpop.eup %10049  ;;  %1780 = vmatprep.mubr.f32.mxu1 %v10048_v9  ;;  %1524 = vmatmul.mubr.f32.gmra.mrb[98].mxu0 %v10044_v4  ;;  %v705_v14 = vpop.f32.mrb[43].mxu0  ;;  %10071 = vtanh.f32 %v1149_v6  ;;  %v1153_v20 = vadd.f32 %v1152_v11, %v13111_v0 }
 0x1d1   : > { %v1154_v15 = vpop.f32.mrb[43].mxu1  ;;  %v10052_v16 = vpop.eup %10051  ;;  %1781 = vmatmul.mubr.f32.gmra.mrb[98].mxu1 %v10050_v12  ;;  %v706_v17 = vadd.f32 %v705_v14, %v13114_v49  ;;  %10073 = vtanh.f32 %v1147_v8  ;;  %v2056_v12 = vld [vmem:[#allocation6 + $0x3c0] sm:$0xff] }
 0x1d2   : > { %v1155_v18 = vadd.f32 %v1154_v15, %v13114_v49  ;;  %v10054_v19 = vpop.eup %10053  ;;  %10075 = vtanh.f32 %v704_v13  ;;  %v709_v22 = vpop.f32.mrb[44].mxu0  ;;  %v2058_v13 = vld [vmem:[#allocation6 + $0x3d0] sm:$0xff] }
 0x1d3   : > { %v10056_v21 = vpop.eup %10055  ;;  %1529 = vmatprep.mubr.f32.mxu0 %v10054_v19  ;;  %v1158_v23 = vpop.f32.mrb[44].mxu1  ;;  %10077 = vtanh.f32 %v706_v17  ;;  %v710_v25 = vadd.f32 %v709_v22, %v13111_v0 }
 0x1d4   : > { %v10058_v24 = vpop.eup %10057  ;;  %1786 = vmatprep.mubr.f32.mxu1 %v10056_v21  ;;  %1530 = vmatmul.mubr.f32.gmra.mrb[100].mxu0 %v10052_v16  ;;  %v711_v26 = vpop.f32.mrb[45].mxu0  ;;  %10079 = vtanh.f32 %v1155_v18  ;;  %v1159_v32 = vadd.f32 %v1158_v23, %v13111_v0  ;;  %v8741_v18 = vpack.c.bf16 %v2058_v13, %v2056_v12 }
 0x1d5   : > { %v1160_v27 = vpop.f32.mrb[45].mxu1  ;;  %v10060_v28 = vpop.eup %10059  ;;  %1787 = vmatmul.mubr.f32.gmra.mrb[100].mxu1 %v10058_v24  ;;  %v712_v29 = vadd.f32 %v711_v26, %v13114_v49  ;;  %10081 = vtanh.f32 %v1153_v20 }
 0x1d6   : > { %v1161_v30 = vadd.f32 %v1160_v27, %v13114_v49  ;;  %v10062_v31 = vpop.eup %10061  ;;  %10083 = vtanh.f32 %v710_v25  ;;  %v715_v34 = vpop.f32.mrb[46].mxu0  ;;  %8742 = vmatpush1.bf16.msra.mxu0 %v8741_v18  ;;  %8806 = vmatpush1.bf16.msra.mxu1 %v8741_v18 }
 0x1d7   : > { %v10064_v33 = vpop.eup %10063  ;;  %1535 = vmatprep.mubr.f32.mxu0 %v10062_v31  ;;  %v1164_v35 = vpop.f32.mrb[46].mxu1  ;;  %10085 = vtanh.f32 %v712_v29  ;;  %v716_v37 = vadd.f32 %v715_v34, %v13111_v0  ;;  %v2061_v34 = vld [vmem:[#allocation6 + $0x3e8] sm:$0xff] }
 0x1d8   : > { %v10066_v36 = vpop.eup %10065  ;;  %1792 = vmatprep.mubr.f32.mxu1 %v10064_v33  ;;  %1536 = vmatmul.mubr.f32.gmra.mrb[102].mxu0 %v10060_v28  ;;  %v717_v38 = vpop.f32.mrb[47].mxu0  ;;  %10087 = vtanh.f32 %v1161_v30  ;;  %v1165_v44 = vadd.f32 %v1164_v35, %v13111_v0  ;;  %v2063_v35 = vld [vmem:[#allocation6 + $0x3f8] sm:$0xff] }
 0x1d9   : > { %v1166_v39 = vpop.f32.mrb[47].mxu1  ;;  %v10068_v40 = vpop.eup %10067  ;;  %1793 = vmatmul.mubr.f32.gmra.mrb[102].mxu1 %v10066_v36  ;;  %v718_v41 = vadd.f32 %v717_v38, %v13114_v49  ;;  %10089 = vtanh.f32 %v1159_v32  ;;  %v8743_v38 = vpack.c.bf16 %v2063_v35, %v2061_v34 }
 0x1da   : > { %v1167_v42 = vadd.f32 %v1166_v39, %v13114_v49  ;;  %v10070_v43 = vpop.eup %10069  ;;  %10091 = vtanh.f32 %v716_v37  ;;  %v721_v47 = vpop.f32.mrb[48].mxu0 }
 0x1db   : > { %v10072_v45 = vpop.eup %10071  ;;  %1541 = vmatprep.mubr.f32.mxu0 %v10070_v43  ;;  %v1170_v50 = vpop.f32.mrb[48].mxu1  ;;  %10093 = vtanh.f32 %v718_v41  ;;  %v722_v52 = vadd.f32 %v721_v47, %v13111_v0  ;;  %v2062_v43 = vld [vmem:[#allocation6 + $0x3f0] sm:$0xff]  ;;  %8744 = vmatprep.subr.bf16.mxu0 %v8743_v38 }
 0x1dc   : > { %v10074_v51 = vpop.eup %10073  ;;  %1798 = vmatprep.mubr.f32.mxu1 %v10072_v45  ;;  %1542 = vmatmul.mubr.f32.gmra.mrb[104].mxu0 %v10068_v40  ;;  %v723_v53 = vpop.f32.mrb[49].mxu0  ;;  %10095 = vtanh.f32 %v1167_v42  ;;  %v1171_v59 = vadd.f32 %v1170_v50, %v13111_v0  ;;  %v2060_v42 = vld [vmem:[#allocation6 + $0x3e0] sm:$0xff] }
 0x1dd   : > { %v1172_v54 = vpop.f32.mrb[49].mxu1  ;;  %v10076_v55 = vpop.eup %10075  ;;  %1799 = vmatmul.mubr.f32.gmra.mrb[104].mxu1 %v10074_v51  ;;  %v724_v56 = vadd.f32 %v723_v53, %v13114_v49  ;;  %10097 = vtanh.f32 %v1165_v44  ;;  %v8745_v51 = vpack.c.bf16 %v2062_v43, %v2060_v42  ;;  %8808 = vmatprep.subr.bf16.mxu1 %v8743_v38  ;;  %v2721_v42 = vld [vmem:[#allocation6 + $0x408] sm:$0xff]  ;;  %v2723_v43 = vld [vmem:[#allocation6 + $0x418] sm:$0xff] }
 0x1de   : > { %v1173_v57 = vadd.f32 %v1172_v54, %v13114_v49  ;;  %v10078_v58 = vpop.eup %10077  ;;  %10099 = vtanh.f32 %v722_v52  ;;  %v727_v61 = vpop.f32.mrb[50].mxu0 }
 0x1df   : > { %v10080_v60 = vpop.eup %10079  ;;  %1547 = vmatprep.mubr.f32.mxu0 %v10078_v58  ;;  %v1176_v62 = vpop.f32.mrb[50].mxu1  ;;  %10101 = vtanh.f32 %v724_v56  ;;  %v728_v1 = vadd.f32 %v727_v61, %v13111_v0  ;;  %8746 = vmatpush1.bf16.msra.mxu0 %v8745_v51 }
 0x1e0   : > { %v10082_v63 = vpop.eup %10081  ;;  %1804 = vmatprep.mubr.f32.mxu1 %v10080_v60  ;;  %1548 = vmatmul.mubr.f32.gmra.mrb[106].mxu0 %v10076_v55  ;;  %v729_v2 = vpop.f32.mrb[51].mxu0  ;;  %10103 = vtanh.f32 %v1173_v57  ;;  %v1177_v8 = vadd.f32 %v1176_v62, %v13111_v0 }
 0x1e1   : > { %v1178_v3 = vpop.f32.mrb[51].mxu1  ;;  %v10084_v4 = vpop.eup %10083  ;;  %1805 = vmatmul.mubr.f32.gmra.mrb[106].mxu1 %v10082_v63  ;;  %v730_v5 = vadd.f32 %v729_v2, %v13114_v49  ;;  %10105 = vtanh.f32 %v1171_v59 }
 0x1e2   : > { %v1179_v6 = vadd.f32 %v1178_v3, %v13114_v49  ;;  %v10086_v7 = vpop.eup %10085  ;;  %10107 = vtanh.f32 %v728_v1  ;;  %v733_v10 = vpop.f32.mrb[52].mxu0  ;;  %8810 = vmatpush1.bf16.msra.mxu1 %v8745_v51 }
 0x1e3   : > { %v10088_v9 = vpop.eup %10087  ;;  %1553 = vmatprep.mubr.f32.mxu0 %v10086_v7  ;;  %v1182_v11 = vpop.f32.mrb[52].mxu1  ;;  %10109 = vtanh.f32 %v730_v5  ;;  %v734_v15 = vadd.f32 %v733_v10, %v13111_v0 }
 0x1e4   : > { %v10090_v14 = vpop.eup %10089  ;;  %1810 = vmatprep.mubr.f32.mxu1 %v10088_v9  ;;  %1554 = vmatmul.mubr.f32.gmra.mrb[108].mxu0 %v10084_v4  ;;  %v735_v16 = vpop.f32.mrb[53].mxu0  ;;  %10111 = vtanh.f32 %v1179_v6  ;;  %v1183_v23 = vadd.f32 %v1182_v11, %v13111_v0 }
 0x1e5   : > { %v1184_v17 = vpop.f32.mrb[53].mxu1  ;;  %v10092_v19 = vpop.eup %10091  ;;  %1811 = vmatmul.mubr.f32.gmra.mrb[108].mxu1 %v10090_v14  ;;  %v736_v20 = vadd.f32 %v735_v16, %v13114_v49  ;;  %10113 = vtanh.f32 %v1177_v8 }
 0x1e6   : > { %v1185_v21 = vadd.f32 %v1184_v17, %v13114_v49  ;;  %v10094_v22 = vpop.eup %10093  ;;  %10115 = vtanh.f32 %v734_v15  ;;  %v739_v25 = vpop.f32.mrb[54].mxu0 }
 0x1e7   : > { %v10096_v24 = vpop.eup %10095  ;;  %1559 = vmatprep.mubr.f32.mxu0 %v10094_v22  ;;  %v1188_v26 = vpop.f32.mrb[54].mxu1  ;;  %10117 = vtanh.f32 %v736_v20  ;;  %v740_v28 = vadd.f32 %v739_v25, %v13111_v0 }
 0x1e8   : > { %v10098_v27 = vpop.eup %10097  ;;  %1816 = vmatprep.mubr.f32.mxu1 %v10096_v24  ;;  %1560 = vmatmul.mubr.f32.gmra.mrb[110].mxu0 %v10092_v19  ;;  %v741_v29 = vpop.f32.mrb[55].mxu0  ;;  %10119 = vtanh.f32 %v1185_v21  ;;  %v1189_v37 = vadd.f32 %v1188_v26, %v13111_v0 }
 0x1e9   : > { %v1190_v30 = vpop.f32.mrb[55].mxu1  ;;  %v10100_v31 = vpop.eup %10099  ;;  %1817 = vmatmul.mubr.f32.gmra.mrb[110].mxu1 %v10098_v27  ;;  %v742_v32 = vadd.f32 %v741_v29, %v13114_v49  ;;  %10121 = vtanh.f32 %v1183_v23 }
 0x1ea   : > { %v1191_v33 = vadd.f32 %v1190_v30, %v13114_v49  ;;  %v10102_v36 = vpop.eup %10101  ;;  %10123 = vtanh.f32 %v740_v28  ;;  %v745_v40 = vpop.f32.mrb[56].mxu0 }
 0x1eb   : > { %v10104_v39 = vpop.eup %10103  ;;  %1565 = vmatprep.mubr.f32.mxu0 %v10102_v36  ;;  %v1194_v41 = vpop.f32.mrb[56].mxu1  ;;  %10125 = vtanh.f32 %v742_v32  ;;  %v746_v45 = vadd.f32 %v745_v40, %v13111_v0 }
 0x1ec   : > { %v10106_v44 = vpop.eup %10105  ;;  %1822 = vmatprep.mubr.f32.mxu1 %v10104_v39  ;;  %1566 = vmatmul.mubr.f32.gmra.mrb[112].mxu0 %v10100_v31  ;;  %v747_v47 = vpop.f32.mrb[57].mxu0  ;;  %10127 = vtanh.f32 %v1191_v33  ;;  %v1195_v56 = vadd.f32 %v1194_v41, %v13111_v0 }
 0x1ed   : > { %v1196_v50 = vpop.f32.mrb[57].mxu1  ;;  %v10108_v52 = vpop.eup %10107  ;;  %1823 = vmatmul.mubr.f32.gmra.mrb[112].mxu1 %v10106_v44  ;;  %v748_v53 = vadd.f32 %v747_v47, %v13114_v49  ;;  %10129 = vtanh.f32 %v1189_v37  ;;  %v8811_v44 = vpack.c.bf16 %v2723_v43, %v2721_v42 }
 0x1ee   : > { %v1197_v54 = vadd.f32 %v1196_v50, %v13114_v49  ;;  %v10110_v55 = vpop.eup %10109  ;;  %10131 = vtanh.f32 %v746_v45  ;;  %v751_v58 = vpop.f32.mrb[58].mxu0  ;;  %v1345_v45 = vld [vmem:[#allocation7] ss:$8 sm:$0x3] }
 0x1ef   : > { %v10112_v57 = vpop.eup %10111  ;;  %1571 = vmatprep.mubr.f32.mxu0 %v10110_v55  ;;  %v1200_v59 = vpop.f32.mrb[58].mxu1  ;;  %10133 = vtanh.f32 %v748_v53  ;;  %v752_v61 = vadd.f32 %v751_v58, %v13111_v0  ;;  %8812 = vmatprep.subr.bf16.mxu0 %v8811_v44  ;;  %v13245_v47 = vrot.slane %v1345_v45, %v13106_v46  ;;  %v13248_v50 = vrot.slane %v1345_v45, %v13108_v48  ;;  %v2730_v45 = vld [vmem:[#allocation6 + $0x450] sm:$0xff] }
 0x1f0   : > { %v10114_v60 = vpop.eup %10113  ;;  %1828 = vmatprep.mubr.f32.mxu1 %v10112_v57  ;;  %1572 = vmatmul.mubr.f32.gmra.mrb[114].mxu0 %v10108_v52  ;;  %v753_v62 = vpop.f32.mrb[59].mxu0  ;;  %10135 = vtanh.f32 %v1197_v54  ;;  %v1201_v5 = vadd.f32 %v1200_v59, %v13111_v0 }
 0x1f1   : > { %v1202_v63 = vpop.f32.mrb[59].mxu1  ;;  %v10116_v1 = vpop.eup %10115  ;;  %1829 = vmatmul.mubr.f32.gmra.mrb[114].mxu1 %v10114_v60  ;;  %v754_v2 = vadd.f32 %v753_v62, %v13114_v49  ;;  %10137 = vtanh.f32 %v1195_v56  ;;  %8876 = vmatprep.subr.bf16.mxu1 %v8811_v44  ;;  %v2728_v44 = vld [vmem:[#allocation6 + $0x440] sm:$0xff] }
 0x1f2   : > { %v1203_v3 = vadd.f32 %v1202_v63, %v13114_v49  ;;  %v10118_v4 = vpop.eup %10117  ;;  %10139 = vtanh.f32 %v752_v61  ;;  %v757_v7 = vpop.f32.mrb[60].mxu0 }
 0x1f3   : > { %v10120_v6 = vpop.eup %10119  ;;  %1577 = vmatprep.mubr.f32.mxu0 %v10118_v4  ;;  %v1206_v8 = vpop.f32.mrb[60].mxu1  ;;  %10141 = vtanh.f32 %v754_v2  ;;  %v758_v10 = vadd.f32 %v757_v7, %v13111_v0 }
 0x1f4   : > { %v10122_v9 = vpop.eup %10121  ;;  %1834 = vmatprep.mubr.f32.mxu1 %v10120_v6  ;;  %1578 = vmatmul.mubr.f32.gmra.mrb[116].mxu0 %v10116_v1  ;;  %v759_v11 = vpop.f32.mrb[61].mxu0  ;;  %10143 = vtanh.f32 %v1203_v3  ;;  %v1207_v17 = vadd.f32 %v1206_v8, %v13111_v0 }
 0x1f5   : > { %v1208_v12 = vpop.f32.mrb[61].mxu1  ;;  %v10124_v13 = vpop.eup %10123  ;;  %1835 = vmatmul.mubr.f32.gmra.mrb[116].mxu1 %v10122_v9  ;;  %v760_v14 = vadd.f32 %v759_v11, %v13114_v49  ;;  %10145 = vtanh.f32 %v1201_v5 }
 0x1f6   : > { %v1209_v15 = vadd.f32 %v1208_v12, %v13114_v49  ;;  %v10126_v16 = vpop.eup %10125  ;;  %10147 = vtanh.f32 %v758_v10  ;;  %v763_v19 = vpop.f32.mrb[62].mxu0  ;;  %v2720_v12 = vld [vmem:[#allocation6 + $0x400] sm:$0xff] }
 0x1f7   : > { %v10128_v18 = vpop.eup %10127  ;;  %1583 = vmatprep.mubr.f32.mxu0 %v10126_v16  ;;  %v1212_v20 = vpop.f32.mrb[62].mxu1  ;;  %10149 = vtanh.f32 %v760_v14  ;;  %v764_v22 = vadd.f32 %v763_v19, %v13111_v0  ;;  %v2727_v16 = vld [vmem:[#allocation6 + $0x438] sm:$0xff] }
 0x1f8   : > { %v10130_v21 = vpop.eup %10129  ;;  %1840 = vmatprep.mubr.f32.mxu1 %v10128_v18  ;;  %1584 = vmatmul.mubr.f32.gmra.mrb[118].mxu0 %v10124_v13  ;;  %v765_v23 = vpop.f32.mrb[63].mxu0  ;;  %10151 = vtanh.f32 %v1209_v15  ;;  %v1213_v29 = vadd.f32 %v1212_v20, %v13111_v0  ;;  %v2722_v13 = vld [vmem:[#allocation6 + $0x410] sm:$0xff]  ;;  %v2725_v15 = vld [vmem:[#allocation6 + $0x428] sm:$0xff] }
 0x1f9   : > { %v1214_v24 = vpop.f32.mrb[63].mxu1  ;;  %v10132_v25 = vpop.eup %10131  ;;  %1841 = vmatmul.mubr.f32.gmra.mrb[118].mxu1 %v10130_v21  ;;  %v766_v26 = vadd.f32 %v765_v23, %v13114_v49  ;;  %10153 = vtanh.f32 %v1207_v17  ;;  %v8813_v23 = vpack.c.bf16 %v2722_v13, %v2720_v12 }
 0x1fa   : > { %v1215_v27 = vadd.f32 %v1214_v24, %v13114_v49  ;;  %v10134_v28 = vpop.eup %10133  ;;  %10155 = vtanh.f32 %v764_v22 }
 0x1fb   : > { %v10136_v30 = vpop.eup %10135  ;;  %1589 = vmatprep.mubr.f32.mxu0 %v10134_v28  ;;  %10157 = vtanh.f32 %v766_v26  ;;  %v2724_v28 = vld [vmem:[#allocation6 + $0x420] sm:$0xff] }
 0x1fc   : > { %v10138_v31 = vpop.eup %10137  ;;  %1846 = vmatprep.mubr.f32.mxu1 %v10136_v30  ;;  %1590 = vmatmul.mubr.f32.gmra.mrb[120].mxu0 %v10132_v25  ;;  %10159 = vtanh.f32 %v1215_v27  ;;  %v8815_v27 = vpack.c.bf16 %v2727_v16, %v2725_v15 }
 0x1fd   : > { %v10140_v32 = vpop.eup %10139  ;;  %1847 = vmatmul.mubr.f32.gmra.mrb[120].mxu1 %v10138_v31  ;;  %10161 = vtanh.f32 %v1213_v29  ;;  %v2726_v29 = vld [vmem:[#allocation6 + $0x430] sm:$0xff] }
 0x1fe   : > { %v10142_v33 = vpop.eup %10141 }
 0x1ff   : > { %v10144_v34 = vpop.eup %10143  ;;  %1595 = vmatprep.mubr.f32.mxu0 %v10142_v33  ;;  %v2731_v33 = vld [vmem:[#allocation6 + $0x458] sm:$0xff] }
 0x200   : > { %v10146_v35 = vpop.eup %10145  ;;  %1852 = vmatprep.mubr.f32.mxu1 %v10144_v34  ;;  %1596 = vmatmul.mubr.f32.gmra.mrb[122].mxu0 %v10140_v32  ;;  %v2729_v32 = vld [vmem:[#allocation6 + $0x448] sm:$0xff] }
 0x201   : > { %v10148_v49 = vpop.eup %10147  ;;  %1853 = vmatmul.mubr.f32.gmra.mrb[122].mxu1 %v10146_v35  ;;  %v8819_v43 = vpack.c.bf16 %v2731_v33, %v2729_v32 }
 0x202   : > { %v10150_v0 = vpop.eup %10149 }
 0x203   : > { %v10152_v36 = vpop.eup %10151  ;;  %1601 = vmatprep.mubr.f32.mxu0 %v10150_v0 }
 0x204   : > { %v10154_v37 = vpop.eup %10153  ;;  %1858 = vmatprep.mubr.f32.mxu1 %v10152_v36  ;;  %1602 = vmatmul.mubr.f32.gmra.mrb[124].mxu0 %v10148_v49 }
 0x205   : > { %v10156_v38 = vpop.eup %10155  ;;  %1859 = vmatmul.mubr.f32.gmra.mrb[124].mxu1 %v10154_v37 }
 0x206   : > { %v10158_v39 = vpop.eup %10157 }
 0x207   : > { %v10160_v40 = vpop.eup %10159  ;;  %1607 = vmatprep.mubr.f32.mxu0 %v10158_v39  ;;  %v8817_v39 = vpack.c.bf16 %v2726_v29, %v2724_v28 }
 0x208   : > { %v10162_v41 = vpop.eup %10161  ;;  %1864 = vmatprep.mubr.f32.mxu1 %v10160_v40  ;;  %1608 = vmatmul.mubr.f32.gmra.mrb[126].mxu0 %v10156_v38 }
 0x209   : > { %1865 = vmatmul.mubr.f32.gmra.mrb[126].mxu1 %v10162_v41 }
 0x25e   : > { %v1423_v51 = vpop.f32.mrb[64].mxu0 }
 0x25f   : > { %v1424_v52 = vadd.f32 %v1423_v51, %v13245_v47  ;;  %v1680_v53 = vpop.f32.mrb[64].mxu1  ;;  %v1425_v54 = vpop.f32.mrb[65].mxu0 }
 0x260   : > { %v1426_v55 = vadd.f32 %v1425_v54, %v13248_v50  ;;  %v1682_v56 = vpop.f32.mrb[65].mxu1  ;;  %v1681_v57 = vadd.f32 %v1680_v53, %v13245_v47  ;;  %v2733_v53 = vld [vmem:[#allocation6 + $0x468] sm:$0xff]  ;;  %v2735_v54 = vld [vmem:[#allocation6 + $0x478] sm:$0xff] }
 0x261   : > { %v1683_v58 = vadd.f32 %v1682_v56, %v13248_v50  ;;  %10163 = vtanh.f32 %v1424_v52 }
 0x262   : > { %10165 = vtanh.f32 %v1426_v55 }
 0x263   : > { %v1429_v59 = vpop.f32.mrb[66].mxu0  ;;  %10167 = vtanh.f32 %v1683_v58 }
 0x264   : > { %v1430_v60 = vadd.f32 %v1429_v59, %v13245_v47  ;;  %v1686_v61 = vpop.f32.mrb[66].mxu1  ;;  %v1431_v62 = vpop.f32.mrb[67].mxu0  ;;  %10169 = vtanh.f32 %v1681_v57 }
 0x265   : > { %v1432_v63 = vadd.f32 %v1431_v62, %v13248_v50  ;;  %v1688_v1 = vpop.f32.mrb[67].mxu1  ;;  %v1687_v2 = vadd.f32 %v1686_v61, %v13245_v47  ;;  %v8821_v62 = vpack.c.bf16 %v2730_v45, %v2728_v44 }
 0x266   : > { %v1689_v3 = vadd.f32 %v1688_v1, %v13248_v50  ;;  %10171 = vtanh.f32 %v1430_v60 }
 0x267   : > { %v1435_v4 = vpop.f32.mrb[68].mxu0  ;;  %10173 = vtanh.f32 %v1432_v63 }
 0x268   : > { %v1436_v5 = vadd.f32 %v1435_v4, %v13245_v47  ;;  %v1692_v6 = vpop.f32.mrb[68].mxu1  ;;  %v1437_v7 = vpop.f32.mrb[69].mxu0  ;;  %10175 = vtanh.f32 %v1689_v3  ;;  %v8823_v3 = vpack.c.bf16 %v2735_v54, %v2733_v53  ;;  %v2732_v4 = vld [vmem:[#allocation6 + $0x460] sm:$0xff] }
 0x269   : > { %v1438_v8 = vadd.f32 %v1437_v7, %v13248_v50  ;;  %v1694_v9 = vpop.f32.mrb[69].mxu1  ;;  %10177 = vtanh.f32 %v1687_v2  ;;  %v1693_v10 = vadd.f32 %v1692_v6, %v13245_v47 }
 0x26a   : > { %v1695_v11 = vadd.f32 %v1694_v9, %v13248_v50  ;;  %10179 = vtanh.f32 %v1436_v5  ;;  %v2734_v5 = vld [vmem:[#allocation6 + $0x470] sm:$0xff]  ;;  %v2739_v9 = vld [vmem:[#allocation6 + $0x498] sm:$0xff] }
 0x26b   : > { %v1441_v14 = vpop.f32.mrb[70].mxu0  ;;  %10181 = vtanh.f32 %v1438_v8  ;;  %v10164_v20 = vpop.eup %10163  ;;  %v2737_v8 = vld [vmem:[#allocation6 + $0x488] sm:$0xff] }
 0x26c   : > { %v1442_v17 = vadd.f32 %v1441_v14, %v13245_v47  ;;  %v1698_v18 = vpop.f32.mrb[70].mxu1  ;;  %v1443_v19 = vpop.f32.mrb[71].mxu0  ;;  %10183 = vtanh.f32 %v1695_v11 }
 0x26d   : > { %v1444_v21 = vadd.f32 %v1443_v19, %v13248_v50  ;;  %v1700_v22 = vpop.f32.mrb[71].mxu1  ;;  %v10166_v24 = vpop.eup %10165  ;;  %10185 = vtanh.f32 %v1693_v10  ;;  %v1699_v25 = vadd.f32 %v1698_v18, %v13245_v47 }
 0x26e   : > { %v1701_v26 = vadd.f32 %v1700_v22, %v13248_v50  ;;  %v10168_v30 = vpop.eup %10167  ;;  %10187 = vtanh.f32 %v1442_v17  ;;  %2141 = vmatprep.mubr.f32.mxu0 %v10166_v24  ;;  %v8825_v17 = vpack.c.bf16 %v2734_v5, %v2732_v4  ;;  %v2736_v22 = vld [vmem:[#allocation6 + $0x480] sm:$0xff] }
 0x26f   : > { %v1447_v31 = vpop.f32.mrb[72].mxu0  ;;  %v10170_v34 = vpop.eup %10169  ;;  %10189 = vtanh.f32 %v1444_v21  ;;  %2398 = vmatprep.mubr.f32.mxu1 %v10168_v30  ;;  %2142 = vmatmul.mubr.f32.vlgmr.msra.gmra.mrb[128].mxu0 %v10164_v20  ;;  %v8827_v21 = vpack.c.bf16 %v2739_v9, %v2737_v8 }
 0x270   : > { %v1448_v35 = vadd.f32 %v1447_v31, %v13245_v47  ;;  %v1704_v49 = vpop.f32.mrb[72].mxu1  ;;  %v1449_v0 = vpop.f32.mrb[73].mxu0  ;;  %10191 = vtanh.f32 %v1701_v26  ;;  %2399 = vmatmul.mubr.f32.vlgmr.msra.gmra.mrb[128].mxu1 %v10170_v34  ;;  %8814 = vmatpush1.bf16.msra.mxu0 %v8813_v23  ;;  %v2741_v26 = vld [vmem:[#allocation6 + $0x4a8] sm:$0xff] }
 0x271   : > { %v10172_v36 = vpop.eup %10171  ;;  %v1450_v37 = vadd.f32 %v1449_v0, %v13248_v50  ;;  %v1706_v38 = vpop.f32.mrb[73].mxu1  ;;  %10193 = vtanh.f32 %v1699_v25  ;;  %v1705_v41 = vadd.f32 %v1704_v49, %v13245_v47  ;;  %8878 = vmatpush1.bf16.msra.mxu1 %v8813_v23  ;;  %8816 = vmatprep.subr.bf16.mxu0 %v8815_v27  ;;  %v2738_v23 = vld [vmem:[#allocation6 + $0x490] sm:$0xff] }
 0x272   : > { %v10174_v40 = vpop.eup %10173  ;;  %v1707_v42 = vadd.f32 %v1706_v38, %v13248_v50  ;;  %10195 = vtanh.f32 %v1448_v35  ;;  %8880 = vmatprep.subr.bf16.mxu1 %v8815_v27  ;;  %v2743_v27 = vld [vmem:[#allocation6 + $0x4b8] sm:$0xff]  ;;  %v8829_v35 = vpack.c.bf16 %v2738_v23, %v2736_v22  ;;  %v2740_v38 = vld [vmem:[#allocation6 + $0x4a0] sm:$0xff] }
 0x273   : > { %v10176_v51 = vpop.eup %10175  ;;  %2147 = vmatprep.mubr.f32.mxu0 %v10174_v40  ;;  %v1453_v52 = vpop.f32.mrb[74].mxu0  ;;  %10197 = vtanh.f32 %v1450_v37  ;;  %v8831_v37 = vpack.c.bf16 %v2743_v27, %v2741_v26 }
 0x274   : > { %v10178_v55 = vpop.eup %10177  ;;  %2404 = vmatprep.mubr.f32.mxu1 %v10176_v51  ;;  %v1454_v56 = vadd.f32 %v1453_v52, %v13245_v47  ;;  %v1710_v57 = vpop.f32.mrb[74].mxu1  ;;  %2148 = vmatmul.mubr.f32.gmra.mrb[130].mxu0 %v10172_v36  ;;  %10199 = vtanh.f32 %v1707_v42  ;;  %v2745_v42 = vld [vmem:[#allocation6 + $0x4c8] sm:$0xff] }
 0x275   : > { %v1455_v58 = vpop.f32.mrb[75].mxu0  ;;  %v10180_v59 = vpop.eup %10179  ;;  %2405 = vmatmul.mubr.f32.gmra.mrb[130].mxu1 %v10178_v55  ;;  %8818 = vmatpush1.bf16.msra.mxu0 %v8817_v39  ;;  %10201 = vtanh.f32 %v1705_v41  ;;  %v1711_v1 = vadd.f32 %v1710_v57, %v13245_v47 }
 0x276   : > { %v1456_v60 = vadd.f32 %v1455_v58, %v13248_v50  ;;  %v1712_v61 = vpop.f32.mrb[75].mxu1  ;;  %v10182_v63 = vpop.eup %10181  ;;  %8882 = vmatpush1.bf16.msra.mxu1 %v8817_v39  ;;  %8820 = vmatprep.subr.bf16.mxu0 %v8819_v43  ;;  %10203 = vtanh.f32 %v1454_v56  ;;  %v2742_v39 = vld [vmem:[#allocation6 + $0x4b0] sm:$0xff] }
 0x277   : > { %v1713_v2 = vadd.f32 %v1712_v61, %v13248_v50  ;;  %v10184_v6 = vpop.eup %10183  ;;  %2153 = vmatprep.mubr.f32.mxu0 %v10182_v63  ;;  %v1459_v7 = vpop.f32.mrb[76].mxu0  ;;  %8884 = vmatprep.subr.bf16.mxu1 %v8819_v43  ;;  %v2747_v43 = vld [vmem:[#allocation6 + $0x4d8] sm:$0xff]  ;;  %v8833_v56 = vpack.c.bf16 %v2742_v39, %v2740_v38  ;;  %v2744_v61 = vld [vmem:[#allocation6 + $0x4c0] sm:$0xff] }
 0x278   : > { %v10186_v10 = vpop.eup %10185  ;;  %10205 = vtanh.f32 %v1456_v60  ;;  %2410 = vmatprep.mubr.f32.mxu1 %v10184_v6  ;;  %v1460_v11 = vadd.f32 %v1459_v7, %v13245_v47  ;;  %v1716_v12 = vpop.f32.mrb[76].mxu1  ;;  %2154 = vmatmul.mubr.f32.gmra.mrb[132].mxu0 %v10180_v59  ;;  %v8835_v60 = vpack.c.bf16 %v2747_v43, %v2745_v42 }
 0x279   : > { %v1461_v13 = vpop.f32.mrb[77].mxu0  ;;  %v10188_v14 = vpop.eup %10187  ;;  %10207 = vtanh.f32 %v1713_v2  ;;  %2411 = vmatmul.mubr.f32.gmra.mrb[132].mxu1 %v10186_v10  ;;  %8822 = vmatpush1.bf16.msra.mxu0 %v8821_v62  ;;  %v1717_v19 = vadd.f32 %v1716_v12, %v13245_v47  ;;  %v2749_v2 = vld [vmem:[#allocation6 + $0x4e8] sm:$0xff] }
 0x27a   : > { %v1462_v15 = vadd.f32 %v1461_v13, %v13248_v50  ;;  %v1718_v16 = vpop.f32.mrb[77].mxu1  ;;  %v10190_v18 = vpop.eup %10189  ;;  %10209 = vtanh.f32 %v1711_v1  ;;  %8886 = vmatpush1.bf16.msra.mxu1 %v8821_v62  ;;  %8824 = vmatprep.subr.bf16.mxu0 %v8823_v3  ;;  %v2746_v62 = vld [vmem:[#allocation6 + $0x4d0] sm:$0xff] }
 0x27b   : > { %v1719_v20 = vadd.f32 %v1718_v16, %v13248_v50  ;;  %v10192_v24 = vpop.eup %10191  ;;  %10211 = vtanh.f32 %v1460_v11  ;;  %2159 = vmatprep.mubr.f32.mxu0 %v10190_v18  ;;  %v1465_v25 = vpop.f32.mrb[78].mxu0  ;;  %8888 = vmatprep.subr.bf16.mxu1 %v8823_v3  ;;  %v2751_v3 = vld [vmem:[#allocation6 + $0x4f8] sm:$0xff]  ;;  %v8837_v11 = vpack.c.bf16 %v2746_v62, %v2744_v61  ;;  %v2748_v16 = vld [vmem:[#allocation6 + $0x4e0] sm:$0xff] }
 0x27c   : > { %v10194_v28 = vpop.eup %10193  ;;  %10213 = vtanh.f32 %v1462_v15  ;;  %2416 = vmatprep.mubr.f32.mxu1 %v10192_v24  ;;  %v1466_v29 = vadd.f32 %v1465_v25, %v13245_v47  ;;  %v1722_v30 = vpop.f32.mrb[78].mxu1  ;;  %2160 = vmatmul.mubr.f32.gmra.mrb[134].mxu0 %v10188_v14  ;;  %v8839_v15 = vpack.c.bf16 %v2751_v3, %v2749_v2 }
 0x27d   : > { %v1467_v31 = vpop.f32.mrb[79].mxu0  ;;  %v10196_v32 = vpop.eup %10195  ;;  %10215 = vtanh.f32 %v1719_v20  ;;  %2417 = vmatmul.mubr.f32.gmra.mrb[134].mxu1 %v10194_v28  ;;  %8826 = vmatpush1.bf16.msra.mxu0 %v8825_v17  ;;  %v1723_v0 = vadd.f32 %v1722_v30, %v13245_v47  ;;  %v2753_v20 = vld [vmem:[#allocation6 + $0x508] sm:$0xff] }
 0x27e   : > { %v1468_v33 = vadd.f32 %v1467_v31, %v13248_v50  ;;  %v1724_v34 = vpop.f32.mrb[79].mxu1  ;;  %v10198_v49 = vpop.eup %10197  ;;  %10217 = vtanh.f32 %v1717_v19  ;;  %8890 = vmatpush1.bf16.msra.mxu1 %v8825_v17  ;;  %8828 = vmatprep.subr.bf16.mxu0 %v8827_v21  ;;  %v2750_v17 = vld [vmem:[#allocation6 + $0x4f0] sm:$0xff] }
 0x27f   : > { %v1725_v36 = vadd.f32 %v1724_v34, %v13248_v50  ;;  %v10200_v40 = vpop.eup %10199  ;;  %10219 = vtanh.f32 %v1466_v29  ;;  %2165 = vmatprep.mubr.f32.mxu0 %v10198_v49  ;;  %v1471_v41 = vpop.f32.mrb[80].mxu0  ;;  %8892 = vmatprep.subr.bf16.mxu1 %v8827_v21  ;;  %v2755_v21 = vld [vmem:[#allocation6 + $0x518] sm:$0xff]  ;;  %v8841_v29 = vpack.c.bf16 %v2750_v17, %v2748_v16  ;;  %v2752_v34 = vld [vmem:[#allocation6 + $0x500] sm:$0xff] }
 0x280   : > { %v10202_v44 = vpop.eup %10201  ;;  %10221 = vtanh.f32 %v1468_v33  ;;  %2422 = vmatprep.mubr.f32.mxu1 %v10200_v40  ;;  %v1472_v45 = vadd.f32 %v1471_v41, %v13245_v47  ;;  %v1728_v51 = vpop.f32.mrb[80].mxu1  ;;  %2166 = vmatmul.mubr.f32.gmra.mrb[136].mxu0 %v10196_v32  ;;  %v8843_v33 = vpack.c.bf16 %v2755_v21, %v2753_v20 }
 0x281   : > { %v1473_v52 = vpop.f32.mrb[81].mxu0  ;;  %v10204_v53 = vpop.eup %10203  ;;  %10223 = vtanh.f32 %v1725_v36  ;;  %2423 = vmatmul.mubr.f32.gmra.mrb[136].mxu1 %v10202_v44  ;;  %8830 = vmatpush1.bf16.msra.mxu0 %v8829_v35  ;;  %v1729_v58 = vadd.f32 %v1728_v51, %v13245_v47  ;;  %v2757_v36 = vld [vmem:[#allocation6 + $0x528] sm:$0xff] }
 0x282   : > { %v1474_v54 = vadd.f32 %v1473_v52, %v13248_v50  ;;  %v1730_v55 = vpop.f32.mrb[81].mxu1  ;;  %v10206_v57 = vpop.eup %10205  ;;  %10225 = vtanh.f32 %v1723_v0  ;;  %8894 = vmatpush1.bf16.msra.mxu1 %v8829_v35  ;;  %8832 = vmatprep.subr.bf16.mxu0 %v8831_v37  ;;  %v2754_v35 = vld [vmem:[#allocation6 + $0x510] sm:$0xff] }
 0x283   : > { %v1731_v59 = vadd.f32 %v1730_v55, %v13248_v50  ;;  %v10208_v63 = vpop.eup %10207  ;;  %10227 = vtanh.f32 %v1472_v45  ;;  %2171 = vmatprep.mubr.f32.mxu0 %v10206_v57  ;;  %v1477_v1 = vpop.f32.mrb[82].mxu0  ;;  %8896 = vmatprep.subr.bf16.mxu1 %v8831_v37  ;;  %v2759_v37 = vld [vmem:[#allocation6 + $0x538] sm:$0xff]  ;;  %v8845_v45 = vpack.c.bf16 %v2754_v35, %v2752_v34  ;;  %v2756_v55 = vld [vmem:[#allocation6 + $0x520] sm:$0xff] }
 0x284   : > { %v10210_v4 = vpop.eup %10209  ;;  %10229 = vtanh.f32 %v1474_v54  ;;  %2428 = vmatprep.mubr.f32.mxu1 %v10208_v63  ;;  %v1478_v5 = vadd.f32 %v1477_v1, %v13245_v47  ;;  %v1734_v6 = vpop.f32.mrb[82].mxu1  ;;  %2172 = vmatmul.mubr.f32.gmra.mrb[138].mxu0 %v10204_v53  ;;  %v8847_v54 = vpack.c.bf16 %v2759_v37, %v2757_v36 }
 0x285   : > { %v1479_v7 = vpop.f32.mrb[83].mxu0  ;;  %v10212_v8 = vpop.eup %10211  ;;  %10231 = vtanh.f32 %v1731_v59  ;;  %2429 = vmatmul.mubr.f32.gmra.mrb[138].mxu1 %v10210_v4  ;;  %8834 = vmatpush1.bf16.msra.mxu0 %v8833_v56  ;;  %v1735_v13 = vadd.f32 %v1734_v6, %v13245_v47  ;;  %v2761_v59 = vld [vmem:[#allocation6 + $0x548] sm:$0xff] }
 0x286   : > { %v1480_v9 = vadd.f32 %v1479_v7, %v13248_v50  ;;  %v1736_v10 = vpop.f32.mrb[83].mxu1  ;;  %v10214_v12 = vpop.eup %10213  ;;  %10233 = vtanh.f32 %v1729_v58  ;;  %8898 = vmatpush1.bf16.msra.mxu1 %v8833_v56  ;;  %8836 = vmatprep.subr.bf16.mxu0 %v8835_v60  ;;  %v2758_v56 = vld [vmem:[#allocation6 + $0x530] sm:$0xff] }
 0x287   : > { %v1737_v14 = vadd.f32 %v1736_v10, %v13248_v50  ;;  %v10216_v18 = vpop.eup %10215  ;;  %10235 = vtanh.f32 %v1478_v5  ;;  %2177 = vmatprep.mubr.f32.mxu0 %v10214_v12  ;;  %v1483_v19 = vpop.f32.mrb[84].mxu0  ;;  %8900 = vmatprep.subr.bf16.mxu1 %v8835_v60  ;;  %v2763_v60 = vld [vmem:[#allocation6 + $0x558] sm:$0xff]  ;;  %v8849_v5 = vpack.c.bf16 %v2758_v56, %v2756_v55  ;;  %v2760_v10 = vld [vmem:[#allocation6 + $0x540] sm:$0xff] }
 0x288   : > { %v10218_v22 = vpop.eup %10217  ;;  %10237 = vtanh.f32 %v1480_v9  ;;  %2434 = vmatprep.mubr.f32.mxu1 %v10216_v18  ;;  %v1484_v23 = vadd.f32 %v1483_v19, %v13245_v47  ;;  %v1740_v24 = vpop.f32.mrb[84].mxu1  ;;  %2178 = vmatmul.mubr.f32.gmra.mrb[140].mxu0 %v10212_v8  ;;  %v8851_v9 = vpack.c.bf16 %v2763_v60, %v2761_v59 }
 0x289   : > { %v1485_v25 = vpop.f32.mrb[85].mxu0  ;;  %v10220_v26 = vpop.eup %10219  ;;  %10239 = vtanh.f32 %v1737_v14  ;;  %2435 = vmatmul.mubr.f32.gmra.mrb[140].mxu1 %v10218_v22  ;;  %8838 = vmatpush1.bf16.msra.mxu0 %v8837_v11  ;;  %v1741_v31 = vadd.f32 %v1740_v24, %v13245_v47  ;;  %v2765_v14 = vld [vmem:[#allocation6 + $0x568] sm:$0xff] }
 0x28a   : > { %v1486_v27 = vadd.f32 %v1485_v25, %v13248_v50  ;;  %v1742_v28 = vpop.f32.mrb[85].mxu1  ;;  %v10222_v30 = vpop.eup %10221  ;;  %10241 = vtanh.f32 %v1735_v13  ;;  %8902 = vmatpush1.bf16.msra.mxu1 %v8837_v11  ;;  %8840 = vmatprep.subr.bf16.mxu0 %v8839_v15  ;;  %v2762_v11 = vld [vmem:[#allocation6 + $0x550] sm:$0xff] }
 0x28b   : > { %v1743_v32 = vadd.f32 %v1742_v28, %v13248_v50  ;;  %v10224_v49 = vpop.eup %10223  ;;  %10243 = vtanh.f32 %v1484_v23  ;;  %2183 = vmatprep.mubr.f32.mxu0 %v10222_v30  ;;  %v1489_v0 = vpop.f32.mrb[86].mxu0  ;;  %8904 = vmatprep.subr.bf16.mxu1 %v8839_v15  ;;  %v2767_v15 = vld [vmem:[#allocation6 + $0x578] sm:$0xff]  ;;  %v8853_v23 = vpack.c.bf16 %v2762_v11, %v2760_v10  ;;  %v2764_v28 = vld [vmem:[#allocation6 + $0x560] sm:$0xff] }
 0x28c   : > { %v10226_v38 = vpop.eup %10225  ;;  %10245 = vtanh.f32 %v1486_v27  ;;  %2440 = vmatprep.mubr.f32.mxu1 %v10224_v49  ;;  %v1490_v39 = vadd.f32 %v1489_v0, %v13245_v47  ;;  %v1746_v40 = vpop.f32.mrb[86].mxu1  ;;  %2184 = vmatmul.mubr.f32.gmra.mrb[142].mxu0 %v10220_v26  ;;  %v8855_v27 = vpack.c.bf16 %v2767_v15, %v2765_v14 }
 0x28d   : > { %v1491_v41 = vpop.f32.mrb[87].mxu0  ;;  %v10228_v42 = vpop.eup %10227  ;;  %10247 = vtanh.f32 %v1743_v32  ;;  %2441 = vmatmul.mubr.f32.gmra.mrb[142].mxu1 %v10226_v38  ;;  %8842 = vmatpush1.bf16.msra.mxu0 %v8841_v29  ;;  %v1747_v52 = vadd.f32 %v1746_v40, %v13245_v47  ;;  %v2769_v32 = vld [vmem:[#allocation6 + $0x588] sm:$0xff] }
 0x28e   : > { %v1492_v43 = vadd.f32 %v1491_v41, %v13248_v50  ;;  %v1748_v44 = vpop.f32.mrb[87].mxu1  ;;  %v10230_v51 = vpop.eup %10229  ;;  %10249 = vtanh.f32 %v1741_v31  ;;  %8906 = vmatpush1.bf16.msra.mxu1 %v8841_v29  ;;  %8844 = vmatprep.subr.bf16.mxu0 %v8843_v33  ;;  %v2766_v29 = vld [vmem:[#allocation6 + $0x570] sm:$0xff] }
 0x28f   : > { %v1749_v53 = vadd.f32 %v1748_v44, %v13248_v50  ;;  %v10232_v57 = vpop.eup %10231  ;;  %10251 = vtanh.f32 %v1490_v39  ;;  %2189 = vmatprep.mubr.f32.mxu0 %v10230_v51  ;;  %v1495_v58 = vpop.f32.mrb[88].mxu0  ;;  %8908 = vmatprep.subr.bf16.mxu1 %v8843_v33  ;;  %v2771_v33 = vld [vmem:[#allocation6 + $0x598] sm:$0xff]  ;;  %v8857_v39 = vpack.c.bf16 %v2766_v29, %v2764_v28  ;;  %v2768_v44 = vld [vmem:[#allocation6 + $0x580] sm:$0xff] }
 0x290   : > { %v10234_v61 = vpop.eup %10233  ;;  %10253 = vtanh.f32 %v1492_v43  ;;  %2446 = vmatprep.mubr.f32.mxu1 %v10232_v57  ;;  %v1496_v62 = vadd.f32 %v1495_v58, %v13245_v47  ;;  %v1752_v63 = vpop.f32.mrb[88].mxu1  ;;  %2190 = vmatmul.mubr.f32.gmra.mrb[144].mxu0 %v10228_v42  ;;  %v8859_v43 = vpack.c.bf16 %v2771_v33, %v2769_v32 }
 0x291   : > { %v1497_v1 = vpop.f32.mrb[89].mxu0  ;;  %v10236_v2 = vpop.eup %10235  ;;  %10255 = vtanh.f32 %v1749_v53  ;;  %2447 = vmatmul.mubr.f32.gmra.mrb[144].mxu1 %v10234_v61  ;;  %8846 = vmatpush1.bf16.msra.mxu0 %v8845_v45  ;;  %v1753_v7 = vadd.f32 %v1752_v63, %v13245_v47  ;;  %v2773_v53 = vld [vmem:[#allocation6 + $0x5a8] sm:$0xff] }
 0x292   : > { %v1498_v3 = vadd.f32 %v1497_v1, %v13248_v50  ;;  %v1754_v4 = vpop.f32.mrb[89].mxu1  ;;  %v10238_v6 = vpop.eup %10237  ;;  %10257 = vtanh.f32 %v1747_v52  ;;  %8910 = vmatpush1.bf16.msra.mxu1 %v8845_v45  ;;  %8848 = vmatprep.subr.bf16.mxu0 %v8847_v54  ;;  %v2770_v45 = vld [vmem:[#allocation6 + $0x590] sm:$0xff] }
 0x293   : > { %v1755_v8 = vadd.f32 %v1754_v4, %v13248_v50  ;;  %v10240_v12 = vpop.eup %10239  ;;  %10259 = vtanh.f32 %v1496_v62  ;;  %2195 = vmatprep.mubr.f32.mxu0 %v10238_v6  ;;  %v1501_v13 = vpop.f32.mrb[90].mxu0  ;;  %8912 = vmatprep.subr.bf16.mxu1 %v8847_v54  ;;  %v2775_v54 = vld [vmem:[#allocation6 + $0x5b8] sm:$0xff]  ;;  %v8861_v62 = vpack.c.bf16 %v2770_v45, %v2768_v44  ;;  %v2772_v4 = vld [vmem:[#allocation6 + $0x5a0] sm:$0xff] }
 0x294   : > { %v10242_v16 = vpop.eup %10241  ;;  %10261 = vtanh.f32 %v1498_v3  ;;  %2452 = vmatprep.mubr.f32.mxu1 %v10240_v12  ;;  %v1502_v17 = vadd.f32 %v1501_v13, %v13245_v47  ;;  %v1758_v18 = vpop.f32.mrb[90].mxu1  ;;  %2196 = vmatmul.mubr.f32.gmra.mrb[146].mxu0 %v10236_v2  ;;  %v8863_v3 = vpack.c.bf16 %v2775_v54, %v2773_v53 }
 0x295   : > { %v1503_v19 = vpop.f32.mrb[91].mxu0  ;;  %v10244_v20 = vpop.eup %10243  ;;  %10263 = vtanh.f32 %v1755_v8  ;;  %2453 = vmatmul.mubr.f32.gmra.mrb[146].mxu1 %v10242_v16  ;;  %8850 = vmatpush1.bf16.msra.mxu0 %v8849_v5  ;;  %v1759_v25 = vadd.f32 %v1758_v18, %v13245_v47  ;;  %v2777_v8 = vld [vmem:[#allocation6 + $0x5c8] sm:$0xff] }
 0x296   : > { %v1504_v21 = vadd.f32 %v1503_v19, %v13248_v50  ;;  %v1760_v22 = vpop.f32.mrb[91].mxu1  ;;  %v10246_v24 = vpop.eup %10245  ;;  %10265 = vtanh.f32 %v1753_v7  ;;  %8914 = vmatpush1.bf16.msra.mxu1 %v8849_v5  ;;  %8852 = vmatprep.subr.bf16.mxu0 %v8851_v9  ;;  %v2774_v5 = vld [vmem:[#allocation6 + $0x5b0] sm:$0xff] }
 0x297   : > { %v1761_v26 = vadd.f32 %v1760_v22, %v13248_v50  ;;  %v10248_v30 = vpop.eup %10247  ;;  %10267 = vtanh.f32 %v1502_v17  ;;  %2201 = vmatprep.mubr.f32.mxu0 %v10246_v24  ;;  %v1507_v31 = vpop.f32.mrb[92].mxu0  ;;  %8916 = vmatprep.subr.bf16.mxu1 %v8851_v9  ;;  %v2779_v9 = vld [vmem:[#allocation6 + $0x5d8] sm:$0xff]  ;;  %v8865_v17 = vpack.c.bf16 %v2774_v5, %v2772_v4 }
 0x298   : > { %v10250_v34 = vpop.eup %10249  ;;  %10269 = vtanh.f32 %v1504_v21  ;;  %2458 = vmatprep.mubr.f32.mxu1 %v10248_v30  ;;  %v1508_v35 = vadd.f32 %v1507_v31, %v13245_v47  ;;  %v1764_v49 = vpop.f32.mrb[92].mxu1  ;;  %2202 = vmatmul.mubr.f32.gmra.mrb[148].mxu0 %v10244_v20  ;;  %v8867_v21 = vpack.c.bf16 %v2779_v9, %v2777_v8 }
 0x299   : > { %v1509_v0 = vpop.f32.mrb[93].mxu0  ;;  %v10252_v36 = vpop.eup %10251  ;;  %10271 = vtanh.f32 %v1761_v26  ;;  %2459 = vmatmul.mubr.f32.gmra.mrb[148].mxu1 %v10250_v34  ;;  %8854 = vmatpush1.bf16.msra.mxu0 %v8853_v23  ;;  %v1765_v41 = vadd.f32 %v1764_v49, %v13245_v47 }
 0x29a   : > { %v1510_v37 = vadd.f32 %v1509_v0, %v13248_v50  ;;  %v1766_v38 = vpop.f32.mrb[93].mxu1  ;;  %v10254_v40 = vpop.eup %10253  ;;  %10273 = vtanh.f32 %v1759_v25  ;;  %8918 = vmatpush1.bf16.msra.mxu1 %v8853_v23  ;;  %8856 = vmatprep.subr.bf16.mxu0 %v8855_v27 }
 0x29b   : > { %v1767_v42 = vadd.f32 %v1766_v38, %v13248_v50  ;;  %v10256_v51 = vpop.eup %10255  ;;  %10275 = vtanh.f32 %v1508_v35  ;;  %2207 = vmatprep.mubr.f32.mxu0 %v10254_v40  ;;  %v1513_v52 = vpop.f32.mrb[94].mxu0  ;;  %8920 = vmatprep.subr.bf16.mxu1 %v8855_v27 }
 0x29c   : > { %v10258_v55 = vpop.eup %10257  ;;  %10277 = vtanh.f32 %v1510_v37  ;;  %2464 = vmatprep.mubr.f32.mxu1 %v10256_v51  ;;  %v1514_v56 = vadd.f32 %v1513_v52, %v13245_v47  ;;  %v1770_v57 = vpop.f32.mrb[94].mxu1  ;;  %2208 = vmatmul.mubr.f32.gmra.mrb[150].mxu0 %v10252_v36 }
 0x29d   : > { %v1515_v58 = vpop.f32.mrb[95].mxu0  ;;  %v10260_v59 = vpop.eup %10259  ;;  %10279 = vtanh.f32 %v1767_v42  ;;  %2465 = vmatmul.mubr.f32.gmra.mrb[150].mxu1 %v10258_v55  ;;  %8858 = vmatpush1.bf16.msra.mxu0 %v8857_v39  ;;  %v1771_v1 = vadd.f32 %v1770_v57, %v13245_v47 }
 0x29e   : > { %v1516_v60 = vadd.f32 %v1515_v58, %v13248_v50  ;;  %v1772_v61 = vpop.f32.mrb[95].mxu1  ;;  %v10262_v63 = vpop.eup %10261  ;;  %10281 = vtanh.f32 %v1765_v41  ;;  %8922 = vmatpush1.bf16.msra.mxu1 %v8857_v39  ;;  %8860 = vmatprep.subr.bf16.mxu0 %v8859_v43 }
 0x29f   : > { %v1773_v2 = vadd.f32 %v1772_v61, %v13248_v50  ;;  %v10264_v6 = vpop.eup %10263  ;;  %10283 = vtanh.f32 %v1514_v56  ;;  %2213 = vmatprep.mubr.f32.mxu0 %v10262_v63  ;;  %v1519_v7 = vpop.f32.mrb[96].mxu0  ;;  %8924 = vmatprep.subr.bf16.mxu1 %v8859_v43 }
 0x2a0   : > { %v10266_v10 = vpop.eup %10265  ;;  %10285 = vtanh.f32 %v1516_v60  ;;  %2470 = vmatprep.mubr.f32.mxu1 %v10264_v6  ;;  %v1520_v11 = vadd.f32 %v1519_v7, %v13245_v47  ;;  %v1776_v12 = vpop.f32.mrb[96].mxu1  ;;  %2214 = vmatmul.mubr.f32.gmra.mrb[152].mxu0 %v10260_v59 }
 0x2a1   : > { %v1521_v13 = vpop.f32.mrb[97].mxu0  ;;  %v10268_v14 = vpop.eup %10267  ;;  %10287 = vtanh.f32 %v1773_v2  ;;  %2471 = vmatmul.mubr.f32.gmra.mrb[152].mxu1 %v10266_v10  ;;  %8862 = vmatpush1.bf16.msra.mxu0 %v8861_v62  ;;  %v1777_v19 = vadd.f32 %v1776_v12, %v13245_v47 }
 0x2a2   : > { %v1522_v15 = vadd.f32 %v1521_v13, %v13248_v50  ;;  %v1778_v16 = vpop.f32.mrb[97].mxu1  ;;  %v10270_v18 = vpop.eup %10269  ;;  %10289 = vtanh.f32 %v1771_v1  ;;  %8926 = vmatpush1.bf16.msra.mxu1 %v8861_v62  ;;  %8864 = vmatprep.subr.bf16.mxu0 %v8863_v3 }
 0x2a3   : > { %v1779_v20 = vadd.f32 %v1778_v16, %v13248_v50  ;;  %v10272_v22 = vpop.eup %10271  ;;  %10291 = vtanh.f32 %v1520_v11  ;;  %2219 = vmatprep.mubr.f32.mxu0 %v10270_v18  ;;  %v1525_v23 = vpop.f32.mrb[98].mxu0  ;;  %8928 = vmatprep.subr.bf16.mxu1 %v8863_v3 }
 0x2a4   : > { %v10274_v24 = vpop.eup %10273  ;;  %10293 = vtanh.f32 %v1522_v15  ;;  %2476 = vmatprep.mubr.f32.mxu1 %v10272_v22  ;;  %v1526_v25 = vadd.f32 %v1525_v23, %v13245_v47  ;;  %v1782_v26 = vpop.f32.mrb[98].mxu1  ;;  %2220 = vmatmul.mubr.f32.gmra.mrb[154].mxu0 %v10268_v14 }
 0x2a5   : > { %v1527_v27 = vpop.f32.mrb[99].mxu0  ;;  %v10276_v28 = vpop.eup %10275  ;;  %10295 = vtanh.f32 %v1779_v20  ;;  %2477 = vmatmul.mubr.f32.gmra.mrb[154].mxu1 %v10274_v24  ;;  %8866 = vmatpush1.bf16.msra.mxu0 %v8865_v17  ;;  %v1783_v32 = vadd.f32 %v1782_v26, %v13245_v47 }
 0x2a6   : > { %v1528_v29 = vadd.f32 %v1527_v27, %v13248_v50  ;;  %v1784_v30 = vpop.f32.mrb[99].mxu1  ;;  %v10278_v31 = vpop.eup %10277  ;;  %10297 = vtanh.f32 %v1777_v19  ;;  %8930 = vmatpush1.bf16.msra.mxu1 %v8865_v17  ;;  %8868 = vmatprep.subr.bf16.mxu0 %v8867_v21 }
 0x2a7   : > { %v1785_v33 = vadd.f32 %v1784_v30, %v13248_v50  ;;  %v10280_v34 = vpop.eup %10279  ;;  %10299 = vtanh.f32 %v1526_v25  ;;  %2225 = vmatprep.mubr.f32.mxu0 %v10278_v31  ;;  %v1531_v35 = vpop.f32.mrb[100].mxu0  ;;  %8932 = vmatprep.subr.bf16.mxu1 %v8867_v21 }
 0x2a8   : > { %v10282_v49 = vpop.eup %10281  ;;  %10301 = vtanh.f32 %v1528_v29  ;;  %2482 = vmatprep.mubr.f32.mxu1 %v10280_v34  ;;  %v1532_v0 = vadd.f32 %v1531_v35, %v13245_v47  ;;  %v1788_v36 = vpop.f32.mrb[100].mxu1  ;;  %2226 = vmatmul.mubr.f32.gmra.mrb[156].mxu0 %v10276_v28 }
 0x2a9   : > { %v1533_v37 = vpop.f32.mrb[101].mxu0  ;;  %v10284_v38 = vpop.eup %10283  ;;  %10303 = vtanh.f32 %v1785_v33  ;;  %2483 = vmatmul.mubr.f32.gmra.mrb[156].mxu1 %v10282_v49  ;;  %v1789_v42 = vadd.f32 %v1788_v36, %v13245_v47 }
 0x2aa   : > { %v1534_v39 = vadd.f32 %v1533_v37, %v13248_v50  ;;  %v1790_v40 = vpop.f32.mrb[101].mxu1  ;;  %v10286_v41 = vpop.eup %10285  ;;  %10305 = vtanh.f32 %v1783_v32 }
 0x2ab   : > { %v1791_v43 = vadd.f32 %v1790_v40, %v13248_v50  ;;  %v10288_v44 = vpop.eup %10287  ;;  %10307 = vtanh.f32 %v1532_v0  ;;  %2231 = vmatprep.mubr.f32.mxu0 %v10286_v41  ;;  %v1537_v45 = vpop.f32.mrb[102].mxu0 }
 0x2ac   : > { %v10290_v51 = vpop.eup %10289  ;;  %10309 = vtanh.f32 %v1534_v39  ;;  %2488 = vmatprep.mubr.f32.mxu1 %v10288_v44  ;;  %v1538_v52 = vadd.f32 %v1537_v45, %v13245_v47  ;;  %v1794_v53 = vpop.f32.mrb[102].mxu1  ;;  %2232 = vmatmul.mubr.f32.gmra.mrb[158].mxu0 %v10284_v38 }
 0x2ad   : > { %v1539_v54 = vpop.f32.mrb[103].mxu0  ;;  %v10292_v55 = vpop.eup %10291  ;;  %10311 = vtanh.f32 %v1791_v43  ;;  %2489 = vmatmul.mubr.f32.gmra.mrb[158].mxu1 %v10290_v51  ;;  %v1795_v59 = vadd.f32 %v1794_v53, %v13245_v47 }
 0x2ae   : > { %v1540_v56 = vadd.f32 %v1539_v54, %v13248_v50  ;;  %v1796_v57 = vpop.f32.mrb[103].mxu1  ;;  %v10294_v58 = vpop.eup %10293  ;;  %10313 = vtanh.f32 %v1789_v42 }
 0x2af   : > { %v1797_v60 = vadd.f32 %v1796_v57, %v13248_v50  ;;  %v10296_v61 = vpop.eup %10295  ;;  %10315 = vtanh.f32 %v1538_v52  ;;  %2237 = vmatprep.mubr.f32.mxu0 %v10294_v58  ;;  %v1543_v62 = vpop.f32.mrb[104].mxu0 }
 0x2b0   : > { %v10298_v63 = vpop.eup %10297  ;;  %10317 = vtanh.f32 %v1540_v56  ;;  %2494 = vmatprep.mubr.f32.mxu1 %v10296_v61  ;;  %v1544_v1 = vadd.f32 %v1543_v62, %v13245_v47  ;;  %v1800_v2 = vpop.f32.mrb[104].mxu1  ;;  %2238 = vmatmul.mubr.f32.gmra.mrb[160].mxu0 %v10292_v55 }
 0x2b1   : > { %v1545_v3 = vpop.f32.mrb[105].mxu0  ;;  %v10300_v4 = vpop.eup %10299  ;;  %10319 = vtanh.f32 %v1797_v60  ;;  %2495 = vmatmul.mubr.f32.gmra.mrb[160].mxu1 %v10298_v63  ;;  %v1801_v8 = vadd.f32 %v1800_v2, %v13245_v47 }
 0x2b2   : > { %v1546_v5 = vadd.f32 %v1545_v3, %v13248_v50  ;;  %v1802_v6 = vpop.f32.mrb[105].mxu1  ;;  %v10302_v7 = vpop.eup %10301  ;;  %10321 = vtanh.f32 %v1795_v59 }
 0x2b3   : > { %v1803_v9 = vadd.f32 %v1802_v6, %v13248_v50  ;;  %v10304_v10 = vpop.eup %10303  ;;  %10323 = vtanh.f32 %v1544_v1  ;;  %2243 = vmatprep.mubr.f32.mxu0 %v10302_v7  ;;  %v1549_v11 = vpop.f32.mrb[106].mxu0 }
 0x2b4   : > { %v10306_v12 = vpop.eup %10305  ;;  %10325 = vtanh.f32 %v1546_v5  ;;  %2500 = vmatprep.mubr.f32.mxu1 %v10304_v10  ;;  %v1550_v13 = vadd.f32 %v1549_v11, %v13245_v47  ;;  %v1806_v14 = vpop.f32.mrb[106].mxu1  ;;  %2244 = vmatmul.mubr.f32.gmra.mrb[162].mxu0 %v10300_v4 }
 0x2b5   : > { %v1551_v15 = vpop.f32.mrb[107].mxu0  ;;  %v10308_v16 = vpop.eup %10307  ;;  %10327 = vtanh.f32 %v1803_v9  ;;  %2501 = vmatmul.mubr.f32.gmra.mrb[162].mxu1 %v10306_v12  ;;  %v1807_v20 = vadd.f32 %v1806_v14, %v13245_v47  ;;  %v2776_v12 = vld [vmem:[#allocation6 + $0x5c0] sm:$0xff] }
 0x2b6   : > { %v1552_v17 = vadd.f32 %v1551_v15, %v13248_v50  ;;  %v1808_v18 = vpop.f32.mrb[107].mxu1  ;;  %v10310_v19 = vpop.eup %10309  ;;  %10329 = vtanh.f32 %v1801_v8 }
 0x2b7   : > { %v1809_v21 = vadd.f32 %v1808_v18, %v13248_v50  ;;  %v10312_v22 = vpop.eup %10311  ;;  %10331 = vtanh.f32 %v1550_v13  ;;  %2249 = vmatprep.mubr.f32.mxu0 %v10310_v19  ;;  %v1555_v23 = vpop.f32.mrb[108].mxu0  ;;  %v2778_v13 = vld [vmem:[#allocation6 + $0x5d0] sm:$0xff] }
 0x2b8   : > { %v10314_v24 = vpop.eup %10313  ;;  %10333 = vtanh.f32 %v1552_v17  ;;  %2506 = vmatprep.mubr.f32.mxu1 %v10312_v22  ;;  %v1556_v25 = vadd.f32 %v1555_v23, %v13245_v47  ;;  %v1812_v26 = vpop.f32.mrb[108].mxu1  ;;  %2250 = vmatmul.mubr.f32.gmra.mrb[164].mxu0 %v10308_v16  ;;  %v8869_v18 = vpack.c.bf16 %v2778_v13, %v2776_v12 }
 0x2b9   : > { %v1557_v27 = vpop.f32.mrb[109].mxu0  ;;  %v10316_v28 = vpop.eup %10315  ;;  %10335 = vtanh.f32 %v1809_v21  ;;  %2507 = vmatmul.mubr.f32.gmra.mrb[164].mxu1 %v10314_v24  ;;  %v1813_v32 = vadd.f32 %v1812_v26, %v13245_v47 }
 0x2ba   : > { %v1558_v29 = vadd.f32 %v1557_v27, %v13248_v50  ;;  %v1814_v30 = vpop.f32.mrb[109].mxu1  ;;  %v10318_v31 = vpop.eup %10317  ;;  %10337 = vtanh.f32 %v1807_v20  ;;  %8870 = vmatpush1.bf16.msra.mxu0 %v8869_v18  ;;  %8934 = vmatpush1.bf16.msra.mxu1 %v8869_v18 }
 0x2bb   : > { %v1815_v33 = vadd.f32 %v1814_v30, %v13248_v50  ;;  %v10320_v34 = vpop.eup %10319  ;;  %10339 = vtanh.f32 %v1556_v25  ;;  %2255 = vmatprep.mubr.f32.mxu0 %v10318_v31  ;;  %v1561_v35 = vpop.f32.mrb[110].mxu0 }
 0x2bc   : > { %v10322_v49 = vpop.eup %10321  ;;  %10341 = vtanh.f32 %v1558_v29  ;;  %2512 = vmatprep.mubr.f32.mxu1 %v10320_v34  ;;  %v1562_v0 = vadd.f32 %v1561_v35, %v13245_v47  ;;  %v1818_v36 = vpop.f32.mrb[110].mxu1  ;;  %2256 = vmatmul.mubr.f32.gmra.mrb[166].mxu0 %v10316_v28  ;;  %v2781_v34 = vld [vmem:[#allocation6 + $0x5e8] sm:$0xff]  ;;  %v2783_v35 = vld [vmem:[#allocation6 + $0x5f8] sm:$0xff] }
 0x2bd   : > { %v1563_v37 = vpop.f32.mrb[111].mxu0  ;;  %v10324_v38 = vpop.eup %10323  ;;  %10343 = vtanh.f32 %v1815_v33  ;;  %2513 = vmatmul.mubr.f32.gmra.mrb[166].mxu1 %v10322_v49  ;;  %v1819_v42 = vadd.f32 %v1818_v36, %v13245_v47 }
 0x2be   : > { %v1564_v39 = vadd.f32 %v1563_v37, %v13248_v50  ;;  %v1820_v40 = vpop.f32.mrb[111].mxu1  ;;  %v10326_v41 = vpop.eup %10325  ;;  %10345 = vtanh.f32 %v1813_v32  ;;  %v8871_v37 = vpack.c.bf16 %v2783_v35, %v2781_v34 }
 0x2bf   : > { %v1821_v43 = vadd.f32 %v1820_v40, %v13248_v50  ;;  %v10328_v44 = vpop.eup %10327  ;;  %10347 = vtanh.f32 %v1562_v0  ;;  %2261 = vmatprep.mubr.f32.mxu0 %v10326_v41  ;;  %v1567_v45 = vpop.f32.mrb[112].mxu0  ;;  %v2780_v40 = vld [vmem:[#allocation6 + $0x5e0] sm:$0xff]  ;;  %v2782_v41 = vld [vmem:[#allocation6 + $0x5f0] sm:$0xff] }
 0x2c0   : > { %v10330_v51 = vpop.eup %10329  ;;  %10349 = vtanh.f32 %v1564_v39  ;;  %2518 = vmatprep.mubr.f32.mxu1 %v10328_v44  ;;  %v1568_v52 = vadd.f32 %v1567_v45, %v13245_v47  ;;  %v1824_v53 = vpop.f32.mrb[112].mxu1  ;;  %2262 = vmatmul.mubr.f32.gmra.mrb[168].mxu0 %v10324_v38 }
 0x2c1   : > { %v1569_v54 = vpop.f32.mrb[113].mxu0  ;;  %v10332_v55 = vpop.eup %10331  ;;  %10351 = vtanh.f32 %v1821_v43  ;;  %2519 = vmatmul.mubr.f32.gmra.mrb[168].mxu1 %v10330_v51  ;;  %v1825_v59 = vadd.f32 %v1824_v53, %v13245_v47  ;;  %v8873_v51 = vpack.c.bf16 %v2782_v41, %v2780_v40  ;;  %8872 = vmatprep.subr.bf16.mxu0 %v8871_v37  ;;  %v3441_v41 = vld [vmem:[#allocation6 + $0x608] sm:$0xff] }
 0x2c2   : > { %v1570_v56 = vadd.f32 %v1569_v54, %v13248_v50  ;;  %v1826_v57 = vpop.f32.mrb[113].mxu1  ;;  %v10334_v58 = vpop.eup %10333  ;;  %10353 = vtanh.f32 %v1819_v42  ;;  %8936 = vmatprep.subr.bf16.mxu1 %v8871_v37 }
 0x2c3   : > { %v1827_v60 = vadd.f32 %v1826_v57, %v13248_v50  ;;  %v10336_v61 = vpop.eup %10335  ;;  %10355 = vtanh.f32 %v1568_v52  ;;  %2267 = vmatprep.mubr.f32.mxu0 %v10334_v58  ;;  %v1573_v62 = vpop.f32.mrb[114].mxu0  ;;  %8874 = vmatpush1.bf16.msra.mxu0 %v8873_v51 }
 0x2c4   : > { %v10338_v63 = vpop.eup %10337  ;;  %10357 = vtanh.f32 %v1570_v56  ;;  %2524 = vmatprep.mubr.f32.mxu1 %v10336_v61  ;;  %v1574_v1 = vadd.f32 %v1573_v62, %v13245_v47  ;;  %v1830_v2 = vpop.f32.mrb[114].mxu1  ;;  %2268 = vmatmul.mubr.f32.gmra.mrb[170].mxu0 %v10332_v55 }
 0x2c5   : > { %v1575_v3 = vpop.f32.mrb[115].mxu0  ;;  %v10340_v4 = vpop.eup %10339  ;;  %10359 = vtanh.f32 %v1827_v60  ;;  %2525 = vmatmul.mubr.f32.gmra.mrb[170].mxu1 %v10338_v63  ;;  %v1831_v8 = vadd.f32 %v1830_v2, %v13245_v47 }
 0x2c6   : > { %v1576_v5 = vadd.f32 %v1575_v3, %v13248_v50  ;;  %v1832_v6 = vpop.f32.mrb[115].mxu1  ;;  %v10342_v7 = vpop.eup %10341  ;;  %10361 = vtanh.f32 %v1825_v59  ;;  %8938 = vmatpush1.bf16.msra.mxu1 %v8873_v51 }
 0x2c7   : > { %v1833_v9 = vadd.f32 %v1832_v6, %v13248_v50  ;;  %v10344_v10 = vpop.eup %10343  ;;  %10363 = vtanh.f32 %v1574_v1  ;;  %2273 = vmatprep.mubr.f32.mxu0 %v10342_v7  ;;  %v1579_v11 = vpop.f32.mrb[116].mxu0 }
 0x2c8   : > { %v10346_v14 = vpop.eup %10345  ;;  %10365 = vtanh.f32 %v1576_v5  ;;  %2530 = vmatprep.mubr.f32.mxu1 %v10344_v10  ;;  %v1580_v15 = vadd.f32 %v1579_v11, %v13245_v47  ;;  %v1836_v16 = vpop.f32.mrb[116].mxu1  ;;  %2274 = vmatmul.mubr.f32.gmra.mrb[172].mxu0 %v10340_v4 }
 0x2c9   : > { %v1581_v17 = vpop.f32.mrb[117].mxu0  ;;  %v10348_v19 = vpop.eup %10347  ;;  %10367 = vtanh.f32 %v1833_v9  ;;  %2531 = vmatmul.mubr.f32.gmra.mrb[172].mxu1 %v10346_v14  ;;  %v1837_v23 = vadd.f32 %v1836_v16, %v13245_v47 }
 0x2ca   : > { %v1582_v20 = vadd.f32 %v1581_v17, %v13248_v50  ;;  %v1838_v21 = vpop.f32.mrb[117].mxu1  ;;  %v10350_v22 = vpop.eup %10349  ;;  %10369 = vtanh.f32 %v1831_v8 }
 0x2cb   : > { %v1839_v24 = vadd.f32 %v1838_v21, %v13248_v50  ;;  %v10352_v25 = vpop.eup %10351  ;;  %10371 = vtanh.f32 %v1580_v15  ;;  %2279 = vmatprep.mubr.f32.mxu0 %v10350_v22  ;;  %v1585_v26 = vpop.f32.mrb[118].mxu0 }
 0x2cc   : > { %v10354_v27 = vpop.eup %10353  ;;  %10373 = vtanh.f32 %v1582_v20  ;;  %2536 = vmatprep.mubr.f32.mxu1 %v10352_v25  ;;  %v1586_v28 = vadd.f32 %v1585_v26, %v13245_v47  ;;  %v1842_v29 = vpop.f32.mrb[118].mxu1  ;;  %2280 = vmatmul.mubr.f32.gmra.mrb[174].mxu0 %v10348_v19 }
 0x2cd   : > { %v1587_v30 = vpop.f32.mrb[119].mxu0  ;;  %v10356_v31 = vpop.eup %10355  ;;  %10375 = vtanh.f32 %v1839_v24  ;;  %2537 = vmatmul.mubr.f32.gmra.mrb[174].mxu1 %v10354_v27  ;;  %v1843_v0 = vadd.f32 %v1842_v29, %v13245_v47 }
 0x2ce   : > { %v1588_v32 = vadd.f32 %v1587_v30, %v13248_v50  ;;  %v1844_v33 = vpop.f32.mrb[119].mxu1  ;;  %v10358_v49 = vpop.eup %10357  ;;  %10377 = vtanh.f32 %v1837_v23 }
 0x2cf   : > { %v1845_v36 = vadd.f32 %v1844_v33, %v13248_v50  ;;  %v10360_v38 = vpop.eup %10359  ;;  %10379 = vtanh.f32 %v1586_v28  ;;  %2285 = vmatprep.mubr.f32.mxu0 %v10358_v49  ;;  %v1591_v39 = vpop.f32.mrb[120].mxu0 }
 0x2d0   : > { %v10362_v42 = vpop.eup %10361  ;;  %10381 = vtanh.f32 %v1588_v32  ;;  %2542 = vmatprep.mubr.f32.mxu1 %v10360_v38  ;;  %v1592_v43 = vadd.f32 %v1591_v39, %v13245_v47  ;;  %v1848_v44 = vpop.f32.mrb[120].mxu1  ;;  %2286 = vmatmul.mubr.f32.gmra.mrb[176].mxu0 %v10356_v31 }
 0x2d1   : > { %v1593_v45 = vpop.f32.mrb[121].mxu0  ;;  %v10364_v52 = vpop.eup %10363  ;;  %10383 = vtanh.f32 %v1845_v36  ;;  %2543 = vmatmul.mubr.f32.gmra.mrb[176].mxu1 %v10362_v42  ;;  %v1849_v56 = vadd.f32 %v1848_v44, %v13245_v47  ;;  %v3443_v42 = vld [vmem:[#allocation6 + $0x618] sm:$0xff]  ;;  %v2065_v44 = vld [vmem:[#allocation7 + $0x1] ss:$8 sm:$0x3] }
 0x2d2   : > { %v1594_v53 = vadd.f32 %v1593_v45, %v13248_v50  ;;  %v1850_v54 = vpop.f32.mrb[121].mxu1  ;;  %v10366_v55 = vpop.eup %10365  ;;  %10385 = vtanh.f32 %v1843_v0  ;;  %v13379_v45 = vrot.slane %v2065_v44, %v13106_v46  ;;  %v13382_v51 = vrot.slane %v2065_v44, %v13108_v48  ;;  %v3450_v44 = vld [vmem:[#allocation6 + $0x650] sm:$0xff] }
 0x2d3   : > { %v1851_v57 = vadd.f32 %v1850_v54, %v13248_v50  ;;  %v10368_v58 = vpop.eup %10367  ;;  %10387 = vtanh.f32 %v1592_v43  ;;  %2291 = vmatprep.mubr.f32.mxu0 %v10366_v55  ;;  %v1597_v59 = vpop.f32.mrb[122].mxu0  ;;  %v8939_v43 = vpack.c.bf16 %v3443_v42, %v3441_v41 }
 0x2d4   : > { %v10370_v60 = vpop.eup %10369  ;;  %10389 = vtanh.f32 %v1594_v53  ;;  %2548 = vmatprep.mubr.f32.mxu1 %v10368_v58  ;;  %v1598_v61 = vadd.f32 %v1597_v59, %v13245_v47  ;;  %v1854_v62 = vpop.f32.mrb[122].mxu1  ;;  %2292 = vmatmul.mubr.f32.gmra.mrb[178].mxu0 %v10364_v52 }
 0x2d5   : > { %v1599_v63 = vpop.f32.mrb[123].mxu0  ;;  %v10372_v1 = vpop.eup %10371  ;;  %10391 = vtanh.f32 %v1851_v57  ;;  %2549 = vmatmul.mubr.f32.gmra.mrb[178].mxu1 %v10370_v60  ;;  %v1855_v5 = vadd.f32 %v1854_v62, %v13245_v47  ;;  %8940 = vmatprep.subr.bf16.mxu0 %v8939_v43 }
 0x2d6   : > { %v1600_v2 = vadd.f32 %v1599_v63, %v13248_v50  ;;  %v1856_v3 = vpop.f32.mrb[123].mxu1  ;;  %v10374_v4 = vpop.eup %10373  ;;  %10393 = vtanh.f32 %v1849_v56  ;;  %9004 = vmatprep.subr.bf16.mxu1 %v8939_v43  ;;  %v3448_v43 = vld [vmem:[#allocation6 + $0x640] sm:$0xff] }
 0x2d7   : > { %v1857_v6 = vadd.f32 %v1856_v3, %v13248_v50  ;;  %v10376_v7 = vpop.eup %10375  ;;  %10395 = vtanh.f32 %v1598_v61  ;;  %2297 = vmatprep.mubr.f32.mxu0 %v10374_v4  ;;  %v1603_v8 = vpop.f32.mrb[124].mxu0 }
 0x2d8   : > { %v10378_v9 = vpop.eup %10377  ;;  %10397 = vtanh.f32 %v1600_v2  ;;  %2554 = vmatprep.mubr.f32.mxu1 %v10376_v7  ;;  %v1604_v10 = vadd.f32 %v1603_v8, %v13245_v47  ;;  %v1860_v11 = vpop.f32.mrb[124].mxu1  ;;  %2298 = vmatmul.mubr.f32.gmra.mrb[180].mxu0 %v10372_v1 }
 0x2d9   : > { %v1605_v12 = vpop.f32.mrb[125].mxu0  ;;  %v10380_v13 = vpop.eup %10379  ;;  %10399 = vtanh.f32 %v1857_v6  ;;  %2555 = vmatmul.mubr.f32.gmra.mrb[180].mxu1 %v10378_v9  ;;  %v1861_v17 = vadd.f32 %v1860_v11, %v13245_v47 }
 0x2da   : > { %v1606_v14 = vadd.f32 %v1605_v12, %v13248_v50  ;;  %v1862_v15 = vpop.f32.mrb[125].mxu1  ;;  %v10382_v16 = vpop.eup %10381  ;;  %10401 = vtanh.f32 %v1855_v5 }
 0x2db   : > { %v1863_v18 = vadd.f32 %v1862_v15, %v13248_v50  ;;  %v10384_v19 = vpop.eup %10383  ;;  %10403 = vtanh.f32 %v1604_v10  ;;  %2303 = vmatprep.mubr.f32.mxu0 %v10382_v16  ;;  %v1609_v20 = vpop.f32.mrb[126].mxu0  ;;  %v3445_v16 = vld [vmem:[#allocation6 + $0x628] sm:$0xff] }
 0x2dc   : > { %v10386_v21 = vpop.eup %10385  ;;  %10405 = vtanh.f32 %v1606_v14  ;;  %2560 = vmatprep.mubr.f32.mxu1 %v10384_v19  ;;  %v1610_v22 = vadd.f32 %v1609_v20, %v13245_v47  ;;  %v1866_v23 = vpop.f32.mrb[126].mxu1  ;;  %2304 = vmatmul.mubr.f32.gmra.mrb[182].mxu0 %v10380_v13  ;;  %v3440_v13 = vld [vmem:[#allocation6 + $0x600] sm:$0xff]  ;;  %v3442_v14 = vld [vmem:[#allocation6 + $0x610] sm:$0xff] }
 0x2dd   : > { %v1611_v24 = vpop.f32.mrb[127].mxu0  ;;  %v10388_v25 = vpop.eup %10387  ;;  %10407 = vtanh.f32 %v1863_v18  ;;  %2561 = vmatmul.mubr.f32.gmra.mrb[182].mxu1 %v10386_v21  ;;  %v1867_v29 = vadd.f32 %v1866_v23, %v13245_v47 }
 0x2de   : > { %v1612_v26 = vadd.f32 %v1611_v24, %v13248_v50  ;;  %v1868_v27 = vpop.f32.mrb[127].mxu1  ;;  %v10390_v28 = vpop.eup %10389  ;;  %10409 = vtanh.f32 %v1861_v17  ;;  %v3447_v17 = vld [vmem:[#allocation6 + $0x638] sm:$0xff]  ;;  %v8941_v24 = vpack.c.bf16 %v3442_v14, %v3440_v13 }
 0x2df   : > { %v1869_v30 = vadd.f32 %v1868_v27, %v13248_v50  ;;  %v10392_v31 = vpop.eup %10391  ;;  %10411 = vtanh.f32 %v1610_v22  ;;  %2309 = vmatprep.mubr.f32.mxu0 %v10390_v28  ;;  %v8943_v28 = vpack.c.bf16 %v3447_v17, %v3445_v16 }
 0x2e0   : > { %v10394_v32 = vpop.eup %10393  ;;  %10413 = vtanh.f32 %v1612_v26  ;;  %2566 = vmatprep.mubr.f32.mxu1 %v10392_v31  ;;  %2310 = vmatmul.mubr.f32.gmra.mrb[184].mxu0 %v10388_v25 }
 0x2e1   : > { %v10396_v33 = vpop.eup %10395  ;;  %10415 = vtanh.f32 %v1869_v30  ;;  %2567 = vmatmul.mubr.f32.gmra.mrb[184].mxu1 %v10394_v32  ;;  %v3446_v30 = vld [vmem:[#allocation6 + $0x630] sm:$0xff] }
 0x2e2   : > { %v10398_v34 = vpop.eup %10397  ;;  %10417 = vtanh.f32 %v1867_v29  ;;  %v3444_v29 = vld [vmem:[#allocation6 + $0x620] sm:$0xff] }
 0x2e3   : > { %v10400_v35 = vpop.eup %10399  ;;  %2315 = vmatprep.mubr.f32.mxu0 %v10398_v34  ;;  %v3451_v34 = vld [vmem:[#allocation6 + $0x658] sm:$0xff] }
 0x2e4   : > { %v10402_v49 = vpop.eup %10401  ;;  %2572 = vmatprep.mubr.f32.mxu1 %v10400_v35  ;;  %2316 = vmatmul.mubr.f32.gmra.mrb[186].mxu0 %v10396_v33  ;;  %v3449_v33 = vld [vmem:[#allocation6 + $0x648] sm:$0xff] }
 0x2e5   : > { %v10404_v47 = vpop.eup %10403  ;;  %2573 = vmatmul.mubr.f32.gmra.mrb[186].mxu1 %v10402_v49  ;;  %v8947_v42 = vpack.c.bf16 %v3451_v34, %v3449_v33 }
 0x2e6   : > { %v10406_v50 = vpop.eup %10405 }
 0x2e7   : > { %v10408_v0 = vpop.eup %10407  ;;  %2321 = vmatprep.mubr.f32.mxu0 %v10406_v50 }
 0x2e8   : > { %v10410_v36 = vpop.eup %10409  ;;  %2578 = vmatprep.mubr.f32.mxu1 %v10408_v0  ;;  %2322 = vmatmul.mubr.f32.gmra.mrb[188].mxu0 %v10404_v47 }
 0x2e9   : > { %v10412_v37 = vpop.eup %10411  ;;  %2579 = vmatmul.mubr.f32.gmra.mrb[188].mxu1 %v10410_v36 }
 0x2ea   : > { %v10414_v38 = vpop.eup %10413 }
 0x2eb   : > { %v10416_v39 = vpop.eup %10415  ;;  %2327 = vmatprep.mubr.f32.mxu0 %v10414_v38  ;;  %v8945_v38 = vpack.c.bf16 %v3446_v30, %v3444_v29 }
 0x2ec   : > { %v10418_v40 = vpop.eup %10417  ;;  %2584 = vmatprep.mubr.f32.mxu1 %v10416_v39  ;;  %2328 = vmatmul.mubr.f32.gmra.mrb[190].mxu0 %v10412_v37 }
 0x2ed   : > { %2585 = vmatmul.mubr.f32.gmra.mrb[190].mxu1 %v10418_v40 }
 0x342   : > { %v2143_v52 = vpop.f32.mrb[128].mxu0 }
 0x343   : > { %v2144_v53 = vadd.f32 %v2143_v52, %v13379_v45  ;;  %v2400_v54 = vpop.f32.mrb[128].mxu1  ;;  %v2145_v55 = vpop.f32.mrb[129].mxu0 }
 0x344   : > { %v2146_v56 = vadd.f32 %v2145_v55, %v13382_v51  ;;  %v2402_v57 = vpop.f32.mrb[129].mxu1  ;;  %v2401_v58 = vadd.f32 %v2400_v54, %v13379_v45  ;;  %v3453_v54 = vld [vmem:[#allocation6 + $0x668] sm:$0xff]  ;;  %v3455_v55 = vld [vmem:[#allocation6 + $0x678] sm:$0xff] }
 0x345   : > { %v2403_v59 = vadd.f32 %v2402_v57, %v13382_v51  ;;  %10419 = vtanh.f32 %v2144_v53 }
 0x346   : > { %10421 = vtanh.f32 %v2146_v56 }
 0x347   : > { %v2149_v60 = vpop.f32.mrb[130].mxu0  ;;  %10423 = vtanh.f32 %v2403_v59 }
 0x348   : > { %v2150_v61 = vadd.f32 %v2149_v60, %v13379_v45  ;;  %v2406_v62 = vpop.f32.mrb[130].mxu1  ;;  %v2151_v63 = vpop.f32.mrb[131].mxu0  ;;  %10425 = vtanh.f32 %v2401_v58 }
 0x349   : > { %v2152_v1 = vadd.f32 %v2151_v63, %v13382_v51  ;;  %v2408_v2 = vpop.f32.mrb[131].mxu1  ;;  %v2407_v3 = vadd.f32 %v2406_v62, %v13379_v45  ;;  %v8949_v63 = vpack.c.bf16 %v3450_v44, %v3448_v43 }
 0x34a   : > { %v2409_v4 = vadd.f32 %v2408_v2, %v13382_v51  ;;  %10427 = vtanh.f32 %v2150_v61 }
 0x34b   : > { %v2155_v5 = vpop.f32.mrb[132].mxu0  ;;  %10429 = vtanh.f32 %v2152_v1 }
 0x34c   : > { %v2156_v6 = vadd.f32 %v2155_v5, %v13379_v45  ;;  %v2412_v7 = vpop.f32.mrb[132].mxu1  ;;  %v2157_v8 = vpop.f32.mrb[133].mxu0  ;;  %10431 = vtanh.f32 %v2409_v4  ;;  %v8951_v4 = vpack.c.bf16 %v3455_v55, %v3453_v54  ;;  %v3452_v5 = vld [vmem:[#allocation6 + $0x660] sm:$0xff] }
 0x34d   : > { %v2158_v9 = vadd.f32 %v2157_v8, %v13382_v51  ;;  %v2414_v10 = vpop.f32.mrb[133].mxu1  ;;  %10433 = vtanh.f32 %v2407_v3  ;;  %v2413_v11 = vadd.f32 %v2412_v7, %v13379_v45 }
 0x34e   : > { %v2415_v12 = vadd.f32 %v2414_v10, %v13382_v51  ;;  %10435 = vtanh.f32 %v2156_v6  ;;  %v3454_v6 = vld [vmem:[#allocation6 + $0x670] sm:$0xff]  ;;  %v3459_v10 = vld [vmem:[#allocation6 + $0x698] sm:$0xff] }
 0x34f   : > { %v2161_v15 = vpop.f32.mrb[134].mxu0  ;;  %10437 = vtanh.f32 %v2158_v9  ;;  %v10420_v21 = vpop.eup %10419  ;;  %v3457_v9 = vld [vmem:[#allocation6 + $0x688] sm:$0xff] }
 0x350   : > { %v2162_v18 = vadd.f32 %v2161_v15, %v13379_v45  ;;  %v2418_v19 = vpop.f32.mrb[134].mxu1  ;;  %v2163_v20 = vpop.f32.mrb[135].mxu0  ;;  %10439 = vtanh.f32 %v2415_v12 }
 0x351   : > { %v2164_v22 = vadd.f32 %v2163_v20, %v13382_v51  ;;  %v2420_v23 = vpop.f32.mrb[135].mxu1  ;;  %v10422_v25 = vpop.eup %10421  ;;  %10441 = vtanh.f32 %v2413_v11  ;;  %v2419_v26 = vadd.f32 %v2418_v19, %v13379_v45 }
 0x352   : > { %v2421_v27 = vadd.f32 %v2420_v23, %v13382_v51  ;;  %v10424_v31 = vpop.eup %10423  ;;  %10443 = vtanh.f32 %v2162_v18  ;;  %2861 = vmatprep.mubr.f32.mxu0 %v10422_v25  ;;  %v8953_v18 = vpack.c.bf16 %v3454_v6, %v3452_v5  ;;  %v3456_v23 = vld [vmem:[#allocation6 + $0x680] sm:$0xff] }
 0x353   : > { %v2167_v32 = vpop.f32.mrb[136].mxu0  ;;  %v10426_v35 = vpop.eup %10425  ;;  %10445 = vtanh.f32 %v2164_v22  ;;  %3118 = vmatprep.mubr.f32.mxu1 %v10424_v31  ;;  %2862 = vmatmul.mubr.f32.vlgmr.msra.gmra.mrb[192].mxu0 %v10420_v21  ;;  %v8955_v22 = vpack.c.bf16 %v3459_v10, %v3457_v9 }
 0x354   : > { %v2168_v49 = vadd.f32 %v2167_v32, %v13379_v45  ;;  %v2424_v47 = vpop.f32.mrb[136].mxu1  ;;  %v2169_v50 = vpop.f32.mrb[137].mxu0  ;;  %10447 = vtanh.f32 %v2421_v27  ;;  %3119 = vmatmul.mubr.f32.vlgmr.msra.gmra.mrb[192].mxu1 %v10426_v35  ;;  %8942 = vmatpush1.bf16.msra.mxu0 %v8941_v24  ;;  %v3461_v27 = vld [vmem:[#allocation6 + $0x6a8] sm:$0xff] }
 0x355   : > { %v10428_v0 = vpop.eup %10427  ;;  %v2170_v36 = vadd.f32 %v2169_v50, %v13382_v51  ;;  %v2426_v37 = vpop.f32.mrb[137].mxu1  ;;  %10449 = vtanh.f32 %v2419_v26  ;;  %v2425_v40 = vadd.f32 %v2424_v47, %v13379_v45  ;;  %9006 = vmatpush1.bf16.msra.mxu1 %v8941_v24  ;;  %8944 = vmatprep.subr.bf16.mxu0 %v8943_v28  ;;  %v3458_v24 = vld [vmem:[#allocation6 + $0x690] sm:$0xff] }
 0x356   : > { %v10430_v39 = vpop.eup %10429  ;;  %v2427_v41 = vadd.f32 %v2426_v37, %v13382_v51  ;;  %10451 = vtanh.f32 %v2168_v49  ;;  %9008 = vmatprep.subr.bf16.mxu1 %v8943_v28  ;;  %v3463_v28 = vld [vmem:[#allocation6 + $0x6b8] sm:$0xff]  ;;  %v8957_v49 = vpack.c.bf16 %v3458_v24, %v3456_v23  ;;  %v3460_v37 = vld [vmem:[#allocation6 + $0x6a0] sm:$0xff] }
 0x357   : > { %v10432_v52 = vpop.eup %10431  ;;  %2867 = vmatprep.mubr.f32.mxu0 %v10430_v39  ;;  %v2173_v53 = vpop.f32.mrb[138].mxu0  ;;  %10453 = vtanh.f32 %v2170_v36  ;;  %v8959_v36 = vpack.c.bf16 %v3463_v28, %v3461_v27 }
 0x358   : > { %v10434_v56 = vpop.eup %10433  ;;  %3124 = vmatprep.mubr.f32.mxu1 %v10432_v52  ;;  %v2174_v57 = vadd.f32 %v2173_v53, %v13379_v45  ;;  %v2430_v58 = vpop.f32.mrb[138].mxu1  ;;  %2868 = vmatmul.mubr.f32.gmra.mrb[194].mxu0 %v10428_v0  ;;  %10455 = vtanh.f32 %v2427_v41  ;;  %v3465_v41 = vld [vmem:[#allocation6 + $0x6c8] sm:$0xff] }
 0x359   : > { %v2175_v59 = vpop.f32.mrb[139].mxu0  ;;  %v10436_v60 = vpop.eup %10435  ;;  %3125 = vmatmul.mubr.f32.gmra.mrb[194].mxu1 %v10434_v56  ;;  %8946 = vmatpush1.bf16.msra.mxu0 %v8945_v38  ;;  %10457 = vtanh.f32 %v2425_v40  ;;  %v2431_v2 = vadd.f32 %v2430_v58, %v13379_v45 }
 0x35a   : > { %v2176_v61 = vadd.f32 %v2175_v59, %v13382_v51  ;;  %v2432_v62 = vpop.f32.mrb[139].mxu1  ;;  %v10438_v1 = vpop.eup %10437  ;;  %9010 = vmatpush1.bf16.msra.mxu1 %v8945_v38  ;;  %8948 = vmatprep.subr.bf16.mxu0 %v8947_v42  ;;  %10459 = vtanh.f32 %v2174_v57  ;;  %v3462_v38 = vld [vmem:[#allocation6 + $0x6b0] sm:$0xff] }
 0x35b   : > { %v2433_v3 = vadd.f32 %v2432_v62, %v13382_v51  ;;  %v10440_v7 = vpop.eup %10439  ;;  %2873 = vmatprep.mubr.f32.mxu0 %v10438_v1  ;;  %v2179_v8 = vpop.f32.mrb[140].mxu0  ;;  %9012 = vmatprep.subr.bf16.mxu1 %v8947_v42  ;;  %v3467_v42 = vld [vmem:[#allocation6 + $0x6d8] sm:$0xff]  ;;  %v8961_v57 = vpack.c.bf16 %v3462_v38, %v3460_v37  ;;  %v3464_v62 = vld [vmem:[#allocation6 + $0x6c0] sm:$0xff] }
 0x35c   : > { %v10442_v11 = vpop.eup %10441  ;;  %10461 = vtanh.f32 %v2176_v61  ;;  %3130 = vmatprep.mubr.f32.mxu1 %v10440_v7  ;;  %v2180_v12 = vadd.f32 %v2179_v8, %v13379_v45  ;;  %v2436_v13 = vpop.f32.mrb[140].mxu1  ;;  %2874 = vmatmul.mubr.f32.gmra.mrb[196].mxu0 %v10436_v60  ;;  %v8963_v61 = vpack.c.bf16 %v3467_v42, %v3465_v41 }
 0x35d   : > { %v2181_v14 = vpop.f32.mrb[141].mxu0  ;;  %v10444_v15 = vpop.eup %10443  ;;  %10463 = vtanh.f32 %v2433_v3  ;;  %3131 = vmatmul.mubr.f32.gmra.mrb[196].mxu1 %v10442_v11  ;;  %8950 = vmatpush1.bf16.msra.mxu0 %v8949_v63  ;;  %v2437_v20 = vadd.f32 %v2436_v13, %v13379_v45  ;;  %v3469_v3 = vld [vmem:[#allocation6 + $0x6e8] sm:$0xff] }
 0x35e   : > { %v2182_v16 = vadd.f32 %v2181_v14, %v13382_v51  ;;  %v2438_v17 = vpop.f32.mrb[141].mxu1  ;;  %v10446_v19 = vpop.eup %10445  ;;  %10465 = vtanh.f32 %v2431_v2  ;;  %9014 = vmatpush1.bf16.msra.mxu1 %v8949_v63  ;;  %8952 = vmatprep.subr.bf16.mxu0 %v8951_v4  ;;  %v3466_v63 = vld [vmem:[#allocation6 + $0x6d0] sm:$0xff] }
 0x35f   : > { %v2439_v21 = vadd.f32 %v2438_v17, %v13382_v51  ;;  %v10448_v25 = vpop.eup %10447  ;;  %10467 = vtanh.f32 %v2180_v12  ;;  %2879 = vmatprep.mubr.f32.mxu0 %v10446_v19  ;;  %v2185_v26 = vpop.f32.mrb[142].mxu0  ;;  %9016 = vmatprep.subr.bf16.mxu1 %v8951_v4  ;;  %v3471_v4 = vld [vmem:[#allocation6 + $0x6f8] sm:$0xff]  ;;  %v8965_v12 = vpack.c.bf16 %v3466_v63, %v3464_v62  ;;  %v3468_v17 = vld [vmem:[#allocation6 + $0x6e0] sm:$0xff] }
 0x360   : > { %v10450_v29 = vpop.eup %10449  ;;  %10469 = vtanh.f32 %v2182_v16  ;;  %3136 = vmatprep.mubr.f32.mxu1 %v10448_v25  ;;  %v2186_v30 = vadd.f32 %v2185_v26, %v13379_v45  ;;  %v2442_v31 = vpop.f32.mrb[142].mxu1  ;;  %2880 = vmatmul.mubr.f32.gmra.mrb[198].mxu0 %v10444_v15  ;;  %v8967_v16 = vpack.c.bf16 %v3471_v4, %v3469_v3 }
 0x361   : > { %v2187_v32 = vpop.f32.mrb[143].mxu0  ;;  %v10452_v33 = vpop.eup %10451  ;;  %10471 = vtanh.f32 %v2439_v21  ;;  %3137 = vmatmul.mubr.f32.gmra.mrb[198].mxu1 %v10450_v29  ;;  %8954 = vmatpush1.bf16.msra.mxu0 %v8953_v18  ;;  %v2443_v50 = vadd.f32 %v2442_v31, %v13379_v45  ;;  %v3473_v21 = vld [vmem:[#allocation6 + $0x708] sm:$0xff] }
 0x362   : > { %v2188_v34 = vadd.f32 %v2187_v32, %v13382_v51  ;;  %v2444_v35 = vpop.f32.mrb[143].mxu1  ;;  %v10454_v47 = vpop.eup %10453  ;;  %10473 = vtanh.f32 %v2437_v20  ;;  %9018 = vmatpush1.bf16.msra.mxu1 %v8953_v18  ;;  %8956 = vmatprep.subr.bf16.mxu0 %v8955_v22  ;;  %v3470_v18 = vld [vmem:[#allocation6 + $0x6f0] sm:$0xff] }
 0x363   : > { %v2445_v0 = vadd.f32 %v2444_v35, %v13382_v51  ;;  %v10456_v39 = vpop.eup %10455  ;;  %10475 = vtanh.f32 %v2186_v30  ;;  %2885 = vmatprep.mubr.f32.mxu0 %v10454_v47  ;;  %v2191_v40 = vpop.f32.mrb[144].mxu0  ;;  %9020 = vmatprep.subr.bf16.mxu1 %v8955_v22  ;;  %v3475_v22 = vld [vmem:[#allocation6 + $0x718] sm:$0xff]  ;;  %v8969_v30 = vpack.c.bf16 %v3470_v18, %v3468_v17  ;;  %v3472_v35 = vld [vmem:[#allocation6 + $0x700] sm:$0xff] }
 0x364   : > { %v10458_v43 = vpop.eup %10457  ;;  %10477 = vtanh.f32 %v2188_v34  ;;  %3142 = vmatprep.mubr.f32.mxu1 %v10456_v39  ;;  %v2192_v44 = vadd.f32 %v2191_v40, %v13379_v45  ;;  %v2448_v52 = vpop.f32.mrb[144].mxu1  ;;  %2886 = vmatmul.mubr.f32.gmra.mrb[200].mxu0 %v10452_v33  ;;  %v8971_v34 = vpack.c.bf16 %v3475_v22, %v3473_v21 }
 0x365   : > { %v2193_v53 = vpop.f32.mrb[145].mxu0  ;;  %v10460_v54 = vpop.eup %10459  ;;  %10479 = vtanh.f32 %v2445_v0  ;;  %3143 = vmatmul.mubr.f32.gmra.mrb[200].mxu1 %v10458_v43  ;;  %8958 = vmatpush1.bf16.msra.mxu0 %v8957_v49  ;;  %v2449_v59 = vadd.f32 %v2448_v52, %v13379_v45  ;;  %v3477_v0 = vld [vmem:[#allocation6 + $0x728] sm:$0xff] }
 0x366   : > { %v2194_v55 = vadd.f32 %v2193_v53, %v13382_v51  ;;  %v2450_v56 = vpop.f32.mrb[145].mxu1  ;;  %v10462_v58 = vpop.eup %10461  ;;  %10481 = vtanh.f32 %v2443_v50  ;;  %9022 = vmatpush1.bf16.msra.mxu1 %v8957_v49  ;;  %8960 = vmatprep.subr.bf16.mxu0 %v8959_v36  ;;  %v3474_v49 = vld [vmem:[#allocation6 + $0x710] sm:$0xff] }
 0x367   : > { %v2451_v60 = vadd.f32 %v2450_v56, %v13382_v51  ;;  %v10464_v1 = vpop.eup %10463  ;;  %10483 = vtanh.f32 %v2192_v44  ;;  %2891 = vmatprep.mubr.f32.mxu0 %v10462_v58  ;;  %v2197_v2 = vpop.f32.mrb[146].mxu0  ;;  %9024 = vmatprep.subr.bf16.mxu1 %v8959_v36  ;;  %v3479_v36 = vld [vmem:[#allocation6 + $0x738] sm:$0xff]  ;;  %v8973_v44 = vpack.c.bf16 %v3474_v49, %v3472_v35  ;;  %v3476_v56 = vld [vmem:[#allocation6 + $0x720] sm:$0xff] }
 0x368   : > { %v10466_v5 = vpop.eup %10465  ;;  %10485 = vtanh.f32 %v2194_v55  ;;  %3148 = vmatprep.mubr.f32.mxu1 %v10464_v1  ;;  %v2198_v6 = vadd.f32 %v2197_v2, %v13379_v45  ;;  %v2454_v7 = vpop.f32.mrb[146].mxu1  ;;  %2892 = vmatmul.mubr.f32.gmra.mrb[202].mxu0 %v10460_v54  ;;  %v8975_v55 = vpack.c.bf16 %v3479_v36, %v3477_v0 }
 0x369   : > { %v2199_v8 = vpop.f32.mrb[147].mxu0  ;;  %v10468_v9 = vpop.eup %10467  ;;  %10487 = vtanh.f32 %v2451_v60  ;;  %3149 = vmatmul.mubr.f32.gmra.mrb[202].mxu1 %v10466_v5  ;;  %8962 = vmatpush1.bf16.msra.mxu0 %v8961_v57  ;;  %v2455_v14 = vadd.f32 %v2454_v7, %v13379_v45  ;;  %v3481_v60 = vld [vmem:[#allocation6 + $0x748] sm:$0xff] }
 0x36a   : > { %v2200_v10 = vadd.f32 %v2199_v8, %v13382_v51  ;;  %v2456_v11 = vpop.f32.mrb[147].mxu1  ;;  %v10470_v13 = vpop.eup %10469  ;;  %10489 = vtanh.f32 %v2449_v59  ;;  %9026 = vmatpush1.bf16.msra.mxu1 %v8961_v57  ;;  %8964 = vmatprep.subr.bf16.mxu0 %v8963_v61  ;;  %v3478_v57 = vld [vmem:[#allocation6 + $0x730] sm:$0xff] }
 0x36b   : > { %v2457_v15 = vadd.f32 %v2456_v11, %v13382_v51  ;;  %v10472_v19 = vpop.eup %10471  ;;  %10491 = vtanh.f32 %v2198_v6  ;;  %2897 = vmatprep.mubr.f32.mxu0 %v10470_v13  ;;  %v2203_v20 = vpop.f32.mrb[148].mxu0  ;;  %9028 = vmatprep.subr.bf16.mxu1 %v8963_v61  ;;  %v3483_v61 = vld [vmem:[#allocation6 + $0x758] sm:$0xff]  ;;  %v8977_v6 = vpack.c.bf16 %v3478_v57, %v3476_v56  ;;  %v3480_v11 = vld [vmem:[#allocation6 + $0x740] sm:$0xff] }
 0x36c   : > { %v10474_v23 = vpop.eup %10473  ;;  %10493 = vtanh.f32 %v2200_v10  ;;  %3154 = vmatprep.mubr.f32.mxu1 %v10472_v19  ;;  %v2204_v24 = vadd.f32 %v2203_v20, %v13379_v45  ;;  %v2460_v25 = vpop.f32.mrb[148].mxu1  ;;  %2898 = vmatmul.mubr.f32.gmra.mrb[204].mxu0 %v10468_v9  ;;  %v8979_v10 = vpack.c.bf16 %v3483_v61, %v3481_v60 }
 0x36d   : > { %v2205_v26 = vpop.f32.mrb[149].mxu0  ;;  %v10476_v27 = vpop.eup %10475  ;;  %10495 = vtanh.f32 %v2457_v15  ;;  %3155 = vmatmul.mubr.f32.gmra.mrb[204].mxu1 %v10474_v23  ;;  %8966 = vmatpush1.bf16.msra.mxu0 %v8965_v12  ;;  %v2461_v32 = vadd.f32 %v2460_v25, %v13379_v45  ;;  %v3485_v15 = vld [vmem:[#allocation6 + $0x768] sm:$0xff] }
 0x36e   : > { %v2206_v28 = vadd.f32 %v2205_v26, %v13382_v51  ;;  %v2462_v29 = vpop.f32.mrb[149].mxu1  ;;  %v10478_v31 = vpop.eup %10477  ;;  %10497 = vtanh.f32 %v2455_v14  ;;  %9030 = vmatpush1.bf16.msra.mxu1 %v8965_v12  ;;  %8968 = vmatprep.subr.bf16.mxu0 %v8967_v16  ;;  %v3482_v12 = vld [vmem:[#allocation6 + $0x750] sm:$0xff] }
 0x36f   : > { %v2463_v33 = vadd.f32 %v2462_v29, %v13382_v51  ;;  %v10480_v47 = vpop.eup %10479  ;;  %10499 = vtanh.f32 %v2204_v24  ;;  %2903 = vmatprep.mubr.f32.mxu0 %v10478_v31  ;;  %v2209_v50 = vpop.f32.mrb[150].mxu0  ;;  %9032 = vmatprep.subr.bf16.mxu1 %v8967_v16  ;;  %v3487_v16 = vld [vmem:[#allocation6 + $0x778] sm:$0xff]  ;;  %v8981_v24 = vpack.c.bf16 %v3482_v12, %v3480_v11  ;;  %v3484_v29 = vld [vmem:[#allocation6 + $0x760] sm:$0xff] }
 0x370   : > { %v10482_v37 = vpop.eup %10481  ;;  %10501 = vtanh.f32 %v2206_v28  ;;  %3160 = vmatprep.mubr.f32.mxu1 %v10480_v47  ;;  %v2210_v38 = vadd.f32 %v2209_v50, %v13379_v45  ;;  %v2466_v39 = vpop.f32.mrb[150].mxu1  ;;  %2904 = vmatmul.mubr.f32.gmra.mrb[206].mxu0 %v10476_v27  ;;  %v8983_v28 = vpack.c.bf16 %v3487_v16, %v3485_v15 }
 0x371   : > { %v2211_v40 = vpop.f32.mrb[151].mxu0  ;;  %v10484_v41 = vpop.eup %10483  ;;  %10503 = vtanh.f32 %v2463_v33  ;;  %3161 = vmatmul.mubr.f32.gmra.mrb[206].mxu1 %v10482_v37  ;;  %8970 = vmatpush1.bf16.msra.mxu0 %v8969_v30  ;;  %v2467_v53 = vadd.f32 %v2466_v39, %v13379_v45  ;;  %v3489_v33 = vld [vmem:[#allocation6 + $0x788] sm:$0xff] }
 0x372   : > { %v2212_v42 = vadd.f32 %v2211_v40, %v13382_v51  ;;  %v2468_v43 = vpop.f32.mrb[151].mxu1  ;;  %v10486_v52 = vpop.eup %10485  ;;  %10505 = vtanh.f32 %v2461_v32  ;;  %9034 = vmatpush1.bf16.msra.mxu1 %v8969_v30  ;;  %8972 = vmatprep.subr.bf16.mxu0 %v8971_v34  ;;  %v3486_v30 = vld [vmem:[#allocation6 + $0x770] sm:$0xff] }
 0x373   : > { %v2469_v54 = vadd.f32 %v2468_v43, %v13382_v51  ;;  %v10488_v58 = vpop.eup %10487  ;;  %10507 = vtanh.f32 %v2210_v38  ;;  %2909 = vmatprep.mubr.f32.mxu0 %v10486_v52  ;;  %v2215_v59 = vpop.f32.mrb[152].mxu0  ;;  %9036 = vmatprep.subr.bf16.mxu1 %v8971_v34  ;;  %v3491_v34 = vld [vmem:[#allocation6 + $0x798] sm:$0xff]  ;;  %v8985_v38 = vpack.c.bf16 %v3486_v30, %v3484_v29  ;;  %v3488_v43 = vld [vmem:[#allocation6 + $0x780] sm:$0xff] }
 0x374   : > { %v10490_v62 = vpop.eup %10489  ;;  %10509 = vtanh.f32 %v2212_v42  ;;  %3166 = vmatprep.mubr.f32.mxu1 %v10488_v58  ;;  %v2216_v63 = vadd.f32 %v2215_v59, %v13379_v45  ;;  %v2472_v1 = vpop.f32.mrb[152].mxu1  ;;  %2910 = vmatmul.mubr.f32.gmra.mrb[208].mxu0 %v10484_v41  ;;  %v8987_v42 = vpack.c.bf16 %v3491_v34, %v3489_v33 }
 0x375   : > { %v2217_v2 = vpop.f32.mrb[153].mxu0  ;;  %v10492_v3 = vpop.eup %10491  ;;  %10511 = vtanh.f32 %v2469_v54  ;;  %3167 = vmatmul.mubr.f32.gmra.mrb[208].mxu1 %v10490_v62  ;;  %8974 = vmatpush1.bf16.msra.mxu0 %v8973_v44  ;;  %v2473_v8 = vadd.f32 %v2472_v1, %v13379_v45  ;;  %v3493_v54 = vld [vmem:[#allocation6 + $0x7a8] sm:$0xff] }
 0x376   : > { %v2218_v4 = vadd.f32 %v2217_v2, %v13382_v51  ;;  %v2474_v5 = vpop.f32.mrb[153].mxu1  ;;  %v10494_v7 = vpop.eup %10493  ;;  %10513 = vtanh.f32 %v2467_v53  ;;  %9038 = vmatpush1.bf16.msra.mxu1 %v8973_v44  ;;  %8976 = vmatprep.subr.bf16.mxu0 %v8975_v55  ;;  %v3490_v44 = vld [vmem:[#allocation6 + $0x790] sm:$0xff] }
 0x377   : > { %v2475_v9 = vadd.f32 %v2474_v5, %v13382_v51  ;;  %v10496_v13 = vpop.eup %10495  ;;  %10515 = vtanh.f32 %v2216_v63  ;;  %2915 = vmatprep.mubr.f32.mxu0 %v10494_v7  ;;  %v2221_v14 = vpop.f32.mrb[154].mxu0  ;;  %9040 = vmatprep.subr.bf16.mxu1 %v8975_v55  ;;  %v3495_v55 = vld [vmem:[#allocation6 + $0x7b8] sm:$0xff]  ;;  %v8989_v63 = vpack.c.bf16 %v3490_v44, %v3488_v43  ;;  %v3492_v5 = vld [vmem:[#allocation6 + $0x7a0] sm:$0xff] }
 0x378   : > { %v10498_v17 = vpop.eup %10497  ;;  %10517 = vtanh.f32 %v2218_v4  ;;  %3172 = vmatprep.mubr.f32.mxu1 %v10496_v13  ;;  %v2222_v18 = vadd.f32 %v2221_v14, %v13379_v45  ;;  %v2478_v19 = vpop.f32.mrb[154].mxu1  ;;  %2916 = vmatmul.mubr.f32.gmra.mrb[210].mxu0 %v10492_v3  ;;  %v8991_v4 = vpack.c.bf16 %v3495_v55, %v3493_v54 }
 0x379   : > { %v2223_v20 = vpop.f32.mrb[155].mxu0  ;;  %v10500_v21 = vpop.eup %10499  ;;  %10519 = vtanh.f32 %v2475_v9  ;;  %3173 = vmatmul.mubr.f32.gmra.mrb[210].mxu1 %v10498_v17  ;;  %8978 = vmatpush1.bf16.msra.mxu0 %v8977_v6  ;;  %v2479_v26 = vadd.f32 %v2478_v19, %v13379_v45  ;;  %v3497_v9 = vld [vmem:[#allocation6 + $0x7c8] sm:$0xff] }
 0x37a   : > { %v2224_v22 = vadd.f32 %v2223_v20, %v13382_v51  ;;  %v2480_v23 = vpop.f32.mrb[155].mxu1  ;;  %v10502_v25 = vpop.eup %10501  ;;  %10521 = vtanh.f32 %v2473_v8  ;;  %9042 = vmatpush1.bf16.msra.mxu1 %v8977_v6  ;;  %8980 = vmatprep.subr.bf16.mxu0 %v8979_v10  ;;  %v3494_v6 = vld [vmem:[#allocation6 + $0x7b0] sm:$0xff] }
 0x37b   : > { %v2481_v27 = vadd.f32 %v2480_v23, %v13382_v51  ;;  %v10504_v31 = vpop.eup %10503  ;;  %10523 = vtanh.f32 %v2222_v18  ;;  %2921 = vmatprep.mubr.f32.mxu0 %v10502_v25  ;;  %v2227_v32 = vpop.f32.mrb[156].mxu0  ;;  %9044 = vmatprep.subr.bf16.mxu1 %v8979_v10  ;;  %v3499_v10 = vld [vmem:[#allocation6 + $0x7d8] sm:$0xff]  ;;  %v8993_v18 = vpack.c.bf16 %v3494_v6, %v3492_v5 }
 0x37c   : > { %v10506_v35 = vpop.eup %10505  ;;  %10525 = vtanh.f32 %v2224_v22  ;;  %3178 = vmatprep.mubr.f32.mxu1 %v10504_v31  ;;  %v2228_v49 = vadd.f32 %v2227_v32, %v13379_v45  ;;  %v2484_v47 = vpop.f32.mrb[156].mxu1  ;;  %2922 = vmatmul.mubr.f32.gmra.mrb[212].mxu0 %v10500_v21  ;;  %v8995_v22 = vpack.c.bf16 %v3499_v10, %v3497_v9 }
 0x37d   : > { %v2229_v50 = vpop.f32.mrb[157].mxu0  ;;  %v10508_v0 = vpop.eup %10507  ;;  %10527 = vtanh.f32 %v2481_v27  ;;  %3179 = vmatmul.mubr.f32.gmra.mrb[212].mxu1 %v10506_v35  ;;  %8982 = vmatpush1.bf16.msra.mxu0 %v8981_v24  ;;  %v2485_v40 = vadd.f32 %v2484_v47, %v13379_v45 }
 0x37e   : > { %v2230_v36 = vadd.f32 %v2229_v50, %v13382_v51  ;;  %v2486_v37 = vpop.f32.mrb[157].mxu1  ;;  %v10510_v39 = vpop.eup %10509  ;;  %10529 = vtanh.f32 %v2479_v26  ;;  %9046 = vmatpush1.bf16.msra.mxu1 %v8981_v24  ;;  %8984 = vmatprep.subr.bf16.mxu0 %v8983_v28 }
 0x37f   : > { %v2487_v41 = vadd.f32 %v2486_v37, %v13382_v51  ;;  %v10512_v52 = vpop.eup %10511  ;;  %10531 = vtanh.f32 %v2228_v49  ;;  %2927 = vmatprep.mubr.f32.mxu0 %v10510_v39  ;;  %v2233_v53 = vpop.f32.mrb[158].mxu0  ;;  %9048 = vmatprep.subr.bf16.mxu1 %v8983_v28 }
 0x380   : > { %v10514_v56 = vpop.eup %10513  ;;  %10533 = vtanh.f32 %v2230_v36  ;;  %3184 = vmatprep.mubr.f32.mxu1 %v10512_v52  ;;  %v2234_v57 = vadd.f32 %v2233_v53, %v13379_v45  ;;  %v2490_v58 = vpop.f32.mrb[158].mxu1  ;;  %2928 = vmatmul.mubr.f32.gmra.mrb[214].mxu0 %v10508_v0 }
 0x381   : > { %v2235_v59 = vpop.f32.mrb[159].mxu0  ;;  %v10516_v60 = vpop.eup %10515  ;;  %10535 = vtanh.f32 %v2487_v41  ;;  %3185 = vmatmul.mubr.f32.gmra.mrb[214].mxu1 %v10514_v56  ;;  %8986 = vmatpush1.bf16.msra.mxu0 %v8985_v38  ;;  %v2491_v2 = vadd.f32 %v2490_v58, %v13379_v45 }
 0x382   : > { %v2236_v61 = vadd.f32 %v2235_v59, %v13382_v51  ;;  %v2492_v62 = vpop.f32.mrb[159].mxu1  ;;  %v10518_v1 = vpop.eup %10517  ;;  %10537 = vtanh.f32 %v2485_v40  ;;  %9050 = vmatpush1.bf16.msra.mxu1 %v8985_v38  ;;  %8988 = vmatprep.subr.bf16.mxu0 %v8987_v42 }
 0x383   : > { %v2493_v3 = vadd.f32 %v2492_v62, %v13382_v51  ;;  %v10520_v7 = vpop.eup %10519  ;;  %10539 = vtanh.f32 %v2234_v57  ;;  %2933 = vmatprep.mubr.f32.mxu0 %v10518_v1  ;;  %v2239_v8 = vpop.f32.mrb[160].mxu0  ;;  %9052 = vmatprep.subr.bf16.mxu1 %v8987_v42 }
 0x384   : > { %v10522_v11 = vpop.eup %10521  ;;  %10541 = vtanh.f32 %v2236_v61  ;;  %3190 = vmatprep.mubr.f32.mxu1 %v10520_v7  ;;  %v2240_v12 = vadd.f32 %v2239_v8, %v13379_v45  ;;  %v2496_v13 = vpop.f32.mrb[160].mxu1  ;;  %2934 = vmatmul.mubr.f32.gmra.mrb[216].mxu0 %v10516_v60 }
 0x385   : > { %v2241_v14 = vpop.f32.mrb[161].mxu0  ;;  %v10524_v15 = vpop.eup %10523  ;;  %10543 = vtanh.f32 %v2493_v3  ;;  %3191 = vmatmul.mubr.f32.gmra.mrb[216].mxu1 %v10522_v11  ;;  %8990 = vmatpush1.bf16.msra.mxu0 %v8989_v63  ;;  %v2497_v20 = vadd.f32 %v2496_v13, %v13379_v45 }
 0x386   : > { %v2242_v16 = vadd.f32 %v2241_v14, %v13382_v51  ;;  %v2498_v17 = vpop.f32.mrb[161].mxu1  ;;  %v10526_v19 = vpop.eup %10525  ;;  %10545 = vtanh.f32 %v2491_v2  ;;  %9054 = vmatpush1.bf16.msra.mxu1 %v8989_v63  ;;  %8992 = vmatprep.subr.bf16.mxu0 %v8991_v4 }
 0x387   : > { %v2499_v21 = vadd.f32 %v2498_v17, %v13382_v51  ;;  %v10528_v23 = vpop.eup %10527  ;;  %10547 = vtanh.f32 %v2240_v12  ;;  %2939 = vmatprep.mubr.f32.mxu0 %v10526_v19  ;;  %v2245_v24 = vpop.f32.mrb[162].mxu0  ;;  %9056 = vmatprep.subr.bf16.mxu1 %v8991_v4 }
 0x388   : > { %v10530_v25 = vpop.eup %10529  ;;  %10549 = vtanh.f32 %v2242_v16  ;;  %3196 = vmatprep.mubr.f32.mxu1 %v10528_v23  ;;  %v2246_v26 = vadd.f32 %v2245_v24, %v13379_v45  ;;  %v2502_v27 = vpop.f32.mrb[162].mxu1  ;;  %2940 = vmatmul.mubr.f32.gmra.mrb[218].mxu0 %v10524_v15 }
 0x389   : > { %v2247_v28 = vpop.f32.mrb[163].mxu0  ;;  %v10532_v29 = vpop.eup %10531  ;;  %10551 = vtanh.f32 %v2499_v21  ;;  %3197 = vmatmul.mubr.f32.gmra.mrb[218].mxu1 %v10530_v25  ;;  %8994 = vmatpush1.bf16.msra.mxu0 %v8993_v18  ;;  %v2503_v33 = vadd.f32 %v2502_v27, %v13379_v45 }
 0x38a   : > { %v2248_v30 = vadd.f32 %v2247_v28, %v13382_v51  ;;  %v2504_v31 = vpop.f32.mrb[163].mxu1  ;;  %v10534_v32 = vpop.eup %10533  ;;  %10553 = vtanh.f32 %v2497_v20  ;;  %9058 = vmatpush1.bf16.msra.mxu1 %v8993_v18  ;;  %8996 = vmatprep.subr.bf16.mxu0 %v8995_v22 }
 0x38b   : > { %v2505_v34 = vadd.f32 %v2504_v31, %v13382_v51  ;;  %v10536_v35 = vpop.eup %10535  ;;  %10555 = vtanh.f32 %v2246_v26  ;;  %2945 = vmatprep.mubr.f32.mxu0 %v10534_v32  ;;  %v2251_v49 = vpop.f32.mrb[164].mxu0  ;;  %9060 = vmatprep.subr.bf16.mxu1 %v8995_v22 }
 0x38c   : > { %v10538_v47 = vpop.eup %10537  ;;  %10557 = vtanh.f32 %v2248_v30  ;;  %3202 = vmatprep.mubr.f32.mxu1 %v10536_v35  ;;  %v2252_v50 = vadd.f32 %v2251_v49, %v13379_v45  ;;  %v2508_v0 = vpop.f32.mrb[164].mxu1  ;;  %2946 = vmatmul.mubr.f32.gmra.mrb[220].mxu0 %v10532_v29 }
 0x38d   : > { %v2253_v36 = vpop.f32.mrb[165].mxu0  ;;  %v10540_v37 = vpop.eup %10539  ;;  %10559 = vtanh.f32 %v2505_v34  ;;  %3203 = vmatmul.mubr.f32.gmra.mrb[220].mxu1 %v10538_v47  ;;  %v2509_v41 = vadd.f32 %v2508_v0, %v13379_v45 }
 0x38e   : > { %v2254_v38 = vadd.f32 %v2253_v36, %v13382_v51  ;;  %v2510_v39 = vpop.f32.mrb[165].mxu1  ;;  %v10542_v40 = vpop.eup %10541  ;;  %10561 = vtanh.f32 %v2503_v33 }
 0x38f   : > { %v2511_v42 = vadd.f32 %v2510_v39, %v13382_v51  ;;  %v10544_v43 = vpop.eup %10543  ;;  %10563 = vtanh.f32 %v2252_v50  ;;  %2951 = vmatprep.mubr.f32.mxu0 %v10542_v40  ;;  %v2257_v44 = vpop.f32.mrb[166].mxu0 }
 0x390   : > { %v10546_v52 = vpop.eup %10545  ;;  %10565 = vtanh.f32 %v2254_v38  ;;  %3208 = vmatprep.mubr.f32.mxu1 %v10544_v43  ;;  %v2258_v53 = vadd.f32 %v2257_v44, %v13379_v45  ;;  %v2514_v54 = vpop.f32.mrb[166].mxu1  ;;  %2952 = vmatmul.mubr.f32.gmra.mrb[222].mxu0 %v10540_v37 }
 0x391   : > { %v2259_v55 = vpop.f32.mrb[167].mxu0  ;;  %v10548_v56 = vpop.eup %10547  ;;  %10567 = vtanh.f32 %v2511_v42  ;;  %3209 = vmatmul.mubr.f32.gmra.mrb[222].mxu1 %v10546_v52  ;;  %v2515_v60 = vadd.f32 %v2514_v54, %v13379_v45 }
 0x392   : > { %v2260_v57 = vadd.f32 %v2259_v55, %v13382_v51  ;;  %v2516_v58 = vpop.f32.mrb[167].mxu1  ;;  %v10550_v59 = vpop.eup %10549  ;;  %10569 = vtanh.f32 %v2509_v41 }
 0x393   : > { %v2517_v61 = vadd.f32 %v2516_v58, %v13382_v51  ;;  %v10552_v62 = vpop.eup %10551  ;;  %10571 = vtanh.f32 %v2258_v53  ;;  %2957 = vmatprep.mubr.f32.mxu0 %v10550_v59  ;;  %v2263_v63 = vpop.f32.mrb[168].mxu0 }
 0x394   : > { %v10554_v1 = vpop.eup %10553  ;;  %10573 = vtanh.f32 %v2260_v57  ;;  %3214 = vmatprep.mubr.f32.mxu1 %v10552_v62  ;;  %v2264_v2 = vadd.f32 %v2263_v63, %v13379_v45  ;;  %v2520_v3 = vpop.f32.mrb[168].mxu1  ;;  %2958 = vmatmul.mubr.f32.gmra.mrb[224].mxu0 %v10548_v56 }
 0x395   : > { %v2265_v4 = vpop.f32.mrb[169].mxu0  ;;  %v10556_v5 = vpop.eup %10555  ;;  %10575 = vtanh.f32 %v2517_v61  ;;  %3215 = vmatmul.mubr.f32.gmra.mrb[224].mxu1 %v10554_v1  ;;  %v2521_v9 = vadd.f32 %v2520_v3, %v13379_v45 }
 0x396   : > { %v2266_v6 = vadd.f32 %v2265_v4, %v13382_v51  ;;  %v2522_v7 = vpop.f32.mrb[169].mxu1  ;;  %v10558_v8 = vpop.eup %10557  ;;  %10577 = vtanh.f32 %v2515_v60 }
 0x397   : > { %v2523_v10 = vadd.f32 %v2522_v7, %v13382_v51  ;;  %v10560_v11 = vpop.eup %10559  ;;  %10579 = vtanh.f32 %v2264_v2  ;;  %2963 = vmatprep.mubr.f32.mxu0 %v10558_v8  ;;  %v2269_v12 = vpop.f32.mrb[170].mxu0 }
 0x398   : > { %v10562_v13 = vpop.eup %10561  ;;  %10581 = vtanh.f32 %v2266_v6  ;;  %3220 = vmatprep.mubr.f32.mxu1 %v10560_v11  ;;  %v2270_v14 = vadd.f32 %v2269_v12, %v13379_v45  ;;  %v2526_v15 = vpop.f32.mrb[170].mxu1  ;;  %2964 = vmatmul.mubr.f32.gmra.mrb[226].mxu0 %v10556_v5 }
 0x399   : > { %v2271_v16 = vpop.f32.mrb[171].mxu0  ;;  %v10564_v17 = vpop.eup %10563  ;;  %10583 = vtanh.f32 %v2523_v10  ;;  %3221 = vmatmul.mubr.f32.gmra.mrb[226].mxu1 %v10562_v13  ;;  %v2527_v21 = vadd.f32 %v2526_v15, %v13379_v45  ;;  %v3496_v13 = vld [vmem:[#allocation6 + $0x7c0] sm:$0xff] }
 0x39a   : > { %v2272_v18 = vadd.f32 %v2271_v16, %v13382_v51  ;;  %v2528_v19 = vpop.f32.mrb[171].mxu1  ;;  %v10566_v20 = vpop.eup %10565  ;;  %10585 = vtanh.f32 %v2521_v9 }
 0x39b   : > { %v2529_v22 = vadd.f32 %v2528_v19, %v13382_v51  ;;  %v10568_v23 = vpop.eup %10567  ;;  %10587 = vtanh.f32 %v2270_v14  ;;  %2969 = vmatprep.mubr.f32.mxu0 %v10566_v20  ;;  %v2275_v24 = vpop.f32.mrb[172].mxu0  ;;  %v3498_v14 = vld [vmem:[#allocation6 + $0x7d0] sm:$0xff] }
 0x39c   : > { %v10570_v25 = vpop.eup %10569  ;;  %10589 = vtanh.f32 %v2272_v18  ;;  %3226 = vmatprep.mubr.f32.mxu1 %v10568_v23  ;;  %v2276_v26 = vadd.f32 %v2275_v24, %v13379_v45  ;;  %v2532_v27 = vpop.f32.mrb[172].mxu1  ;;  %2970 = vmatmul.mubr.f32.gmra.mrb[228].mxu0 %v10564_v17  ;;  %v8997_v19 = vpack.c.bf16 %v3498_v14, %v3496_v13 }
 0x39d   : > { %v2277_v28 = vpop.f32.mrb[173].mxu0  ;;  %v10572_v29 = vpop.eup %10571  ;;  %10591 = vtanh.f32 %v2529_v22  ;;  %3227 = vmatmul.mubr.f32.gmra.mrb[228].mxu1 %v10570_v25  ;;  %v2533_v33 = vadd.f32 %v2532_v27, %v13379_v45 }
 0x39e   : > { %v2278_v30 = vadd.f32 %v2277_v28, %v13382_v51  ;;  %v2534_v31 = vpop.f32.mrb[173].mxu1  ;;  %v10574_v32 = vpop.eup %10573  ;;  %10593 = vtanh.f32 %v2527_v21  ;;  %8998 = vmatpush1.bf16.msra.mxu0 %v8997_v19  ;;  %9062 = vmatpush1.bf16.msra.mxu1 %v8997_v19 }
 0x39f   : > { %v2535_v34 = vadd.f32 %v2534_v31, %v13382_v51  ;;  %v10576_v35 = vpop.eup %10575  ;;  %10595 = vtanh.f32 %v2276_v26  ;;  %2975 = vmatprep.mubr.f32.mxu0 %v10574_v32  ;;  %v2281_v49 = vpop.f32.mrb[174].mxu0 }
 0x3a0   : > { %v10578_v47 = vpop.eup %10577  ;;  %10597 = vtanh.f32 %v2278_v30  ;;  %3232 = vmatprep.mubr.f32.mxu1 %v10576_v35  ;;  %v2282_v50 = vadd.f32 %v2281_v49, %v13379_v45  ;;  %v2538_v0 = vpop.f32.mrb[174].mxu1  ;;  %2976 = vmatmul.mubr.f32.gmra.mrb[230].mxu0 %v10572_v29  ;;  %v3501_v35 = vld [vmem:[#allocation6 + $0x7e8] sm:$0xff]  ;;  %v3503_v49 = vld [vmem:[#allocation6 + $0x7f8] sm:$0xff] }
 0x3a1   : > { %v2283_v36 = vpop.f32.mrb[175].mxu0  ;;  %v10580_v37 = vpop.eup %10579  ;;  %10599 = vtanh.f32 %v2535_v34  ;;  %3233 = vmatmul.mubr.f32.gmra.mrb[230].mxu1 %v10578_v47  ;;  %v2539_v41 = vadd.f32 %v2538_v0, %v13379_v45 }
 0x3a2   : > { %v2284_v38 = vadd.f32 %v2283_v36, %v13382_v51  ;;  %v2540_v39 = vpop.f32.mrb[175].mxu1  ;;  %v10582_v40 = vpop.eup %10581  ;;  %10601 = vtanh.f32 %v2533_v33  ;;  %v8999_v36 = vpack.c.bf16 %v3503_v49, %v3501_v35 }
 0x3a3   : > { %v2541_v42 = vadd.f32 %v2540_v39, %v13382_v51  ;;  %v10584_v43 = vpop.eup %10583  ;;  %10603 = vtanh.f32 %v2282_v50  ;;  %2981 = vmatprep.mubr.f32.mxu0 %v10582_v40  ;;  %v2287_v44 = vpop.f32.mrb[176].mxu0  ;;  %v3500_v39 = vld [vmem:[#allocation6 + $0x7e0] sm:$0xff]  ;;  %v3502_v40 = vld [vmem:[#allocation6 + $0x7f0] sm:$0xff] }
 0x3a4   : > { %v10586_v52 = vpop.eup %10585  ;;  %10605 = vtanh.f32 %v2284_v38  ;;  %3238 = vmatprep.mubr.f32.mxu1 %v10584_v43  ;;  %v2288_v53 = vadd.f32 %v2287_v44, %v13379_v45  ;;  %v2544_v54 = vpop.f32.mrb[176].mxu1  ;;  %2982 = vmatmul.mubr.f32.gmra.mrb[232].mxu0 %v10580_v37 }
 0x3a5   : > { %v2289_v55 = vpop.f32.mrb[177].mxu0  ;;  %v10588_v56 = vpop.eup %10587  ;;  %10607 = vtanh.f32 %v2541_v42  ;;  %3239 = vmatmul.mubr.f32.gmra.mrb[232].mxu1 %v10586_v52  ;;  %v2545_v60 = vadd.f32 %v2544_v54, %v13379_v45  ;;  %v9001_v52 = vpack.c.bf16 %v3502_v40, %v3500_v39  ;;  %9000 = vmatprep.subr.bf16.mxu0 %v8999_v36  ;;  %v4161_v40 = vld [vmem:[#allocation6 + $0x808] sm:$0xff] }
 0x3a6   : > { %v2290_v57 = vadd.f32 %v2289_v55, %v13382_v51  ;;  %v2546_v58 = vpop.f32.mrb[177].mxu1  ;;  %v10590_v59 = vpop.eup %10589  ;;  %10609 = vtanh.f32 %v2539_v41  ;;  %9064 = vmatprep.subr.bf16.mxu1 %v8999_v36 }
 0x3a7   : > { %v2547_v61 = vadd.f32 %v2546_v58, %v13382_v51  ;;  %v10592_v62 = vpop.eup %10591  ;;  %10611 = vtanh.f32 %v2288_v53  ;;  %2987 = vmatprep.mubr.f32.mxu0 %v10590_v59  ;;  %v2293_v63 = vpop.f32.mrb[178].mxu0  ;;  %9002 = vmatpush1.bf16.msra.mxu0 %v9001_v52 }
 0x3a8   : > { %v10594_v1 = vpop.eup %10593  ;;  %10613 = vtanh.f32 %v2290_v57  ;;  %3244 = vmatprep.mubr.f32.mxu1 %v10592_v62  ;;  %v2294_v2 = vadd.f32 %v2293_v63, %v13379_v45  ;;  %v2550_v3 = vpop.f32.mrb[178].mxu1  ;;  %2988 = vmatmul.mubr.f32.gmra.mrb[234].mxu0 %v10588_v56 }
 0x3a9   : > { %v2295_v4 = vpop.f32.mrb[179].mxu0  ;;  %v10596_v5 = vpop.eup %10595  ;;  %10615 = vtanh.f32 %v2547_v61  ;;  %3245 = vmatmul.mubr.f32.gmra.mrb[234].mxu1 %v10594_v1  ;;  %v2551_v9 = vadd.f32 %v2550_v3, %v13379_v45 }
 0x3aa   : > { %v2296_v6 = vadd.f32 %v2295_v4, %v13382_v51  ;;  %v2552_v7 = vpop.f32.mrb[179].mxu1  ;;  %v10598_v8 = vpop.eup %10597  ;;  %10617 = vtanh.f32 %v2545_v60  ;;  %9066 = vmatpush1.bf16.msra.mxu1 %v9001_v52 }
 0x3ab   : > { %v2553_v10 = vadd.f32 %v2552_v7, %v13382_v51  ;;  %v10600_v11 = vpop.eup %10599  ;;  %10619 = vtanh.f32 %v2294_v2  ;;  %2993 = vmatprep.mubr.f32.mxu0 %v10598_v8  ;;  %v2299_v12 = vpop.f32.mrb[180].mxu0 }
 0x3ac   : > { %v10602_v15 = vpop.eup %10601  ;;  %10621 = vtanh.f32 %v2296_v6  ;;  %3250 = vmatprep.mubr.f32.mxu1 %v10600_v11  ;;  %v2300_v16 = vadd.f32 %v2299_v12, %v13379_v45  ;;  %v2556_v17 = vpop.f32.mrb[180].mxu1  ;;  %2994 = vmatmul.mubr.f32.gmra.mrb[236].mxu0 %v10596_v5 }
 0x3ad   : > { %v2301_v18 = vpop.f32.mrb[181].mxu0  ;;  %v10604_v20 = vpop.eup %10603  ;;  %10623 = vtanh.f32 %v2553_v10  ;;  %3251 = vmatmul.mubr.f32.gmra.mrb[236].mxu1 %v10602_v15  ;;  %v2557_v24 = vadd.f32 %v2556_v17, %v13379_v45 }
 0x3ae   : > { %v2302_v21 = vadd.f32 %v2301_v18, %v13382_v51  ;;  %v2558_v22 = vpop.f32.mrb[181].mxu1  ;;  %v10606_v23 = vpop.eup %10605  ;;  %10625 = vtanh.f32 %v2551_v9 }
 0x3af   : > { %v2559_v25 = vadd.f32 %v2558_v22, %v13382_v51  ;;  %v10608_v26 = vpop.eup %10607  ;;  %10627 = vtanh.f32 %v2300_v16  ;;  %2999 = vmatprep.mubr.f32.mxu0 %v10606_v23  ;;  %v2305_v27 = vpop.f32.mrb[182].mxu0 }
 0x3b0   : > { %v10610_v28 = vpop.eup %10609  ;;  %10629 = vtanh.f32 %v2302_v21  ;;  %3256 = vmatprep.mubr.f32.mxu1 %v10608_v26  ;;  %v2306_v29 = vadd.f32 %v2305_v27, %v13379_v45  ;;  %v2562_v30 = vpop.f32.mrb[182].mxu1  ;;  %3000 = vmatmul.mubr.f32.gmra.mrb[238].mxu0 %v10604_v20 }
 0x3b1   : > { %v2307_v31 = vpop.f32.mrb[183].mxu0  ;;  %v10612_v32 = vpop.eup %10611  ;;  %10631 = vtanh.f32 %v2559_v25  ;;  %3257 = vmatmul.mubr.f32.gmra.mrb[238].mxu1 %v10610_v28  ;;  %v2563_v50 = vadd.f32 %v2562_v30, %v13379_v45 }
 0x3b2   : > { %v2308_v33 = vadd.f32 %v2307_v31, %v13382_v51  ;;  %v2564_v34 = vpop.f32.mrb[183].mxu1  ;;  %v10614_v47 = vpop.eup %10613  ;;  %10633 = vtanh.f32 %v2557_v24 }
 0x3b3   : > { %v2565_v0 = vadd.f32 %v2564_v34, %v13382_v51  ;;  %v10616_v37 = vpop.eup %10615  ;;  %10635 = vtanh.f32 %v2306_v29  ;;  %3005 = vmatprep.mubr.f32.mxu0 %v10614_v47  ;;  %v2311_v38 = vpop.f32.mrb[184].mxu0 }
 0x3b4   : > { %v10618_v41 = vpop.eup %10617  ;;  %10637 = vtanh.f32 %v2308_v33  ;;  %3262 = vmatprep.mubr.f32.mxu1 %v10616_v37  ;;  %v2312_v42 = vadd.f32 %v2311_v38, %v13379_v45  ;;  %v2568_v43 = vpop.f32.mrb[184].mxu1  ;;  %3006 = vmatmul.mubr.f32.gmra.mrb[240].mxu0 %v10612_v32 }
 0x3b5   : > { %v2313_v44 = vpop.f32.mrb[185].mxu0  ;;  %v10620_v53 = vpop.eup %10619  ;;  %10639 = vtanh.f32 %v2565_v0  ;;  %3263 = vmatmul.mubr.f32.gmra.mrb[240].mxu1 %v10618_v41  ;;  %v2569_v57 = vadd.f32 %v2568_v43, %v13379_v45  ;;  %v4163_v41 = vld [vmem:[#allocation6 + $0x818] sm:$0xff]  ;;  %v2785_v43 = vld [vmem:[#allocation7 + $0x2] ss:$8 sm:$0x3] }
 0x3b6   : > { %v2314_v54 = vadd.f32 %v2313_v44, %v13382_v51  ;;  %v2570_v55 = vpop.f32.mrb[185].mxu1  ;;  %v10622_v56 = vpop.eup %10621  ;;  %10641 = vtanh.f32 %v2563_v50  ;;  %v13513_v44 = vrot.slane %v2785_v43, %v13106_v46  ;;  %v13516_v52 = vrot.slane %v2785_v43, %v13108_v48  ;;  %v4170_v43 = vld [vmem:[#allocation6 + $0x850] sm:$0xff] }
 0x3b7   : > { %v2571_v58 = vadd.f32 %v2570_v55, %v13382_v51  ;;  %v10624_v59 = vpop.eup %10623  ;;  %10643 = vtanh.f32 %v2312_v42  ;;  %3011 = vmatprep.mubr.f32.mxu0 %v10622_v56  ;;  %v2317_v60 = vpop.f32.mrb[186].mxu0  ;;  %v9067_v42 = vpack.c.bf16 %v4163_v41, %v4161_v40 }
 0x3b8   : > { %v10626_v61 = vpop.eup %10625  ;;  %10645 = vtanh.f32 %v2314_v54  ;;  %3268 = vmatprep.mubr.f32.mxu1 %v10624_v59  ;;  %v2318_v62 = vadd.f32 %v2317_v60, %v13379_v45  ;;  %v2574_v63 = vpop.f32.mrb[186].mxu1  ;;  %3012 = vmatmul.mubr.f32.gmra.mrb[242].mxu0 %v10620_v53 }
 0x3b9   : > { %v2319_v1 = vpop.f32.mrb[187].mxu0  ;;  %v10628_v2 = vpop.eup %10627  ;;  %10647 = vtanh.f32 %v2571_v58  ;;  %3269 = vmatmul.mubr.f32.gmra.mrb[242].mxu1 %v10626_v61  ;;  %v2575_v6 = vadd.f32 %v2574_v63, %v13379_v45  ;;  %9068 = vmatprep.subr.bf16.mxu0 %v9067_v42 }
 0x3ba   : > { %v2320_v3 = vadd.f32 %v2319_v1, %v13382_v51  ;;  %v2576_v4 = vpop.f32.mrb[187].mxu1  ;;  %v10630_v5 = vpop.eup %10629  ;;  %10649 = vtanh.f32 %v2569_v57  ;;  %9132 = vmatprep.subr.bf16.mxu1 %v9067_v42  ;;  %v4168_v42 = vld [vmem:[#allocation6 + $0x840] sm:$0xff] }
 0x3bb   : > { %v2577_v7 = vadd.f32 %v2576_v4, %v13382_v51  ;;  %v10632_v8 = vpop.eup %10631  ;;  %10651 = vtanh.f32 %v2318_v62  ;;  %3017 = vmatprep.mubr.f32.mxu0 %v10630_v5  ;;  %v2323_v9 = vpop.f32.mrb[188].mxu0 }
 0x3bc   : > { %v10634_v10 = vpop.eup %10633  ;;  %10653 = vtanh.f32 %v2320_v3  ;;  %3274 = vmatprep.mubr.f32.mxu1 %v10632_v8  ;;  %v2324_v11 = vadd.f32 %v2323_v9, %v13379_v45  ;;  %v2580_v12 = vpop.f32.mrb[188].mxu1  ;;  %3018 = vmatmul.mubr.f32.gmra.mrb[244].mxu0 %v10628_v2 }
 0x3bd   : > { %v2325_v13 = vpop.f32.mrb[189].mxu0  ;;  %v10636_v14 = vpop.eup %10635  ;;  %10655 = vtanh.f32 %v2577_v7  ;;  %3275 = vmatmul.mubr.f32.gmra.mrb[244].mxu1 %v10634_v10  ;;  %v2581_v18 = vadd.f32 %v2580_v12, %v13379_v45 }
 0x3be   : > { %v2326_v15 = vadd.f32 %v2325_v13, %v13382_v51  ;;  %v2582_v16 = vpop.f32.mrb[189].mxu1  ;;  %v10638_v17 = vpop.eup %10637  ;;  %10657 = vtanh.f32 %v2575_v6 }
 0x3bf   : > { %v2583_v19 = vadd.f32 %v2582_v16, %v13382_v51  ;;  %v10640_v20 = vpop.eup %10639  ;;  %10659 = vtanh.f32 %v2324_v11  ;;  %3023 = vmatprep.mubr.f32.mxu0 %v10638_v17  ;;  %v2329_v21 = vpop.f32.mrb[190].mxu0  ;;  %v4165_v17 = vld [vmem:[#allocation6 + $0x828] sm:$0xff] }
 0x3c0   : > { %v10642_v22 = vpop.eup %10641  ;;  %10661 = vtanh.f32 %v2326_v15  ;;  %3280 = vmatprep.mubr.f32.mxu1 %v10640_v20  ;;  %v2330_v23 = vadd.f32 %v2329_v21, %v13379_v45  ;;  %v2586_v24 = vpop.f32.mrb[190].mxu1  ;;  %3024 = vmatmul.mubr.f32.gmra.mrb[246].mxu0 %v10636_v14  ;;  %v4160_v14 = vld [vmem:[#allocation6 + $0x800] sm:$0xff]  ;;  %v4162_v15 = vld [vmem:[#allocation6 + $0x810] sm:$0xff] }
 0x3c1   : > { %v2331_v25 = vpop.f32.mrb[191].mxu0  ;;  %v10644_v26 = vpop.eup %10643  ;;  %10663 = vtanh.f32 %v2583_v19  ;;  %3281 = vmatmul.mubr.f32.gmra.mrb[246].mxu1 %v10642_v22  ;;  %v2587_v30 = vadd.f32 %v2586_v24, %v13379_v45 }
 0x3c2   : > { %v2332_v27 = vadd.f32 %v2331_v25, %v13382_v51  ;;  %v2588_v28 = vpop.f32.mrb[191].mxu1  ;;  %v10646_v29 = vpop.eup %10645  ;;  %10665 = vtanh.f32 %v2581_v18  ;;  %v4167_v18 = vld [vmem:[#allocation6 + $0x838] sm:$0xff]  ;;  %v9069_v25 = vpack.c.bf16 %v4162_v15, %v4160_v14 }
 0x3c3   : > { %v2589_v31 = vadd.f32 %v2588_v28, %v13382_v51  ;;  %v10648_v32 = vpop.eup %10647  ;;  %10667 = vtanh.f32 %v2330_v23  ;;  %3029 = vmatprep.mubr.f32.mxu0 %v10646_v29  ;;  %v9071_v29 = vpack.c.bf16 %v4167_v18, %v4165_v17 }
 0x3c4   : > { %v10650_v33 = vpop.eup %10649  ;;  %10669 = vtanh.f32 %v2332_v27  ;;  %3286 = vmatprep.mubr.f32.mxu1 %v10648_v32  ;;  %3030 = vmatmul.mubr.f32.gmra.mrb[248].mxu0 %v10644_v26 }
 0x3c5   : > { %v10652_v34 = vpop.eup %10651  ;;  %10671 = vtanh.f32 %v2589_v31  ;;  %3287 = vmatmul.mubr.f32.gmra.mrb[248].mxu1 %v10650_v33  ;;  %v4166_v31 = vld [vmem:[#allocation6 + $0x830] sm:$0xff] }
 0x3c6   : > { %v10654_v35 = vpop.eup %10653  ;;  %10673 = vtanh.f32 %v2587_v30  ;;  %v4164_v30 = vld [vmem:[#allocation6 + $0x820] sm:$0xff] }
 0x3c7   : > { %v10656_v49 = vpop.eup %10655  ;;  %3035 = vmatprep.mubr.f32.mxu0 %v10654_v35  ;;  %v4171_v35 = vld [vmem:[#allocation6 + $0x858] sm:$0xff] }
 0x3c8   : > { %v10658_v47 = vpop.eup %10657  ;;  %3292 = vmatprep.mubr.f32.mxu1 %v10656_v49  ;;  %3036 = vmatmul.mubr.f32.gmra.mrb[250].mxu0 %v10652_v34  ;;  %v4169_v34 = vld [vmem:[#allocation6 + $0x848] sm:$0xff] }
 0x3c9   : > { %v10660_v45 = vpop.eup %10659  ;;  %3293 = vmatmul.mubr.f32.gmra.mrb[250].mxu1 %v10658_v47  ;;  %v9075_v41 = vpack.c.bf16 %v4171_v35, %v4169_v34 }
 0x3ca   : > { %v10662_v51 = vpop.eup %10661 }
 0x3cb   : > { %v10664_v50 = vpop.eup %10663  ;;  %3041 = vmatprep.mubr.f32.mxu0 %v10662_v51 }
 0x3cc   : > { %v10666_v0 = vpop.eup %10665  ;;  %3298 = vmatprep.mubr.f32.mxu1 %v10664_v50  ;;  %3042 = vmatmul.mubr.f32.gmra.mrb[252].mxu0 %v10660_v45 }
 0x3cd   : > { %v10668_v36 = vpop.eup %10667  ;;  %3299 = vmatmul.mubr.f32.gmra.mrb[252].mxu1 %v10666_v0 }
 0x3ce   : > { %v10670_v37 = vpop.eup %10669 }
 0x3cf   : > { %v10672_v38 = vpop.eup %10671  ;;  %3047 = vmatprep.mubr.f32.mxu0 %v10670_v37  ;;  %v9073_v37 = vpack.c.bf16 %v4166_v31, %v4164_v30 }
 0x3d0   : > { %v10674_v39 = vpop.eup %10673  ;;  %3304 = vmatprep.mubr.f32.mxu1 %v10672_v38  ;;  %3048 = vmatmul.mubr.f32.gmra.mrb[254].mxu0 %v10668_v36 }
 0x3d1   : > { %3305 = vmatmul.mubr.f32.gmra.mrb[254].mxu1 %v10674_v39 }
 0x426   : > { %v2863_v53 = vpop.f32.mrb[192].mxu0 }
 0x427   : > { %v2864_v54 = vadd.f32 %v2863_v53, %v13513_v44  ;;  %v3120_v55 = vpop.f32.mrb[192].mxu1  ;;  %v2865_v56 = vpop.f32.mrb[193].mxu0 }
 0x428   : > { %v2866_v57 = vadd.f32 %v2865_v56, %v13516_v52  ;;  %v3122_v58 = vpop.f32.mrb[193].mxu1  ;;  %v3121_v59 = vadd.f32 %v3120_v55, %v13513_v44  ;;  %v4173_v55 = vld [vmem:[#allocation6 + $0x868] sm:$0xff]  ;;  %v4175_v56 = vld [vmem:[#allocation6 + $0x878] sm:$0xff] }
 0x429   : > { %v3123_v60 = vadd.f32 %v3122_v58, %v13516_v52  ;;  %10675 = vtanh.f32 %v2864_v54 }
 0x42a   : > { %10677 = vtanh.f32 %v2866_v57 }
 0x42b   : > { %v2869_v61 = vpop.f32.mrb[194].mxu0  ;;  %10679 = vtanh.f32 %v3123_v60 }
 0x42c   : > { %v2870_v62 = vadd.f32 %v2869_v61, %v13513_v44  ;;  %v3126_v63 = vpop.f32.mrb[194].mxu1  ;;  %v2871_v1 = vpop.f32.mrb[195].mxu0  ;;  %10681 = vtanh.f32 %v3121_v59 }
 0x42d   : > { %v2872_v2 = vadd.f32 %v2871_v1, %v13516_v52  ;;  %v3128_v3 = vpop.f32.mrb[195].mxu1  ;;  %v3127_v4 = vadd.f32 %v3126_v63, %v13513_v44  ;;  %v9077_v1 = vpack.c.bf16 %v4170_v43, %v4168_v42 }
 0x42e   : > { %v3129_v5 = vadd.f32 %v3128_v3, %v13516_v52  ;;  %10683 = vtanh.f32 %v2870_v62 }
 0x42f   : > { %v2875_v6 = vpop.f32.mrb[196].mxu0  ;;  %10685 = vtanh.f32 %v2872_v2 }
 0x430   : > { %v2876_v7 = vadd.f32 %v2875_v6, %v13513_v44  ;;  %v3132_v8 = vpop.f32.mrb[196].mxu1  ;;  %v2877_v9 = vpop.f32.mrb[197].mxu0  ;;  %10687 = vtanh.f32 %v3129_v5  ;;  %v9079_v5 = vpack.c.bf16 %v4175_v56, %v4173_v55  ;;  %v4172_v6 = vld [vmem:[#allocation6 + $0x860] sm:$0xff] }
 0x431   : > { %v2878_v10 = vadd.f32 %v2877_v9, %v13516_v52  ;;  %v3134_v11 = vpop.f32.mrb[197].mxu1  ;;  %10689 = vtanh.f32 %v3127_v4  ;;  %v3133_v12 = vadd.f32 %v3132_v8, %v13513_v44 }
 0x432   : > { %v3135_v13 = vadd.f32 %v3134_v11, %v13516_v52  ;;  %10691 = vtanh.f32 %v2876_v7  ;;  %v4174_v7 = vld [vmem:[#allocation6 + $0x870] sm:$0xff]  ;;  %v4179_v11 = vld [vmem:[#allocation6 + $0x898] sm:$0xff] }
 0x433   : > { %v2881_v16 = vpop.f32.mrb[198].mxu0  ;;  %10693 = vtanh.f32 %v2878_v10  ;;  %v10676_v22 = vpop.eup %10675  ;;  %v4177_v10 = vld [vmem:[#allocation6 + $0x888] sm:$0xff] }
 0x434   : > { %v2882_v19 = vadd.f32 %v2881_v16, %v13513_v44  ;;  %v3138_v20 = vpop.f32.mrb[198].mxu1  ;;  %v2883_v21 = vpop.f32.mrb[199].mxu0  ;;  %10695 = vtanh.f32 %v3135_v13 }
 0x435   : > { %v2884_v23 = vadd.f32 %v2883_v21, %v13516_v52  ;;  %v3140_v24 = vpop.f32.mrb[199].mxu1  ;;  %v10678_v26 = vpop.eup %10677  ;;  %10697 = vtanh.f32 %v3133_v12  ;;  %v3139_v27 = vadd.f32 %v3138_v20, %v13513_v44 }
 0x436   : > { %v3141_v28 = vadd.f32 %v3140_v24, %v13516_v52  ;;  %v10680_v32 = vpop.eup %10679  ;;  %10699 = vtanh.f32 %v2882_v19  ;;  %3581 = vmatprep.mubr.f32.mxu0 %v10678_v26  ;;  %v9081_v19 = vpack.c.bf16 %v4174_v7, %v4172_v6  ;;  %v4176_v24 = vld [vmem:[#allocation6 + $0x880] sm:$0xff] }
 0x437   : > { %v2887_v33 = vpop.f32.mrb[200].mxu0  ;;  %v10682_v49 = vpop.eup %10681  ;;  %10701 = vtanh.f32 %v2884_v23  ;;  %3838 = vmatprep.mubr.f32.mxu1 %v10680_v32  ;;  %3582 = vmatmul.mubr.f32.vlgmr.msra.gmra.mrb[0].mxu0 %v10676_v22  ;;  %v9083_v23 = vpack.c.bf16 %v4179_v11, %v4177_v10 }
 0x438   : > { %v2888_v47 = vadd.f32 %v2887_v33, %v13513_v44  ;;  %v3144_v45 = vpop.f32.mrb[200].mxu1  ;;  %v2889_v51 = vpop.f32.mrb[201].mxu0  ;;  %10703 = vtanh.f32 %v3141_v28  ;;  %3839 = vmatmul.mubr.f32.vlgmr.msra.gmra.mrb[0].mxu1 %v10682_v49  ;;  %9070 = vmatpush1.bf16.msra.mxu0 %v9069_v25  ;;  %v4181_v28 = vld [vmem:[#allocation6 + $0x8a8] sm:$0xff] }
 0x439   : > { %v10684_v50 = vpop.eup %10683  ;;  %v2890_v0 = vadd.f32 %v2889_v51, %v13516_v52  ;;  %v3146_v36 = vpop.f32.mrb[201].mxu1  ;;  %10705 = vtanh.f32 %v3139_v27  ;;  %v3145_v39 = vadd.f32 %v3144_v45, %v13513_v44  ;;  %9134 = vmatpush1.bf16.msra.mxu1 %v9069_v25  ;;  %9072 = vmatprep.subr.bf16.mxu0 %v9071_v29  ;;  %v4178_v25 = vld [vmem:[#allocation6 + $0x890] sm:$0xff] }
 0x43a   : > { %v10686_v38 = vpop.eup %10685  ;;  %v3147_v40 = vadd.f32 %v3146_v36, %v13516_v52  ;;  %10707 = vtanh.f32 %v2888_v47  ;;  %9136 = vmatprep.subr.bf16.mxu1 %v9071_v29  ;;  %v4183_v29 = vld [vmem:[#allocation6 + $0x8b8] sm:$0xff]  ;;  %v9085_v47 = vpack.c.bf16 %v4178_v25, %v4176_v24  ;;  %v4180_v36 = vld [vmem:[#allocation6 + $0x8a0] sm:$0xff] }
 0x43b   : > { %v10688_v53 = vpop.eup %10687  ;;  %3587 = vmatprep.mubr.f32.mxu0 %v10686_v38  ;;  %v2893_v54 = vpop.f32.mrb[202].mxu0  ;;  %10709 = vtanh.f32 %v2890_v0  ;;  %v9087_v0 = vpack.c.bf16 %v4183_v29, %v4181_v28 }
 0x43c   : > { %v10690_v57 = vpop.eup %10689  ;;  %3844 = vmatprep.mubr.f32.mxu1 %v10688_v53  ;;  %v2894_v58 = vadd.f32 %v2893_v54, %v13513_v44  ;;  %v3150_v59 = vpop.f32.mrb[202].mxu1  ;;  %3588 = vmatmul.mubr.f32.gmra.mrb[2].mxu0 %v10684_v50  ;;  %10711 = vtanh.f32 %v3147_v40  ;;  %v4185_v40 = vld [vmem:[#allocation6 + $0x8c8] sm:$0xff] }
 0x43d   : > { %v2895_v60 = vpop.f32.mrb[203].mxu0  ;;  %v10692_v61 = vpop.eup %10691  ;;  %3845 = vmatmul.mubr.f32.gmra.mrb[2].mxu1 %v10690_v57  ;;  %9074 = vmatpush1.bf16.msra.mxu0 %v9073_v37  ;;  %10713 = vtanh.f32 %v3145_v39  ;;  %v3151_v3 = vadd.f32 %v3150_v59, %v13513_v44 }
 0x43e   : > { %v2896_v62 = vadd.f32 %v2895_v60, %v13516_v52  ;;  %v3152_v63 = vpop.f32.mrb[203].mxu1  ;;  %v10694_v2 = vpop.eup %10693  ;;  %9138 = vmatpush1.bf16.msra.mxu1 %v9073_v37  ;;  %9076 = vmatprep.subr.bf16.mxu0 %v9075_v41  ;;  %10715 = vtanh.f32 %v2894_v58  ;;  %v4182_v37 = vld [vmem:[#allocation6 + $0x8b0] sm:$0xff] }
 0x43f   : > { %v3153_v4 = vadd.f32 %v3152_v63, %v13516_v52  ;;  %v10696_v8 = vpop.eup %10695  ;;  %3593 = vmatprep.mubr.f32.mxu0 %v10694_v2  ;;  %v2899_v9 = vpop.f32.mrb[204].mxu0  ;;  %9140 = vmatprep.subr.bf16.mxu1 %v9075_v41  ;;  %v4187_v41 = vld [vmem:[#allocation6 + $0x8d8] sm:$0xff]  ;;  %v9089_v58 = vpack.c.bf16 %v4182_v37, %v4180_v36  ;;  %v4184_v63 = vld [vmem:[#allocation6 + $0x8c0] sm:$0xff] }
 0x440   : > { %v10698_v12 = vpop.eup %10697  ;;  %10717 = vtanh.f32 %v2896_v62  ;;  %3850 = vmatprep.mubr.f32.mxu1 %v10696_v8  ;;  %v2900_v13 = vadd.f32 %v2899_v9, %v13513_v44  ;;  %v3156_v14 = vpop.f32.mrb[204].mxu1  ;;  %3594 = vmatmul.mubr.f32.gmra.mrb[4].mxu0 %v10692_v61  ;;  %v9091_v62 = vpack.c.bf16 %v4187_v41, %v4185_v40 }
 0x441   : > { %v2901_v15 = vpop.f32.mrb[205].mxu0  ;;  %v10700_v16 = vpop.eup %10699  ;;  %10719 = vtanh.f32 %v3153_v4  ;;  %3851 = vmatmul.mubr.f32.gmra.mrb[4].mxu1 %v10698_v12  ;;  %9078 = vmatpush1.bf16.msra.mxu0 %v9077_v1  ;;  %v3157_v21 = vadd.f32 %v3156_v14, %v13513_v44  ;;  %v4189_v4 = vld [vmem:[#allocation6 + $0x8e8] sm:$0xff] }
 0x442   : > { %v2902_v17 = vadd.f32 %v2901_v15, %v13516_v52  ;;  %v3158_v18 = vpop.f32.mrb[205].mxu1  ;;  %v10702_v20 = vpop.eup %10701  ;;  %10721 = vtanh.f32 %v3151_v3  ;;  %9142 = vmatpush1.bf16.msra.mxu1 %v9077_v1  ;;  %9080 = vmatprep.subr.bf16.mxu0 %v9079_v5  ;;  %v4186_v1 = vld [vmem:[#allocation6 + $0x8d0] sm:$0xff] }
 0x443   : > { %v3159_v22 = vadd.f32 %v3158_v18, %v13516_v52  ;;  %v10704_v26 = vpop.eup %10703  ;;  %10723 = vtanh.f32 %v2900_v13  ;;  %3599 = vmatprep.mubr.f32.mxu0 %v10702_v20  ;;  %v2905_v27 = vpop.f32.mrb[206].mxu0  ;;  %9144 = vmatprep.subr.bf16.mxu1 %v9079_v5  ;;  %v4191_v5 = vld [vmem:[#allocation6 + $0x8f8] sm:$0xff]  ;;  %v9093_v13 = vpack.c.bf16 %v4186_v1, %v4184_v63  ;;  %v4188_v18 = vld [vmem:[#allocation6 + $0x8e0] sm:$0xff] }
 0x444   : > { %v10706_v30 = vpop.eup %10705  ;;  %10725 = vtanh.f32 %v2902_v17  ;;  %3856 = vmatprep.mubr.f32.mxu1 %v10704_v26  ;;  %v2906_v31 = vadd.f32 %v2905_v27, %v13513_v44  ;;  %v3162_v32 = vpop.f32.mrb[206].mxu1  ;;  %3600 = vmatmul.mubr.f32.gmra.mrb[6].mxu0 %v10700_v16  ;;  %v9095_v17 = vpack.c.bf16 %v4191_v5, %v4189_v4 }
 0x445   : > { %v2907_v33 = vpop.f32.mrb[207].mxu0  ;;  %v10708_v34 = vpop.eup %10707  ;;  %10727 = vtanh.f32 %v3159_v22  ;;  %3857 = vmatmul.mubr.f32.gmra.mrb[6].mxu1 %v10706_v30  ;;  %9082 = vmatpush1.bf16.msra.mxu0 %v9081_v19  ;;  %v3163_v51 = vadd.f32 %v3162_v32, %v13513_v44  ;;  %v4193_v22 = vld [vmem:[#allocation6 + $0x908] sm:$0xff] }
 0x446   : > { %v2908_v35 = vadd.f32 %v2907_v33, %v13516_v52  ;;  %v3164_v49 = vpop.f32.mrb[207].mxu1  ;;  %v10710_v45 = vpop.eup %10709  ;;  %10729 = vtanh.f32 %v3157_v21  ;;  %9146 = vmatpush1.bf16.msra.mxu1 %v9081_v19  ;;  %9084 = vmatprep.subr.bf16.mxu0 %v9083_v23  ;;  %v4190_v19 = vld [vmem:[#allocation6 + $0x8f0] sm:$0xff] }
 0x447   : > { %v3165_v50 = vadd.f32 %v3164_v49, %v13516_v52  ;;  %v10712_v38 = vpop.eup %10711  ;;  %10731 = vtanh.f32 %v2906_v31  ;;  %3605 = vmatprep.mubr.f32.mxu0 %v10710_v45  ;;  %v2911_v39 = vpop.f32.mrb[208].mxu0  ;;  %9148 = vmatprep.subr.bf16.mxu1 %v9083_v23  ;;  %v4195_v23 = vld [vmem:[#allocation6 + $0x918] sm:$0xff]  ;;  %v9097_v31 = vpack.c.bf16 %v4190_v19, %v4188_v18  ;;  %v4192_v49 = vld [vmem:[#allocation6 + $0x900] sm:$0xff] }
 0x448   : > { %v10714_v42 = vpop.eup %10713  ;;  %10733 = vtanh.f32 %v2908_v35  ;;  %3862 = vmatprep.mubr.f32.mxu1 %v10712_v38  ;;  %v2912_v43 = vadd.f32 %v2911_v39, %v13513_v44  ;;  %v3168_v53 = vpop.f32.mrb[208].mxu1  ;;  %3606 = vmatmul.mubr.f32.gmra.mrb[8].mxu0 %v10708_v34  ;;  %v9099_v35 = vpack.c.bf16 %v4195_v23, %v4193_v22 }
 0x449   : > { %v2913_v54 = vpop.f32.mrb[209].mxu0  ;;  %v10716_v55 = vpop.eup %10715  ;;  %10735 = vtanh.f32 %v3165_v50  ;;  %3863 = vmatmul.mubr.f32.gmra.mrb[8].mxu1 %v10714_v42  ;;  %9086 = vmatpush1.bf16.msra.mxu0 %v9085_v47  ;;  %v3169_v60 = vadd.f32 %v3168_v53, %v13513_v44  ;;  %v4197_v50 = vld [vmem:[#allocation6 + $0x928] sm:$0xff] }
 0x44a   : > { %v2914_v56 = vadd.f32 %v2913_v54, %v13516_v52  ;;  %v3170_v57 = vpop.f32.mrb[209].mxu1  ;;  %v10718_v59 = vpop.eup %10717  ;;  %10737 = vtanh.f32 %v3163_v51  ;;  %9150 = vmatpush1.bf16.msra.mxu1 %v9085_v47  ;;  %9088 = vmatprep.subr.bf16.mxu0 %v9087_v0  ;;  %v4194_v47 = vld [vmem:[#allocation6 + $0x910] sm:$0xff] }
 0x44b   : > { %v3171_v61 = vadd.f32 %v3170_v57, %v13516_v52  ;;  %v10720_v2 = vpop.eup %10719  ;;  %10739 = vtanh.f32 %v2912_v43  ;;  %3611 = vmatprep.mubr.f32.mxu0 %v10718_v59  ;;  %v2917_v3 = vpop.f32.mrb[210].mxu0  ;;  %9152 = vmatprep.subr.bf16.mxu1 %v9087_v0  ;;  %v4199_v0 = vld [vmem:[#allocation6 + $0x938] sm:$0xff]  ;;  %v9101_v43 = vpack.c.bf16 %v4194_v47, %v4192_v49  ;;  %v4196_v57 = vld [vmem:[#allocation6 + $0x920] sm:$0xff] }
 0x44c   : > { %v10722_v6 = vpop.eup %10721  ;;  %10741 = vtanh.f32 %v2914_v56  ;;  %3868 = vmatprep.mubr.f32.mxu1 %v10720_v2  ;;  %v2918_v7 = vadd.f32 %v2917_v3, %v13513_v44  ;;  %v3174_v8 = vpop.f32.mrb[210].mxu1  ;;  %3612 = vmatmul.mubr.f32.gmra.mrb[10].mxu0 %v10716_v55  ;;  %v9103_v56 = vpack.c.bf16 %v4199_v0, %v4197_v50 }
 0x44d   : > { %v2919_v9 = vpop.f32.mrb[211].mxu0  ;;  %v10724_v10 = vpop.eup %10723  ;;  %10743 = vtanh.f32 %v3171_v61  ;;  %3869 = vmatmul.mubr.f32.gmra.mrb[10].mxu1 %v10722_v6  ;;  %9090 = vmatpush1.bf16.msra.mxu0 %v9089_v58  ;;  %v3175_v15 = vadd.f32 %v3174_v8, %v13513_v44  ;;  %v4201_v61 = vld [vmem:[#allocation6 + $0x948] sm:$0xff] }
 0x44e   : > { %v2920_v11 = vadd.f32 %v2919_v9, %v13516_v52  ;;  %v3176_v12 = vpop.f32.mrb[211].mxu1  ;;  %v10726_v14 = vpop.eup %10725  ;;  %10745 = vtanh.f32 %v3169_v60  ;;  %9154 = vmatpush1.bf16.msra.mxu1 %v9089_v58  ;;  %9092 = vmatprep.subr.bf16.mxu0 %v9091_v62  ;;  %v4198_v58 = vld [vmem:[#allocation6 + $0x930] sm:$0xff] }
 0x44f   : > { %v3177_v16 = vadd.f32 %v3176_v12, %v13516_v52  ;;  %v10728_v20 = vpop.eup %10727  ;;  %10747 = vtanh.f32 %v2918_v7  ;;  %3617 = vmatprep.mubr.f32.mxu0 %v10726_v14  ;;  %v2923_v21 = vpop.f32.mrb[212].mxu0  ;;  %9156 = vmatprep.subr.bf16.mxu1 %v9091_v62  ;;  %v4203_v62 = vld [vmem:[#allocation6 + $0x958] sm:$0xff]  ;;  %v9105_v7 = vpack.c.bf16 %v4198_v58, %v4196_v57  ;;  %v4200_v12 = vld [vmem:[#allocation6 + $0x940] sm:$0xff] }
 0x450   : > { %v10730_v24 = vpop.eup %10729  ;;  %10749 = vtanh.f32 %v2920_v11  ;;  %3874 = vmatprep.mubr.f32.mxu1 %v10728_v20  ;;  %v2924_v25 = vadd.f32 %v2923_v21, %v13513_v44  ;;  %v3180_v26 = vpop.f32.mrb[212].mxu1  ;;  %3618 = vmatmul.mubr.f32.gmra.mrb[12].mxu0 %v10724_v10  ;;  %v9107_v11 = vpack.c.bf16 %v4203_v62, %v4201_v61 }
 0x451   : > { %v2925_v27 = vpop.f32.mrb[213].mxu0  ;;  %v10732_v28 = vpop.eup %10731  ;;  %10751 = vtanh.f32 %v3177_v16  ;;  %3875 = vmatmul.mubr.f32.gmra.mrb[12].mxu1 %v10730_v24  ;;  %9094 = vmatpush1.bf16.msra.mxu0 %v9093_v13  ;;  %v3181_v33 = vadd.f32 %v3180_v26, %v13513_v44  ;;  %v4205_v16 = vld [vmem:[#allocation6 + $0x968] sm:$0xff] }
 0x452   : > { %v2926_v29 = vadd.f32 %v2925_v27, %v13516_v52  ;;  %v3182_v30 = vpop.f32.mrb[213].mxu1  ;;  %v10734_v32 = vpop.eup %10733  ;;  %10753 = vtanh.f32 %v3175_v15  ;;  %9158 = vmatpush1.bf16.msra.mxu1 %v9093_v13  ;;  %9096 = vmatprep.subr.bf16.mxu0 %v9095_v17  ;;  %v4202_v13 = vld [vmem:[#allocation6 + $0x950] sm:$0xff] }
 0x453   : > { %v3183_v34 = vadd.f32 %v3182_v30, %v13516_v52  ;;  %v10736_v45 = vpop.eup %10735  ;;  %10755 = vtanh.f32 %v2924_v25  ;;  %3623 = vmatprep.mubr.f32.mxu0 %v10734_v32  ;;  %v2929_v51 = vpop.f32.mrb[214].mxu0  ;;  %9160 = vmatprep.subr.bf16.mxu1 %v9095_v17  ;;  %v4207_v17 = vld [vmem:[#allocation6 + $0x978] sm:$0xff]  ;;  %v9109_v25 = vpack.c.bf16 %v4202_v13, %v4200_v12  ;;  %v4204_v30 = vld [vmem:[#allocation6 + $0x960] sm:$0xff] }
 0x454   : > { %v10738_v36 = vpop.eup %10737  ;;  %10757 = vtanh.f32 %v2926_v29  ;;  %3880 = vmatprep.mubr.f32.mxu1 %v10736_v45  ;;  %v2930_v37 = vadd.f32 %v2929_v51, %v13513_v44  ;;  %v3186_v38 = vpop.f32.mrb[214].mxu1  ;;  %3624 = vmatmul.mubr.f32.gmra.mrb[14].mxu0 %v10732_v28  ;;  %v9111_v29 = vpack.c.bf16 %v4207_v17, %v4205_v16 }
 0x455   : > { %v2931_v39 = vpop.f32.mrb[215].mxu0  ;;  %v10740_v40 = vpop.eup %10739  ;;  %10759 = vtanh.f32 %v3183_v34  ;;  %3881 = vmatmul.mubr.f32.gmra.mrb[14].mxu1 %v10738_v36  ;;  %9098 = vmatpush1.bf16.msra.mxu0 %v9097_v31  ;;  %v3187_v54 = vadd.f32 %v3186_v38, %v13513_v44  ;;  %v4209_v34 = vld [vmem:[#allocation6 + $0x988] sm:$0xff] }
 0x456   : > { %v2932_v41 = vadd.f32 %v2931_v39, %v13516_v52  ;;  %v3188_v42 = vpop.f32.mrb[215].mxu1  ;;  %v10742_v53 = vpop.eup %10741  ;;  %10761 = vtanh.f32 %v3181_v33  ;;  %9162 = vmatpush1.bf16.msra.mxu1 %v9097_v31  ;;  %9100 = vmatprep.subr.bf16.mxu0 %v9099_v35  ;;  %v4206_v31 = vld [vmem:[#allocation6 + $0x970] sm:$0xff] }
 0x457   : > { %v3189_v55 = vadd.f32 %v3188_v42, %v13516_v52  ;;  %v10744_v59 = vpop.eup %10743  ;;  %10763 = vtanh.f32 %v2930_v37  ;;  %3629 = vmatprep.mubr.f32.mxu0 %v10742_v53  ;;  %v2935_v60 = vpop.f32.mrb[216].mxu0  ;;  %9164 = vmatprep.subr.bf16.mxu1 %v9099_v35  ;;  %v4211_v35 = vld [vmem:[#allocation6 + $0x998] sm:$0xff]  ;;  %v9113_v37 = vpack.c.bf16 %v4206_v31, %v4204_v30  ;;  %v4208_v42 = vld [vmem:[#allocation6 + $0x980] sm:$0xff] }
 0x458   : > { %v10746_v63 = vpop.eup %10745  ;;  %10765 = vtanh.f32 %v2932_v41  ;;  %3886 = vmatprep.mubr.f32.mxu1 %v10744_v59  ;;  %v2936_v1 = vadd.f32 %v2935_v60, %v13513_v44  ;;  %v3192_v2 = vpop.f32.mrb[216].mxu1  ;;  %3630 = vmatmul.mubr.f32.gmra.mrb[16].mxu0 %v10740_v40  ;;  %v9115_v41 = vpack.c.bf16 %v4211_v35, %v4209_v34 }
 0x459   : > { %v2937_v3 = vpop.f32.mrb[217].mxu0  ;;  %v10748_v4 = vpop.eup %10747  ;;  %10767 = vtanh.f32 %v3189_v55  ;;  %3887 = vmatmul.mubr.f32.gmra.mrb[16].mxu1 %v10746_v63  ;;  %9102 = vmatpush1.bf16.msra.mxu0 %v9101_v43  ;;  %v3193_v9 = vadd.f32 %v3192_v2, %v13513_v44  ;;  %v4213_v55 = vld [vmem:[#allocation6 + $0x9a8] sm:$0xff] }
 0x45a   : > { %v2938_v5 = vadd.f32 %v2937_v3, %v13516_v52  ;;  %v3194_v6 = vpop.f32.mrb[217].mxu1  ;;  %v10750_v8 = vpop.eup %10749  ;;  %10769 = vtanh.f32 %v3187_v54  ;;  %9166 = vmatpush1.bf16.msra.mxu1 %v9101_v43  ;;  %9104 = vmatprep.subr.bf16.mxu0 %v9103_v56  ;;  %v4210_v43 = vld [vmem:[#allocation6 + $0x990] sm:$0xff] }
 0x45b   : > { %v3195_v10 = vadd.f32 %v3194_v6, %v13516_v52  ;;  %v10752_v14 = vpop.eup %10751  ;;  %10771 = vtanh.f32 %v2936_v1  ;;  %3635 = vmatprep.mubr.f32.mxu0 %v10750_v8  ;;  %v2941_v15 = vpop.f32.mrb[218].mxu0  ;;  %9168 = vmatprep.subr.bf16.mxu1 %v9103_v56  ;;  %v4215_v56 = vld [vmem:[#allocation6 + $0x9b8] sm:$0xff]  ;;  %v9117_v1 = vpack.c.bf16 %v4210_v43, %v4208_v42  ;;  %v4212_v6 = vld [vmem:[#allocation6 + $0x9a0] sm:$0xff] }
 0x45c   : > { %v10754_v18 = vpop.eup %10753  ;;  %10773 = vtanh.f32 %v2938_v5  ;;  %3892 = vmatprep.mubr.f32.mxu1 %v10752_v14  ;;  %v2942_v19 = vadd.f32 %v2941_v15, %v13513_v44  ;;  %v3198_v20 = vpop.f32.mrb[218].mxu1  ;;  %3636 = vmatmul.mubr.f32.gmra.mrb[18].mxu0 %v10748_v4  ;;  %v9119_v5 = vpack.c.bf16 %v4215_v56, %v4213_v55 }
 0x45d   : > { %v2943_v21 = vpop.f32.mrb[219].mxu0  ;;  %v10756_v22 = vpop.eup %10755  ;;  %10775 = vtanh.f32 %v3195_v10  ;;  %3893 = vmatmul.mubr.f32.gmra.mrb[18].mxu1 %v10754_v18  ;;  %9106 = vmatpush1.bf16.msra.mxu0 %v9105_v7  ;;  %v3199_v27 = vadd.f32 %v3198_v20, %v13513_v44  ;;  %v4217_v10 = vld [vmem:[#allocation6 + $0x9c8] sm:$0xff] }
 0x45e   : > { %v2944_v23 = vadd.f32 %v2943_v21, %v13516_v52  ;;  %v3200_v24 = vpop.f32.mrb[219].mxu1  ;;  %v10758_v26 = vpop.eup %10757  ;;  %10777 = vtanh.f32 %v3193_v9  ;;  %9170 = vmatpush1.bf16.msra.mxu1 %v9105_v7  ;;  %9108 = vmatprep.subr.bf16.mxu0 %v9107_v11  ;;  %v4214_v7 = vld [vmem:[#allocation6 + $0x9b0] sm:$0xff] }
 0x45f   : > { %v3201_v28 = vadd.f32 %v3200_v24, %v13516_v52  ;;  %v10760_v32 = vpop.eup %10759  ;;  %10779 = vtanh.f32 %v2942_v19  ;;  %3641 = vmatprep.mubr.f32.mxu0 %v10758_v26  ;;  %v2947_v33 = vpop.f32.mrb[220].mxu0  ;;  %9172 = vmatprep.subr.bf16.mxu1 %v9107_v11  ;;  %v4219_v11 = vld [vmem:[#allocation6 + $0x9d8] sm:$0xff]  ;;  %v9121_v19 = vpack.c.bf16 %v4214_v7, %v4212_v6 }
 0x460   : > { %v10762_v49 = vpop.eup %10761  ;;  %10781 = vtanh.f32 %v2944_v23  ;;  %3898 = vmatprep.mubr.f32.mxu1 %v10760_v32  ;;  %v2948_v47 = vadd.f32 %v2947_v33, %v13513_v44  ;;  %v3204_v45 = vpop.f32.mrb[220].mxu1  ;;  %3642 = vmatmul.mubr.f32.gmra.mrb[20].mxu0 %v10756_v22  ;;  %v9123_v23 = vpack.c.bf16 %v4219_v11, %v4217_v10 }
 0x461   : > { %v2949_v51 = vpop.f32.mrb[221].mxu0  ;;  %v10764_v50 = vpop.eup %10763  ;;  %10783 = vtanh.f32 %v3201_v28  ;;  %3899 = vmatmul.mubr.f32.gmra.mrb[20].mxu1 %v10762_v49  ;;  %9110 = vmatpush1.bf16.msra.mxu0 %v9109_v25  ;;  %v3205_v39 = vadd.f32 %v3204_v45, %v13513_v44 }
 0x462   : > { %v2950_v0 = vadd.f32 %v2949_v51, %v13516_v52  ;;  %v3206_v36 = vpop.f32.mrb[221].mxu1  ;;  %v10766_v38 = vpop.eup %10765  ;;  %10785 = vtanh.f32 %v3199_v27  ;;  %9174 = vmatpush1.bf16.msra.mxu1 %v9109_v25  ;;  %9112 = vmatprep.subr.bf16.mxu0 %v9111_v29 }
 0x463   : > { %v3207_v40 = vadd.f32 %v3206_v36, %v13516_v52  ;;  %v10768_v53 = vpop.eup %10767  ;;  %10787 = vtanh.f32 %v2948_v47  ;;  %3647 = vmatprep.mubr.f32.mxu0 %v10766_v38  ;;  %v2953_v54 = vpop.f32.mrb[222].mxu0  ;;  %9176 = vmatprep.subr.bf16.mxu1 %v9111_v29 }
 0x464   : > { %v10770_v57 = vpop.eup %10769  ;;  %10789 = vtanh.f32 %v2950_v0  ;;  %3904 = vmatprep.mubr.f32.mxu1 %v10768_v53  ;;  %v2954_v58 = vadd.f32 %v2953_v54, %v13513_v44  ;;  %v3210_v59 = vpop.f32.mrb[222].mxu1  ;;  %3648 = vmatmul.mubr.f32.gmra.mrb[22].mxu0 %v10764_v50 }
 0x465   : > { %v2955_v60 = vpop.f32.mrb[223].mxu0  ;;  %v10772_v61 = vpop.eup %10771  ;;  %10791 = vtanh.f32 %v3207_v40  ;;  %3905 = vmatmul.mubr.f32.gmra.mrb[22].mxu1 %v10770_v57  ;;  %9114 = vmatpush1.bf16.msra.mxu0 %v9113_v37  ;;  %v3211_v3 = vadd.f32 %v3210_v59, %v13513_v44 }
 0x466   : > { %v2956_v62 = vadd.f32 %v2955_v60, %v13516_v52  ;;  %v3212_v63 = vpop.f32.mrb[223].mxu1  ;;  %v10774_v2 = vpop.eup %10773  ;;  %10793 = vtanh.f32 %v3205_v39  ;;  %9178 = vmatpush1.bf16.msra.mxu1 %v9113_v37  ;;  %9116 = vmatprep.subr.bf16.mxu0 %v9115_v41 }
 0x467   : > { %v3213_v4 = vadd.f32 %v3212_v63, %v13516_v52  ;;  %v10776_v8 = vpop.eup %10775  ;;  %10795 = vtanh.f32 %v2954_v58  ;;  %3653 = vmatprep.mubr.f32.mxu0 %v10774_v2  ;;  %v2959_v9 = vpop.f32.mrb[224].mxu0  ;;  %9180 = vmatprep.subr.bf16.mxu1 %v9115_v41 }
 0x468   : > { %v10778_v12 = vpop.eup %10777  ;;  %10797 = vtanh.f32 %v2956_v62  ;;  %3910 = vmatprep.mubr.f32.mxu1 %v10776_v8  ;;  %v2960_v13 = vadd.f32 %v2959_v9, %v13513_v44  ;;  %v3216_v14 = vpop.f32.mrb[224].mxu1  ;;  %3654 = vmatmul.mubr.f32.gmra.mrb[24].mxu0 %v10772_v61 }
 0x469   : > { %v2961_v15 = vpop.f32.mrb[225].mxu0  ;;  %v10780_v16 = vpop.eup %10779  ;;  %10799 = vtanh.f32 %v3213_v4  ;;  %3911 = vmatmul.mubr.f32.gmra.mrb[24].mxu1 %v10778_v12  ;;  %9118 = vmatpush1.bf16.msra.mxu0 %v9117_v1  ;;  %v3217_v21 = vadd.f32 %v3216_v14, %v13513_v44 }
 0x46a   : > { %v2962_v17 = vadd.f32 %v2961_v15, %v13516_v52  ;;  %v3218_v18 = vpop.f32.mrb[225].mxu1  ;;  %v10782_v20 = vpop.eup %10781  ;;  %10801 = vtanh.f32 %v3211_v3  ;;  %9182 = vmatpush1.bf16.msra.mxu1 %v9117_v1  ;;  %9120 = vmatprep.subr.bf16.mxu0 %v9119_v5 }
 0x46b   : > { %v3219_v22 = vadd.f32 %v3218_v18, %v13516_v52  ;;  %v10784_v24 = vpop.eup %10783  ;;  %10803 = vtanh.f32 %v2960_v13  ;;  %3659 = vmatprep.mubr.f32.mxu0 %v10782_v20  ;;  %v2965_v25 = vpop.f32.mrb[226].mxu0  ;;  %9184 = vmatprep.subr.bf16.mxu1 %v9119_v5 }
 0x46c   : > { %v10786_v26 = vpop.eup %10785  ;;  %10805 = vtanh.f32 %v2962_v17  ;;  %3916 = vmatprep.mubr.f32.mxu1 %v10784_v24  ;;  %v2966_v27 = vadd.f32 %v2965_v25, %v13513_v44  ;;  %v3222_v28 = vpop.f32.mrb[226].mxu1  ;;  %3660 = vmatmul.mubr.f32.gmra.mrb[26].mxu0 %v10780_v16 }
 0x46d   : > { %v2967_v29 = vpop.f32.mrb[227].mxu0  ;;  %v10788_v30 = vpop.eup %10787  ;;  %10807 = vtanh.f32 %v3219_v22  ;;  %3917 = vmatmul.mubr.f32.gmra.mrb[26].mxu1 %v10786_v26  ;;  %9122 = vmatpush1.bf16.msra.mxu0 %v9121_v19  ;;  %v3223_v34 = vadd.f32 %v3222_v28, %v13513_v44 }
 0x46e   : > { %v2968_v31 = vadd.f32 %v2967_v29, %v13516_v52  ;;  %v3224_v32 = vpop.f32.mrb[227].mxu1  ;;  %v10790_v33 = vpop.eup %10789  ;;  %10809 = vtanh.f32 %v3217_v21  ;;  %9186 = vmatpush1.bf16.msra.mxu1 %v9121_v19  ;;  %9124 = vmatprep.subr.bf16.mxu0 %v9123_v23 }
 0x46f   : > { %v3225_v35 = vadd.f32 %v3224_v32, %v13516_v52  ;;  %v10792_v49 = vpop.eup %10791  ;;  %10811 = vtanh.f32 %v2966_v27  ;;  %3665 = vmatprep.mubr.f32.mxu0 %v10790_v33  ;;  %v2971_v47 = vpop.f32.mrb[228].mxu0  ;;  %9188 = vmatprep.subr.bf16.mxu1 %v9123_v23 }
 0x470   : > { %v10794_v45 = vpop.eup %10793  ;;  %10813 = vtanh.f32 %v2968_v31  ;;  %3922 = vmatprep.mubr.f32.mxu1 %v10792_v49  ;;  %v2972_v51 = vadd.f32 %v2971_v47, %v13513_v44  ;;  %v3228_v50 = vpop.f32.mrb[228].mxu1  ;;  %3666 = vmatmul.mubr.f32.gmra.mrb[28].mxu0 %v10788_v30 }
 0x471   : > { %v2973_v0 = vpop.f32.mrb[229].mxu0  ;;  %v10796_v36 = vpop.eup %10795  ;;  %10815 = vtanh.f32 %v3225_v35  ;;  %3923 = vmatmul.mubr.f32.gmra.mrb[28].mxu1 %v10794_v45  ;;  %v3229_v40 = vadd.f32 %v3228_v50, %v13513_v44 }
 0x472   : > { %v2974_v37 = vadd.f32 %v2973_v0, %v13516_v52  ;;  %v3230_v38 = vpop.f32.mrb[229].mxu1  ;;  %v10798_v39 = vpop.eup %10797  ;;  %10817 = vtanh.f32 %v3223_v34 }
 0x473   : > { %v3231_v41 = vadd.f32 %v3230_v38, %v13516_v52  ;;  %v10800_v42 = vpop.eup %10799  ;;  %10819 = vtanh.f32 %v2972_v51  ;;  %3671 = vmatprep.mubr.f32.mxu0 %v10798_v39  ;;  %v2977_v43 = vpop.f32.mrb[230].mxu0 }
 0x474   : > { %v10802_v53 = vpop.eup %10801  ;;  %10821 = vtanh.f32 %v2974_v37  ;;  %3928 = vmatprep.mubr.f32.mxu1 %v10800_v42  ;;  %v2978_v54 = vadd.f32 %v2977_v43, %v13513_v44  ;;  %v3234_v55 = vpop.f32.mrb[230].mxu1  ;;  %3672 = vmatmul.mubr.f32.gmra.mrb[30].mxu0 %v10796_v36 }
 0x475   : > { %v2979_v56 = vpop.f32.mrb[231].mxu0  ;;  %v10804_v57 = vpop.eup %10803  ;;  %10823 = vtanh.f32 %v3231_v41  ;;  %3929 = vmatmul.mubr.f32.gmra.mrb[30].mxu1 %v10802_v53  ;;  %v3235_v61 = vadd.f32 %v3234_v55, %v13513_v44 }
 0x476   : > { %v2980_v58 = vadd.f32 %v2979_v56, %v13516_v52  ;;  %v3236_v59 = vpop.f32.mrb[231].mxu1  ;;  %v10806_v60 = vpop.eup %10805  ;;  %10825 = vtanh.f32 %v3229_v40 }
 0x477   : > { %v3237_v62 = vadd.f32 %v3236_v59, %v13516_v52  ;;  %v10808_v63 = vpop.eup %10807  ;;  %10827 = vtanh.f32 %v2978_v54  ;;  %3677 = vmatprep.mubr.f32.mxu0 %v10806_v60  ;;  %v2983_v1 = vpop.f32.mrb[232].mxu0 }
 0x478   : > { %v10810_v2 = vpop.eup %10809  ;;  %10829 = vtanh.f32 %v2980_v58  ;;  %3934 = vmatprep.mubr.f32.mxu1 %v10808_v63  ;;  %v2984_v3 = vadd.f32 %v2983_v1, %v13513_v44  ;;  %v3240_v4 = vpop.f32.mrb[232].mxu1  ;;  %3678 = vmatmul.mubr.f32.gmra.mrb[32].mxu0 %v10804_v57 }
 0x479   : > { %v2985_v5 = vpop.f32.mrb[233].mxu0  ;;  %v10812_v6 = vpop.eup %10811  ;;  %10831 = vtanh.f32 %v3237_v62  ;;  %3935 = vmatmul.mubr.f32.gmra.mrb[32].mxu1 %v10810_v2  ;;  %v3241_v10 = vadd.f32 %v3240_v4, %v13513_v44 }
 0x47a   : > { %v2986_v7 = vadd.f32 %v2985_v5, %v13516_v52  ;;  %v3242_v8 = vpop.f32.mrb[233].mxu1  ;;  %v10814_v9 = vpop.eup %10813  ;;  %10833 = vtanh.f32 %v3235_v61 }
 0x47b   : > { %v3243_v11 = vadd.f32 %v3242_v8, %v13516_v52  ;;  %v10816_v12 = vpop.eup %10815  ;;  %10835 = vtanh.f32 %v2984_v3  ;;  %3683 = vmatprep.mubr.f32.mxu0 %v10814_v9  ;;  %v2989_v13 = vpop.f32.mrb[234].mxu0 }
 0x47c   : > { %v10818_v14 = vpop.eup %10817  ;;  %10837 = vtanh.f32 %v2986_v7  ;;  %3940 = vmatprep.mubr.f32.mxu1 %v10816_v12  ;;  %v2990_v15 = vadd.f32 %v2989_v13, %v13513_v44  ;;  %v3246_v16 = vpop.f32.mrb[234].mxu1  ;;  %3684 = vmatmul.mubr.f32.gmra.mrb[34].mxu0 %v10812_v6 }
 0x47d   : > { %v2991_v17 = vpop.f32.mrb[235].mxu0  ;;  %v10820_v18 = vpop.eup %10819  ;;  %10839 = vtanh.f32 %v3243_v11  ;;  %3941 = vmatmul.mubr.f32.gmra.mrb[34].mxu1 %v10818_v14  ;;  %v3247_v22 = vadd.f32 %v3246_v16, %v13513_v44  ;;  %v4216_v14 = vld [vmem:[#allocation6 + $0x9c0] sm:$0xff] }
 0x47e   : > { %v2992_v19 = vadd.f32 %v2991_v17, %v13516_v52  ;;  %v3248_v20 = vpop.f32.mrb[235].mxu1  ;;  %v10822_v21 = vpop.eup %10821  ;;  %10841 = vtanh.f32 %v3241_v10 }
 0x47f   : > { %v3249_v23 = vadd.f32 %v3248_v20, %v13516_v52  ;;  %v10824_v24 = vpop.eup %10823  ;;  %10843 = vtanh.f32 %v2990_v15  ;;  %3689 = vmatprep.mubr.f32.mxu0 %v10822_v21  ;;  %v2995_v25 = vpop.f32.mrb[236].mxu0  ;;  %v4218_v15 = vld [vmem:[#allocation6 + $0x9d0] sm:$0xff] }
 0x480   : > { %v10826_v26 = vpop.eup %10825  ;;  %10845 = vtanh.f32 %v2992_v19  ;;  %3946 = vmatprep.mubr.f32.mxu1 %v10824_v24  ;;  %v2996_v27 = vadd.f32 %v2995_v25, %v13513_v44  ;;  %v3252_v28 = vpop.f32.mrb[236].mxu1  ;;  %3690 = vmatmul.mubr.f32.gmra.mrb[36].mxu0 %v10820_v18  ;;  %v9125_v20 = vpack.c.bf16 %v4218_v15, %v4216_v14 }
 0x481   : > { %v2997_v29 = vpop.f32.mrb[237].mxu0  ;;  %v10828_v30 = vpop.eup %10827  ;;  %10847 = vtanh.f32 %v3249_v23  ;;  %3947 = vmatmul.mubr.f32.gmra.mrb[36].mxu1 %v10826_v26  ;;  %v3253_v34 = vadd.f32 %v3252_v28, %v13513_v44 }
 0x482   : > { %v2998_v31 = vadd.f32 %v2997_v29, %v13516_v52  ;;  %v3254_v32 = vpop.f32.mrb[237].mxu1  ;;  %v10830_v33 = vpop.eup %10829  ;;  %10849 = vtanh.f32 %v3247_v22  ;;  %9126 = vmatpush1.bf16.msra.mxu0 %v9125_v20  ;;  %9190 = vmatpush1.bf16.msra.mxu1 %v9125_v20 }
 0x483   : > { %v3255_v35 = vadd.f32 %v3254_v32, %v13516_v52  ;;  %v10832_v49 = vpop.eup %10831  ;;  %10851 = vtanh.f32 %v2996_v27  ;;  %3695 = vmatprep.mubr.f32.mxu0 %v10830_v33  ;;  %v3001_v47 = vpop.f32.mrb[238].mxu0 }
 0x484   : > { %v10834_v45 = vpop.eup %10833  ;;  %10853 = vtanh.f32 %v2998_v31  ;;  %3952 = vmatprep.mubr.f32.mxu1 %v10832_v49  ;;  %v3002_v51 = vadd.f32 %v3001_v47, %v13513_v44  ;;  %v3258_v50 = vpop.f32.mrb[238].mxu1  ;;  %3696 = vmatmul.mubr.f32.gmra.mrb[38].mxu0 %v10828_v30  ;;  %v4221_v49 = vld [vmem:[#allocation6 + $0x9e8] sm:$0xff]  ;;  %v4223_v47 = vld [vmem:[#allocation6 + $0x9f8] sm:$0xff] }
 0x485   : > { %v3003_v0 = vpop.f32.mrb[239].mxu0  ;;  %v10836_v36 = vpop.eup %10835  ;;  %10855 = vtanh.f32 %v3255_v35  ;;  %3953 = vmatmul.mubr.f32.gmra.mrb[38].mxu1 %v10834_v45  ;;  %v3259_v40 = vadd.f32 %v3258_v50, %v13513_v44 }
 0x486   : > { %v3004_v37 = vadd.f32 %v3003_v0, %v13516_v52  ;;  %v3260_v38 = vpop.f32.mrb[239].mxu1  ;;  %v10838_v39 = vpop.eup %10837  ;;  %10857 = vtanh.f32 %v3253_v34  ;;  %v9127_v0 = vpack.c.bf16 %v4223_v47, %v4221_v49 }
 0x487   : > { %v3261_v41 = vadd.f32 %v3260_v38, %v13516_v52  ;;  %v10840_v42 = vpop.eup %10839  ;;  %10859 = vtanh.f32 %v3002_v51  ;;  %3701 = vmatprep.mubr.f32.mxu0 %v10838_v39  ;;  %v3007_v43 = vpop.f32.mrb[240].mxu0  ;;  %v4220_v38 = vld [vmem:[#allocation6 + $0x9e0] sm:$0xff]  ;;  %v4222_v39 = vld [vmem:[#allocation6 + $0x9f0] sm:$0xff] }
 0x488   : > { %v10842_v53 = vpop.eup %10841  ;;  %10861 = vtanh.f32 %v3004_v37  ;;  %3958 = vmatprep.mubr.f32.mxu1 %v10840_v42  ;;  %v3008_v54 = vadd.f32 %v3007_v43, %v13513_v44  ;;  %v3264_v55 = vpop.f32.mrb[240].mxu1  ;;  %3702 = vmatmul.mubr.f32.gmra.mrb[40].mxu0 %v10836_v36 }
 0x489   : > { %v3009_v56 = vpop.f32.mrb[241].mxu0  ;;  %v10844_v57 = vpop.eup %10843  ;;  %10863 = vtanh.f32 %v3261_v41  ;;  %3959 = vmatmul.mubr.f32.gmra.mrb[40].mxu1 %v10842_v53  ;;  %v3265_v61 = vadd.f32 %v3264_v55, %v13513_v44  ;;  %v9129_v53 = vpack.c.bf16 %v4222_v39, %v4220_v38  ;;  %9128 = vmatprep.subr.bf16.mxu0 %v9127_v0  ;;  %v4881_v39 = vld [vmem:[#allocation6 + $0xa08] sm:$0xff] }
 0x48a   : > { %v3010_v58 = vadd.f32 %v3009_v56, %v13516_v52  ;;  %v3266_v59 = vpop.f32.mrb[241].mxu1  ;;  %v10846_v60 = vpop.eup %10845  ;;  %10865 = vtanh.f32 %v3259_v40  ;;  %9192 = vmatprep.subr.bf16.mxu1 %v9127_v0 }
 0x48b   : > { %v3267_v62 = vadd.f32 %v3266_v59, %v13516_v52  ;;  %v10848_v63 = vpop.eup %10847  ;;  %10867 = vtanh.f32 %v3008_v54  ;;  %3707 = vmatprep.mubr.f32.mxu0 %v10846_v60  ;;  %v3013_v1 = vpop.f32.mrb[242].mxu0  ;;  %9130 = vmatpush1.bf16.msra.mxu0 %v9129_v53 }
 0x48c   : > { %v10850_v2 = vpop.eup %10849  ;;  %10869 = vtanh.f32 %v3010_v58  ;;  %3964 = vmatprep.mubr.f32.mxu1 %v10848_v63  ;;  %v3014_v3 = vadd.f32 %v3013_v1, %v13513_v44  ;;  %v3270_v4 = vpop.f32.mrb[242].mxu1  ;;  %3708 = vmatmul.mubr.f32.gmra.mrb[42].mxu0 %v10844_v57 }
 0x48d   : > { %v3015_v5 = vpop.f32.mrb[243].mxu0  ;;  %v10852_v6 = vpop.eup %10851  ;;  %10871 = vtanh.f32 %v3267_v62  ;;  %3965 = vmatmul.mubr.f32.gmra.mrb[42].mxu1 %v10850_v2  ;;  %v3271_v10 = vadd.f32 %v3270_v4, %v13513_v44 }
 0x48e   : > { %v3016_v7 = vadd.f32 %v3015_v5, %v13516_v52  ;;  %v3272_v8 = vpop.f32.mrb[243].mxu1  ;;  %v10854_v9 = vpop.eup %10853  ;;  %10873 = vtanh.f32 %v3265_v61  ;;  %9194 = vmatpush1.bf16.msra.mxu1 %v9129_v53 }
 0x48f   : > { %v3273_v11 = vadd.f32 %v3272_v8, %v13516_v52  ;;  %v10856_v12 = vpop.eup %10855  ;;  %10875 = vtanh.f32 %v3014_v3  ;;  %3713 = vmatprep.mubr.f32.mxu0 %v10854_v9  ;;  %v3019_v13 = vpop.f32.mrb[244].mxu0 }
 0x490   : > { %v10858_v16 = vpop.eup %10857  ;;  %10877 = vtanh.f32 %v3016_v7  ;;  %3970 = vmatprep.mubr.f32.mxu1 %v10856_v12  ;;  %v3020_v17 = vadd.f32 %v3019_v13, %v13513_v44  ;;  %v3276_v18 = vpop.f32.mrb[244].mxu1  ;;  %3714 = vmatmul.mubr.f32.gmra.mrb[44].mxu0 %v10852_v6 }
 0x491   : > { %v3021_v19 = vpop.f32.mrb[245].mxu0  ;;  %v10860_v21 = vpop.eup %10859  ;;  %10879 = vtanh.f32 %v3273_v11  ;;  %3971 = vmatmul.mubr.f32.gmra.mrb[44].mxu1 %v10858_v16  ;;  %v3277_v25 = vadd.f32 %v3276_v18, %v13513_v44 }
 0x492   : > { %v3022_v22 = vadd.f32 %v3021_v19, %v13516_v52  ;;  %v3278_v23 = vpop.f32.mrb[245].mxu1  ;;  %v10862_v24 = vpop.eup %10861  ;;  %10881 = vtanh.f32 %v3271_v10 }
 0x493   : > { %v3279_v26 = vadd.f32 %v3278_v23, %v13516_v52  ;;  %v10864_v27 = vpop.eup %10863  ;;  %10883 = vtanh.f32 %v3020_v17  ;;  %3719 = vmatprep.mubr.f32.mxu0 %v10862_v24  ;;  %v3025_v28 = vpop.f32.mrb[246].mxu0 }
 0x494   : > { %v10866_v29 = vpop.eup %10865  ;;  %10885 = vtanh.f32 %v3022_v22  ;;  %3976 = vmatprep.mubr.f32.mxu1 %v10864_v27  ;;  %v3026_v30 = vadd.f32 %v3025_v28, %v13513_v44  ;;  %v3282_v31 = vpop.f32.mrb[246].mxu1  ;;  %3720 = vmatmul.mubr.f32.gmra.mrb[46].mxu0 %v10860_v21 }
 0x495   : > { %v3027_v32 = vpop.f32.mrb[247].mxu0  ;;  %v10868_v33 = vpop.eup %10867  ;;  %10887 = vtanh.f32 %v3279_v26  ;;  %3977 = vmatmul.mubr.f32.gmra.mrb[46].mxu1 %v10866_v29  ;;  %v3283_v51 = vadd.f32 %v3282_v31, %v13513_v44 }
 0x496   : > { %v3028_v34 = vadd.f32 %v3027_v32, %v13516_v52  ;;  %v3284_v35 = vpop.f32.mrb[247].mxu1  ;;  %v10870_v45 = vpop.eup %10869  ;;  %10889 = vtanh.f32 %v3277_v25 }
 0x497   : > { %v3285_v50 = vadd.f32 %v3284_v35, %v13516_v52  ;;  %v10872_v36 = vpop.eup %10871  ;;  %10891 = vtanh.f32 %v3026_v30  ;;  %3725 = vmatprep.mubr.f32.mxu0 %v10870_v45  ;;  %v3031_v37 = vpop.f32.mrb[248].mxu0 }
 0x498   : > { %v10874_v40 = vpop.eup %10873  ;;  %10893 = vtanh.f32 %v3028_v34  ;;  %3982 = vmatprep.mubr.f32.mxu1 %v10872_v36  ;;  %v3032_v41 = vadd.f32 %v3031_v37, %v13513_v44  ;;  %v3288_v42 = vpop.f32.mrb[248].mxu1  ;;  %3726 = vmatmul.mubr.f32.gmra.mrb[48].mxu0 %v10868_v33 }
 0x499   : > { %v3033_v43 = vpop.f32.mrb[249].mxu0  ;;  %v10876_v54 = vpop.eup %10875  ;;  %10895 = vtanh.f32 %v3285_v50  ;;  %3983 = vmatmul.mubr.f32.gmra.mrb[48].mxu1 %v10874_v40  ;;  %v3289_v58 = vadd.f32 %v3288_v42, %v13513_v44  ;;  %v4883_v40 = vld [vmem:[#allocation6 + $0xa18] sm:$0xff]  ;;  %v3505_v42 = vld [vmem:[#allocation7 + $0x3] ss:$8 sm:$0x3] }
 0x49a   : > { %v3034_v55 = vadd.f32 %v3033_v43, %v13516_v52  ;;  %v3290_v56 = vpop.f32.mrb[249].mxu1  ;;  %v10878_v57 = vpop.eup %10877  ;;  %10897 = vtanh.f32 %v3283_v51  ;;  %v13647_v43 = vrot.slane %v3505_v42, %v13106_v46  ;;  %v13650_v53 = vrot.slane %v3505_v42, %v13108_v48  ;;  %v4890_v42 = vld [vmem:[#allocation6 + $0xa50] sm:$0xff] }
 0x49b   : > { %v3291_v59 = vadd.f32 %v3290_v56, %v13516_v52  ;;  %v10880_v60 = vpop.eup %10879  ;;  %10899 = vtanh.f32 %v3032_v41  ;;  %3731 = vmatprep.mubr.f32.mxu0 %v10878_v57  ;;  %v3037_v61 = vpop.f32.mrb[250].mxu0  ;;  %v9195_v41 = vpack.c.bf16 %v4883_v40, %v4881_v39 }
 0x49c   : > { %v10882_v62 = vpop.eup %10881  ;;  %10901 = vtanh.f32 %v3034_v55  ;;  %3988 = vmatprep.mubr.f32.mxu1 %v10880_v60  ;;  %v3038_v63 = vadd.f32 %v3037_v61, %v13513_v44  ;;  %v3294_v1 = vpop.f32.mrb[250].mxu1  ;;  %3732 = vmatmul.mubr.f32.gmra.mrb[50].mxu0 %v10876_v54 }
 0x49d   : > { %v3039_v2 = vpop.f32.mrb[251].mxu0  ;;  %v10884_v3 = vpop.eup %10883  ;;  %10903 = vtanh.f32 %v3291_v59  ;;  %3989 = vmatmul.mubr.f32.gmra.mrb[50].mxu1 %v10882_v62  ;;  %v3295_v7 = vadd.f32 %v3294_v1, %v13513_v44  ;;  %9196 = vmatprep.subr.bf16.mxu0 %v9195_v41 }
 0x49e   : > { %v3040_v4 = vadd.f32 %v3039_v2, %v13516_v52  ;;  %v3296_v5 = vpop.f32.mrb[251].mxu1  ;;  %v10886_v6 = vpop.eup %10885  ;;  %10905 = vtanh.f32 %v3289_v58  ;;  %9260 = vmatprep.subr.bf16.mxu1 %v9195_v41  ;;  %v4888_v41 = vld [vmem:[#allocation6 + $0xa40] sm:$0xff] }
 0x49f   : > { %v3297_v8 = vadd.f32 %v3296_v5, %v13516_v52  ;;  %v10888_v9 = vpop.eup %10887  ;;  %10907 = vtanh.f32 %v3038_v63  ;;  %3737 = vmatprep.mubr.f32.mxu0 %v10886_v6  ;;  %v3043_v10 = vpop.f32.mrb[252].mxu0 }
 0x4a0   : > { %v10890_v11 = vpop.eup %10889  ;;  %10909 = vtanh.f32 %v3040_v4  ;;  %3994 = vmatprep.mubr.f32.mxu1 %v10888_v9  ;;  %v3044_v12 = vadd.f32 %v3043_v10, %v13513_v44  ;;  %v3300_v13 = vpop.f32.mrb[252].mxu1  ;;  %3738 = vmatmul.mubr.f32.gmra.mrb[52].mxu0 %v10884_v3 }
 0x4a1   : > { %v3045_v14 = vpop.f32.mrb[253].mxu0  ;;  %v10892_v15 = vpop.eup %10891  ;;  %10911 = vtanh.f32 %v3297_v8  ;;  %3995 = vmatmul.mubr.f32.gmra.mrb[52].mxu1 %v10890_v11  ;;  %v3301_v19 = vadd.f32 %v3300_v13, %v13513_v44 }
 0x4a2   : > { %v3046_v16 = vadd.f32 %v3045_v14, %v13516_v52  ;;  %v3302_v17 = vpop.f32.mrb[253].mxu1  ;;  %v10894_v18 = vpop.eup %10893  ;;  %10913 = vtanh.f32 %v3295_v7 }
 0x4a3   : > { %v3303_v20 = vadd.f32 %v3302_v17, %v13516_v52  ;;  %v10896_v21 = vpop.eup %10895  ;;  %10915 = vtanh.f32 %v3044_v12  ;;  %3743 = vmatprep.mubr.f32.mxu0 %v10894_v18  ;;  %v3049_v22 = vpop.f32.mrb[254].mxu0  ;;  %v4885_v18 = vld [vmem:[#allocation6 + $0xa28] sm:$0xff] }
 0x4a4   : > { %v10898_v23 = vpop.eup %10897  ;;  %10917 = vtanh.f32 %v3046_v16  ;;  %4000 = vmatprep.mubr.f32.mxu1 %v10896_v21  ;;  %v3050_v24 = vadd.f32 %v3049_v22, %v13513_v44  ;;  %v3306_v25 = vpop.f32.mrb[254].mxu1  ;;  %3744 = vmatmul.mubr.f32.gmra.mrb[54].mxu0 %v10892_v15  ;;  %v4880_v15 = vld [vmem:[#allocation6 + $0xa00] sm:$0xff]  ;;  %v4882_v16 = vld [vmem:[#allocation6 + $0xa10] sm:$0xff] }
 0x4a5   : > { %v3051_v26 = vpop.f32.mrb[255].mxu0  ;;  %v10900_v27 = vpop.eup %10899  ;;  %10919 = vtanh.f32 %v3303_v20  ;;  %4001 = vmatmul.mubr.f32.gmra.mrb[54].mxu1 %v10898_v23  ;;  %v3307_v31 = vadd.f32 %v3306_v25, %v13513_v44 }
 0x4a6   : > { %v3052_v28 = vadd.f32 %v3051_v26, %v13516_v52  ;;  %v3308_v29 = vpop.f32.mrb[255].mxu1  ;;  %v10902_v30 = vpop.eup %10901  ;;  %10921 = vtanh.f32 %v3301_v19  ;;  %v4887_v19 = vld [vmem:[#allocation6 + $0xa38] sm:$0xff]  ;;  %v9197_v26 = vpack.c.bf16 %v4882_v16, %v4880_v15 }
 0x4a7   : > { %v3309_v32 = vadd.f32 %v3308_v29, %v13516_v52  ;;  %v10904_v33 = vpop.eup %10903  ;;  %10923 = vtanh.f32 %v3050_v24  ;;  %3749 = vmatprep.mubr.f32.mxu0 %v10902_v30  ;;  %v9199_v30 = vpack.c.bf16 %v4887_v19, %v4885_v18 }
 0x4a8   : > { %v10906_v34 = vpop.eup %10905  ;;  %10925 = vtanh.f32 %v3052_v28  ;;  %4006 = vmatprep.mubr.f32.mxu1 %v10904_v33  ;;  %3750 = vmatmul.mubr.f32.gmra.mrb[56].mxu0 %v10900_v27 }
 0x4a9   : > { %v10908_v35 = vpop.eup %10907  ;;  %10927 = vtanh.f32 %v3309_v32  ;;  %4007 = vmatmul.mubr.f32.gmra.mrb[56].mxu1 %v10906_v34  ;;  %v4886_v32 = vld [vmem:[#allocation6 + $0xa30] sm:$0xff] }
 0x4aa   : > { %v10910_v49 = vpop.eup %10909  ;;  %10929 = vtanh.f32 %v3307_v31  ;;  %v4884_v31 = vld [vmem:[#allocation6 + $0xa20] sm:$0xff] }
 0x4ab   : > { %v10912_v47 = vpop.eup %10911  ;;  %3755 = vmatprep.mubr.f32.mxu0 %v10910_v49  ;;  %v4891_v49 = vld [vmem:[#allocation6 + $0xa58] sm:$0xff] }
 0x4ac   : > { %v10914_v45 = vpop.eup %10913  ;;  %4012 = vmatprep.mubr.f32.mxu1 %v10912_v47  ;;  %3756 = vmatmul.mubr.f32.gmra.mrb[58].mxu0 %v10908_v35  ;;  %v4889_v35 = vld [vmem:[#allocation6 + $0xa48] sm:$0xff] }
 0x4ad   : > { %v10916_v44 = vpop.eup %10915  ;;  %4013 = vmatmul.mubr.f32.gmra.mrb[58].mxu1 %v10914_v45  ;;  %v9203_v40 = vpack.c.bf16 %v4891_v49, %v4889_v35 }
 0x4ae   : > { %v10918_v52 = vpop.eup %10917 }
 0x4af   : > { %v10920_v51 = vpop.eup %10919  ;;  %3761 = vmatprep.mubr.f32.mxu0 %v10918_v52 }
 0x4b0   : > { %v10922_v50 = vpop.eup %10921  ;;  %4018 = vmatprep.mubr.f32.mxu1 %v10920_v51  ;;  %3762 = vmatmul.mubr.f32.gmra.mrb[60].mxu0 %v10916_v44 }
 0x4b1   : > { %v10924_v0 = vpop.eup %10923  ;;  %4019 = vmatmul.mubr.f32.gmra.mrb[60].mxu1 %v10922_v50 }
 0x4b2   : > { %v10926_v36 = vpop.eup %10925 }
 0x4b3   : > { %v10928_v37 = vpop.eup %10927  ;;  %3767 = vmatprep.mubr.f32.mxu0 %v10926_v36  ;;  %v9201_v36 = vpack.c.bf16 %v4886_v32, %v4884_v31 }
 0x4b4   : > { %v10930_v38 = vpop.eup %10929  ;;  %4024 = vmatprep.mubr.f32.mxu1 %v10928_v37  ;;  %3768 = vmatmul.mubr.f32.gmra.mrb[62].mxu0 %v10924_v0 }
 0x4b5   : > { %4025 = vmatmul.mubr.f32.gmra.mrb[62].mxu1 %v10930_v38 }
 0x50a   : > { %v3583_v54 = vpop.f32.mrb[0].mxu0 }
 0x50b   : > { %v3584_v55 = vadd.f32 %v3583_v54, %v13647_v43  ;;  %v3840_v56 = vpop.f32.mrb[0].mxu1  ;;  %v3585_v57 = vpop.f32.mrb[1].mxu0 }
 0x50c   : > { %v3586_v58 = vadd.f32 %v3585_v57, %v13650_v53  ;;  %v3842_v59 = vpop.f32.mrb[1].mxu1  ;;  %v3841_v60 = vadd.f32 %v3840_v56, %v13647_v43  ;;  %v4893_v56 = vld [vmem:[#allocation6 + $0xa68] sm:$0xff]  ;;  %v4895_v57 = vld [vmem:[#allocation6 + $0xa78] sm:$0xff] }
 0x50d   : > { %v3843_v61 = vadd.f32 %v3842_v59, %v13650_v53  ;;  %10931 = vtanh.f32 %v3584_v55 }
 0x50e   : > { %10933 = vtanh.f32 %v3586_v58 }
 0x50f   : > { %v3589_v62 = vpop.f32.mrb[2].mxu0  ;;  %10935 = vtanh.f32 %v3843_v61 }
 0x510   : > { %v3590_v63 = vadd.f32 %v3589_v62, %v13647_v43  ;;  %v3846_v1 = vpop.f32.mrb[2].mxu1  ;;  %v3591_v2 = vpop.f32.mrb[3].mxu0  ;;  %10937 = vtanh.f32 %v3841_v60 }
 0x511   : > { %v3592_v3 = vadd.f32 %v3591_v2, %v13650_v53  ;;  %v3848_v4 = vpop.f32.mrb[3].mxu1  ;;  %v3847_v5 = vadd.f32 %v3846_v1, %v13647_v43  ;;  %v9205_v2 = vpack.c.bf16 %v4890_v42, %v4888_v41 }
 0x512   : > { %v3849_v6 = vadd.f32 %v3848_v4, %v13650_v53  ;;  %10939 = vtanh.f32 %v3590_v63 }
 0x513   : > { %v3595_v7 = vpop.f32.mrb[4].mxu0  ;;  %10941 = vtanh.f32 %v3592_v3 }
 0x514   : > { %v3596_v8 = vadd.f32 %v3595_v7, %v13647_v43  ;;  %v3852_v9 = vpop.f32.mrb[4].mxu1  ;;  %v3597_v10 = vpop.f32.mrb[5].mxu0  ;;  %10943 = vtanh.f32 %v3849_v6  ;;  %v9207_v6 = vpack.c.bf16 %v4895_v57, %v4893_v56  ;;  %v4892_v7 = vld [vmem:[#allocation6 + $0xa60] sm:$0xff] }
 0x515   : > { %v3598_v11 = vadd.f32 %v3597_v10, %v13650_v53  ;;  %v3854_v12 = vpop.f32.mrb[5].mxu1  ;;  %10945 = vtanh.f32 %v3847_v5  ;;  %v3853_v13 = vadd.f32 %v3852_v9, %v13647_v43 }
 0x516   : > { %v3855_v14 = vadd.f32 %v3854_v12, %v13650_v53  ;;  %10947 = vtanh.f32 %v3596_v8  ;;  %v4894_v8 = vld [vmem:[#allocation6 + $0xa70] sm:$0xff]  ;;  %v4899_v12 = vld [vmem:[#allocation6 + $0xa98] sm:$0xff] }
 0x517   : > { %v3601_v17 = vpop.f32.mrb[6].mxu0  ;;  %10949 = vtanh.f32 %v3598_v11  ;;  %v10932_v23 = vpop.eup %10931  ;;  %v4897_v11 = vld [vmem:[#allocation6 + $0xa88] sm:$0xff] }
 0x518   : > { %v3602_v20 = vadd.f32 %v3601_v17, %v13647_v43  ;;  %v3858_v21 = vpop.f32.mrb[6].mxu1  ;;  %v3603_v22 = vpop.f32.mrb[7].mxu0  ;;  %10951 = vtanh.f32 %v3855_v14 }
 0x519   : > { %v3604_v24 = vadd.f32 %v3603_v22, %v13650_v53  ;;  %v3860_v25 = vpop.f32.mrb[7].mxu1  ;;  %v10934_v27 = vpop.eup %10933  ;;  %10953 = vtanh.f32 %v3853_v13  ;;  %v3859_v28 = vadd.f32 %v3858_v21, %v13647_v43 }
 0x51a   : > { %v3861_v29 = vadd.f32 %v3860_v25, %v13650_v53  ;;  %v10936_v33 = vpop.eup %10935  ;;  %10955 = vtanh.f32 %v3602_v20  ;;  %4301 = vmatprep.mubr.f32.mxu0 %v10934_v27  ;;  %v9209_v20 = vpack.c.bf16 %v4894_v8, %v4892_v7  ;;  %v4896_v25 = vld [vmem:[#allocation6 + $0xa80] sm:$0xff] }
 0x51b   : > { %v3607_v34 = vpop.f32.mrb[8].mxu0  ;;  %v10938_v47 = vpop.eup %10937  ;;  %10957 = vtanh.f32 %v3604_v24  ;;  %4558 = vmatprep.mubr.f32.mxu1 %v10936_v33  ;;  %4302 = vmatmul.mubr.f32.vlgmr.msra.gmra.mrb[64].mxu0 %v10932_v23  ;;  %v9211_v24 = vpack.c.bf16 %v4899_v12, %v4897_v11 }
 0x51c   : > { %v3608_v45 = vadd.f32 %v3607_v34, %v13647_v43  ;;  %v3864_v44 = vpop.f32.mrb[8].mxu1  ;;  %v3609_v52 = vpop.f32.mrb[9].mxu0  ;;  %10959 = vtanh.f32 %v3861_v29  ;;  %4559 = vmatmul.mubr.f32.vlgmr.msra.gmra.mrb[64].mxu1 %v10938_v47  ;;  %9198 = vmatpush1.bf16.msra.mxu0 %v9197_v26  ;;  %v4901_v29 = vld [vmem:[#allocation6 + $0xaa8] sm:$0xff] }
 0x51d   : > { %v10940_v51 = vpop.eup %10939  ;;  %v3610_v50 = vadd.f32 %v3609_v52, %v13650_v53  ;;  %v3866_v0 = vpop.f32.mrb[9].mxu1  ;;  %10961 = vtanh.f32 %v3859_v28  ;;  %v3865_v38 = vadd.f32 %v3864_v44, %v13647_v43  ;;  %9262 = vmatpush1.bf16.msra.mxu1 %v9197_v26  ;;  %9200 = vmatprep.subr.bf16.mxu0 %v9199_v30  ;;  %v4898_v26 = vld [vmem:[#allocation6 + $0xa90] sm:$0xff] }
 0x51e   : > { %v10942_v37 = vpop.eup %10941  ;;  %v3867_v39 = vadd.f32 %v3866_v0, %v13650_v53  ;;  %10963 = vtanh.f32 %v3608_v45  ;;  %9264 = vmatprep.subr.bf16.mxu1 %v9199_v30  ;;  %v4903_v30 = vld [vmem:[#allocation6 + $0xab8] sm:$0xff]  ;;  %v9213_v45 = vpack.c.bf16 %v4898_v26, %v4896_v25  ;;  %v4900_v0 = vld [vmem:[#allocation6 + $0xaa0] sm:$0xff] }
 0x51f   : > { %v10944_v54 = vpop.eup %10943  ;;  %4307 = vmatprep.mubr.f32.mxu0 %v10942_v37  ;;  %v3613_v55 = vpop.f32.mrb[10].mxu0  ;;  %10965 = vtanh.f32 %v3610_v50  ;;  %v9215_v50 = vpack.c.bf16 %v4903_v30, %v4901_v29 }
 0x520   : > { %v10946_v58 = vpop.eup %10945  ;;  %4564 = vmatprep.mubr.f32.mxu1 %v10944_v54  ;;  %v3614_v59 = vadd.f32 %v3613_v55, %v13647_v43  ;;  %v3870_v60 = vpop.f32.mrb[10].mxu1  ;;  %4308 = vmatmul.mubr.f32.gmra.mrb[66].mxu0 %v10940_v51  ;;  %10967 = vtanh.f32 %v3867_v39  ;;  %v4905_v39 = vld [vmem:[#allocation6 + $0xac8] sm:$0xff] }
 0x521   : > { %v3615_v61 = vpop.f32.mrb[11].mxu0  ;;  %v10948_v62 = vpop.eup %10947  ;;  %4565 = vmatmul.mubr.f32.gmra.mrb[66].mxu1 %v10946_v58  ;;  %9202 = vmatpush1.bf16.msra.mxu0 %v9201_v36  ;;  %10969 = vtanh.f32 %v3865_v38  ;;  %v3871_v4 = vadd.f32 %v3870_v60, %v13647_v43 }
 0x522   : > { %v3616_v63 = vadd.f32 %v3615_v61, %v13650_v53  ;;  %v3872_v1 = vpop.f32.mrb[11].mxu1  ;;  %v10950_v3 = vpop.eup %10949  ;;  %9266 = vmatpush1.bf16.msra.mxu1 %v9201_v36  ;;  %9204 = vmatprep.subr.bf16.mxu0 %v9203_v40  ;;  %10971 = vtanh.f32 %v3614_v59  ;;  %v4902_v36 = vld [vmem:[#allocation6 + $0xab0] sm:$0xff] }
 0x523   : > { %v3873_v5 = vadd.f32 %v3872_v1, %v13650_v53  ;;  %v10952_v9 = vpop.eup %10951  ;;  %4313 = vmatprep.mubr.f32.mxu0 %v10950_v3  ;;  %v3619_v10 = vpop.f32.mrb[12].mxu0  ;;  %9268 = vmatprep.subr.bf16.mxu1 %v9203_v40  ;;  %v4907_v40 = vld [vmem:[#allocation6 + $0xad8] sm:$0xff]  ;;  %v9217_v59 = vpack.c.bf16 %v4902_v36, %v4900_v0  ;;  %v4904_v1 = vld [vmem:[#allocation6 + $0xac0] sm:$0xff] }
 0x524   : > { %v10954_v13 = vpop.eup %10953  ;;  %10973 = vtanh.f32 %v3616_v63  ;;  %4570 = vmatprep.mubr.f32.mxu1 %v10952_v9  ;;  %v3620_v14 = vadd.f32 %v3619_v10, %v13647_v43  ;;  %v3876_v15 = vpop.f32.mrb[12].mxu1  ;;  %4314 = vmatmul.mubr.f32.gmra.mrb[68].mxu0 %v10948_v62  ;;  %v9219_v63 = vpack.c.bf16 %v4907_v40, %v4905_v39 }
 0x525   : > { %v3621_v16 = vpop.f32.mrb[13].mxu0  ;;  %v10956_v17 = vpop.eup %10955  ;;  %10975 = vtanh.f32 %v3873_v5  ;;  %4571 = vmatmul.mubr.f32.gmra.mrb[68].mxu1 %v10954_v13  ;;  %9206 = vmatpush1.bf16.msra.mxu0 %v9205_v2  ;;  %v3877_v22 = vadd.f32 %v3876_v15, %v13647_v43  ;;  %v4909_v5 = vld [vmem:[#allocation6 + $0xae8] sm:$0xff] }
 0x526   : > { %v3622_v18 = vadd.f32 %v3621_v16, %v13650_v53  ;;  %v3878_v19 = vpop.f32.mrb[13].mxu1  ;;  %v10958_v21 = vpop.eup %10957  ;;  %10977 = vtanh.f32 %v3871_v4  ;;  %9270 = vmatpush1.bf16.msra.mxu1 %v9205_v2  ;;  %9208 = vmatprep.subr.bf16.mxu0 %v9207_v6  ;;  %v4906_v2 = vld [vmem:[#allocation6 + $0xad0] sm:$0xff] }
 0x527   : > { %v3879_v23 = vadd.f32 %v3878_v19, %v13650_v53  ;;  %v10960_v27 = vpop.eup %10959  ;;  %10979 = vtanh.f32 %v3620_v14  ;;  %4319 = vmatprep.mubr.f32.mxu0 %v10958_v21  ;;  %v3625_v28 = vpop.f32.mrb[14].mxu0  ;;  %9272 = vmatprep.subr.bf16.mxu1 %v9207_v6  ;;  %v4911_v6 = vld [vmem:[#allocation6 + $0xaf8] sm:$0xff]  ;;  %v9221_v14 = vpack.c.bf16 %v4906_v2, %v4904_v1  ;;  %v4908_v19 = vld [vmem:[#allocation6 + $0xae0] sm:$0xff] }
 0x528   : > { %v10962_v31 = vpop.eup %10961  ;;  %10981 = vtanh.f32 %v3622_v18  ;;  %4576 = vmatprep.mubr.f32.mxu1 %v10960_v27  ;;  %v3626_v32 = vadd.f32 %v3625_v28, %v13647_v43  ;;  %v3882_v33 = vpop.f32.mrb[14].mxu1  ;;  %4320 = vmatmul.mubr.f32.gmra.mrb[70].mxu0 %v10956_v17  ;;  %v9223_v18 = vpack.c.bf16 %v4911_v6, %v4909_v5 }
 0x529   : > { %v3627_v34 = vpop.f32.mrb[15].mxu0  ;;  %v10964_v35 = vpop.eup %10963  ;;  %10983 = vtanh.f32 %v3879_v23  ;;  %4577 = vmatmul.mubr.f32.gmra.mrb[70].mxu1 %v10962_v31  ;;  %9210 = vmatpush1.bf16.msra.mxu0 %v9209_v20  ;;  %v3883_v52 = vadd.f32 %v3882_v33, %v13647_v43  ;;  %v4913_v23 = vld [vmem:[#allocation6 + $0xb08] sm:$0xff] }
 0x52a   : > { %v3628_v49 = vadd.f32 %v3627_v34, %v13650_v53  ;;  %v3884_v47 = vpop.f32.mrb[15].mxu1  ;;  %v10966_v44 = vpop.eup %10965  ;;  %10985 = vtanh.f32 %v3877_v22  ;;  %9274 = vmatpush1.bf16.msra.mxu1 %v9209_v20  ;;  %9212 = vmatprep.subr.bf16.mxu0 %v9211_v24  ;;  %v4910_v20 = vld [vmem:[#allocation6 + $0xaf0] sm:$0xff] }
 0x52b   : > { %v3885_v51 = vadd.f32 %v3884_v47, %v13650_v53  ;;  %v10968_v37 = vpop.eup %10967  ;;  %10987 = vtanh.f32 %v3626_v32  ;;  %4325 = vmatprep.mubr.f32.mxu0 %v10966_v44  ;;  %v3631_v38 = vpop.f32.mrb[16].mxu0  ;;  %9276 = vmatprep.subr.bf16.mxu1 %v9211_v24  ;;  %v4915_v24 = vld [vmem:[#allocation6 + $0xb18] sm:$0xff]  ;;  %v9225_v32 = vpack.c.bf16 %v4910_v20, %v4908_v19  ;;  %v4912_v47 = vld [vmem:[#allocation6 + $0xb00] sm:$0xff] }
 0x52c   : > { %v10970_v41 = vpop.eup %10969  ;;  %10989 = vtanh.f32 %v3628_v49  ;;  %4582 = vmatprep.mubr.f32.mxu1 %v10968_v37  ;;  %v3632_v42 = vadd.f32 %v3631_v38, %v13647_v43  ;;  %v3888_v54 = vpop.f32.mrb[16].mxu1  ;;  %4326 = vmatmul.mubr.f32.gmra.mrb[72].mxu0 %v10964_v35  ;;  %v9227_v49 = vpack.c.bf16 %v4915_v24, %v4913_v23 }
 0x52d   : > { %v3633_v55 = vpop.f32.mrb[17].mxu0  ;;  %v10972_v56 = vpop.eup %10971  ;;  %10991 = vtanh.f32 %v3885_v51  ;;  %4583 = vmatmul.mubr.f32.gmra.mrb[72].mxu1 %v10970_v41  ;;  %9214 = vmatpush1.bf16.msra.mxu0 %v9213_v45  ;;  %v3889_v61 = vadd.f32 %v3888_v54, %v13647_v43  ;;  %v4917_v51 = vld [vmem:[#allocation6 + $0xb28] sm:$0xff] }
 0x52e   : > { %v3634_v57 = vadd.f32 %v3633_v55, %v13650_v53  ;;  %v3890_v58 = vpop.f32.mrb[17].mxu1  ;;  %v10974_v60 = vpop.eup %10973  ;;  %10993 = vtanh.f32 %v3883_v52  ;;  %9278 = vmatpush1.bf16.msra.mxu1 %v9213_v45  ;;  %9216 = vmatprep.subr.bf16.mxu0 %v9215_v50  ;;  %v4914_v45 = vld [vmem:[#allocation6 + $0xb10] sm:$0xff] }
 0x52f   : > { %v3891_v62 = vadd.f32 %v3890_v58, %v13650_v53  ;;  %v10976_v3 = vpop.eup %10975  ;;  %10995 = vtanh.f32 %v3632_v42  ;;  %4331 = vmatprep.mubr.f32.mxu0 %v10974_v60  ;;  %v3637_v4 = vpop.f32.mrb[18].mxu0  ;;  %9280 = vmatprep.subr.bf16.mxu1 %v9215_v50  ;;  %v4919_v50 = vld [vmem:[#allocation6 + $0xb38] sm:$0xff]  ;;  %v9229_v42 = vpack.c.bf16 %v4914_v45, %v4912_v47  ;;  %v4916_v58 = vld [vmem:[#allocation6 + $0xb20] sm:$0xff] }
 0x530   : > { %v10978_v7 = vpop.eup %10977  ;;  %10997 = vtanh.f32 %v3634_v57  ;;  %4588 = vmatprep.mubr.f32.mxu1 %v10976_v3  ;;  %v3638_v8 = vadd.f32 %v3637_v4, %v13647_v43  ;;  %v3894_v9 = vpop.f32.mrb[18].mxu1  ;;  %4332 = vmatmul.mubr.f32.gmra.mrb[74].mxu0 %v10972_v56  ;;  %v9231_v57 = vpack.c.bf16 %v4919_v50, %v4917_v51 }
 0x531   : > { %v3639_v10 = vpop.f32.mrb[19].mxu0  ;;  %v10980_v11 = vpop.eup %10979  ;;  %10999 = vtanh.f32 %v3891_v62  ;;  %4589 = vmatmul.mubr.f32.gmra.mrb[74].mxu1 %v10978_v7  ;;  %9218 = vmatpush1.bf16.msra.mxu0 %v9217_v59  ;;  %v3895_v16 = vadd.f32 %v3894_v9, %v13647_v43  ;;  %v4921_v62 = vld [vmem:[#allocation6 + $0xb48] sm:$0xff] }
 0x532   : > { %v3640_v12 = vadd.f32 %v3639_v10, %v13650_v53  ;;  %v3896_v13 = vpop.f32.mrb[19].mxu1  ;;  %v10982_v15 = vpop.eup %10981  ;;  %11001 = vtanh.f32 %v3889_v61  ;;  %9282 = vmatpush1.bf16.msra.mxu1 %v9217_v59  ;;  %9220 = vmatprep.subr.bf16.mxu0 %v9219_v63  ;;  %v4918_v59 = vld [vmem:[#allocation6 + $0xb30] sm:$0xff] }
 0x533   : > { %v3897_v17 = vadd.f32 %v3896_v13, %v13650_v53  ;;  %v10984_v21 = vpop.eup %10983  ;;  %11003 = vtanh.f32 %v3638_v8  ;;  %4337 = vmatprep.mubr.f32.mxu0 %v10982_v15  ;;  %v3643_v22 = vpop.f32.mrb[20].mxu0  ;;  %9284 = vmatprep.subr.bf16.mxu1 %v9219_v63  ;;  %v4923_v63 = vld [vmem:[#allocation6 + $0xb58] sm:$0xff]  ;;  %v9233_v8 = vpack.c.bf16 %v4918_v59, %v4916_v58  ;;  %v4920_v13 = vld [vmem:[#allocation6 + $0xb40] sm:$0xff] }
 0x534   : > { %v10986_v25 = vpop.eup %10985  ;;  %11005 = vtanh.f32 %v3640_v12  ;;  %4594 = vmatprep.mubr.f32.mxu1 %v10984_v21  ;;  %v3644_v26 = vadd.f32 %v3643_v22, %v13647_v43  ;;  %v3900_v27 = vpop.f32.mrb[20].mxu1  ;;  %4338 = vmatmul.mubr.f32.gmra.mrb[76].mxu0 %v10980_v11  ;;  %v9235_v12 = vpack.c.bf16 %v4923_v63, %v4921_v62 }
 0x535   : > { %v3645_v28 = vpop.f32.mrb[21].mxu0  ;;  %v10988_v29 = vpop.eup %10987  ;;  %11007 = vtanh.f32 %v3897_v17  ;;  %4595 = vmatmul.mubr.f32.gmra.mrb[76].mxu1 %v10986_v25  ;;  %9222 = vmatpush1.bf16.msra.mxu0 %v9221_v14  ;;  %v3901_v34 = vadd.f32 %v3900_v27, %v13647_v43  ;;  %v4925_v17 = vld [vmem:[#allocation6 + $0xb68] sm:$0xff] }
 0x536   : > { %v3646_v30 = vadd.f32 %v3645_v28, %v13650_v53  ;;  %v3902_v31 = vpop.f32.mrb[21].mxu1  ;;  %v10990_v33 = vpop.eup %10989  ;;  %11009 = vtanh.f32 %v3895_v16  ;;  %9286 = vmatpush1.bf16.msra.mxu1 %v9221_v14  ;;  %9224 = vmatprep.subr.bf16.mxu0 %v9223_v18  ;;  %v4922_v14 = vld [vmem:[#allocation6 + $0xb50] sm:$0xff] }
 0x537   : > { %v3903_v35 = vadd.f32 %v3902_v31, %v13650_v53  ;;  %v10992_v44 = vpop.eup %10991  ;;  %11011 = vtanh.f32 %v3644_v26  ;;  %4343 = vmatprep.mubr.f32.mxu0 %v10990_v33  ;;  %v3649_v52 = vpop.f32.mrb[22].mxu0  ;;  %9288 = vmatprep.subr.bf16.mxu1 %v9223_v18  ;;  %v4927_v18 = vld [vmem:[#allocation6 + $0xb78] sm:$0xff]  ;;  %v9237_v26 = vpack.c.bf16 %v4922_v14, %v4920_v13  ;;  %v4924_v31 = vld [vmem:[#allocation6 + $0xb60] sm:$0xff] }
 0x538   : > { %v10994_v0 = vpop.eup %10993  ;;  %11013 = vtanh.f32 %v3646_v30  ;;  %4600 = vmatprep.mubr.f32.mxu1 %v10992_v44  ;;  %v3650_v36 = vadd.f32 %v3649_v52, %v13647_v43  ;;  %v3906_v37 = vpop.f32.mrb[22].mxu1  ;;  %4344 = vmatmul.mubr.f32.gmra.mrb[78].mxu0 %v10988_v29  ;;  %v9239_v30 = vpack.c.bf16 %v4927_v18, %v4925_v17 }
 0x539   : > { %v3651_v38 = vpop.f32.mrb[23].mxu0  ;;  %v10996_v39 = vpop.eup %10995  ;;  %11015 = vtanh.f32 %v3903_v35  ;;  %4601 = vmatmul.mubr.f32.gmra.mrb[78].mxu1 %v10994_v0  ;;  %9226 = vmatpush1.bf16.msra.mxu0 %v9225_v32  ;;  %v3907_v55 = vadd.f32 %v3906_v37, %v13647_v43  ;;  %v4929_v35 = vld [vmem:[#allocation6 + $0xb88] sm:$0xff] }
 0x53a   : > { %v3652_v40 = vadd.f32 %v3651_v38, %v13650_v53  ;;  %v3908_v41 = vpop.f32.mrb[23].mxu1  ;;  %v10998_v54 = vpop.eup %10997  ;;  %11017 = vtanh.f32 %v3901_v34  ;;  %9290 = vmatpush1.bf16.msra.mxu1 %v9225_v32  ;;  %9228 = vmatprep.subr.bf16.mxu0 %v9227_v49  ;;  %v4926_v32 = vld [vmem:[#allocation6 + $0xb70] sm:$0xff] }
 0x53b   : > { %v3909_v56 = vadd.f32 %v3908_v41, %v13650_v53  ;;  %v11000_v60 = vpop.eup %10999  ;;  %11019 = vtanh.f32 %v3650_v36  ;;  %4349 = vmatprep.mubr.f32.mxu0 %v10998_v54  ;;  %v3655_v61 = vpop.f32.mrb[24].mxu0  ;;  %9292 = vmatprep.subr.bf16.mxu1 %v9227_v49  ;;  %v4931_v49 = vld [vmem:[#allocation6 + $0xb98] sm:$0xff]  ;;  %v9241_v36 = vpack.c.bf16 %v4926_v32, %v4924_v31  ;;  %v4928_v41 = vld [vmem:[#allocation6 + $0xb80] sm:$0xff] }
 0x53c   : > { %v11002_v1 = vpop.eup %11001  ;;  %11021 = vtanh.f32 %v3652_v40  ;;  %4606 = vmatprep.mubr.f32.mxu1 %v11000_v60  ;;  %v3656_v2 = vadd.f32 %v3655_v61, %v13647_v43  ;;  %v3912_v3 = vpop.f32.mrb[24].mxu1  ;;  %4350 = vmatmul.mubr.f32.gmra.mrb[80].mxu0 %v10996_v39  ;;  %v9243_v40 = vpack.c.bf16 %v4931_v49, %v4929_v35 }
 0x53d   : > { %v3657_v4 = vpop.f32.mrb[25].mxu0  ;;  %v11004_v5 = vpop.eup %11003  ;;  %11023 = vtanh.f32 %v3909_v56  ;;  %4607 = vmatmul.mubr.f32.gmra.mrb[80].mxu1 %v11002_v1  ;;  %9230 = vmatpush1.bf16.msra.mxu0 %v9229_v42  ;;  %v3913_v10 = vadd.f32 %v3912_v3, %v13647_v43  ;;  %v4933_v56 = vld [vmem:[#allocation6 + $0xba8] sm:$0xff] }
 0x53e   : > { %v3658_v6 = vadd.f32 %v3657_v4, %v13650_v53  ;;  %v3914_v7 = vpop.f32.mrb[25].mxu1  ;;  %v11006_v9 = vpop.eup %11005  ;;  %11025 = vtanh.f32 %v3907_v55  ;;  %9294 = vmatpush1.bf16.msra.mxu1 %v9229_v42  ;;  %9232 = vmatprep.subr.bf16.mxu0 %v9231_v57  ;;  %v4930_v42 = vld [vmem:[#allocation6 + $0xb90] sm:$0xff] }
 0x53f   : > { %v3915_v11 = vadd.f32 %v3914_v7, %v13650_v53  ;;  %v11008_v15 = vpop.eup %11007  ;;  %11027 = vtanh.f32 %v3656_v2  ;;  %4355 = vmatprep.mubr.f32.mxu0 %v11006_v9  ;;  %v3661_v16 = vpop.f32.mrb[26].mxu0  ;;  %9296 = vmatprep.subr.bf16.mxu1 %v9231_v57  ;;  %v4935_v57 = vld [vmem:[#allocation6 + $0xbb8] sm:$0xff]  ;;  %v9245_v2 = vpack.c.bf16 %v4930_v42, %v4928_v41  ;;  %v4932_v7 = vld [vmem:[#allocation6 + $0xba0] sm:$0xff] }
 0x540   : > { %v11010_v19 = vpop.eup %11009  ;;  %11029 = vtanh.f32 %v3658_v6  ;;  %4612 = vmatprep.mubr.f32.mxu1 %v11008_v15  ;;  %v3662_v20 = vadd.f32 %v3661_v16, %v13647_v43  ;;  %v3918_v21 = vpop.f32.mrb[26].mxu1  ;;  %4356 = vmatmul.mubr.f32.gmra.mrb[82].mxu0 %v11004_v5  ;;  %v9247_v6 = vpack.c.bf16 %v4935_v57, %v4933_v56 }
 0x541   : > { %v3663_v22 = vpop.f32.mrb[27].mxu0  ;;  %v11012_v23 = vpop.eup %11011  ;;  %11031 = vtanh.f32 %v3915_v11  ;;  %4613 = vmatmul.mubr.f32.gmra.mrb[82].mxu1 %v11010_v19  ;;  %9234 = vmatpush1.bf16.msra.mxu0 %v9233_v8  ;;  %v3919_v28 = vadd.f32 %v3918_v21, %v13647_v43  ;;  %v4937_v11 = vld [vmem:[#allocation6 + $0xbc8] sm:$0xff] }
 0x542   : > { %v3664_v24 = vadd.f32 %v3663_v22, %v13650_v53  ;;  %v3920_v25 = vpop.f32.mrb[27].mxu1  ;;  %v11014_v27 = vpop.eup %11013  ;;  %11033 = vtanh.f32 %v3913_v10  ;;  %9298 = vmatpush1.bf16.msra.mxu1 %v9233_v8  ;;  %9236 = vmatprep.subr.bf16.mxu0 %v9235_v12  ;;  %v4934_v8 = vld [vmem:[#allocation6 + $0xbb0] sm:$0xff] }
 0x543   : > { %v3921_v29 = vadd.f32 %v3920_v25, %v13650_v53  ;;  %v11016_v33 = vpop.eup %11015  ;;  %11035 = vtanh.f32 %v3662_v20  ;;  %4361 = vmatprep.mubr.f32.mxu0 %v11014_v27  ;;  %v3667_v34 = vpop.f32.mrb[28].mxu0  ;;  %9300 = vmatprep.subr.bf16.mxu1 %v9235_v12  ;;  %v4939_v12 = vld [vmem:[#allocation6 + $0xbd8] sm:$0xff]  ;;  %v9249_v20 = vpack.c.bf16 %v4934_v8, %v4932_v7 }
 0x544   : > { %v11018_v47 = vpop.eup %11017  ;;  %11037 = vtanh.f32 %v3664_v24  ;;  %4618 = vmatprep.mubr.f32.mxu1 %v11016_v33  ;;  %v3668_v45 = vadd.f32 %v3667_v34, %v13647_v43  ;;  %v3924_v44 = vpop.f32.mrb[28].mxu1  ;;  %4362 = vmatmul.mubr.f32.gmra.mrb[84].mxu0 %v11012_v23  ;;  %v9251_v24 = vpack.c.bf16 %v4939_v12, %v4937_v11 }
 0x545   : > { %v3669_v52 = vpop.f32.mrb[29].mxu0  ;;  %v11020_v51 = vpop.eup %11019  ;;  %11039 = vtanh.f32 %v3921_v29  ;;  %4619 = vmatmul.mubr.f32.gmra.mrb[84].mxu1 %v11018_v47  ;;  %9238 = vmatpush1.bf16.msra.mxu0 %v9237_v26  ;;  %v3925_v38 = vadd.f32 %v3924_v44, %v13647_v43 }
 0x546   : > { %v3670_v50 = vadd.f32 %v3669_v52, %v13650_v53  ;;  %v3926_v0 = vpop.f32.mrb[29].mxu1  ;;  %v11022_v37 = vpop.eup %11021  ;;  %11041 = vtanh.f32 %v3919_v28  ;;  %9302 = vmatpush1.bf16.msra.mxu1 %v9237_v26  ;;  %9240 = vmatprep.subr.bf16.mxu0 %v9239_v30 }
 0x547   : > { %v3927_v39 = vadd.f32 %v3926_v0, %v13650_v53  ;;  %v11024_v54 = vpop.eup %11023  ;;  %11043 = vtanh.f32 %v3668_v45  ;;  %4367 = vmatprep.mubr.f32.mxu0 %v11022_v37  ;;  %v3673_v55 = vpop.f32.mrb[30].mxu0  ;;  %9304 = vmatprep.subr.bf16.mxu1 %v9239_v30 }
 0x548   : > { %v11026_v58 = vpop.eup %11025  ;;  %11045 = vtanh.f32 %v3670_v50  ;;  %4624 = vmatprep.mubr.f32.mxu1 %v11024_v54  ;;  %v3674_v59 = vadd.f32 %v3673_v55, %v13647_v43  ;;  %v3930_v60 = vpop.f32.mrb[30].mxu1  ;;  %4368 = vmatmul.mubr.f32.gmra.mrb[86].mxu0 %v11020_v51 }
 0x549   : > { %v3675_v61 = vpop.f32.mrb[31].mxu0  ;;  %v11028_v62 = vpop.eup %11027  ;;  %11047 = vtanh.f32 %v3927_v39  ;;  %4625 = vmatmul.mubr.f32.gmra.mrb[86].mxu1 %v11026_v58  ;;  %9242 = vmatpush1.bf16.msra.mxu0 %v9241_v36  ;;  %v3931_v4 = vadd.f32 %v3930_v60, %v13647_v43 }
 0x54a   : > { %v3676_v63 = vadd.f32 %v3675_v61, %v13650_v53  ;;  %v3932_v1 = vpop.f32.mrb[31].mxu1  ;;  %v11030_v3 = vpop.eup %11029  ;;  %11049 = vtanh.f32 %v3925_v38  ;;  %9306 = vmatpush1.bf16.msra.mxu1 %v9241_v36  ;;  %9244 = vmatprep.subr.bf16.mxu0 %v9243_v40 }
 0x54b   : > { %v3933_v5 = vadd.f32 %v3932_v1, %v13650_v53  ;;  %v11032_v9 = vpop.eup %11031  ;;  %11051 = vtanh.f32 %v3674_v59  ;;  %4373 = vmatprep.mubr.f32.mxu0 %v11030_v3  ;;  %v3679_v10 = vpop.f32.mrb[32].mxu0  ;;  %9308 = vmatprep.subr.bf16.mxu1 %v9243_v40 }
 0x54c   : > { %v11034_v13 = vpop.eup %11033  ;;  %11053 = vtanh.f32 %v3676_v63  ;;  %4630 = vmatprep.mubr.f32.mxu1 %v11032_v9  ;;  %v3680_v14 = vadd.f32 %v3679_v10, %v13647_v43  ;;  %v3936_v15 = vpop.f32.mrb[32].mxu1  ;;  %4374 = vmatmul.mubr.f32.gmra.mrb[88].mxu0 %v11028_v62 }
 0x54d   : > { %v3681_v16 = vpop.f32.mrb[33].mxu0  ;;  %v11036_v17 = vpop.eup %11035  ;;  %11055 = vtanh.f32 %v3933_v5  ;;  %4631 = vmatmul.mubr.f32.gmra.mrb[88].mxu1 %v11034_v13  ;;  %9246 = vmatpush1.bf16.msra.mxu0 %v9245_v2  ;;  %v3937_v22 = vadd.f32 %v3936_v15, %v13647_v43 }
 0x54e   : > { %v3682_v18 = vadd.f32 %v3681_v16, %v13650_v53  ;;  %v3938_v19 = vpop.f32.mrb[33].mxu1  ;;  %v11038_v21 = vpop.eup %11037  ;;  %11057 = vtanh.f32 %v3931_v4  ;;  %9310 = vmatpush1.bf16.msra.mxu1 %v9245_v2  ;;  %9248 = vmatprep.subr.bf16.mxu0 %v9247_v6 }
 0x54f   : > { %v3939_v23 = vadd.f32 %v3938_v19, %v13650_v53  ;;  %v11040_v25 = vpop.eup %11039  ;;  %11059 = vtanh.f32 %v3680_v14  ;;  %4379 = vmatprep.mubr.f32.mxu0 %v11038_v21  ;;  %v3685_v26 = vpop.f32.mrb[34].mxu0  ;;  %9312 = vmatprep.subr.bf16.mxu1 %v9247_v6 }
 0x550   : > { %v11042_v27 = vpop.eup %11041  ;;  %11061 = vtanh.f32 %v3682_v18  ;;  %4636 = vmatprep.mubr.f32.mxu1 %v11040_v25  ;;  %v3686_v28 = vadd.f32 %v3685_v26, %v13647_v43  ;;  %v3942_v29 = vpop.f32.mrb[34].mxu1  ;;  %4380 = vmatmul.mubr.f32.gmra.mrb[90].mxu0 %v11036_v17 }
 0x551   : > { %v3687_v30 = vpop.f32.mrb[35].mxu0  ;;  %v11044_v31 = vpop.eup %11043  ;;  %11063 = vtanh.f32 %v3939_v23  ;;  %4637 = vmatmul.mubr.f32.gmra.mrb[90].mxu1 %v11042_v27  ;;  %9250 = vmatpush1.bf16.msra.mxu0 %v9249_v20  ;;  %v3943_v35 = vadd.f32 %v3942_v29, %v13647_v43 }
 0x552   : > { %v3688_v32 = vadd.f32 %v3687_v30, %v13650_v53  ;;  %v3944_v33 = vpop.f32.mrb[35].mxu1  ;;  %v11046_v34 = vpop.eup %11045  ;;  %11065 = vtanh.f32 %v3937_v22  ;;  %9314 = vmatpush1.bf16.msra.mxu1 %v9249_v20  ;;  %9252 = vmatprep.subr.bf16.mxu0 %v9251_v24 }
 0x553   : > { %v3945_v49 = vadd.f32 %v3944_v33, %v13650_v53  ;;  %v11048_v47 = vpop.eup %11047  ;;  %11067 = vtanh.f32 %v3686_v28  ;;  %4385 = vmatprep.mubr.f32.mxu0 %v11046_v34  ;;  %v3691_v45 = vpop.f32.mrb[36].mxu0  ;;  %9316 = vmatprep.subr.bf16.mxu1 %v9251_v24 }
 0x554   : > { %v11050_v44 = vpop.eup %11049  ;;  %11069 = vtanh.f32 %v3688_v32  ;;  %4642 = vmatprep.mubr.f32.mxu1 %v11048_v47  ;;  %v3692_v52 = vadd.f32 %v3691_v45, %v13647_v43  ;;  %v3948_v51 = vpop.f32.mrb[36].mxu1  ;;  %4386 = vmatmul.mubr.f32.gmra.mrb[92].mxu0 %v11044_v31 }
 0x555   : > { %v3693_v50 = vpop.f32.mrb[37].mxu0  ;;  %v11052_v0 = vpop.eup %11051  ;;  %11071 = vtanh.f32 %v3945_v49  ;;  %4643 = vmatmul.mubr.f32.gmra.mrb[92].mxu1 %v11050_v44  ;;  %v3949_v39 = vadd.f32 %v3948_v51, %v13647_v43 }
 0x556   : > { %v3694_v36 = vadd.f32 %v3693_v50, %v13650_v53  ;;  %v3950_v37 = vpop.f32.mrb[37].mxu1  ;;  %v11054_v38 = vpop.eup %11053  ;;  %11073 = vtanh.f32 %v3943_v35 }
 0x557   : > { %v3951_v40 = vadd.f32 %v3950_v37, %v13650_v53  ;;  %v11056_v41 = vpop.eup %11055  ;;  %11075 = vtanh.f32 %v3692_v52  ;;  %4391 = vmatprep.mubr.f32.mxu0 %v11054_v38  ;;  %v3697_v42 = vpop.f32.mrb[38].mxu0 }
 0x558   : > { %v11058_v54 = vpop.eup %11057  ;;  %11077 = vtanh.f32 %v3694_v36  ;;  %4648 = vmatprep.mubr.f32.mxu1 %v11056_v41  ;;  %v3698_v55 = vadd.f32 %v3697_v42, %v13647_v43  ;;  %v3954_v56 = vpop.f32.mrb[38].mxu1  ;;  %4392 = vmatmul.mubr.f32.gmra.mrb[94].mxu0 %v11052_v0 }
 0x559   : > { %v3699_v57 = vpop.f32.mrb[39].mxu0  ;;  %v11060_v58 = vpop.eup %11059  ;;  %11079 = vtanh.f32 %v3951_v40  ;;  %4649 = vmatmul.mubr.f32.gmra.mrb[94].mxu1 %v11058_v54  ;;  %v3955_v62 = vadd.f32 %v3954_v56, %v13647_v43 }
 0x55a   : > { %v3700_v59 = vadd.f32 %v3699_v57, %v13650_v53  ;;  %v3956_v60 = vpop.f32.mrb[39].mxu1  ;;  %v11062_v61 = vpop.eup %11061  ;;  %11081 = vtanh.f32 %v3949_v39 }
 0x55b   : > { %v3957_v63 = vadd.f32 %v3956_v60, %v13650_v53  ;;  %v11064_v1 = vpop.eup %11063  ;;  %11083 = vtanh.f32 %v3698_v55  ;;  %4397 = vmatprep.mubr.f32.mxu0 %v11062_v61  ;;  %v3703_v2 = vpop.f32.mrb[40].mxu0 }
 0x55c   : > { %v11066_v3 = vpop.eup %11065  ;;  %11085 = vtanh.f32 %v3700_v59  ;;  %4654 = vmatprep.mubr.f32.mxu1 %v11064_v1  ;;  %v3704_v4 = vadd.f32 %v3703_v2, %v13647_v43  ;;  %v3960_v5 = vpop.f32.mrb[40].mxu1  ;;  %4398 = vmatmul.mubr.f32.gmra.mrb[96].mxu0 %v11060_v58 }
 0x55d   : > { %v3705_v6 = vpop.f32.mrb[41].mxu0  ;;  %v11068_v7 = vpop.eup %11067  ;;  %11087 = vtanh.f32 %v3957_v63  ;;  %4655 = vmatmul.mubr.f32.gmra.mrb[96].mxu1 %v11066_v3  ;;  %v3961_v11 = vadd.f32 %v3960_v5, %v13647_v43 }
 0x55e   : > { %v3706_v8 = vadd.f32 %v3705_v6, %v13650_v53  ;;  %v3962_v9 = vpop.f32.mrb[41].mxu1  ;;  %v11070_v10 = vpop.eup %11069  ;;  %11089 = vtanh.f32 %v3955_v62 }
 0x55f   : > { %v3963_v12 = vadd.f32 %v3962_v9, %v13650_v53  ;;  %v11072_v13 = vpop.eup %11071  ;;  %11091 = vtanh.f32 %v3704_v4  ;;  %4403 = vmatprep.mubr.f32.mxu0 %v11070_v10  ;;  %v3709_v14 = vpop.f32.mrb[42].mxu0 }
 0x560   : > { %v11074_v15 = vpop.eup %11073  ;;  %11093 = vtanh.f32 %v3706_v8  ;;  %4660 = vmatprep.mubr.f32.mxu1 %v11072_v13  ;;  %v3710_v16 = vadd.f32 %v3709_v14, %v13647_v43  ;;  %v3966_v17 = vpop.f32.mrb[42].mxu1  ;;  %4404 = vmatmul.mubr.f32.gmra.mrb[98].mxu0 %v11068_v7 }
 0x561   : > { %v3711_v18 = vpop.f32.mrb[43].mxu0  ;;  %v11076_v19 = vpop.eup %11075  ;;  %11095 = vtanh.f32 %v3963_v12  ;;  %4661 = vmatmul.mubr.f32.gmra.mrb[98].mxu1 %v11074_v15  ;;  %v3967_v23 = vadd.f32 %v3966_v17, %v13647_v43  ;;  %v4936_v15 = vld [vmem:[#allocation6 + $0xbc0] sm:$0xff] }
 0x562   : > { %v3712_v20 = vadd.f32 %v3711_v18, %v13650_v53  ;;  %v3968_v21 = vpop.f32.mrb[43].mxu1  ;;  %v11078_v22 = vpop.eup %11077  ;;  %11097 = vtanh.f32 %v3961_v11 }
 0x563   : > { %v3969_v24 = vadd.f32 %v3968_v21, %v13650_v53  ;;  %v11080_v25 = vpop.eup %11079  ;;  %11099 = vtanh.f32 %v3710_v16  ;;  %4409 = vmatprep.mubr.f32.mxu0 %v11078_v22  ;;  %v3715_v26 = vpop.f32.mrb[44].mxu0  ;;  %v4938_v16 = vld [vmem:[#allocation6 + $0xbd0] sm:$0xff] }
 0x564   : > { %v11082_v27 = vpop.eup %11081  ;;  %11101 = vtanh.f32 %v3712_v20  ;;  %4666 = vmatprep.mubr.f32.mxu1 %v11080_v25  ;;  %v3716_v28 = vadd.f32 %v3715_v26, %v13647_v43  ;;  %v3972_v29 = vpop.f32.mrb[44].mxu1  ;;  %4410 = vmatmul.mubr.f32.gmra.mrb[100].mxu0 %v11076_v19  ;;  %v9253_v21 = vpack.c.bf16 %v4938_v16, %v4936_v15 }
 0x565   : > { %v3717_v30 = vpop.f32.mrb[45].mxu0  ;;  %v11084_v31 = vpop.eup %11083  ;;  %11103 = vtanh.f32 %v3969_v24  ;;  %4667 = vmatmul.mubr.f32.gmra.mrb[100].mxu1 %v11082_v27  ;;  %v3973_v35 = vadd.f32 %v3972_v29, %v13647_v43 }
 0x566   : > { %v3718_v32 = vadd.f32 %v3717_v30, %v13650_v53  ;;  %v3974_v33 = vpop.f32.mrb[45].mxu1  ;;  %v11086_v34 = vpop.eup %11085  ;;  %11105 = vtanh.f32 %v3967_v23  ;;  %9254 = vmatpush1.bf16.msra.mxu0 %v9253_v21  ;;  %9318 = vmatpush1.bf16.msra.mxu1 %v9253_v21 }
 0x567   : > { %v3975_v49 = vadd.f32 %v3974_v33, %v13650_v53  ;;  %v11088_v47 = vpop.eup %11087  ;;  %11107 = vtanh.f32 %v3716_v28  ;;  %4415 = vmatprep.mubr.f32.mxu0 %v11086_v34  ;;  %v3721_v45 = vpop.f32.mrb[46].mxu0 }
 0x568   : > { %v11090_v44 = vpop.eup %11089  ;;  %11109 = vtanh.f32 %v3718_v32  ;;  %4672 = vmatprep.mubr.f32.mxu1 %v11088_v47  ;;  %v3722_v52 = vadd.f32 %v3721_v45, %v13647_v43  ;;  %v3978_v51 = vpop.f32.mrb[46].mxu1  ;;  %4416 = vmatmul.mubr.f32.gmra.mrb[102].mxu0 %v11084_v31  ;;  %v4941_v47 = vld [vmem:[#allocation6 + $0xbe8] sm:$0xff]  ;;  %v4943_v45 = vld [vmem:[#allocation6 + $0xbf8] sm:$0xff] }
 0x569   : > { %v3723_v50 = vpop.f32.mrb[47].mxu0  ;;  %v11092_v0 = vpop.eup %11091  ;;  %11111 = vtanh.f32 %v3975_v49  ;;  %4673 = vmatmul.mubr.f32.gmra.mrb[102].mxu1 %v11090_v44  ;;  %v3979_v39 = vadd.f32 %v3978_v51, %v13647_v43 }
 0x56a   : > { %v3724_v36 = vadd.f32 %v3723_v50, %v13650_v53  ;;  %v3980_v37 = vpop.f32.mrb[47].mxu1  ;;  %v11094_v38 = vpop.eup %11093  ;;  %11113 = vtanh.f32 %v3973_v35  ;;  %v9255_v50 = vpack.c.bf16 %v4943_v45, %v4941_v47 }
 0x56b   : > { %v3981_v40 = vadd.f32 %v3980_v37, %v13650_v53  ;;  %v11096_v41 = vpop.eup %11095  ;;  %11115 = vtanh.f32 %v3722_v52  ;;  %4421 = vmatprep.mubr.f32.mxu0 %v11094_v38  ;;  %v3727_v42 = vpop.f32.mrb[48].mxu0  ;;  %v4940_v37 = vld [vmem:[#allocation6 + $0xbe0] sm:$0xff]  ;;  %v4942_v38 = vld [vmem:[#allocation6 + $0xbf0] sm:$0xff] }
 0x56c   : > { %v11098_v54 = vpop.eup %11097  ;;  %11117 = vtanh.f32 %v3724_v36  ;;  %4678 = vmatprep.mubr.f32.mxu1 %v11096_v41  ;;  %v3728_v55 = vadd.f32 %v3727_v42, %v13647_v43  ;;  %v3984_v56 = vpop.f32.mrb[48].mxu1  ;;  %4422 = vmatmul.mubr.f32.gmra.mrb[104].mxu0 %v11092_v0 }
 0x56d   : > { %v3729_v57 = vpop.f32.mrb[49].mxu0  ;;  %v11100_v58 = vpop.eup %11099  ;;  %11119 = vtanh.f32 %v3981_v40  ;;  %4679 = vmatmul.mubr.f32.gmra.mrb[104].mxu1 %v11098_v54  ;;  %v3985_v62 = vadd.f32 %v3984_v56, %v13647_v43  ;;  %v9257_v54 = vpack.c.bf16 %v4942_v38, %v4940_v37  ;;  %9256 = vmatprep.subr.bf16.mxu0 %v9255_v50  ;;  %v5601_v38 = vld [vmem:[#allocation6 + $0xc08] sm:$0xff] }
 0x56e   : > { %v3730_v59 = vadd.f32 %v3729_v57, %v13650_v53  ;;  %v3986_v60 = vpop.f32.mrb[49].mxu1  ;;  %v11102_v61 = vpop.eup %11101  ;;  %11121 = vtanh.f32 %v3979_v39  ;;  %9320 = vmatprep.subr.bf16.mxu1 %v9255_v50 }
 0x56f   : > { %v3987_v63 = vadd.f32 %v3986_v60, %v13650_v53  ;;  %v11104_v1 = vpop.eup %11103  ;;  %11123 = vtanh.f32 %v3728_v55  ;;  %4427 = vmatprep.mubr.f32.mxu0 %v11102_v61  ;;  %v3733_v2 = vpop.f32.mrb[50].mxu0  ;;  %9258 = vmatpush1.bf16.msra.mxu0 %v9257_v54 }
 0x570   : > { %v11106_v3 = vpop.eup %11105  ;;  %11125 = vtanh.f32 %v3730_v59  ;;  %4684 = vmatprep.mubr.f32.mxu1 %v11104_v1  ;;  %v3734_v4 = vadd.f32 %v3733_v2, %v13647_v43  ;;  %v3990_v5 = vpop.f32.mrb[50].mxu1  ;;  %4428 = vmatmul.mubr.f32.gmra.mrb[106].mxu0 %v11100_v58 }
 0x571   : > { %v3735_v6 = vpop.f32.mrb[51].mxu0  ;;  %v11108_v7 = vpop.eup %11107  ;;  %11127 = vtanh.f32 %v3987_v63  ;;  %4685 = vmatmul.mubr.f32.gmra.mrb[106].mxu1 %v11106_v3  ;;  %v3991_v11 = vadd.f32 %v3990_v5, %v13647_v43 }
 0x572   : > { %v3736_v8 = vadd.f32 %v3735_v6, %v13650_v53  ;;  %v3992_v9 = vpop.f32.mrb[51].mxu1  ;;  %v11110_v10 = vpop.eup %11109  ;;  %11129 = vtanh.f32 %v3985_v62  ;;  %9322 = vmatpush1.bf16.msra.mxu1 %v9257_v54 }
 0x573   : > { %v3993_v12 = vadd.f32 %v3992_v9, %v13650_v53  ;;  %v11112_v13 = vpop.eup %11111  ;;  %11131 = vtanh.f32 %v3734_v4  ;;  %4433 = vmatprep.mubr.f32.mxu0 %v11110_v10  ;;  %v3739_v14 = vpop.f32.mrb[52].mxu0 }
 0x574   : > { %v11114_v17 = vpop.eup %11113  ;;  %11133 = vtanh.f32 %v3736_v8  ;;  %4690 = vmatprep.mubr.f32.mxu1 %v11112_v13  ;;  %v3740_v18 = vadd.f32 %v3739_v14, %v13647_v43  ;;  %v3996_v19 = vpop.f32.mrb[52].mxu1  ;;  %4434 = vmatmul.mubr.f32.gmra.mrb[108].mxu0 %v11108_v7 }
 0x575   : > { %v3741_v20 = vpop.f32.mrb[53].mxu0  ;;  %v11116_v22 = vpop.eup %11115  ;;  %11135 = vtanh.f32 %v3993_v12  ;;  %4691 = vmatmul.mubr.f32.gmra.mrb[108].mxu1 %v11114_v17  ;;  %v3997_v26 = vadd.f32 %v3996_v19, %v13647_v43 }
 0x576   : > { %v3742_v23 = vadd.f32 %v3741_v20, %v13650_v53  ;;  %v3998_v24 = vpop.f32.mrb[53].mxu1  ;;  %v11118_v25 = vpop.eup %11117  ;;  %11137 = vtanh.f32 %v3991_v11 }
 0x577   : > { %v3999_v27 = vadd.f32 %v3998_v24, %v13650_v53  ;;  %v11120_v28 = vpop.eup %11119  ;;  %11139 = vtanh.f32 %v3740_v18  ;;  %4439 = vmatprep.mubr.f32.mxu0 %v11118_v25  ;;  %v3745_v29 = vpop.f32.mrb[54].mxu0 }
 0x578   : > { %v11122_v30 = vpop.eup %11121  ;;  %11141 = vtanh.f32 %v3742_v23  ;;  %4696 = vmatprep.mubr.f32.mxu1 %v11120_v28  ;;  %v3746_v31 = vadd.f32 %v3745_v29, %v13647_v43  ;;  %v4002_v32 = vpop.f32.mrb[54].mxu1  ;;  %4440 = vmatmul.mubr.f32.gmra.mrb[110].mxu0 %v11116_v22 }
 0x579   : > { %v3747_v33 = vpop.f32.mrb[55].mxu0  ;;  %v11124_v34 = vpop.eup %11123  ;;  %11143 = vtanh.f32 %v3999_v27  ;;  %4697 = vmatmul.mubr.f32.gmra.mrb[110].mxu1 %v11122_v30  ;;  %v4003_v52 = vadd.f32 %v4002_v32, %v13647_v43 }
 0x57a   : > { %v3748_v35 = vadd.f32 %v3747_v33, %v13650_v53  ;;  %v4004_v49 = vpop.f32.mrb[55].mxu1  ;;  %v11126_v44 = vpop.eup %11125  ;;  %11145 = vtanh.f32 %v3997_v26 }
 0x57b   : > { %v4005_v51 = vadd.f32 %v4004_v49, %v13650_v53  ;;  %v11128_v0 = vpop.eup %11127  ;;  %11147 = vtanh.f32 %v3746_v31  ;;  %4445 = vmatprep.mubr.f32.mxu0 %v11126_v44  ;;  %v3751_v36 = vpop.f32.mrb[56].mxu0 }
 0x57c   : > { %v11130_v39 = vpop.eup %11129  ;;  %11149 = vtanh.f32 %v3748_v35  ;;  %4702 = vmatprep.mubr.f32.mxu1 %v11128_v0  ;;  %v3752_v40 = vadd.f32 %v3751_v36, %v13647_v43  ;;  %v4008_v41 = vpop.f32.mrb[56].mxu1  ;;  %4446 = vmatmul.mubr.f32.gmra.mrb[112].mxu0 %v11124_v34 }
 0x57d   : > { %v3753_v42 = vpop.f32.mrb[57].mxu0  ;;  %v11132_v55 = vpop.eup %11131  ;;  %11151 = vtanh.f32 %v4005_v51  ;;  %4703 = vmatmul.mubr.f32.gmra.mrb[112].mxu1 %v11130_v39  ;;  %v4009_v59 = vadd.f32 %v4008_v41, %v13647_v43  ;;  %v5603_v39 = vld [vmem:[#allocation6 + $0xc18] sm:$0xff]  ;;  %v4225_v41 = vld [vmem:[#allocation7 + $0x4] ss:$8 sm:$0x3] }
 0x57e   : > { %v3754_v56 = vadd.f32 %v3753_v42, %v13650_v53  ;;  %v4010_v57 = vpop.f32.mrb[57].mxu1  ;;  %v11134_v58 = vpop.eup %11133  ;;  %11153 = vtanh.f32 %v4003_v52  ;;  %v13781_v42 = vrot.slane %v4225_v41, %v13106_v46  ;;  %v13784_v54 = vrot.slane %v4225_v41, %v13108_v48  ;;  %v5610_v41 = vld [vmem:[#allocation6 + $0xc50] sm:$0xff] }
 0x57f   : > { %v4011_v60 = vadd.f32 %v4010_v57, %v13650_v53  ;;  %v11136_v61 = vpop.eup %11135  ;;  %11155 = vtanh.f32 %v3752_v40  ;;  %4451 = vmatprep.mubr.f32.mxu0 %v11134_v58  ;;  %v3757_v62 = vpop.f32.mrb[58].mxu0  ;;  %v9323_v40 = vpack.c.bf16 %v5603_v39, %v5601_v38 }
 0x580   : > { %v11138_v63 = vpop.eup %11137  ;;  %11157 = vtanh.f32 %v3754_v56  ;;  %4708 = vmatprep.mubr.f32.mxu1 %v11136_v61  ;;  %v3758_v1 = vadd.f32 %v3757_v62, %v13647_v43  ;;  %v4014_v2 = vpop.f32.mrb[58].mxu1  ;;  %4452 = vmatmul.mubr.f32.gmra.mrb[114].mxu0 %v11132_v55 }
 0x581   : > { %v3759_v3 = vpop.f32.mrb[59].mxu0  ;;  %v11140_v4 = vpop.eup %11139  ;;  %11159 = vtanh.f32 %v4011_v60  ;;  %4709 = vmatmul.mubr.f32.gmra.mrb[114].mxu1 %v11138_v63  ;;  %v4015_v8 = vadd.f32 %v4014_v2, %v13647_v43  ;;  %9324 = vmatprep.subr.bf16.mxu0 %v9323_v40 }
 0x582   : > { %v3760_v5 = vadd.f32 %v3759_v3, %v13650_v53  ;;  %v4016_v6 = vpop.f32.mrb[59].mxu1  ;;  %v11142_v7 = vpop.eup %11141  ;;  %11161 = vtanh.f32 %v4009_v59  ;;  %9388 = vmatprep.subr.bf16.mxu1 %v9323_v40  ;;  %v5608_v40 = vld [vmem:[#allocation6 + $0xc40] sm:$0xff] }
 0x583   : > { %v4017_v9 = vadd.f32 %v4016_v6, %v13650_v53  ;;  %v11144_v10 = vpop.eup %11143  ;;  %11163 = vtanh.f32 %v3758_v1  ;;  %4457 = vmatprep.mubr.f32.mxu0 %v11142_v7  ;;  %v3763_v11 = vpop.f32.mrb[60].mxu0 }
 0x584   : > { %v11146_v12 = vpop.eup %11145  ;;  %11165 = vtanh.f32 %v3760_v5  ;;  %4714 = vmatprep.mubr.f32.mxu1 %v11144_v10  ;;  %v3764_v13 = vadd.f32 %v3763_v11, %v13647_v43  ;;  %v4020_v14 = vpop.f32.mrb[60].mxu1  ;;  %4458 = vmatmul.mubr.f32.gmra.mrb[116].mxu0 %v11140_v4 }
 0x585   : > { %v3765_v15 = vpop.f32.mrb[61].mxu0  ;;  %v11148_v16 = vpop.eup %11147  ;;  %11167 = vtanh.f32 %v4017_v9  ;;  %4715 = vmatmul.mubr.f32.gmra.mrb[116].mxu1 %v11146_v12  ;;  %v4021_v20 = vadd.f32 %v4020_v14, %v13647_v43 }
 0x586   : > { %v3766_v17 = vadd.f32 %v3765_v15, %v13650_v53  ;;  %v4022_v18 = vpop.f32.mrb[61].mxu1  ;;  %v11150_v19 = vpop.eup %11149  ;;  %11169 = vtanh.f32 %v4015_v8 }
 0x587   : > { %v4023_v21 = vadd.f32 %v4022_v18, %v13650_v53  ;;  %v11152_v22 = vpop.eup %11151  ;;  %11171 = vtanh.f32 %v3764_v13  ;;  %4463 = vmatprep.mubr.f32.mxu0 %v11150_v19  ;;  %v3769_v23 = vpop.f32.mrb[62].mxu0  ;;  %v5605_v19 = vld [vmem:[#allocation6 + $0xc28] sm:$0xff] }
 0x588   : > { %v11154_v24 = vpop.eup %11153  ;;  %11173 = vtanh.f32 %v3766_v17  ;;  %4720 = vmatprep.mubr.f32.mxu1 %v11152_v22  ;;  %v3770_v25 = vadd.f32 %v3769_v23, %v13647_v43  ;;  %v4026_v26 = vpop.f32.mrb[62].mxu1  ;;  %4464 = vmatmul.mubr.f32.gmra.mrb[118].mxu0 %v11148_v16  ;;  %v5600_v16 = vld [vmem:[#allocation6 + $0xc00] sm:$0xff]  ;;  %v5602_v17 = vld [vmem:[#allocation6 + $0xc10] sm:$0xff] }
 0x589   : > { %v3771_v27 = vpop.f32.mrb[63].mxu0  ;;  %v11156_v28 = vpop.eup %11155  ;;  %11175 = vtanh.f32 %v4023_v21  ;;  %4721 = vmatmul.mubr.f32.gmra.mrb[118].mxu1 %v11154_v24  ;;  %v4027_v32 = vadd.f32 %v4026_v26, %v13647_v43 }
 0x58a   : > { %v3772_v29 = vadd.f32 %v3771_v27, %v13650_v53  ;;  %v4028_v30 = vpop.f32.mrb[63].mxu1  ;;  %v11158_v31 = vpop.eup %11157  ;;  %11177 = vtanh.f32 %v4021_v20  ;;  %v5607_v20 = vld [vmem:[#allocation6 + $0xc38] sm:$0xff]  ;;  %v9325_v27 = vpack.c.bf16 %v5602_v17, %v5600_v16 }
 0x58b   : > { %v4029_v33 = vadd.f32 %v4028_v30, %v13650_v53  ;;  %v11160_v34 = vpop.eup %11159  ;;  %11179 = vtanh.f32 %v3770_v25  ;;  %4469 = vmatprep.mubr.f32.mxu0 %v11158_v31  ;;  %v9327_v31 = vpack.c.bf16 %v5607_v20, %v5605_v19 }
 0x58c   : > { %v11162_v35 = vpop.eup %11161  ;;  %11181 = vtanh.f32 %v3772_v29  ;;  %4726 = vmatprep.mubr.f32.mxu1 %v11160_v34  ;;  %4470 = vmatmul.mubr.f32.gmra.mrb[120].mxu0 %v11156_v28 }
 0x58d   : > { %v11164_v49 = vpop.eup %11163  ;;  %11183 = vtanh.f32 %v4029_v33  ;;  %4727 = vmatmul.mubr.f32.gmra.mrb[120].mxu1 %v11162_v35  ;;  %v5606_v33 = vld [vmem:[#allocation6 + $0xc30] sm:$0xff] }
 0x58e   : > { %v11166_v47 = vpop.eup %11165  ;;  %11185 = vtanh.f32 %v4027_v32  ;;  %v5604_v32 = vld [vmem:[#allocation6 + $0xc20] sm:$0xff] }
 0x58f   : > { %v11168_v45 = vpop.eup %11167  ;;  %4475 = vmatprep.mubr.f32.mxu0 %v11166_v47  ;;  %v5611_v47 = vld [vmem:[#allocation6 + $0xc58] sm:$0xff] }
 0x590   : > { %v11170_v44 = vpop.eup %11169  ;;  %4732 = vmatprep.mubr.f32.mxu1 %v11168_v45  ;;  %4476 = vmatmul.mubr.f32.gmra.mrb[122].mxu0 %v11164_v49  ;;  %v5609_v49 = vld [vmem:[#allocation6 + $0xc48] sm:$0xff] }
 0x591   : > { %v11172_v43 = vpop.eup %11171  ;;  %4733 = vmatmul.mubr.f32.gmra.mrb[122].mxu1 %v11170_v44  ;;  %v9331_v39 = vpack.c.bf16 %v5611_v47, %v5609_v49 }
 0x592   : > { %v11174_v53 = vpop.eup %11173 }
 0x593   : > { %v11176_v52 = vpop.eup %11175  ;;  %4481 = vmatprep.mubr.f32.mxu0 %v11174_v53 }
 0x594   : > { %v11178_v51 = vpop.eup %11177  ;;  %4738 = vmatprep.mubr.f32.mxu1 %v11176_v52  ;;  %4482 = vmatmul.mubr.f32.gmra.mrb[124].mxu0 %v11172_v43 }
 0x595   : > { %v11180_v50 = vpop.eup %11179  ;;  %4739 = vmatmul.mubr.f32.gmra.mrb[124].mxu1 %v11178_v51 }
 0x596   : > { %v11182_v0 = vpop.eup %11181 }
 0x597   : > { %v11184_v36 = vpop.eup %11183  ;;  %4487 = vmatprep.mubr.f32.mxu0 %v11182_v0  ;;  %v9329_v0 = vpack.c.bf16 %v5606_v33, %v5604_v32 }
 0x598   : > { %v11186_v37 = vpop.eup %11185  ;;  %4744 = vmatprep.mubr.f32.mxu1 %v11184_v36  ;;  %4488 = vmatmul.mubr.f32.gmra.mrb[126].mxu0 %v11180_v50 }
 0x599   : > { %4745 = vmatmul.mubr.f32.gmra.mrb[126].mxu1 %v11186_v37 }
 0x5ee   : > { %v4303_v55 = vpop.f32.mrb[64].mxu0 }
 0x5ef   : > { %v4304_v56 = vadd.f32 %v4303_v55, %v13781_v42  ;;  %v4560_v57 = vpop.f32.mrb[64].mxu1  ;;  %v4305_v58 = vpop.f32.mrb[65].mxu0 }
 0x5f0   : > { %v4306_v59 = vadd.f32 %v4305_v58, %v13784_v54  ;;  %v4562_v60 = vpop.f32.mrb[65].mxu1  ;;  %v4561_v61 = vadd.f32 %v4560_v57, %v13781_v42  ;;  %v5613_v57 = vld [vmem:[#allocation6 + $0xc68] sm:$0xff]  ;;  %v5615_v58 = vld [vmem:[#allocation6 + $0xc78] sm:$0xff] }
 0x5f1   : > { %v4563_v62 = vadd.f32 %v4562_v60, %v13784_v54  ;;  %11187 = vtanh.f32 %v4304_v56 }
 0x5f2   : > { %11189 = vtanh.f32 %v4306_v59 }
 0x5f3   : > { %v4309_v63 = vpop.f32.mrb[66].mxu0  ;;  %11191 = vtanh.f32 %v4563_v62 }
 0x5f4   : > { %v4310_v1 = vadd.f32 %v4309_v63, %v13781_v42  ;;  %v4566_v2 = vpop.f32.mrb[66].mxu1  ;;  %v4311_v3 = vpop.f32.mrb[67].mxu0  ;;  %11193 = vtanh.f32 %v4561_v61 }
 0x5f5   : > { %v4312_v4 = vadd.f32 %v4311_v3, %v13784_v54  ;;  %v4568_v5 = vpop.f32.mrb[67].mxu1  ;;  %v4567_v6 = vadd.f32 %v4566_v2, %v13781_v42  ;;  %v9333_v3 = vpack.c.bf16 %v5610_v41, %v5608_v40 }
 0x5f6   : > { %v4569_v7 = vadd.f32 %v4568_v5, %v13784_v54  ;;  %11195 = vtanh.f32 %v4310_v1 }
 0x5f7   : > { %v4315_v8 = vpop.f32.mrb[68].mxu0  ;;  %11197 = vtanh.f32 %v4312_v4 }
 0x5f8   : > { %v4316_v9 = vadd.f32 %v4315_v8, %v13781_v42  ;;  %v4572_v10 = vpop.f32.mrb[68].mxu1  ;;  %v4317_v11 = vpop.f32.mrb[69].mxu0  ;;  %11199 = vtanh.f32 %v4569_v7  ;;  %v9335_v7 = vpack.c.bf16 %v5615_v58, %v5613_v57  ;;  %v5612_v8 = vld [vmem:[#allocation6 + $0xc60] sm:$0xff] }
 0x5f9   : > { %v4318_v12 = vadd.f32 %v4317_v11, %v13784_v54  ;;  %v4574_v13 = vpop.f32.mrb[69].mxu1  ;;  %11201 = vtanh.f32 %v4567_v6  ;;  %v4573_v14 = vadd.f32 %v4572_v10, %v13781_v42 }
 0x5fa   : > { %v4575_v15 = vadd.f32 %v4574_v13, %v13784_v54  ;;  %11203 = vtanh.f32 %v4316_v9  ;;  %v5614_v9 = vld [vmem:[#allocation6 + $0xc70] sm:$0xff]  ;;  %v5619_v13 = vld [vmem:[#allocation6 + $0xc98] sm:$0xff] }
 0x5fb   : > { %v4321_v18 = vpop.f32.mrb[70].mxu0  ;;  %11205 = vtanh.f32 %v4318_v12  ;;  %v11188_v24 = vpop.eup %11187  ;;  %v5617_v12 = vld [vmem:[#allocation6 + $0xc88] sm:$0xff] }
 0x5fc   : > { %v4322_v21 = vadd.f32 %v4321_v18, %v13781_v42  ;;  %v4578_v22 = vpop.f32.mrb[70].mxu1  ;;  %v4323_v23 = vpop.f32.mrb[71].mxu0  ;;  %11207 = vtanh.f32 %v4575_v15 }
 0x5fd   : > { %v4324_v25 = vadd.f32 %v4323_v23, %v13784_v54  ;;  %v4580_v26 = vpop.f32.mrb[71].mxu1  ;;  %v11190_v28 = vpop.eup %11189  ;;  %11209 = vtanh.f32 %v4573_v14  ;;  %v4579_v29 = vadd.f32 %v4578_v22, %v13781_v42 }
 0x5fe   : > { %v4581_v30 = vadd.f32 %v4580_v26, %v13784_v54  ;;  %v11192_v34 = vpop.eup %11191  ;;  %11211 = vtanh.f32 %v4322_v21  ;;  %5021 = vmatprep.mubr.f32.mxu0 %v11190_v28  ;;  %v9337_v21 = vpack.c.bf16 %v5614_v9, %v5612_v8  ;;  %v5616_v26 = vld [vmem:[#allocation6 + $0xc80] sm:$0xff] }
 0x5ff   : > { %v4327_v35 = vpop.f32.mrb[72].mxu0  ;;  %v11194_v45 = vpop.eup %11193  ;;  %11213 = vtanh.f32 %v4324_v25  ;;  %5278 = vmatprep.mubr.f32.mxu1 %v11192_v34  ;;  %5022 = vmatmul.mubr.f32.vlgmr.msra.gmra.mrb[128].mxu0 %v11188_v24  ;;  %v9339_v25 = vpack.c.bf16 %v5619_v13, %v5617_v12 }
 0x600   : > { %v4328_v44 = vadd.f32 %v4327_v35, %v13781_v42  ;;  %v4584_v43 = vpop.f32.mrb[72].mxu1  ;;  %v4329_v53 = vpop.f32.mrb[73].mxu0  ;;  %11215 = vtanh.f32 %v4581_v30  ;;  %5279 = vmatmul.mubr.f32.vlgmr.msra.gmra.mrb[128].mxu1 %v11194_v45  ;;  %9326 = vmatpush1.bf16.msra.mxu0 %v9325_v27  ;;  %v5621_v30 = vld [vmem:[#allocation6 + $0xca8] sm:$0xff] }
 0x601   : > { %v11196_v52 = vpop.eup %11195  ;;  %v4330_v51 = vadd.f32 %v4329_v53, %v13784_v54  ;;  %v4586_v50 = vpop.f32.mrb[73].mxu1  ;;  %11217 = vtanh.f32 %v4579_v29  ;;  %v4585_v37 = vadd.f32 %v4584_v43, %v13781_v42  ;;  %9390 = vmatpush1.bf16.msra.mxu1 %v9325_v27  ;;  %9328 = vmatprep.subr.bf16.mxu0 %v9327_v31  ;;  %v5618_v27 = vld [vmem:[#allocation6 + $0xc90] sm:$0xff] }
 0x602   : > { %v11198_v36 = vpop.eup %11197  ;;  %v4587_v38 = vadd.f32 %v4586_v50, %v13784_v54  ;;  %11219 = vtanh.f32 %v4328_v44  ;;  %9392 = vmatprep.subr.bf16.mxu1 %v9327_v31  ;;  %v5623_v31 = vld [vmem:[#allocation6 + $0xcb8] sm:$0xff]  ;;  %v9341_v44 = vpack.c.bf16 %v5618_v27, %v5616_v26  ;;  %v5620_v50 = vld [vmem:[#allocation6 + $0xca0] sm:$0xff] }
 0x603   : > { %v11200_v55 = vpop.eup %11199  ;;  %5027 = vmatprep.mubr.f32.mxu0 %v11198_v36  ;;  %v4333_v56 = vpop.f32.mrb[74].mxu0  ;;  %11221 = vtanh.f32 %v4330_v51  ;;  %v9343_v51 = vpack.c.bf16 %v5623_v31, %v5621_v30 }
 0x604   : > { %v11202_v59 = vpop.eup %11201  ;;  %5284 = vmatprep.mubr.f32.mxu1 %v11200_v55  ;;  %v4334_v60 = vadd.f32 %v4333_v56, %v13781_v42  ;;  %v4590_v61 = vpop.f32.mrb[74].mxu1  ;;  %5028 = vmatmul.mubr.f32.gmra.mrb[130].mxu0 %v11196_v52  ;;  %11223 = vtanh.f32 %v4587_v38  ;;  %v5625_v38 = vld [vmem:[#allocation6 + $0xcc8] sm:$0xff] }
 0x605   : > { %v4335_v62 = vpop.f32.mrb[75].mxu0  ;;  %v11204_v63 = vpop.eup %11203  ;;  %5285 = vmatmul.mubr.f32.gmra.mrb[130].mxu1 %v11202_v59  ;;  %9330 = vmatpush1.bf16.msra.mxu0 %v9329_v0  ;;  %11225 = vtanh.f32 %v4585_v37  ;;  %v4591_v5 = vadd.f32 %v4590_v61, %v13781_v42 }
 0x606   : > { %v4336_v1 = vadd.f32 %v4335_v62, %v13784_v54  ;;  %v4592_v2 = vpop.f32.mrb[75].mxu1  ;;  %v11206_v4 = vpop.eup %11205  ;;  %9394 = vmatpush1.bf16.msra.mxu1 %v9329_v0  ;;  %9332 = vmatprep.subr.bf16.mxu0 %v9331_v39  ;;  %11227 = vtanh.f32 %v4334_v60  ;;  %v5622_v0 = vld [vmem:[#allocation6 + $0xcb0] sm:$0xff] }
 0x607   : > { %v4593_v6 = vadd.f32 %v4592_v2, %v13784_v54  ;;  %v11208_v10 = vpop.eup %11207  ;;  %5033 = vmatprep.mubr.f32.mxu0 %v11206_v4  ;;  %v4339_v11 = vpop.f32.mrb[76].mxu0  ;;  %9396 = vmatprep.subr.bf16.mxu1 %v9331_v39  ;;  %v5627_v39 = vld [vmem:[#allocation6 + $0xcd8] sm:$0xff]  ;;  %v9345_v60 = vpack.c.bf16 %v5622_v0, %v5620_v50  ;;  %v5624_v2 = vld [vmem:[#allocation6 + $0xcc0] sm:$0xff] }
 0x608   : > { %v11210_v14 = vpop.eup %11209  ;;  %11229 = vtanh.f32 %v4336_v1  ;;  %5290 = vmatprep.mubr.f32.mxu1 %v11208_v10  ;;  %v4340_v15 = vadd.f32 %v4339_v11, %v13781_v42  ;;  %v4596_v16 = vpop.f32.mrb[76].mxu1  ;;  %5034 = vmatmul.mubr.f32.gmra.mrb[132].mxu0 %v11204_v63  ;;  %v9347_v1 = vpack.c.bf16 %v5627_v39, %v5625_v38 }
 0x609   : > { %v4341_v17 = vpop.f32.mrb[77].mxu0  ;;  %v11212_v18 = vpop.eup %11211  ;;  %11231 = vtanh.f32 %v4593_v6  ;;  %5291 = vmatmul.mubr.f32.gmra.mrb[132].mxu1 %v11210_v14  ;;  %9334 = vmatpush1.bf16.msra.mxu0 %v9333_v3  ;;  %v4597_v23 = vadd.f32 %v4596_v16, %v13781_v42  ;;  %v5629_v6 = vld [vmem:[#allocation6 + $0xce8] sm:$0xff] }
 0x60a   : > { %v4342_v19 = vadd.f32 %v4341_v17, %v13784_v54  ;;  %v4598_v20 = vpop.f32.mrb[77].mxu1  ;;  %v11214_v22 = vpop.eup %11213  ;;  %11233 = vtanh.f32 %v4591_v5  ;;  %9398 = vmatpush1.bf16.msra.mxu1 %v9333_v3  ;;  %9336 = vmatprep.subr.bf16.mxu0 %v9335_v7  ;;  %v5626_v3 = vld [vmem:[#allocation6 + $0xcd0] sm:$0xff] }
 0x60b   : > { %v4599_v24 = vadd.f32 %v4598_v20, %v13784_v54  ;;  %v11216_v28 = vpop.eup %11215  ;;  %11235 = vtanh.f32 %v4340_v15  ;;  %5039 = vmatprep.mubr.f32.mxu0 %v11214_v22  ;;  %v4345_v29 = vpop.f32.mrb[78].mxu0  ;;  %9400 = vmatprep.subr.bf16.mxu1 %v9335_v7  ;;  %v5631_v7 = vld [vmem:[#allocation6 + $0xcf8] sm:$0xff]  ;;  %v9349_v15 = vpack.c.bf16 %v5626_v3, %v5624_v2  ;;  %v5628_v20 = vld [vmem:[#allocation6 + $0xce0] sm:$0xff] }
 0x60c   : > { %v11218_v32 = vpop.eup %11217  ;;  %11237 = vtanh.f32 %v4342_v19  ;;  %5296 = vmatprep.mubr.f32.mxu1 %v11216_v28  ;;  %v4346_v33 = vadd.f32 %v4345_v29, %v13781_v42  ;;  %v4602_v34 = vpop.f32.mrb[78].mxu1  ;;  %5040 = vmatmul.mubr.f32.gmra.mrb[134].mxu0 %v11212_v18  ;;  %v9351_v19 = vpack.c.bf16 %v5631_v7, %v5629_v6 }
 0x60d   : > { %v4347_v35 = vpop.f32.mrb[79].mxu0  ;;  %v11220_v49 = vpop.eup %11219  ;;  %11239 = vtanh.f32 %v4599_v24  ;;  %5297 = vmatmul.mubr.f32.gmra.mrb[134].mxu1 %v11218_v32  ;;  %9338 = vmatpush1.bf16.msra.mxu0 %v9337_v21  ;;  %v4603_v53 = vadd.f32 %v4602_v34, %v13781_v42  ;;  %v5633_v24 = vld [vmem:[#allocation6 + $0xd08] sm:$0xff] }
 0x60e   : > { %v4348_v47 = vadd.f32 %v4347_v35, %v13784_v54  ;;  %v4604_v45 = vpop.f32.mrb[79].mxu1  ;;  %v11222_v43 = vpop.eup %11221  ;;  %11241 = vtanh.f32 %v4597_v23  ;;  %9402 = vmatpush1.bf16.msra.mxu1 %v9337_v21  ;;  %9340 = vmatprep.subr.bf16.mxu0 %v9339_v25  ;;  %v5630_v21 = vld [vmem:[#allocation6 + $0xcf0] sm:$0xff] }
 0x60f   : > { %v4605_v52 = vadd.f32 %v4604_v45, %v13784_v54  ;;  %v11224_v36 = vpop.eup %11223  ;;  %11243 = vtanh.f32 %v4346_v33  ;;  %5045 = vmatprep.mubr.f32.mxu0 %v11222_v43  ;;  %v4351_v37 = vpop.f32.mrb[80].mxu0  ;;  %9404 = vmatprep.subr.bf16.mxu1 %v9339_v25  ;;  %v5635_v25 = vld [vmem:[#allocation6 + $0xd18] sm:$0xff]  ;;  %v9353_v33 = vpack.c.bf16 %v5630_v21, %v5628_v20  ;;  %v5632_v45 = vld [vmem:[#allocation6 + $0xd00] sm:$0xff] }
 0x610   : > { %v11226_v40 = vpop.eup %11225  ;;  %11245 = vtanh.f32 %v4348_v47  ;;  %5302 = vmatprep.mubr.f32.mxu1 %v11224_v36  ;;  %v4352_v41 = vadd.f32 %v4351_v37, %v13781_v42  ;;  %v4608_v55 = vpop.f32.mrb[80].mxu1  ;;  %5046 = vmatmul.mubr.f32.gmra.mrb[136].mxu0 %v11220_v49  ;;  %v9355_v47 = vpack.c.bf16 %v5635_v25, %v5633_v24 }
 0x611   : > { %v4353_v56 = vpop.f32.mrb[81].mxu0  ;;  %v11228_v57 = vpop.eup %11227  ;;  %11247 = vtanh.f32 %v4605_v52  ;;  %5303 = vmatmul.mubr.f32.gmra.mrb[136].mxu1 %v11226_v40  ;;  %9342 = vmatpush1.bf16.msra.mxu0 %v9341_v44  ;;  %v4609_v62 = vadd.f32 %v4608_v55, %v13781_v42  ;;  %v5637_v52 = vld [vmem:[#allocation6 + $0xd28] sm:$0xff] }
 0x612   : > { %v4354_v58 = vadd.f32 %v4353_v56, %v13784_v54  ;;  %v4610_v59 = vpop.f32.mrb[81].mxu1  ;;  %v11230_v61 = vpop.eup %11229  ;;  %11249 = vtanh.f32 %v4603_v53  ;;  %9406 = vmatpush1.bf16.msra.mxu1 %v9341_v44  ;;  %9344 = vmatprep.subr.bf16.mxu0 %v9343_v51  ;;  %v5634_v44 = vld [vmem:[#allocation6 + $0xd10] sm:$0xff] }
 0x613   : > { %v4611_v63 = vadd.f32 %v4610_v59, %v13784_v54  ;;  %v11232_v4 = vpop.eup %11231  ;;  %11251 = vtanh.f32 %v4352_v41  ;;  %5051 = vmatprep.mubr.f32.mxu0 %v11230_v61  ;;  %v4357_v5 = vpop.f32.mrb[82].mxu0  ;;  %9408 = vmatprep.subr.bf16.mxu1 %v9343_v51  ;;  %v5639_v51 = vld [vmem:[#allocation6 + $0xd38] sm:$0xff]  ;;  %v9357_v41 = vpack.c.bf16 %v5634_v44, %v5632_v45  ;;  %v5636_v59 = vld [vmem:[#allocation6 + $0xd20] sm:$0xff] }
 0x614   : > { %v11234_v8 = vpop.eup %11233  ;;  %11253 = vtanh.f32 %v4354_v58  ;;  %5308 = vmatprep.mubr.f32.mxu1 %v11232_v4  ;;  %v4358_v9 = vadd.f32 %v4357_v5, %v13781_v42  ;;  %v4614_v10 = vpop.f32.mrb[82].mxu1  ;;  %5052 = vmatmul.mubr.f32.gmra.mrb[138].mxu0 %v11228_v57  ;;  %v9359_v58 = vpack.c.bf16 %v5639_v51, %v5637_v52 }
 0x615   : > { %v4359_v11 = vpop.f32.mrb[83].mxu0  ;;  %v11236_v12 = vpop.eup %11235  ;;  %11255 = vtanh.f32 %v4611_v63  ;;  %5309 = vmatmul.mubr.f32.gmra.mrb[138].mxu1 %v11234_v8  ;;  %9346 = vmatpush1.bf16.msra.mxu0 %v9345_v60  ;;  %v4615_v17 = vadd.f32 %v4614_v10, %v13781_v42  ;;  %v5641_v63 = vld [vmem:[#allocation6 + $0xd48] sm:$0xff] }
 0x616   : > { %v4360_v13 = vadd.f32 %v4359_v11, %v13784_v54  ;;  %v4616_v14 = vpop.f32.mrb[83].mxu1  ;;  %v11238_v16 = vpop.eup %11237  ;;  %11257 = vtanh.f32 %v4609_v62  ;;  %9410 = vmatpush1.bf16.msra.mxu1 %v9345_v60  ;;  %9348 = vmatprep.subr.bf16.mxu0 %v9347_v1  ;;  %v5638_v60 = vld [vmem:[#allocation6 + $0xd30] sm:$0xff] }
 0x617   : > { %v4617_v18 = vadd.f32 %v4616_v14, %v13784_v54  ;;  %v11240_v22 = vpop.eup %11239  ;;  %11259 = vtanh.f32 %v4358_v9  ;;  %5057 = vmatprep.mubr.f32.mxu0 %v11238_v16  ;;  %v4363_v23 = vpop.f32.mrb[84].mxu0  ;;  %9412 = vmatprep.subr.bf16.mxu1 %v9347_v1  ;;  %v5643_v1 = vld [vmem:[#allocation6 + $0xd58] sm:$0xff]  ;;  %v9361_v9 = vpack.c.bf16 %v5638_v60, %v5636_v59  ;;  %v5640_v14 = vld [vmem:[#allocation6 + $0xd40] sm:$0xff] }
 0x618   : > { %v11242_v26 = vpop.eup %11241  ;;  %11261 = vtanh.f32 %v4360_v13  ;;  %5314 = vmatprep.mubr.f32.mxu1 %v11240_v22  ;;  %v4364_v27 = vadd.f32 %v4363_v23, %v13781_v42  ;;  %v4620_v28 = vpop.f32.mrb[84].mxu1  ;;  %5058 = vmatmul.mubr.f32.gmra.mrb[140].mxu0 %v11236_v12  ;;  %v9363_v13 = vpack.c.bf16 %v5643_v1, %v5641_v63 }
 0x619   : > { %v4365_v29 = vpop.f32.mrb[85].mxu0  ;;  %v11244_v30 = vpop.eup %11243  ;;  %11263 = vtanh.f32 %v4617_v18  ;;  %5315 = vmatmul.mubr.f32.gmra.mrb[140].mxu1 %v11242_v26  ;;  %9350 = vmatpush1.bf16.msra.mxu0 %v9349_v15  ;;  %v4621_v35 = vadd.f32 %v4620_v28, %v13781_v42  ;;  %v5645_v18 = vld [vmem:[#allocation6 + $0xd68] sm:$0xff] }
 0x61a   : > { %v4366_v31 = vadd.f32 %v4365_v29, %v13784_v54  ;;  %v4622_v32 = vpop.f32.mrb[85].mxu1  ;;  %v11246_v34 = vpop.eup %11245  ;;  %11265 = vtanh.f32 %v4615_v17  ;;  %9414 = vmatpush1.bf16.msra.mxu1 %v9349_v15  ;;  %9352 = vmatprep.subr.bf16.mxu0 %v9351_v19  ;;  %v5642_v15 = vld [vmem:[#allocation6 + $0xd50] sm:$0xff] }
 0x61b   : > { %v4623_v49 = vadd.f32 %v4622_v32, %v13784_v54  ;;  %v11248_v43 = vpop.eup %11247  ;;  %11267 = vtanh.f32 %v4364_v27  ;;  %5063 = vmatprep.mubr.f32.mxu0 %v11246_v34  ;;  %v4369_v53 = vpop.f32.mrb[86].mxu0  ;;  %9416 = vmatprep.subr.bf16.mxu1 %v9351_v19  ;;  %v5647_v19 = vld [vmem:[#allocation6 + $0xd78] sm:$0xff]  ;;  %v9365_v27 = vpack.c.bf16 %v5642_v15, %v5640_v14  ;;  %v5644_v32 = vld [vmem:[#allocation6 + $0xd60] sm:$0xff] }
 0x61c   : > { %v11250_v50 = vpop.eup %11249  ;;  %11269 = vtanh.f32 %v4366_v31  ;;  %5320 = vmatprep.mubr.f32.mxu1 %v11248_v43  ;;  %v4370_v0 = vadd.f32 %v4369_v53, %v13781_v42  ;;  %v4626_v36 = vpop.f32.mrb[86].mxu1  ;;  %5064 = vmatmul.mubr.f32.gmra.mrb[142].mxu0 %v11244_v30  ;;  %v9367_v31 = vpack.c.bf16 %v5647_v19, %v5645_v18 }
 0x61d   : > { %v4371_v37 = vpop.f32.mrb[87].mxu0  ;;  %v11252_v38 = vpop.eup %11251  ;;  %11271 = vtanh.f32 %v4623_v49  ;;  %5321 = vmatmul.mubr.f32.gmra.mrb[142].mxu1 %v11250_v50  ;;  %9354 = vmatpush1.bf16.msra.mxu0 %v9353_v33  ;;  %v4627_v56 = vadd.f32 %v4626_v36, %v13781_v42  ;;  %v5649_v49 = vld [vmem:[#allocation6 + $0xd88] sm:$0xff] }
 0x61e   : > { %v4372_v39 = vadd.f32 %v4371_v37, %v13784_v54  ;;  %v4628_v40 = vpop.f32.mrb[87].mxu1  ;;  %v11254_v55 = vpop.eup %11253  ;;  %11273 = vtanh.f32 %v4621_v35  ;;  %9418 = vmatpush1.bf16.msra.mxu1 %v9353_v33  ;;  %9356 = vmatprep.subr.bf16.mxu0 %v9355_v47  ;;  %v5646_v33 = vld [vmem:[#allocation6 + $0xd70] sm:$0xff] }
 0x61f   : > { %v4629_v57 = vadd.f32 %v4628_v40, %v13784_v54  ;;  %v11256_v61 = vpop.eup %11255  ;;  %11275 = vtanh.f32 %v4370_v0  ;;  %5069 = vmatprep.mubr.f32.mxu0 %v11254_v55  ;;  %v4375_v62 = vpop.f32.mrb[88].mxu0  ;;  %9420 = vmatprep.subr.bf16.mxu1 %v9355_v47  ;;  %v5651_v47 = vld [vmem:[#allocation6 + $0xd98] sm:$0xff]  ;;  %v9369_v0 = vpack.c.bf16 %v5646_v33, %v5644_v32  ;;  %v5648_v40 = vld [vmem:[#allocation6 + $0xd80] sm:$0xff] }
 0x620   : > { %v11258_v2 = vpop.eup %11257  ;;  %11277 = vtanh.f32 %v4372_v39  ;;  %5326 = vmatprep.mubr.f32.mxu1 %v11256_v61  ;;  %v4376_v3 = vadd.f32 %v4375_v62, %v13781_v42  ;;  %v4632_v4 = vpop.f32.mrb[88].mxu1  ;;  %5070 = vmatmul.mubr.f32.gmra.mrb[144].mxu0 %v11252_v38  ;;  %v9371_v39 = vpack.c.bf16 %v5651_v47, %v5649_v49 }
 0x621   : > { %v4377_v5 = vpop.f32.mrb[89].mxu0  ;;  %v11260_v6 = vpop.eup %11259  ;;  %11279 = vtanh.f32 %v4629_v57  ;;  %5327 = vmatmul.mubr.f32.gmra.mrb[144].mxu1 %v11258_v2  ;;  %9358 = vmatpush1.bf16.msra.mxu0 %v9357_v41  ;;  %v4633_v11 = vadd.f32 %v4632_v4, %v13781_v42  ;;  %v5653_v57 = vld [vmem:[#allocation6 + $0xda8] sm:$0xff] }
 0x622   : > { %v4378_v7 = vadd.f32 %v4377_v5, %v13784_v54  ;;  %v4634_v8 = vpop.f32.mrb[89].mxu1  ;;  %v11262_v10 = vpop.eup %11261  ;;  %11281 = vtanh.f32 %v4627_v56  ;;  %9422 = vmatpush1.bf16.msra.mxu1 %v9357_v41  ;;  %9360 = vmatprep.subr.bf16.mxu0 %v9359_v58  ;;  %v5650_v41 = vld [vmem:[#allocation6 + $0xd90] sm:$0xff] }
 0x623   : > { %v4635_v12 = vadd.f32 %v4634_v8, %v13784_v54  ;;  %v11264_v16 = vpop.eup %11263  ;;  %11283 = vtanh.f32 %v4376_v3  ;;  %5075 = vmatprep.mubr.f32.mxu0 %v11262_v10  ;;  %v4381_v17 = vpop.f32.mrb[90].mxu0  ;;  %9424 = vmatprep.subr.bf16.mxu1 %v9359_v58  ;;  %v5655_v58 = vld [vmem:[#allocation6 + $0xdb8] sm:$0xff]  ;;  %v9373_v3 = vpack.c.bf16 %v5650_v41, %v5648_v40  ;;  %v5652_v8 = vld [vmem:[#allocation6 + $0xda0] sm:$0xff] }
 0x624   : > { %v11266_v20 = vpop.eup %11265  ;;  %11285 = vtanh.f32 %v4378_v7  ;;  %5332 = vmatprep.mubr.f32.mxu1 %v11264_v16  ;;  %v4382_v21 = vadd.f32 %v4381_v17, %v13781_v42  ;;  %v4638_v22 = vpop.f32.mrb[90].mxu1  ;;  %5076 = vmatmul.mubr.f32.gmra.mrb[146].mxu0 %v11260_v6  ;;  %v9375_v7 = vpack.c.bf16 %v5655_v58, %v5653_v57 }
 0x625   : > { %v4383_v23 = vpop.f32.mrb[91].mxu0  ;;  %v11268_v24 = vpop.eup %11267  ;;  %11287 = vtanh.f32 %v4635_v12  ;;  %5333 = vmatmul.mubr.f32.gmra.mrb[146].mxu1 %v11266_v20  ;;  %9362 = vmatpush1.bf16.msra.mxu0 %v9361_v9  ;;  %v4639_v29 = vadd.f32 %v4638_v22, %v13781_v42  ;;  %v5657_v12 = vld [vmem:[#allocation6 + $0xdc8] sm:$0xff] }
 0x626   : > { %v4384_v25 = vadd.f32 %v4383_v23, %v13784_v54  ;;  %v4640_v26 = vpop.f32.mrb[91].mxu1  ;;  %v11270_v28 = vpop.eup %11269  ;;  %11289 = vtanh.f32 %v4633_v11  ;;  %9426 = vmatpush1.bf16.msra.mxu1 %v9361_v9  ;;  %9364 = vmatprep.subr.bf16.mxu0 %v9363_v13  ;;  %v5654_v9 = vld [vmem:[#allocation6 + $0xdb0] sm:$0xff] }
 0x627   : > { %v4641_v30 = vadd.f32 %v4640_v26, %v13784_v54  ;;  %v11272_v34 = vpop.eup %11271  ;;  %11291 = vtanh.f32 %v4382_v21  ;;  %5081 = vmatprep.mubr.f32.mxu0 %v11270_v28  ;;  %v4387_v35 = vpop.f32.mrb[92].mxu0  ;;  %9428 = vmatprep.subr.bf16.mxu1 %v9363_v13  ;;  %v5659_v13 = vld [vmem:[#allocation6 + $0xdd8] sm:$0xff]  ;;  %v9377_v21 = vpack.c.bf16 %v5654_v9, %v5652_v8 }
 0x628   : > { %v11274_v45 = vpop.eup %11273  ;;  %11293 = vtanh.f32 %v4384_v25  ;;  %5338 = vmatprep.mubr.f32.mxu1 %v11272_v34  ;;  %v4388_v44 = vadd.f32 %v4387_v35, %v13781_v42  ;;  %v4644_v43 = vpop.f32.mrb[92].mxu1  ;;  %5082 = vmatmul.mubr.f32.gmra.mrb[148].mxu0 %v11268_v24  ;;  %v9379_v25 = vpack.c.bf16 %v5659_v13, %v5657_v12 }
 0x629   : > { %v4389_v53 = vpop.f32.mrb[93].mxu0  ;;  %v11276_v52 = vpop.eup %11275  ;;  %11295 = vtanh.f32 %v4641_v30  ;;  %5339 = vmatmul.mubr.f32.gmra.mrb[148].mxu1 %v11274_v45  ;;  %9366 = vmatpush1.bf16.msra.mxu0 %v9365_v27  ;;  %v4645_v37 = vadd.f32 %v4644_v43, %v13781_v42 }
 0x62a   : > { %v4390_v51 = vadd.f32 %v4389_v53, %v13784_v54  ;;  %v4646_v50 = vpop.f32.mrb[93].mxu1  ;;  %v11278_v36 = vpop.eup %11277  ;;  %11297 = vtanh.f32 %v4639_v29  ;;  %9430 = vmatpush1.bf16.msra.mxu1 %v9365_v27  ;;  %9368 = vmatprep.subr.bf16.mxu0 %v9367_v31 }
 0x62b   : > { %v4647_v38 = vadd.f32 %v4646_v50, %v13784_v54  ;;  %v11280_v55 = vpop.eup %11279  ;;  %11299 = vtanh.f32 %v4388_v44  ;;  %5087 = vmatprep.mubr.f32.mxu0 %v11278_v36  ;;  %v4393_v56 = vpop.f32.mrb[94].mxu0  ;;  %9432 = vmatprep.subr.bf16.mxu1 %v9367_v31 }
 0x62c   : > { %v11282_v59 = vpop.eup %11281  ;;  %11301 = vtanh.f32 %v4390_v51  ;;  %5344 = vmatprep.mubr.f32.mxu1 %v11280_v55  ;;  %v4394_v60 = vadd.f32 %v4393_v56, %v13781_v42  ;;  %v4650_v61 = vpop.f32.mrb[94].mxu1  ;;  %5088 = vmatmul.mubr.f32.gmra.mrb[150].mxu0 %v11276_v52 }
 0x62d   : > { %v4395_v62 = vpop.f32.mrb[95].mxu0  ;;  %v11284_v63 = vpop.eup %11283  ;;  %11303 = vtanh.f32 %v4647_v38  ;;  %5345 = vmatmul.mubr.f32.gmra.mrb[150].mxu1 %v11282_v59  ;;  %9370 = vmatpush1.bf16.msra.mxu0 %v9369_v0  ;;  %v4651_v5 = vadd.f32 %v4650_v61, %v13781_v42 }
 0x62e   : > { %v4396_v1 = vadd.f32 %v4395_v62, %v13784_v54  ;;  %v4652_v2 = vpop.f32.mrb[95].mxu1  ;;  %v11286_v4 = vpop.eup %11285  ;;  %11305 = vtanh.f32 %v4645_v37  ;;  %9434 = vmatpush1.bf16.msra.mxu1 %v9369_v0  ;;  %9372 = vmatprep.subr.bf16.mxu0 %v9371_v39 }
 0x62f   : > { %v4653_v6 = vadd.f32 %v4652_v2, %v13784_v54  ;;  %v11288_v10 = vpop.eup %11287  ;;  %11307 = vtanh.f32 %v4394_v60  ;;  %5093 = vmatprep.mubr.f32.mxu0 %v11286_v4  ;;  %v4399_v11 = vpop.f32.mrb[96].mxu0  ;;  %9436 = vmatprep.subr.bf16.mxu1 %v9371_v39 }
 0x630   : > { %v11290_v14 = vpop.eup %11289  ;;  %11309 = vtanh.f32 %v4396_v1  ;;  %5350 = vmatprep.mubr.f32.mxu1 %v11288_v10  ;;  %v4400_v15 = vadd.f32 %v4399_v11, %v13781_v42  ;;  %v4656_v16 = vpop.f32.mrb[96].mxu1  ;;  %5094 = vmatmul.mubr.f32.gmra.mrb[152].mxu0 %v11284_v63 }
 0x631   : > { %v4401_v17 = vpop.f32.mrb[97].mxu0  ;;  %v11292_v18 = vpop.eup %11291  ;;  %11311 = vtanh.f32 %v4653_v6  ;;  %5351 = vmatmul.mubr.f32.gmra.mrb[152].mxu1 %v11290_v14  ;;  %9374 = vmatpush1.bf16.msra.mxu0 %v9373_v3  ;;  %v4657_v23 = vadd.f32 %v4656_v16, %v13781_v42 }
 0x632   : > { %v4402_v19 = vadd.f32 %v4401_v17, %v13784_v54  ;;  %v4658_v20 = vpop.f32.mrb[97].mxu1  ;;  %v11294_v22 = vpop.eup %11293  ;;  %11313 = vtanh.f32 %v4651_v5  ;;  %9438 = vmatpush1.bf16.msra.mxu1 %v9373_v3  ;;  %9376 = vmatprep.subr.bf16.mxu0 %v9375_v7 }
 0x633   : > { %v4659_v24 = vadd.f32 %v4658_v20, %v13784_v54  ;;  %v11296_v26 = vpop.eup %11295  ;;  %11315 = vtanh.f32 %v4400_v15  ;;  %5099 = vmatprep.mubr.f32.mxu0 %v11294_v22  ;;  %v4405_v27 = vpop.f32.mrb[98].mxu0  ;;  %9440 = vmatprep.subr.bf16.mxu1 %v9375_v7 }
 0x634   : > { %v11298_v28 = vpop.eup %11297  ;;  %11317 = vtanh.f32 %v4402_v19  ;;  %5356 = vmatprep.mubr.f32.mxu1 %v11296_v26  ;;  %v4406_v29 = vadd.f32 %v4405_v27, %v13781_v42  ;;  %v4662_v30 = vpop.f32.mrb[98].mxu1  ;;  %5100 = vmatmul.mubr.f32.gmra.mrb[154].mxu0 %v11292_v18 }
 0x635   : > { %v4407_v31 = vpop.f32.mrb[99].mxu0  ;;  %v11300_v32 = vpop.eup %11299  ;;  %11319 = vtanh.f32 %v4659_v24  ;;  %5357 = vmatmul.mubr.f32.gmra.mrb[154].mxu1 %v11298_v28  ;;  %9378 = vmatpush1.bf16.msra.mxu0 %v9377_v21  ;;  %v4663_v49 = vadd.f32 %v4662_v30, %v13781_v42 }
 0x636   : > { %v4408_v33 = vadd.f32 %v4407_v31, %v13784_v54  ;;  %v4664_v34 = vpop.f32.mrb[99].mxu1  ;;  %v11302_v35 = vpop.eup %11301  ;;  %11321 = vtanh.f32 %v4657_v23  ;;  %9442 = vmatpush1.bf16.msra.mxu1 %v9377_v21  ;;  %9380 = vmatprep.subr.bf16.mxu0 %v9379_v25 }
 0x637   : > { %v4665_v47 = vadd.f32 %v4664_v34, %v13784_v54  ;;  %v11304_v45 = vpop.eup %11303  ;;  %11323 = vtanh.f32 %v4406_v29  ;;  %5105 = vmatprep.mubr.f32.mxu0 %v11302_v35  ;;  %v4411_v44 = vpop.f32.mrb[100].mxu0  ;;  %9444 = vmatprep.subr.bf16.mxu1 %v9379_v25 }
 0x638   : > { %v11306_v43 = vpop.eup %11305  ;;  %11325 = vtanh.f32 %v4408_v33  ;;  %5362 = vmatprep.mubr.f32.mxu1 %v11304_v45  ;;  %v4412_v53 = vadd.f32 %v4411_v44, %v13781_v42  ;;  %v4668_v52 = vpop.f32.mrb[100].mxu1  ;;  %5106 = vmatmul.mubr.f32.gmra.mrb[156].mxu0 %v11300_v32 }
 0x639   : > { %v4413_v51 = vpop.f32.mrb[101].mxu0  ;;  %v11308_v50 = vpop.eup %11307  ;;  %11327 = vtanh.f32 %v4665_v47  ;;  %5363 = vmatmul.mubr.f32.gmra.mrb[156].mxu1 %v11306_v43  ;;  %v4669_v38 = vadd.f32 %v4668_v52, %v13781_v42 }
 0x63a   : > { %v4414_v0 = vadd.f32 %v4413_v51, %v13784_v54  ;;  %v4670_v36 = vpop.f32.mrb[101].mxu1  ;;  %v11310_v37 = vpop.eup %11309  ;;  %11329 = vtanh.f32 %v4663_v49 }
 0x63b   : > { %v4671_v39 = vadd.f32 %v4670_v36, %v13784_v54  ;;  %v11312_v40 = vpop.eup %11311  ;;  %11331 = vtanh.f32 %v4412_v53  ;;  %5111 = vmatprep.mubr.f32.mxu0 %v11310_v37  ;;  %v4417_v41 = vpop.f32.mrb[102].mxu0 }
 0x63c   : > { %v11314_v55 = vpop.eup %11313  ;;  %11333 = vtanh.f32 %v4414_v0  ;;  %5368 = vmatprep.mubr.f32.mxu1 %v11312_v40  ;;  %v4418_v56 = vadd.f32 %v4417_v41, %v13781_v42  ;;  %v4674_v57 = vpop.f32.mrb[102].mxu1  ;;  %5112 = vmatmul.mubr.f32.gmra.mrb[158].mxu0 %v11308_v50 }
 0x63d   : > { %v4419_v58 = vpop.f32.mrb[103].mxu0  ;;  %v11316_v59 = vpop.eup %11315  ;;  %11335 = vtanh.f32 %v4671_v39  ;;  %5369 = vmatmul.mubr.f32.gmra.mrb[158].mxu1 %v11314_v55  ;;  %v4675_v63 = vadd.f32 %v4674_v57, %v13781_v42 }
 0x63e   : > { %v4420_v60 = vadd.f32 %v4419_v58, %v13784_v54  ;;  %v4676_v61 = vpop.f32.mrb[103].mxu1  ;;  %v11318_v62 = vpop.eup %11317  ;;  %11337 = vtanh.f32 %v4669_v38 }
 0x63f   : > { %v4677_v1 = vadd.f32 %v4676_v61, %v13784_v54  ;;  %v11320_v2 = vpop.eup %11319  ;;  %11339 = vtanh.f32 %v4418_v56  ;;  %5117 = vmatprep.mubr.f32.mxu0 %v11318_v62  ;;  %v4423_v3 = vpop.f32.mrb[104].mxu0 }
 0x640   : > { %v11322_v4 = vpop.eup %11321  ;;  %11341 = vtanh.f32 %v4420_v60  ;;  %5374 = vmatprep.mubr.f32.mxu1 %v11320_v2  ;;  %v4424_v5 = vadd.f32 %v4423_v3, %v13781_v42  ;;  %v4680_v6 = vpop.f32.mrb[104].mxu1  ;;  %5118 = vmatmul.mubr.f32.gmra.mrb[160].mxu0 %v11316_v59 }
 0x641   : > { %v4425_v7 = vpop.f32.mrb[105].mxu0  ;;  %v11324_v8 = vpop.eup %11323  ;;  %11343 = vtanh.f32 %v4677_v1  ;;  %5375 = vmatmul.mubr.f32.gmra.mrb[160].mxu1 %v11322_v4  ;;  %v4681_v12 = vadd.f32 %v4680_v6, %v13781_v42 }
 0x642   : > { %v4426_v9 = vadd.f32 %v4425_v7, %v13784_v54  ;;  %v4682_v10 = vpop.f32.mrb[105].mxu1  ;;  %v11326_v11 = vpop.eup %11325  ;;  %11345 = vtanh.f32 %v4675_v63 }
 0x643   : > { %v4683_v13 = vadd.f32 %v4682_v10, %v13784_v54  ;;  %v11328_v14 = vpop.eup %11327  ;;  %11347 = vtanh.f32 %v4424_v5  ;;  %5123 = vmatprep.mubr.f32.mxu0 %v11326_v11  ;;  %v4429_v15 = vpop.f32.mrb[106].mxu0 }
 0x644   : > { %v11330_v16 = vpop.eup %11329  ;;  %11349 = vtanh.f32 %v4426_v9  ;;  %5380 = vmatprep.mubr.f32.mxu1 %v11328_v14  ;;  %v4430_v17 = vadd.f32 %v4429_v15, %v13781_v42  ;;  %v4686_v18 = vpop.f32.mrb[106].mxu1  ;;  %5124 = vmatmul.mubr.f32.gmra.mrb[162].mxu0 %v11324_v8 }
 0x645   : > { %v4431_v19 = vpop.f32.mrb[107].mxu0  ;;  %v11332_v20 = vpop.eup %11331  ;;  %11351 = vtanh.f32 %v4683_v13  ;;  %5381 = vmatmul.mubr.f32.gmra.mrb[162].mxu1 %v11330_v16  ;;  %v4687_v24 = vadd.f32 %v4686_v18, %v13781_v42  ;;  %v5656_v16 = vld [vmem:[#allocation6 + $0xdc0] sm:$0xff] }
 0x646   : > { %v4432_v21 = vadd.f32 %v4431_v19, %v13784_v54  ;;  %v4688_v22 = vpop.f32.mrb[107].mxu1  ;;  %v11334_v23 = vpop.eup %11333  ;;  %11353 = vtanh.f32 %v4681_v12 }
 0x647   : > { %v4689_v25 = vadd.f32 %v4688_v22, %v13784_v54  ;;  %v11336_v26 = vpop.eup %11335  ;;  %11355 = vtanh.f32 %v4430_v17  ;;  %5129 = vmatprep.mubr.f32.mxu0 %v11334_v23  ;;  %v4435_v27 = vpop.f32.mrb[108].mxu0  ;;  %v5658_v17 = vld [vmem:[#allocation6 + $0xdd0] sm:$0xff] }
 0x648   : > { %v11338_v28 = vpop.eup %11337  ;;  %11357 = vtanh.f32 %v4432_v21  ;;  %5386 = vmatprep.mubr.f32.mxu1 %v11336_v26  ;;  %v4436_v29 = vadd.f32 %v4435_v27, %v13781_v42  ;;  %v4692_v30 = vpop.f32.mrb[108].mxu1  ;;  %5130 = vmatmul.mubr.f32.gmra.mrb[164].mxu0 %v11332_v20  ;;  %v9381_v22 = vpack.c.bf16 %v5658_v17, %v5656_v16 }
 0x649   : > { %v4437_v31 = vpop.f32.mrb[109].mxu0  ;;  %v11340_v32 = vpop.eup %11339  ;;  %11359 = vtanh.f32 %v4689_v25  ;;  %5387 = vmatmul.mubr.f32.gmra.mrb[164].mxu1 %v11338_v28  ;;  %v4693_v49 = vadd.f32 %v4692_v30, %v13781_v42 }
 0x64a   : > { %v4438_v33 = vadd.f32 %v4437_v31, %v13784_v54  ;;  %v4694_v34 = vpop.f32.mrb[109].mxu1  ;;  %v11342_v35 = vpop.eup %11341  ;;  %11361 = vtanh.f32 %v4687_v24  ;;  %9382 = vmatpush1.bf16.msra.mxu0 %v9381_v22  ;;  %9446 = vmatpush1.bf16.msra.mxu1 %v9381_v22 }
 0x64b   : > { %v4695_v47 = vadd.f32 %v4694_v34, %v13784_v54  ;;  %v11344_v45 = vpop.eup %11343  ;;  %11363 = vtanh.f32 %v4436_v29  ;;  %5135 = vmatprep.mubr.f32.mxu0 %v11342_v35  ;;  %v4441_v44 = vpop.f32.mrb[110].mxu0 }
 0x64c   : > { %v11346_v43 = vpop.eup %11345  ;;  %11365 = vtanh.f32 %v4438_v33  ;;  %5392 = vmatprep.mubr.f32.mxu1 %v11344_v45  ;;  %v4442_v53 = vadd.f32 %v4441_v44, %v13781_v42  ;;  %v4698_v52 = vpop.f32.mrb[110].mxu1  ;;  %5136 = vmatmul.mubr.f32.gmra.mrb[166].mxu0 %v11340_v32  ;;  %v5661_v45 = vld [vmem:[#allocation6 + $0xde8] sm:$0xff]  ;;  %v5663_v44 = vld [vmem:[#allocation6 + $0xdf8] sm:$0xff] }
 0x64d   : > { %v4443_v51 = vpop.f32.mrb[111].mxu0  ;;  %v11348_v50 = vpop.eup %11347  ;;  %11367 = vtanh.f32 %v4695_v47  ;;  %5393 = vmatmul.mubr.f32.gmra.mrb[166].mxu1 %v11346_v43  ;;  %v4699_v38 = vadd.f32 %v4698_v52, %v13781_v42 }
 0x64e   : > { %v4444_v0 = vadd.f32 %v4443_v51, %v13784_v54  ;;  %v4700_v36 = vpop.f32.mrb[111].mxu1  ;;  %v11350_v37 = vpop.eup %11349  ;;  %11369 = vtanh.f32 %v4693_v49  ;;  %v9383_v51 = vpack.c.bf16 %v5663_v44, %v5661_v45 }
 0x64f   : > { %v4701_v39 = vadd.f32 %v4700_v36, %v13784_v54  ;;  %v11352_v40 = vpop.eup %11351  ;;  %11371 = vtanh.f32 %v4442_v53  ;;  %5141 = vmatprep.mubr.f32.mxu0 %v11350_v37  ;;  %v4447_v41 = vpop.f32.mrb[112].mxu0  ;;  %v5660_v36 = vld [vmem:[#allocation6 + $0xde0] sm:$0xff]  ;;  %v5662_v37 = vld [vmem:[#allocation6 + $0xdf0] sm:$0xff] }
 0x650   : > { %v11354_v55 = vpop.eup %11353  ;;  %11373 = vtanh.f32 %v4444_v0  ;;  %5398 = vmatprep.mubr.f32.mxu1 %v11352_v40  ;;  %v4448_v56 = vadd.f32 %v4447_v41, %v13781_v42  ;;  %v4704_v57 = vpop.f32.mrb[112].mxu1  ;;  %5142 = vmatmul.mubr.f32.gmra.mrb[168].mxu0 %v11348_v50 }
 0x651   : > { %v4449_v58 = vpop.f32.mrb[113].mxu0  ;;  %v11356_v59 = vpop.eup %11355  ;;  %11375 = vtanh.f32 %v4701_v39  ;;  %5399 = vmatmul.mubr.f32.gmra.mrb[168].mxu1 %v11354_v55  ;;  %v4705_v63 = vadd.f32 %v4704_v57, %v13781_v42  ;;  %v9385_v55 = vpack.c.bf16 %v5662_v37, %v5660_v36  ;;  %9384 = vmatprep.subr.bf16.mxu0 %v9383_v51  ;;  %v6321_v37 = vld [vmem:[#allocation6 + $0xe08] sm:$0xff] }
 0x652   : > { %v4450_v60 = vadd.f32 %v4449_v58, %v13784_v54  ;;  %v4706_v61 = vpop.f32.mrb[113].mxu1  ;;  %v11358_v62 = vpop.eup %11357  ;;  %11377 = vtanh.f32 %v4699_v38  ;;  %9448 = vmatprep.subr.bf16.mxu1 %v9383_v51 }
 0x653   : > { %v4707_v1 = vadd.f32 %v4706_v61, %v13784_v54  ;;  %v11360_v2 = vpop.eup %11359  ;;  %11379 = vtanh.f32 %v4448_v56  ;;  %5147 = vmatprep.mubr.f32.mxu0 %v11358_v62  ;;  %v4453_v3 = vpop.f32.mrb[114].mxu0  ;;  %9386 = vmatpush1.bf16.msra.mxu0 %v9385_v55 }
 0x654   : > { %v11362_v4 = vpop.eup %11361  ;;  %11381 = vtanh.f32 %v4450_v60  ;;  %5404 = vmatprep.mubr.f32.mxu1 %v11360_v2  ;;  %v4454_v5 = vadd.f32 %v4453_v3, %v13781_v42  ;;  %v4710_v6 = vpop.f32.mrb[114].mxu1  ;;  %5148 = vmatmul.mubr.f32.gmra.mrb[170].mxu0 %v11356_v59 }
 0x655   : > { %v4455_v7 = vpop.f32.mrb[115].mxu0  ;;  %v11364_v8 = vpop.eup %11363  ;;  %11383 = vtanh.f32 %v4707_v1  ;;  %5405 = vmatmul.mubr.f32.gmra.mrb[170].mxu1 %v11362_v4  ;;  %v4711_v12 = vadd.f32 %v4710_v6, %v13781_v42 }
 0x656   : > { %v4456_v9 = vadd.f32 %v4455_v7, %v13784_v54  ;;  %v4712_v10 = vpop.f32.mrb[115].mxu1  ;;  %v11366_v11 = vpop.eup %11365  ;;  %11385 = vtanh.f32 %v4705_v63  ;;  %9450 = vmatpush1.bf16.msra.mxu1 %v9385_v55 }
 0x657   : > { %v4713_v13 = vadd.f32 %v4712_v10, %v13784_v54  ;;  %v11368_v14 = vpop.eup %11367  ;;  %11387 = vtanh.f32 %v4454_v5  ;;  %5153 = vmatprep.mubr.f32.mxu0 %v11366_v11  ;;  %v4459_v15 = vpop.f32.mrb[116].mxu0 }
 0x658   : > { %v11370_v18 = vpop.eup %11369  ;;  %11389 = vtanh.f32 %v4456_v9  ;;  %5410 = vmatprep.mubr.f32.mxu1 %v11368_v14  ;;  %v4460_v19 = vadd.f32 %v4459_v15, %v13781_v42  ;;  %v4716_v20 = vpop.f32.mrb[116].mxu1  ;;  %5154 = vmatmul.mubr.f32.gmra.mrb[172].mxu0 %v11364_v8 }
 0x659   : > { %v4461_v21 = vpop.f32.mrb[117].mxu0  ;;  %v11372_v23 = vpop.eup %11371  ;;  %11391 = vtanh.f32 %v4713_v13  ;;  %5411 = vmatmul.mubr.f32.gmra.mrb[172].mxu1 %v11370_v18  ;;  %v4717_v27 = vadd.f32 %v4716_v20, %v13781_v42 }
 0x65a   : > { %v4462_v24 = vadd.f32 %v4461_v21, %v13784_v54  ;;  %v4718_v25 = vpop.f32.mrb[117].mxu1  ;;  %v11374_v26 = vpop.eup %11373  ;;  %11393 = vtanh.f32 %v4711_v12 }
 0x65b   : > { %v4719_v28 = vadd.f32 %v4718_v25, %v13784_v54  ;;  %v11376_v29 = vpop.eup %11375  ;;  %11395 = vtanh.f32 %v4460_v19  ;;  %5159 = vmatprep.mubr.f32.mxu0 %v11374_v26  ;;  %v4465_v30 = vpop.f32.mrb[118].mxu0 }
 0x65c   : > { %v11378_v31 = vpop.eup %11377  ;;  %11397 = vtanh.f32 %v4462_v24  ;;  %5416 = vmatprep.mubr.f32.mxu1 %v11376_v29  ;;  %v4466_v32 = vadd.f32 %v4465_v30, %v13781_v42  ;;  %v4722_v33 = vpop.f32.mrb[118].mxu1  ;;  %5160 = vmatmul.mubr.f32.gmra.mrb[174].mxu0 %v11372_v23 }
 0x65d   : > { %v4467_v34 = vpop.f32.mrb[119].mxu0  ;;  %v11380_v35 = vpop.eup %11379  ;;  %11399 = vtanh.f32 %v4719_v28  ;;  %5417 = vmatmul.mubr.f32.gmra.mrb[174].mxu1 %v11378_v31  ;;  %v4723_v53 = vadd.f32 %v4722_v33, %v13781_v42 }
 0x65e   : > { %v4468_v49 = vadd.f32 %v4467_v34, %v13784_v54  ;;  %v4724_v47 = vpop.f32.mrb[119].mxu1  ;;  %v11382_v43 = vpop.eup %11381  ;;  %11401 = vtanh.f32 %v4717_v27 }
 0x65f   : > { %v4725_v52 = vadd.f32 %v4724_v47, %v13784_v54  ;;  %v11384_v50 = vpop.eup %11383  ;;  %11403 = vtanh.f32 %v4466_v32  ;;  %5165 = vmatprep.mubr.f32.mxu0 %v11382_v43  ;;  %v4471_v0 = vpop.f32.mrb[120].mxu0 }
 0x660   : > { %v11386_v38 = vpop.eup %11385  ;;  %11405 = vtanh.f32 %v4468_v49  ;;  %5422 = vmatprep.mubr.f32.mxu1 %v11384_v50  ;;  %v4472_v39 = vadd.f32 %v4471_v0, %v13781_v42  ;;  %v4728_v40 = vpop.f32.mrb[120].mxu1  ;;  %5166 = vmatmul.mubr.f32.gmra.mrb[176].mxu0 %v11380_v35 }
 0x661   : > { %v4473_v41 = vpop.f32.mrb[121].mxu0  ;;  %v11388_v56 = vpop.eup %11387  ;;  %11407 = vtanh.f32 %v4725_v52  ;;  %5423 = vmatmul.mubr.f32.gmra.mrb[176].mxu1 %v11386_v38  ;;  %v4729_v60 = vadd.f32 %v4728_v40, %v13781_v42  ;;  %v6323_v38 = vld [vmem:[#allocation6 + $0xe18] sm:$0xff]  ;;  %v4945_v40 = vld [vmem:[#allocation7 + $0x5] ss:$8 sm:$0x3] }
 0x662   : > { %v4474_v57 = vadd.f32 %v4473_v41, %v13784_v54  ;;  %v4730_v58 = vpop.f32.mrb[121].mxu1  ;;  %v11390_v59 = vpop.eup %11389  ;;  %11409 = vtanh.f32 %v4723_v53  ;;  %v13915_v41 = vrot.slane %v4945_v40, %v13106_v46  ;;  %v13918_v55 = vrot.slane %v4945_v40, %v13108_v48  ;;  %v6330_v40 = vld [vmem:[#allocation6 + $0xe50] sm:$0xff] }
 0x663   : > { %v4731_v61 = vadd.f32 %v4730_v58, %v13784_v54  ;;  %v11392_v62 = vpop.eup %11391  ;;  %11411 = vtanh.f32 %v4472_v39  ;;  %5171 = vmatprep.mubr.f32.mxu0 %v11390_v59  ;;  %v4477_v63 = vpop.f32.mrb[122].mxu0  ;;  %v9451_v39 = vpack.c.bf16 %v6323_v38, %v6321_v37 }
 0x664   : > { %v11394_v1 = vpop.eup %11393  ;;  %11413 = vtanh.f32 %v4474_v57  ;;  %5428 = vmatprep.mubr.f32.mxu1 %v11392_v62  ;;  %v4478_v2 = vadd.f32 %v4477_v63, %v13781_v42  ;;  %v4734_v3 = vpop.f32.mrb[122].mxu1  ;;  %5172 = vmatmul.mubr.f32.gmra.mrb[178].mxu0 %v11388_v56 }
 0x665   : > { %v4479_v4 = vpop.f32.mrb[123].mxu0  ;;  %v11396_v5 = vpop.eup %11395  ;;  %11415 = vtanh.f32 %v4731_v61  ;;  %5429 = vmatmul.mubr.f32.gmra.mrb[178].mxu1 %v11394_v1  ;;  %v4735_v9 = vadd.f32 %v4734_v3, %v13781_v42  ;;  %9452 = vmatprep.subr.bf16.mxu0 %v9451_v39 }
 0x666   : > { %v4480_v6 = vadd.f32 %v4479_v4, %v13784_v54  ;;  %v4736_v7 = vpop.f32.mrb[123].mxu1  ;;  %v11398_v8 = vpop.eup %11397  ;;  %11417 = vtanh.f32 %v4729_v60  ;;  %9516 = vmatprep.subr.bf16.mxu1 %v9451_v39  ;;  %v6328_v39 = vld [vmem:[#allocation6 + $0xe40] sm:$0xff] }
 0x667   : > { %v4737_v10 = vadd.f32 %v4736_v7, %v13784_v54  ;;  %v11400_v11 = vpop.eup %11399  ;;  %11419 = vtanh.f32 %v4478_v2  ;;  %5177 = vmatprep.mubr.f32.mxu0 %v11398_v8  ;;  %v4483_v12 = vpop.f32.mrb[124].mxu0 }
 0x668   : > { %v11402_v13 = vpop.eup %11401  ;;  %11421 = vtanh.f32 %v4480_v6  ;;  %5434 = vmatprep.mubr.f32.mxu1 %v11400_v11  ;;  %v4484_v14 = vadd.f32 %v4483_v12, %v13781_v42  ;;  %v4740_v15 = vpop.f32.mrb[124].mxu1  ;;  %5178 = vmatmul.mubr.f32.gmra.mrb[180].mxu0 %v11396_v5 }
 0x669   : > { %v4485_v16 = vpop.f32.mrb[125].mxu0  ;;  %v11404_v17 = vpop.eup %11403  ;;  %11423 = vtanh.f32 %v4737_v10  ;;  %5435 = vmatmul.mubr.f32.gmra.mrb[180].mxu1 %v11402_v13  ;;  %v4741_v21 = vadd.f32 %v4740_v15, %v13781_v42 }
 0x66a   : > { %v4486_v18 = vadd.f32 %v4485_v16, %v13784_v54  ;;  %v4742_v19 = vpop.f32.mrb[125].mxu1  ;;  %v11406_v20 = vpop.eup %11405  ;;  %11425 = vtanh.f32 %v4735_v9 }
 0x66b   : > { %v4743_v22 = vadd.f32 %v4742_v19, %v13784_v54  ;;  %v11408_v23 = vpop.eup %11407  ;;  %11427 = vtanh.f32 %v4484_v14  ;;  %5183 = vmatprep.mubr.f32.mxu0 %v11406_v20  ;;  %v4489_v24 = vpop.f32.mrb[126].mxu0  ;;  %v6325_v20 = vld [vmem:[#allocation6 + $0xe28] sm:$0xff] }
 0x66c   : > { %v11410_v25 = vpop.eup %11409  ;;  %11429 = vtanh.f32 %v4486_v18  ;;  %5440 = vmatprep.mubr.f32.mxu1 %v11408_v23  ;;  %v4490_v26 = vadd.f32 %v4489_v24, %v13781_v42  ;;  %v4746_v27 = vpop.f32.mrb[126].mxu1  ;;  %5184 = vmatmul.mubr.f32.gmra.mrb[182].mxu0 %v11404_v17  ;;  %v6320_v17 = vld [vmem:[#allocation6 + $0xe00] sm:$0xff]  ;;  %v6322_v18 = vld [vmem:[#allocation6 + $0xe10] sm:$0xff] }
 0x66d   : > { %v4491_v28 = vpop.f32.mrb[127].mxu0  ;;  %v11412_v29 = vpop.eup %11411  ;;  %11431 = vtanh.f32 %v4743_v22  ;;  %5441 = vmatmul.mubr.f32.gmra.mrb[182].mxu1 %v11410_v25  ;;  %v4747_v33 = vadd.f32 %v4746_v27, %v13781_v42 }
 0x66e   : > { %v4492_v30 = vadd.f32 %v4491_v28, %v13784_v54  ;;  %v4748_v31 = vpop.f32.mrb[127].mxu1  ;;  %v11414_v32 = vpop.eup %11413  ;;  %11433 = vtanh.f32 %v4741_v21  ;;  %v6327_v21 = vld [vmem:[#allocation6 + $0xe38] sm:$0xff]  ;;  %v9453_v28 = vpack.c.bf16 %v6322_v18, %v6320_v17 }
 0x66f   : > { %v4749_v34 = vadd.f32 %v4748_v31, %v13784_v54  ;;  %v11416_v35 = vpop.eup %11415  ;;  %11435 = vtanh.f32 %v4490_v26  ;;  %5189 = vmatprep.mubr.f32.mxu0 %v11414_v32  ;;  %v9455_v32 = vpack.c.bf16 %v6327_v21, %v6325_v20 }
 0x670   : > { %v11418_v49 = vpop.eup %11417  ;;  %11437 = vtanh.f32 %v4492_v30  ;;  %5446 = vmatprep.mubr.f32.mxu1 %v11416_v35  ;;  %5190 = vmatmul.mubr.f32.gmra.mrb[184].mxu0 %v11412_v29 }
 0x671   : > { %v11420_v47 = vpop.eup %11419  ;;  %11439 = vtanh.f32 %v4749_v34  ;;  %5447 = vmatmul.mubr.f32.gmra.mrb[184].mxu1 %v11418_v49  ;;  %v6326_v34 = vld [vmem:[#allocation6 + $0xe30] sm:$0xff] }
 0x672   : > { %v11422_v45 = vpop.eup %11421  ;;  %11441 = vtanh.f32 %v4747_v33  ;;  %v6324_v33 = vld [vmem:[#allocation6 + $0xe20] sm:$0xff] }
 0x673   : > { %v11424_v44 = vpop.eup %11423  ;;  %5195 = vmatprep.mubr.f32.mxu0 %v11422_v45  ;;  %v6331_v45 = vld [vmem:[#allocation6 + $0xe58] sm:$0xff] }
 0x674   : > { %v11426_v43 = vpop.eup %11425  ;;  %5452 = vmatprep.mubr.f32.mxu1 %v11424_v44  ;;  %5196 = vmatmul.mubr.f32.gmra.mrb[186].mxu0 %v11420_v47  ;;  %v6329_v47 = vld [vmem:[#allocation6 + $0xe48] sm:$0xff] }
 0x675   : > { %v11428_v42 = vpop.eup %11427  ;;  %5453 = vmatmul.mubr.f32.gmra.mrb[186].mxu1 %v11426_v43  ;;  %v9459_v38 = vpack.c.bf16 %v6331_v45, %v6329_v47 }
 0x676   : > { %v11430_v54 = vpop.eup %11429 }
 0x677   : > { %v11432_v53 = vpop.eup %11431  ;;  %5201 = vmatprep.mubr.f32.mxu0 %v11430_v54 }
 0x678   : > { %v11434_v52 = vpop.eup %11433  ;;  %5458 = vmatprep.mubr.f32.mxu1 %v11432_v53  ;;  %5202 = vmatmul.mubr.f32.gmra.mrb[188].mxu0 %v11428_v42 }
 0x679   : > { %v11436_v51 = vpop.eup %11435  ;;  %5459 = vmatmul.mubr.f32.gmra.mrb[188].mxu1 %v11434_v52 }
 0x67a   : > { %v11438_v50 = vpop.eup %11437 }
 0x67b   : > { %v11440_v0 = vpop.eup %11439  ;;  %5207 = vmatprep.mubr.f32.mxu0 %v11438_v50  ;;  %v9457_v50 = vpack.c.bf16 %v6326_v34, %v6324_v33 }
 0x67c   : > { %v11442_v36 = vpop.eup %11441  ;;  %5464 = vmatprep.mubr.f32.mxu1 %v11440_v0  ;;  %5208 = vmatmul.mubr.f32.gmra.mrb[190].mxu0 %v11436_v51 }
 0x67d   : > { %5465 = vmatmul.mubr.f32.gmra.mrb[190].mxu1 %v11442_v36 }
 0x6d2   : > { %v5023_v56 = vpop.f32.mrb[128].mxu0 }
 0x6d3   : > { %v5024_v57 = vadd.f32 %v5023_v56, %v13915_v41  ;;  %v5280_v58 = vpop.f32.mrb[128].mxu1  ;;  %v5025_v59 = vpop.f32.mrb[129].mxu0 }
 0x6d4   : > { %v5026_v60 = vadd.f32 %v5025_v59, %v13918_v55  ;;  %v5282_v61 = vpop.f32.mrb[129].mxu1  ;;  %v5281_v62 = vadd.f32 %v5280_v58, %v13915_v41  ;;  %v6333_v58 = vld [vmem:[#allocation6 + $0xe68] sm:$0xff]  ;;  %v6335_v59 = vld [vmem:[#allocation6 + $0xe78] sm:$0xff] }
 0x6d5   : > { %v5283_v63 = vadd.f32 %v5282_v61, %v13918_v55  ;;  %11443 = vtanh.f32 %v5024_v57 }
 0x6d6   : > { %11445 = vtanh.f32 %v5026_v60 }
 0x6d7   : > { %v5029_v1 = vpop.f32.mrb[130].mxu0  ;;  %11447 = vtanh.f32 %v5283_v63 }
 0x6d8   : > { %v5030_v2 = vadd.f32 %v5029_v1, %v13915_v41  ;;  %v5286_v3 = vpop.f32.mrb[130].mxu1  ;;  %v5031_v4 = vpop.f32.mrb[131].mxu0  ;;  %11449 = vtanh.f32 %v5281_v62 }
 0x6d9   : > { %v5032_v5 = vadd.f32 %v5031_v4, %v13918_v55  ;;  %v5288_v6 = vpop.f32.mrb[131].mxu1  ;;  %v5287_v7 = vadd.f32 %v5286_v3, %v13915_v41  ;;  %v9461_v4 = vpack.c.bf16 %v6330_v40, %v6328_v39 }
 0x6da   : > { %v5289_v8 = vadd.f32 %v5288_v6, %v13918_v55  ;;  %11451 = vtanh.f32 %v5030_v2 }
 0x6db   : > { %v5035_v9 = vpop.f32.mrb[132].mxu0  ;;  %11453 = vtanh.f32 %v5032_v5 }
 0x6dc   : > { %v5036_v10 = vadd.f32 %v5035_v9, %v13915_v41  ;;  %v5292_v11 = vpop.f32.mrb[132].mxu1  ;;  %v5037_v12 = vpop.f32.mrb[133].mxu0  ;;  %11455 = vtanh.f32 %v5289_v8  ;;  %v9463_v8 = vpack.c.bf16 %v6335_v59, %v6333_v58  ;;  %v6332_v9 = vld [vmem:[#allocation6 + $0xe60] sm:$0xff] }
 0x6dd   : > { %v5038_v13 = vadd.f32 %v5037_v12, %v13918_v55  ;;  %v5294_v14 = vpop.f32.mrb[133].mxu1  ;;  %11457 = vtanh.f32 %v5287_v7  ;;  %v5293_v15 = vadd.f32 %v5292_v11, %v13915_v41 }
 0x6de   : > { %v5295_v16 = vadd.f32 %v5294_v14, %v13918_v55  ;;  %11459 = vtanh.f32 %v5036_v10  ;;  %v6334_v10 = vld [vmem:[#allocation6 + $0xe70] sm:$0xff]  ;;  %v6339_v14 = vld [vmem:[#allocation6 + $0xe98] sm:$0xff] }
 0x6df   : > { %v5041_v19 = vpop.f32.mrb[134].mxu0  ;;  %11461 = vtanh.f32 %v5038_v13  ;;  %v11444_v25 = vpop.eup %11443  ;;  %v6337_v13 = vld [vmem:[#allocation6 + $0xe88] sm:$0xff] }
 0x6e0   : > { %v5042_v22 = vadd.f32 %v5041_v19, %v13915_v41  ;;  %v5298_v23 = vpop.f32.mrb[134].mxu1  ;;  %v5043_v24 = vpop.f32.mrb[135].mxu0  ;;  %11463 = vtanh.f32 %v5295_v16 }
 0x6e1   : > { %v5044_v26 = vadd.f32 %v5043_v24, %v13918_v55  ;;  %v5300_v27 = vpop.f32.mrb[135].mxu1  ;;  %v11446_v29 = vpop.eup %11445  ;;  %11465 = vtanh.f32 %v5293_v15  ;;  %v5299_v30 = vadd.f32 %v5298_v23, %v13915_v41 }
 0x6e2   : > { %v5301_v31 = vadd.f32 %v5300_v27, %v13918_v55  ;;  %v11448_v35 = vpop.eup %11447  ;;  %11467 = vtanh.f32 %v5042_v22  ;;  %5741 = vmatprep.mubr.f32.mxu0 %v11446_v29  ;;  %v9465_v22 = vpack.c.bf16 %v6334_v10, %v6332_v9  ;;  %v6336_v27 = vld [vmem:[#allocation6 + $0xe80] sm:$0xff] }
 0x6e3   : > { %v5047_v49 = vpop.f32.mrb[136].mxu0  ;;  %v11450_v44 = vpop.eup %11449  ;;  %11469 = vtanh.f32 %v5044_v26  ;;  %5998 = vmatprep.mubr.f32.mxu1 %v11448_v35  ;;  %5742 = vmatmul.mubr.f32.vlgmr.msra.gmra.mrb[192].mxu0 %v11444_v25  ;;  %v9467_v26 = vpack.c.bf16 %v6339_v14, %v6337_v13 }
 0x6e4   : > { %v5048_v43 = vadd.f32 %v5047_v49, %v13915_v41  ;;  %v5304_v42 = vpop.f32.mrb[136].mxu1  ;;  %v5049_v54 = vpop.f32.mrb[137].mxu0  ;;  %11471 = vtanh.f32 %v5301_v31  ;;  %5999 = vmatmul.mubr.f32.vlgmr.msra.gmra.mrb[192].mxu1 %v11450_v44  ;;  %9454 = vmatpush1.bf16.msra.mxu0 %v9453_v28  ;;  %v6341_v31 = vld [vmem:[#allocation6 + $0xea8] sm:$0xff] }
 0x6e5   : > { %v11452_v53 = vpop.eup %11451  ;;  %v5050_v52 = vadd.f32 %v5049_v54, %v13918_v55  ;;  %v5306_v51 = vpop.f32.mrb[137].mxu1  ;;  %11473 = vtanh.f32 %v5299_v30  ;;  %v5305_v36 = vadd.f32 %v5304_v42, %v13915_v41  ;;  %9518 = vmatpush1.bf16.msra.mxu1 %v9453_v28  ;;  %9456 = vmatprep.subr.bf16.mxu0 %v9455_v32  ;;  %v6338_v28 = vld [vmem:[#allocation6 + $0xe90] sm:$0xff] }
 0x6e6   : > { %v11454_v0 = vpop.eup %11453  ;;  %v5307_v37 = vadd.f32 %v5306_v51, %v13918_v55  ;;  %11475 = vtanh.f32 %v5048_v43  ;;  %9520 = vmatprep.subr.bf16.mxu1 %v9455_v32  ;;  %v6343_v32 = vld [vmem:[#allocation6 + $0xeb8] sm:$0xff]  ;;  %v9469_v43 = vpack.c.bf16 %v6338_v28, %v6336_v27  ;;  %v6340_v51 = vld [vmem:[#allocation6 + $0xea0] sm:$0xff] }
 0x6e7   : > { %v11456_v56 = vpop.eup %11455  ;;  %5747 = vmatprep.mubr.f32.mxu0 %v11454_v0  ;;  %v5053_v57 = vpop.f32.mrb[138].mxu0  ;;  %11477 = vtanh.f32 %v5050_v52  ;;  %v9471_v52 = vpack.c.bf16 %v6343_v32, %v6341_v31 }
 0x6e8   : > { %v11458_v60 = vpop.eup %11457  ;;  %6004 = vmatprep.mubr.f32.mxu1 %v11456_v56  ;;  %v5054_v61 = vadd.f32 %v5053_v57, %v13915_v41  ;;  %v5310_v62 = vpop.f32.mrb[138].mxu1  ;;  %5748 = vmatmul.mubr.f32.gmra.mrb[194].mxu0 %v11452_v53  ;;  %11479 = vtanh.f32 %v5307_v37  ;;  %v6345_v37 = vld [vmem:[#allocation6 + $0xec8] sm:$0xff] }
 0x6e9   : > { %v5055_v63 = vpop.f32.mrb[139].mxu0  ;;  %v11460_v1 = vpop.eup %11459  ;;  %6005 = vmatmul.mubr.f32.gmra.mrb[194].mxu1 %v11458_v60  ;;  %9458 = vmatpush1.bf16.msra.mxu0 %v9457_v50  ;;  %11481 = vtanh.f32 %v5305_v36  ;;  %v5311_v6 = vadd.f32 %v5310_v62, %v13915_v41 }
 0x6ea   : > { %v5056_v2 = vadd.f32 %v5055_v63, %v13918_v55  ;;  %v5312_v3 = vpop.f32.mrb[139].mxu1  ;;  %v11462_v5 = vpop.eup %11461  ;;  %9522 = vmatpush1.bf16.msra.mxu1 %v9457_v50  ;;  %9460 = vmatprep.subr.bf16.mxu0 %v9459_v38  ;;  %11483 = vtanh.f32 %v5054_v61  ;;  %v6342_v50 = vld [vmem:[#allocation6 + $0xeb0] sm:$0xff] }
 0x6eb   : > { %v5313_v7 = vadd.f32 %v5312_v3, %v13918_v55  ;;  %v11464_v11 = vpop.eup %11463  ;;  %5753 = vmatprep.mubr.f32.mxu0 %v11462_v5  ;;  %v5059_v12 = vpop.f32.mrb[140].mxu0  ;;  %9524 = vmatprep.subr.bf16.mxu1 %v9459_v38  ;;  %v6347_v38 = vld [vmem:[#allocation6 + $0xed8] sm:$0xff]  ;;  %v9473_v61 = vpack.c.bf16 %v6342_v50, %v6340_v51  ;;  %v6344_v3 = vld [vmem:[#allocation6 + $0xec0] sm:$0xff] }
 0x6ec   : > { %v11466_v15 = vpop.eup %11465  ;;  %11485 = vtanh.f32 %v5056_v2  ;;  %6010 = vmatprep.mubr.f32.mxu1 %v11464_v11  ;;  %v5060_v16 = vadd.f32 %v5059_v12, %v13915_v41  ;;  %v5316_v17 = vpop.f32.mrb[140].mxu1  ;;  %5754 = vmatmul.mubr.f32.gmra.mrb[196].mxu0 %v11460_v1  ;;  %v9475_v2 = vpack.c.bf16 %v6347_v38, %v6345_v37 }
 0x6ed   : > { %v5061_v18 = vpop.f32.mrb[141].mxu0  ;;  %v11468_v19 = vpop.eup %11467  ;;  %11487 = vtanh.f32 %v5313_v7  ;;  %6011 = vmatmul.mubr.f32.gmra.mrb[196].mxu1 %v11466_v15  ;;  %9462 = vmatpush1.bf16.msra.mxu0 %v9461_v4  ;;  %v5317_v24 = vadd.f32 %v5316_v17, %v13915_v41  ;;  %v6349_v7 = vld [vmem:[#allocation6 + $0xee8] sm:$0xff] }
 0x6ee   : > { %v5062_v20 = vadd.f32 %v5061_v18, %v13918_v55  ;;  %v5318_v21 = vpop.f32.mrb[141].mxu1  ;;  %v11470_v23 = vpop.eup %11469  ;;  %11489 = vtanh.f32 %v5311_v6  ;;  %9526 = vmatpush1.bf16.msra.mxu1 %v9461_v4  ;;  %9464 = vmatprep.subr.bf16.mxu0 %v9463_v8  ;;  %v6346_v4 = vld [vmem:[#allocation6 + $0xed0] sm:$0xff] }
 0x6ef   : > { %v5319_v25 = vadd.f32 %v5318_v21, %v13918_v55  ;;  %v11472_v29 = vpop.eup %11471  ;;  %11491 = vtanh.f32 %v5060_v16  ;;  %5759 = vmatprep.mubr.f32.mxu0 %v11470_v23  ;;  %v5065_v30 = vpop.f32.mrb[142].mxu0  ;;  %9528 = vmatprep.subr.bf16.mxu1 %v9463_v8  ;;  %v6351_v8 = vld [vmem:[#allocation6 + $0xef8] sm:$0xff]  ;;  %v9477_v16 = vpack.c.bf16 %v6346_v4, %v6344_v3  ;;  %v6348_v21 = vld [vmem:[#allocation6 + $0xee0] sm:$0xff] }
 0x6f0   : > { %v11474_v33 = vpop.eup %11473  ;;  %11493 = vtanh.f32 %v5062_v20  ;;  %6016 = vmatprep.mubr.f32.mxu1 %v11472_v29  ;;  %v5066_v34 = vadd.f32 %v5065_v30, %v13915_v41  ;;  %v5322_v35 = vpop.f32.mrb[142].mxu1  ;;  %5760 = vmatmul.mubr.f32.gmra.mrb[198].mxu0 %v11468_v19  ;;  %v9479_v20 = vpack.c.bf16 %v6351_v8, %v6349_v7 }
 0x6f1   : > { %v5067_v49 = vpop.f32.mrb[143].mxu0  ;;  %v11476_v47 = vpop.eup %11475  ;;  %11495 = vtanh.f32 %v5319_v25  ;;  %6017 = vmatmul.mubr.f32.gmra.mrb[198].mxu1 %v11474_v33  ;;  %9466 = vmatpush1.bf16.msra.mxu0 %v9465_v22  ;;  %v5323_v54 = vadd.f32 %v5322_v35, %v13915_v41  ;;  %v6353_v25 = vld [vmem:[#allocation6 + $0xf08] sm:$0xff] }
 0x6f2   : > { %v5068_v45 = vadd.f32 %v5067_v49, %v13918_v55  ;;  %v5324_v44 = vpop.f32.mrb[143].mxu1  ;;  %v11478_v42 = vpop.eup %11477  ;;  %11497 = vtanh.f32 %v5317_v24  ;;  %9530 = vmatpush1.bf16.msra.mxu1 %v9465_v22  ;;  %9468 = vmatprep.subr.bf16.mxu0 %v9467_v26  ;;  %v6350_v22 = vld [vmem:[#allocation6 + $0xef0] sm:$0xff] }
 0x6f3   : > { %v5325_v53 = vadd.f32 %v5324_v44, %v13918_v55  ;;  %v11480_v0 = vpop.eup %11479  ;;  %11499 = vtanh.f32 %v5066_v34  ;;  %5765 = vmatprep.mubr.f32.mxu0 %v11478_v42  ;;  %v5071_v36 = vpop.f32.mrb[144].mxu0  ;;  %9532 = vmatprep.subr.bf16.mxu1 %v9467_v26  ;;  %v6355_v26 = vld [vmem:[#allocation6 + $0xf18] sm:$0xff]  ;;  %v9481_v34 = vpack.c.bf16 %v6350_v22, %v6348_v21  ;;  %v6352_v44 = vld [vmem:[#allocation6 + $0xf00] sm:$0xff] }
 0x6f4   : > { %v11482_v39 = vpop.eup %11481  ;;  %11501 = vtanh.f32 %v5068_v45  ;;  %6022 = vmatprep.mubr.f32.mxu1 %v11480_v0  ;;  %v5072_v40 = vadd.f32 %v5071_v36, %v13915_v41  ;;  %v5328_v56 = vpop.f32.mrb[144].mxu1  ;;  %5766 = vmatmul.mubr.f32.gmra.mrb[200].mxu0 %v11476_v47  ;;  %v9483_v45 = vpack.c.bf16 %v6355_v26, %v6353_v25 }
 0x6f5   : > { %v5073_v57 = vpop.f32.mrb[145].mxu0  ;;  %v11484_v58 = vpop.eup %11483  ;;  %11503 = vtanh.f32 %v5325_v53  ;;  %6023 = vmatmul.mubr.f32.gmra.mrb[200].mxu1 %v11482_v39  ;;  %9470 = vmatpush1.bf16.msra.mxu0 %v9469_v43  ;;  %v5329_v63 = vadd.f32 %v5328_v56, %v13915_v41  ;;  %v6357_v53 = vld [vmem:[#allocation6 + $0xf28] sm:$0xff] }
 0x6f6   : > { %v5074_v59 = vadd.f32 %v5073_v57, %v13918_v55  ;;  %v5330_v60 = vpop.f32.mrb[145].mxu1  ;;  %v11486_v62 = vpop.eup %11485  ;;  %11505 = vtanh.f32 %v5323_v54  ;;  %9534 = vmatpush1.bf16.msra.mxu1 %v9469_v43  ;;  %9472 = vmatprep.subr.bf16.mxu0 %v9471_v52  ;;  %v6354_v43 = vld [vmem:[#allocation6 + $0xf10] sm:$0xff] }
 0x6f7   : > { %v5331_v1 = vadd.f32 %v5330_v60, %v13918_v55  ;;  %v11488_v5 = vpop.eup %11487  ;;  %11507 = vtanh.f32 %v5072_v40  ;;  %5771 = vmatprep.mubr.f32.mxu0 %v11486_v62  ;;  %v5077_v6 = vpop.f32.mrb[146].mxu0  ;;  %9536 = vmatprep.subr.bf16.mxu1 %v9471_v52  ;;  %v6359_v52 = vld [vmem:[#allocation6 + $0xf38] sm:$0xff]  ;;  %v9485_v40 = vpack.c.bf16 %v6354_v43, %v6352_v44  ;;  %v6356_v60 = vld [vmem:[#allocation6 + $0xf20] sm:$0xff] }
 0x6f8   : > { %v11490_v9 = vpop.eup %11489  ;;  %11509 = vtanh.f32 %v5074_v59  ;;  %6028 = vmatprep.mubr.f32.mxu1 %v11488_v5  ;;  %v5078_v10 = vadd.f32 %v5077_v6, %v13915_v41  ;;  %v5334_v11 = vpop.f32.mrb[146].mxu1  ;;  %5772 = vmatmul.mubr.f32.gmra.mrb[202].mxu0 %v11484_v58  ;;  %v9487_v59 = vpack.c.bf16 %v6359_v52, %v6357_v53 }
 0x6f9   : > { %v5079_v12 = vpop.f32.mrb[147].mxu0  ;;  %v11492_v13 = vpop.eup %11491  ;;  %11511 = vtanh.f32 %v5331_v1  ;;  %6029 = vmatmul.mubr.f32.gmra.mrb[202].mxu1 %v11490_v9  ;;  %9474 = vmatpush1.bf16.msra.mxu0 %v9473_v61  ;;  %v5335_v18 = vadd.f32 %v5334_v11, %v13915_v41  ;;  %v6361_v1 = vld [vmem:[#allocation6 + $0xf48] sm:$0xff] }
 0x6fa   : > { %v5080_v14 = vadd.f32 %v5079_v12, %v13918_v55  ;;  %v5336_v15 = vpop.f32.mrb[147].mxu1  ;;  %v11494_v17 = vpop.eup %11493  ;;  %11513 = vtanh.f32 %v5329_v63  ;;  %9538 = vmatpush1.bf16.msra.mxu1 %v9473_v61  ;;  %9476 = vmatprep.subr.bf16.mxu0 %v9475_v2  ;;  %v6358_v61 = vld [vmem:[#allocation6 + $0xf30] sm:$0xff] }
 0x6fb   : > { %v5337_v19 = vadd.f32 %v5336_v15, %v13918_v55  ;;  %v11496_v23 = vpop.eup %11495  ;;  %11515 = vtanh.f32 %v5078_v10  ;;  %5777 = vmatprep.mubr.f32.mxu0 %v11494_v17  ;;  %v5083_v24 = vpop.f32.mrb[148].mxu0  ;;  %9540 = vmatprep.subr.bf16.mxu1 %v9475_v2  ;;  %v6363_v2 = vld [vmem:[#allocation6 + $0xf58] sm:$0xff]  ;;  %v9489_v10 = vpack.c.bf16 %v6358_v61, %v6356_v60  ;;  %v6360_v15 = vld [vmem:[#allocation6 + $0xf40] sm:$0xff] }
 0x6fc   : > { %v11498_v27 = vpop.eup %11497  ;;  %11517 = vtanh.f32 %v5080_v14  ;;  %6034 = vmatprep.mubr.f32.mxu1 %v11496_v23  ;;  %v5084_v28 = vadd.f32 %v5083_v24, %v13915_v41  ;;  %v5340_v29 = vpop.f32.mrb[148].mxu1  ;;  %5778 = vmatmul.mubr.f32.gmra.mrb[204].mxu0 %v11492_v13  ;;  %v9491_v14 = vpack.c.bf16 %v6363_v2, %v6361_v1 }
 0x6fd   : > { %v5085_v30 = vpop.f32.mrb[149].mxu0  ;;  %v11500_v31 = vpop.eup %11499  ;;  %11519 = vtanh.f32 %v5337_v19  ;;  %6035 = vmatmul.mubr.f32.gmra.mrb[204].mxu1 %v11498_v27  ;;  %9478 = vmatpush1.bf16.msra.mxu0 %v9477_v16  ;;  %v5341_v49 = vadd.f32 %v5340_v29, %v13915_v41  ;;  %v6365_v19 = vld [vmem:[#allocation6 + $0xf68] sm:$0xff] }
 0x6fe   : > { %v5086_v32 = vadd.f32 %v5085_v30, %v13918_v55  ;;  %v5342_v33 = vpop.f32.mrb[149].mxu1  ;;  %v11502_v35 = vpop.eup %11501  ;;  %11521 = vtanh.f32 %v5335_v18  ;;  %9542 = vmatpush1.bf16.msra.mxu1 %v9477_v16  ;;  %9480 = vmatprep.subr.bf16.mxu0 %v9479_v20  ;;  %v6362_v16 = vld [vmem:[#allocation6 + $0xf50] sm:$0xff] }
 0x6ff   : > { %v5343_v47 = vadd.f32 %v5342_v33, %v13918_v55  ;;  %v11504_v42 = vpop.eup %11503  ;;  %11523 = vtanh.f32 %v5084_v28  ;;  %5783 = vmatprep.mubr.f32.mxu0 %v11502_v35  ;;  %v5089_v54 = vpop.f32.mrb[150].mxu0  ;;  %9544 = vmatprep.subr.bf16.mxu1 %v9479_v20  ;;  %v6367_v20 = vld [vmem:[#allocation6 + $0xf78] sm:$0xff]  ;;  %v9493_v28 = vpack.c.bf16 %v6362_v16, %v6360_v15  ;;  %v6364_v33 = vld [vmem:[#allocation6 + $0xf60] sm:$0xff] }
 0x700   : > { %v11506_v51 = vpop.eup %11505  ;;  %11525 = vtanh.f32 %v5086_v32  ;;  %6040 = vmatprep.mubr.f32.mxu1 %v11504_v42  ;;  %v5090_v50 = vadd.f32 %v5089_v54, %v13915_v41  ;;  %v5346_v0 = vpop.f32.mrb[150].mxu1  ;;  %5784 = vmatmul.mubr.f32.gmra.mrb[206].mxu0 %v11500_v31  ;;  %v9495_v32 = vpack.c.bf16 %v6367_v20, %v6365_v19 }
 0x701   : > { %v5091_v36 = vpop.f32.mrb[151].mxu0  ;;  %v11508_v37 = vpop.eup %11507  ;;  %11527 = vtanh.f32 %v5343_v47  ;;  %6041 = vmatmul.mubr.f32.gmra.mrb[206].mxu1 %v11506_v51  ;;  %9482 = vmatpush1.bf16.msra.mxu0 %v9481_v34  ;;  %v5347_v57 = vadd.f32 %v5346_v0, %v13915_v41  ;;  %v6369_v47 = vld [vmem:[#allocation6 + $0xf88] sm:$0xff] }
 0x702   : > { %v5092_v38 = vadd.f32 %v5091_v36, %v13918_v55  ;;  %v5348_v39 = vpop.f32.mrb[151].mxu1  ;;  %v11510_v56 = vpop.eup %11509  ;;  %11529 = vtanh.f32 %v5341_v49  ;;  %9546 = vmatpush1.bf16.msra.mxu1 %v9481_v34  ;;  %9484 = vmatprep.subr.bf16.mxu0 %v9483_v45  ;;  %v6366_v34 = vld [vmem:[#allocation6 + $0xf70] sm:$0xff] }
 0x703   : > { %v5349_v58 = vadd.f32 %v5348_v39, %v13918_v55  ;;  %v11512_v62 = vpop.eup %11511  ;;  %11531 = vtanh.f32 %v5090_v50  ;;  %5789 = vmatprep.mubr.f32.mxu0 %v11510_v56  ;;  %v5095_v63 = vpop.f32.mrb[152].mxu0  ;;  %9548 = vmatprep.subr.bf16.mxu1 %v9483_v45  ;;  %v6371_v45 = vld [vmem:[#allocation6 + $0xf98] sm:$0xff]  ;;  %v9497_v50 = vpack.c.bf16 %v6366_v34, %v6364_v33  ;;  %v6368_v39 = vld [vmem:[#allocation6 + $0xf80] sm:$0xff] }
 0x704   : > { %v11514_v3 = vpop.eup %11513  ;;  %11533 = vtanh.f32 %v5092_v38  ;;  %6046 = vmatprep.mubr.f32.mxu1 %v11512_v62  ;;  %v5096_v4 = vadd.f32 %v5095_v63, %v13915_v41  ;;  %v5352_v5 = vpop.f32.mrb[152].mxu1  ;;  %5790 = vmatmul.mubr.f32.gmra.mrb[208].mxu0 %v11508_v37  ;;  %v9499_v38 = vpack.c.bf16 %v6371_v45, %v6369_v47 }
 0x705   : > { %v5097_v6 = vpop.f32.mrb[153].mxu0  ;;  %v11516_v7 = vpop.eup %11515  ;;  %11535 = vtanh.f32 %v5349_v58  ;;  %6047 = vmatmul.mubr.f32.gmra.mrb[208].mxu1 %v11514_v3  ;;  %9486 = vmatpush1.bf16.msra.mxu0 %v9485_v40  ;;  %v5353_v12 = vadd.f32 %v5352_v5, %v13915_v41  ;;  %v6373_v58 = vld [vmem:[#allocation6 + $0xfa8] sm:$0xff] }
 0x706   : > { %v5098_v8 = vadd.f32 %v5097_v6, %v13918_v55  ;;  %v5354_v9 = vpop.f32.mrb[153].mxu1  ;;  %v11518_v11 = vpop.eup %11517  ;;  %11537 = vtanh.f32 %v5347_v57  ;;  %9550 = vmatpush1.bf16.msra.mxu1 %v9485_v40  ;;  %9488 = vmatprep.subr.bf16.mxu0 %v9487_v59  ;;  %v6370_v40 = vld [vmem:[#allocation6 + $0xf90] sm:$0xff] }
 0x707   : > { %v5355_v13 = vadd.f32 %v5354_v9, %v13918_v55  ;;  %v11520_v17 = vpop.eup %11519  ;;  %11539 = vtanh.f32 %v5096_v4  ;;  %5795 = vmatprep.mubr.f32.mxu0 %v11518_v11  ;;  %v5101_v18 = vpop.f32.mrb[154].mxu0  ;;  %9552 = vmatprep.subr.bf16.mxu1 %v9487_v59  ;;  %v6375_v59 = vld [vmem:[#allocation6 + $0xfb8] sm:$0xff]  ;;  %v9501_v4 = vpack.c.bf16 %v6370_v40, %v6368_v39  ;;  %v6372_v9 = vld [vmem:[#allocation6 + $0xfa0] sm:$0xff] }
 0x708   : > { %v11522_v21 = vpop.eup %11521  ;;  %11541 = vtanh.f32 %v5098_v8  ;;  %6052 = vmatprep.mubr.f32.mxu1 %v11520_v17  ;;  %v5102_v22 = vadd.f32 %v5101_v18, %v13915_v41  ;;  %v5358_v23 = vpop.f32.mrb[154].mxu1  ;;  %5796 = vmatmul.mubr.f32.gmra.mrb[210].mxu0 %v11516_v7  ;;  %v9503_v8 = vpack.c.bf16 %v6375_v59, %v6373_v58 }
 0x709   : > { %v5103_v24 = vpop.f32.mrb[155].mxu0  ;;  %v11524_v25 = vpop.eup %11523  ;;  %11543 = vtanh.f32 %v5355_v13  ;;  %6053 = vmatmul.mubr.f32.gmra.mrb[210].mxu1 %v11522_v21  ;;  %9490 = vmatpush1.bf16.msra.mxu0 %v9489_v10  ;;  %v5359_v30 = vadd.f32 %v5358_v23, %v13915_v41  ;;  %v6377_v13 = vld [vmem:[#allocation6 + $0xfc8] sm:$0xff] }
 0x70a   : > { %v5104_v26 = vadd.f32 %v5103_v24, %v13918_v55  ;;  %v5360_v27 = vpop.f32.mrb[155].mxu1  ;;  %v11526_v29 = vpop.eup %11525  ;;  %11545 = vtanh.f32 %v5353_v12  ;;  %9554 = vmatpush1.bf16.msra.mxu1 %v9489_v10  ;;  %9492 = vmatprep.subr.bf16.mxu0 %v9491_v14  ;;  %v6374_v10 = vld [vmem:[#allocation6 + $0xfb0] sm:$0xff] }
 0x70b   : > { %v5361_v31 = vadd.f32 %v5360_v27, %v13918_v55  ;;  %v11528_v35 = vpop.eup %11527  ;;  %11547 = vtanh.f32 %v5102_v22  ;;  %5801 = vmatprep.mubr.f32.mxu0 %v11526_v29  ;;  %v5107_v49 = vpop.f32.mrb[156].mxu0  ;;  %9556 = vmatprep.subr.bf16.mxu1 %v9491_v14  ;;  %v6379_v14 = vld [vmem:[#allocation6 + $0xfd8] sm:$0xff]  ;;  %v9505_v22 = vpack.c.bf16 %v6374_v10, %v6372_v9 }
 0x70c   : > { %v11530_v44 = vpop.eup %11529  ;;  %11549 = vtanh.f32 %v5104_v26  ;;  %6058 = vmatprep.mubr.f32.mxu1 %v11528_v35  ;;  %v5108_v43 = vadd.f32 %v5107_v49, %v13915_v41  ;;  %v5364_v42 = vpop.f32.mrb[156].mxu1  ;;  %5802 = vmatmul.mubr.f32.gmra.mrb[212].mxu0 %v11524_v25  ;;  %v9507_v26 = vpack.c.bf16 %v6379_v14, %v6377_v13 }
 0x70d   : > { %v5109_v54 = vpop.f32.mrb[157].mxu0  ;;  %v11532_v53 = vpop.eup %11531  ;;  %11551 = vtanh.f32 %v5361_v31  ;;  %6059 = vmatmul.mubr.f32.gmra.mrb[212].mxu1 %v11530_v44  ;;  %9494 = vmatpush1.bf16.msra.mxu0 %v9493_v28  ;;  %v5365_v36 = vadd.f32 %v5364_v42, %v13915_v41 }
 0x70e   : > { %v5110_v52 = vadd.f32 %v5109_v54, %v13918_v55  ;;  %v5366_v51 = vpop.f32.mrb[157].mxu1  ;;  %v11534_v0 = vpop.eup %11533  ;;  %11553 = vtanh.f32 %v5359_v30  ;;  %9558 = vmatpush1.bf16.msra.mxu1 %v9493_v28  ;;  %9496 = vmatprep.subr.bf16.mxu0 %v9495_v32 }
 0x70f   : > { %v5367_v37 = vadd.f32 %v5366_v51, %v13918_v55  ;;  %v11536_v56 = vpop.eup %11535  ;;  %11555 = vtanh.f32 %v5108_v43  ;;  %5807 = vmatprep.mubr.f32.mxu0 %v11534_v0  ;;  %v5113_v57 = vpop.f32.mrb[158].mxu0  ;;  %9560 = vmatprep.subr.bf16.mxu1 %v9495_v32 }
 0x710   : > { %v11538_v60 = vpop.eup %11537  ;;  %11557 = vtanh.f32 %v5110_v52  ;;  %6064 = vmatprep.mubr.f32.mxu1 %v11536_v56  ;;  %v5114_v61 = vadd.f32 %v5113_v57, %v13915_v41  ;;  %v5370_v62 = vpop.f32.mrb[158].mxu1  ;;  %5808 = vmatmul.mubr.f32.gmra.mrb[214].mxu0 %v11532_v53 }
 0x711   : > { %v5115_v63 = vpop.f32.mrb[159].mxu0  ;;  %v11540_v1 = vpop.eup %11539  ;;  %11559 = vtanh.f32 %v5367_v37  ;;  %6065 = vmatmul.mubr.f32.gmra.mrb[214].mxu1 %v11538_v60  ;;  %9498 = vmatpush1.bf16.msra.mxu0 %v9497_v50  ;;  %v5371_v6 = vadd.f32 %v5370_v62, %v13915_v41 }
 0x712   : > { %v5116_v2 = vadd.f32 %v5115_v63, %v13918_v55  ;;  %v5372_v3 = vpop.f32.mrb[159].mxu1  ;;  %v11542_v5 = vpop.eup %11541  ;;  %11561 = vtanh.f32 %v5365_v36  ;;  %9562 = vmatpush1.bf16.msra.mxu1 %v9497_v50  ;;  %9500 = vmatprep.subr.bf16.mxu0 %v9499_v38 }
 0x713   : > { %v5373_v7 = vadd.f32 %v5372_v3, %v13918_v55  ;;  %v11544_v11 = vpop.eup %11543  ;;  %11563 = vtanh.f32 %v5114_v61  ;;  %5813 = vmatprep.mubr.f32.mxu0 %v11542_v5  ;;  %v5119_v12 = vpop.f32.mrb[160].mxu0  ;;  %9564 = vmatprep.subr.bf16.mxu1 %v9499_v38 }
 0x714   : > { %v11546_v15 = vpop.eup %11545  ;;  %11565 = vtanh.f32 %v5116_v2  ;;  %6070 = vmatprep.mubr.f32.mxu1 %v11544_v11  ;;  %v5120_v16 = vadd.f32 %v5119_v12, %v13915_v41  ;;  %v5376_v17 = vpop.f32.mrb[160].mxu1  ;;  %5814 = vmatmul.mubr.f32.gmra.mrb[216].mxu0 %v11540_v1 }
 0x715   : > { %v5121_v18 = vpop.f32.mrb[161].mxu0  ;;  %v11548_v19 = vpop.eup %11547  ;;  %11567 = vtanh.f32 %v5373_v7  ;;  %6071 = vmatmul.mubr.f32.gmra.mrb[216].mxu1 %v11546_v15  ;;  %9502 = vmatpush1.bf16.msra.mxu0 %v9501_v4  ;;  %v5377_v24 = vadd.f32 %v5376_v17, %v13915_v41 }
 0x716   : > { %v5122_v20 = vadd.f32 %v5121_v18, %v13918_v55  ;;  %v5378_v21 = vpop.f32.mrb[161].mxu1  ;;  %v11550_v23 = vpop.eup %11549  ;;  %11569 = vtanh.f32 %v5371_v6  ;;  %9566 = vmatpush1.bf16.msra.mxu1 %v9501_v4  ;;  %9504 = vmatprep.subr.bf16.mxu0 %v9503_v8 }
 0x717   : > { %v5379_v25 = vadd.f32 %v5378_v21, %v13918_v55  ;;  %v11552_v27 = vpop.eup %11551  ;;  %11571 = vtanh.f32 %v5120_v16  ;;  %5819 = vmatprep.mubr.f32.mxu0 %v11550_v23  ;;  %v5125_v28 = vpop.f32.mrb[162].mxu0  ;;  %9568 = vmatprep.subr.bf16.mxu1 %v9503_v8 }
 0x718   : > { %v11554_v29 = vpop.eup %11553  ;;  %11573 = vtanh.f32 %v5122_v20  ;;  %6076 = vmatprep.mubr.f32.mxu1 %v11552_v27  ;;  %v5126_v30 = vadd.f32 %v5125_v28, %v13915_v41  ;;  %v5382_v31 = vpop.f32.mrb[162].mxu1  ;;  %5820 = vmatmul.mubr.f32.gmra.mrb[218].mxu0 %v11548_v19 }
 0x719   : > { %v5127_v32 = vpop.f32.mrb[163].mxu0  ;;  %v11556_v33 = vpop.eup %11555  ;;  %11575 = vtanh.f32 %v5379_v25  ;;  %6077 = vmatmul.mubr.f32.gmra.mrb[218].mxu1 %v11554_v29  ;;  %9506 = vmatpush1.bf16.msra.mxu0 %v9505_v22  ;;  %v5383_v47 = vadd.f32 %v5382_v31, %v13915_v41 }
 0x71a   : > { %v5128_v34 = vadd.f32 %v5127_v32, %v13918_v55  ;;  %v5384_v35 = vpop.f32.mrb[163].mxu1  ;;  %v11558_v49 = vpop.eup %11557  ;;  %11577 = vtanh.f32 %v5377_v24  ;;  %9570 = vmatpush1.bf16.msra.mxu1 %v9505_v22  ;;  %9508 = vmatprep.subr.bf16.mxu0 %v9507_v26 }
 0x71b   : > { %v5385_v45 = vadd.f32 %v5384_v35, %v13918_v55  ;;  %v11560_v44 = vpop.eup %11559  ;;  %11579 = vtanh.f32 %v5126_v30  ;;  %5825 = vmatprep.mubr.f32.mxu0 %v11558_v49  ;;  %v5131_v43 = vpop.f32.mrb[164].mxu0  ;;  %9572 = vmatprep.subr.bf16.mxu1 %v9507_v26 }
 0x71c   : > { %v11562_v42 = vpop.eup %11561  ;;  %11581 = vtanh.f32 %v5128_v34  ;;  %6082 = vmatprep.mubr.f32.mxu1 %v11560_v44  ;;  %v5132_v54 = vadd.f32 %v5131_v43, %v13915_v41  ;;  %v5388_v53 = vpop.f32.mrb[164].mxu1  ;;  %5826 = vmatmul.mubr.f32.gmra.mrb[220].mxu0 %v11556_v33 }
 0x71d   : > { %v5133_v52 = vpop.f32.mrb[165].mxu0  ;;  %v11564_v51 = vpop.eup %11563  ;;  %11583 = vtanh.f32 %v5385_v45  ;;  %6083 = vmatmul.mubr.f32.gmra.mrb[220].mxu1 %v11562_v42  ;;  %v5389_v37 = vadd.f32 %v5388_v53, %v13915_v41 }
 0x71e   : > { %v5134_v50 = vadd.f32 %v5133_v52, %v13918_v55  ;;  %v5390_v0 = vpop.f32.mrb[165].mxu1  ;;  %v11566_v36 = vpop.eup %11565  ;;  %11585 = vtanh.f32 %v5383_v47 }
 0x71f   : > { %v5391_v38 = vadd.f32 %v5390_v0, %v13918_v55  ;;  %v11568_v39 = vpop.eup %11567  ;;  %11587 = vtanh.f32 %v5132_v54  ;;  %5831 = vmatprep.mubr.f32.mxu0 %v11566_v36  ;;  %v5137_v40 = vpop.f32.mrb[166].mxu0 }
 0x720   : > { %v11570_v56 = vpop.eup %11569  ;;  %11589 = vtanh.f32 %v5134_v50  ;;  %6088 = vmatprep.mubr.f32.mxu1 %v11568_v39  ;;  %v5138_v57 = vadd.f32 %v5137_v40, %v13915_v41  ;;  %v5394_v58 = vpop.f32.mrb[166].mxu1  ;;  %5832 = vmatmul.mubr.f32.gmra.mrb[222].mxu0 %v11564_v51 }
 0x721   : > { %v5139_v59 = vpop.f32.mrb[167].mxu0  ;;  %v11572_v60 = vpop.eup %11571  ;;  %11591 = vtanh.f32 %v5391_v38  ;;  %6089 = vmatmul.mubr.f32.gmra.mrb[222].mxu1 %v11570_v56  ;;  %v5395_v1 = vadd.f32 %v5394_v58, %v13915_v41 }
 0x722   : > { %v5140_v61 = vadd.f32 %v5139_v59, %v13918_v55  ;;  %v5396_v62 = vpop.f32.mrb[167].mxu1  ;;  %v11574_v63 = vpop.eup %11573  ;;  %11593 = vtanh.f32 %v5389_v37 }
 0x723   : > { %v5397_v2 = vadd.f32 %v5396_v62, %v13918_v55  ;;  %v11576_v3 = vpop.eup %11575  ;;  %11595 = vtanh.f32 %v5138_v57  ;;  %5837 = vmatprep.mubr.f32.mxu0 %v11574_v63  ;;  %v5143_v4 = vpop.f32.mrb[168].mxu0 }
 0x724   : > { %v11578_v5 = vpop.eup %11577  ;;  %11597 = vtanh.f32 %v5140_v61  ;;  %6094 = vmatprep.mubr.f32.mxu1 %v11576_v3  ;;  %v5144_v6 = vadd.f32 %v5143_v4, %v13915_v41  ;;  %v5400_v7 = vpop.f32.mrb[168].mxu1  ;;  %5838 = vmatmul.mubr.f32.gmra.mrb[224].mxu0 %v11572_v60 }
 0x725   : > { %v5145_v8 = vpop.f32.mrb[169].mxu0  ;;  %v11580_v9 = vpop.eup %11579  ;;  %11599 = vtanh.f32 %v5397_v2  ;;  %6095 = vmatmul.mubr.f32.gmra.mrb[224].mxu1 %v11578_v5  ;;  %v5401_v13 = vadd.f32 %v5400_v7, %v13915_v41 }
 0x726   : > { %v5146_v10 = vadd.f32 %v5145_v8, %v13918_v55  ;;  %v5402_v11 = vpop.f32.mrb[169].mxu1  ;;  %v11582_v12 = vpop.eup %11581  ;;  %11601 = vtanh.f32 %v5395_v1 }
 0x727   : > { %v5403_v14 = vadd.f32 %v5402_v11, %v13918_v55  ;;  %v11584_v15 = vpop.eup %11583  ;;  %11603 = vtanh.f32 %v5144_v6  ;;  %5843 = vmatprep.mubr.f32.mxu0 %v11582_v12  ;;  %v5149_v16 = vpop.f32.mrb[170].mxu0 }
 0x728   : > { %v11586_v17 = vpop.eup %11585  ;;  %11605 = vtanh.f32 %v5146_v10  ;;  %6100 = vmatprep.mubr.f32.mxu1 %v11584_v15  ;;  %v5150_v18 = vadd.f32 %v5149_v16, %v13915_v41  ;;  %v5406_v19 = vpop.f32.mrb[170].mxu1  ;;  %5844 = vmatmul.mubr.f32.gmra.mrb[226].mxu0 %v11580_v9 }
 0x729   : > { %v5151_v20 = vpop.f32.mrb[171].mxu0  ;;  %v11588_v21 = vpop.eup %11587  ;;  %11607 = vtanh.f32 %v5403_v14  ;;  %6101 = vmatmul.mubr.f32.gmra.mrb[226].mxu1 %v11586_v17  ;;  %v5407_v25 = vadd.f32 %v5406_v19, %v13915_v41  ;;  %v6376_v17 = vld [vmem:[#allocation6 + $0xfc0] sm:$0xff] }
 0x72a   : > { %v5152_v22 = vadd.f32 %v5151_v20, %v13918_v55  ;;  %v5408_v23 = vpop.f32.mrb[171].mxu1  ;;  %v11590_v24 = vpop.eup %11589  ;;  %11609 = vtanh.f32 %v5401_v13 }
 0x72b   : > { %v5409_v26 = vadd.f32 %v5408_v23, %v13918_v55  ;;  %v11592_v27 = vpop.eup %11591  ;;  %11611 = vtanh.f32 %v5150_v18  ;;  %5849 = vmatprep.mubr.f32.mxu0 %v11590_v24  ;;  %v5155_v28 = vpop.f32.mrb[172].mxu0  ;;  %v6378_v18 = vld [vmem:[#allocation6 + $0xfd0] sm:$0xff] }
 0x72c   : > { %v11594_v29 = vpop.eup %11593  ;;  %11613 = vtanh.f32 %v5152_v22  ;;  %6106 = vmatprep.mubr.f32.mxu1 %v11592_v27  ;;  %v5156_v30 = vadd.f32 %v5155_v28, %v13915_v41  ;;  %v5412_v31 = vpop.f32.mrb[172].mxu1  ;;  %5850 = vmatmul.mubr.f32.gmra.mrb[228].mxu0 %v11588_v21  ;;  %v9509_v23 = vpack.c.bf16 %v6378_v18, %v6376_v17 }
 0x72d   : > { %v5157_v32 = vpop.f32.mrb[173].mxu0  ;;  %v11596_v33 = vpop.eup %11595  ;;  %11615 = vtanh.f32 %v5409_v26  ;;  %6107 = vmatmul.mubr.f32.gmra.mrb[228].mxu1 %v11594_v29  ;;  %v5413_v47 = vadd.f32 %v5412_v31, %v13915_v41 }
 0x72e   : > { %v5158_v34 = vadd.f32 %v5157_v32, %v13918_v55  ;;  %v5414_v35 = vpop.f32.mrb[173].mxu1  ;;  %v11598_v49 = vpop.eup %11597  ;;  %11617 = vtanh.f32 %v5407_v25  ;;  %9510 = vmatpush1.bf16.msra.mxu0 %v9509_v23  ;;  %9574 = vmatpush1.bf16.msra.mxu1 %v9509_v23 }
 0x72f   : > { %v5415_v45 = vadd.f32 %v5414_v35, %v13918_v55  ;;  %v11600_v44 = vpop.eup %11599  ;;  %11619 = vtanh.f32 %v5156_v30  ;;  %5855 = vmatprep.mubr.f32.mxu0 %v11598_v49  ;;  %v5161_v43 = vpop.f32.mrb[174].mxu0 }
 0x730   : > { %v11602_v42 = vpop.eup %11601  ;;  %11621 = vtanh.f32 %v5158_v34  ;;  %6112 = vmatprep.mubr.f32.mxu1 %v11600_v44  ;;  %v5162_v54 = vadd.f32 %v5161_v43, %v13915_v41  ;;  %v5418_v53 = vpop.f32.mrb[174].mxu1  ;;  %5856 = vmatmul.mubr.f32.gmra.mrb[230].mxu0 %v11596_v33  ;;  %v6381_v44 = vld [vmem:[#allocation6 + $0xfe8] sm:$0xff]  ;;  %v6383_v43 = vld [vmem:[#allocation6 + $0xff8] sm:$0xff] }
 0x731   : > { %v5163_v52 = vpop.f32.mrb[175].mxu0  ;;  %v11604_v51 = vpop.eup %11603  ;;  %11623 = vtanh.f32 %v5415_v45  ;;  %6113 = vmatmul.mubr.f32.gmra.mrb[230].mxu1 %v11602_v42  ;;  %v5419_v37 = vadd.f32 %v5418_v53, %v13915_v41 }
 0x732   : > { %v5164_v50 = vadd.f32 %v5163_v52, %v13918_v55  ;;  %v5420_v0 = vpop.f32.mrb[175].mxu1  ;;  %v11606_v36 = vpop.eup %11605  ;;  %11625 = vtanh.f32 %v5413_v47  ;;  %v9511_v52 = vpack.c.bf16 %v6383_v43, %v6381_v44 }
 0x733   : > { %v5421_v38 = vadd.f32 %v5420_v0, %v13918_v55  ;;  %v11608_v39 = vpop.eup %11607  ;;  %11627 = vtanh.f32 %v5162_v54  ;;  %5861 = vmatprep.mubr.f32.mxu0 %v11606_v36  ;;  %v5167_v40 = vpop.f32.mrb[176].mxu0  ;;  %v6380_v0 = vld [vmem:[#allocation6 + $0xfe0] sm:$0xff]  ;;  %v6382_v36 = vld [vmem:[#allocation6 + $0xff0] sm:$0xff] }
 0x734   : > { %v11610_v56 = vpop.eup %11609  ;;  %11629 = vtanh.f32 %v5164_v50  ;;  %6118 = vmatprep.mubr.f32.mxu1 %v11608_v39  ;;  %v5168_v57 = vadd.f32 %v5167_v40, %v13915_v41  ;;  %v5424_v58 = vpop.f32.mrb[176].mxu1  ;;  %5862 = vmatmul.mubr.f32.gmra.mrb[232].mxu0 %v11604_v51 }
 0x735   : > { %v5169_v59 = vpop.f32.mrb[177].mxu0  ;;  %v11612_v60 = vpop.eup %11611  ;;  %11631 = vtanh.f32 %v5421_v38  ;;  %6119 = vmatmul.mubr.f32.gmra.mrb[232].mxu1 %v11610_v56  ;;  %v5425_v1 = vadd.f32 %v5424_v58, %v13915_v41  ;;  %v9513_v56 = vpack.c.bf16 %v6382_v36, %v6380_v0  ;;  %9512 = vmatprep.subr.bf16.mxu0 %v9511_v52  ;;  %v7041_v36 = vld [vmem:[#allocation6 + $0x1008] sm:$0xff] }
 0x736   : > { %v5170_v61 = vadd.f32 %v5169_v59, %v13918_v55  ;;  %v5426_v62 = vpop.f32.mrb[177].mxu1  ;;  %v11614_v63 = vpop.eup %11613  ;;  %11633 = vtanh.f32 %v5419_v37  ;;  %9576 = vmatprep.subr.bf16.mxu1 %v9511_v52 }
 0x737   : > { %v5427_v2 = vadd.f32 %v5426_v62, %v13918_v55  ;;  %v11616_v3 = vpop.eup %11615  ;;  %11635 = vtanh.f32 %v5168_v57  ;;  %5867 = vmatprep.mubr.f32.mxu0 %v11614_v63  ;;  %v5173_v4 = vpop.f32.mrb[178].mxu0  ;;  %9514 = vmatpush1.bf16.msra.mxu0 %v9513_v56 }
 0x738   : > { %v11618_v5 = vpop.eup %11617  ;;  %11637 = vtanh.f32 %v5170_v61  ;;  %6124 = vmatprep.mubr.f32.mxu1 %v11616_v3  ;;  %v5174_v6 = vadd.f32 %v5173_v4, %v13915_v41  ;;  %v5430_v7 = vpop.f32.mrb[178].mxu1  ;;  %5868 = vmatmul.mubr.f32.gmra.mrb[234].mxu0 %v11612_v60 }
 0x739   : > { %v5175_v8 = vpop.f32.mrb[179].mxu0  ;;  %v11620_v9 = vpop.eup %11619  ;;  %11639 = vtanh.f32 %v5427_v2  ;;  %6125 = vmatmul.mubr.f32.gmra.mrb[234].mxu1 %v11618_v5  ;;  %v5431_v13 = vadd.f32 %v5430_v7, %v13915_v41 }
 0x73a   : > { %v5176_v10 = vadd.f32 %v5175_v8, %v13918_v55  ;;  %v5432_v11 = vpop.f32.mrb[179].mxu1  ;;  %v11622_v12 = vpop.eup %11621  ;;  %11641 = vtanh.f32 %v5425_v1  ;;  %9578 = vmatpush1.bf16.msra.mxu1 %v9513_v56 }
 0x73b   : > { %v5433_v14 = vadd.f32 %v5432_v11, %v13918_v55  ;;  %v11624_v15 = vpop.eup %11623  ;;  %11643 = vtanh.f32 %v5174_v6  ;;  %5873 = vmatprep.mubr.f32.mxu0 %v11622_v12  ;;  %v5179_v16 = vpop.f32.mrb[180].mxu0 }
 0x73c   : > { %v11626_v19 = vpop.eup %11625  ;;  %11645 = vtanh.f32 %v5176_v10  ;;  %6130 = vmatprep.mubr.f32.mxu1 %v11624_v15  ;;  %v5180_v20 = vadd.f32 %v5179_v16, %v13915_v41  ;;  %v5436_v21 = vpop.f32.mrb[180].mxu1  ;;  %5874 = vmatmul.mubr.f32.gmra.mrb[236].mxu0 %v11620_v9 }
 0x73d   : > { %v5181_v22 = vpop.f32.mrb[181].mxu0  ;;  %v11628_v24 = vpop.eup %11627  ;;  %11647 = vtanh.f32 %v5433_v14  ;;  %6131 = vmatmul.mubr.f32.gmra.mrb[236].mxu1 %v11626_v19  ;;  %v5437_v28 = vadd.f32 %v5436_v21, %v13915_v41 }
 0x73e   : > { %v5182_v25 = vadd.f32 %v5181_v22, %v13918_v55  ;;  %v5438_v26 = vpop.f32.mrb[181].mxu1  ;;  %v11630_v27 = vpop.eup %11629  ;;  %11649 = vtanh.f32 %v5431_v13 }
 0x73f   : > { %v5439_v29 = vadd.f32 %v5438_v26, %v13918_v55  ;;  %v11632_v30 = vpop.eup %11631  ;;  %11651 = vtanh.f32 %v5180_v20  ;;  %5879 = vmatprep.mubr.f32.mxu0 %v11630_v27  ;;  %v5185_v31 = vpop.f32.mrb[182].mxu0 }
 0x740   : > { %v11634_v32 = vpop.eup %11633  ;;  %11653 = vtanh.f32 %v5182_v25  ;;  %6136 = vmatprep.mubr.f32.mxu1 %v11632_v30  ;;  %v5186_v33 = vadd.f32 %v5185_v31, %v13915_v41  ;;  %v5442_v34 = vpop.f32.mrb[182].mxu1  ;;  %5880 = vmatmul.mubr.f32.gmra.mrb[238].mxu0 %v11628_v24 }
 0x741   : > { %v5187_v35 = vpop.f32.mrb[183].mxu0  ;;  %v11636_v49 = vpop.eup %11635  ;;  %11655 = vtanh.f32 %v5439_v29  ;;  %6137 = vmatmul.mubr.f32.gmra.mrb[238].mxu1 %v11634_v32  ;;  %v5443_v54 = vadd.f32 %v5442_v34, %v13915_v41 }
 0x742   : > { %v5188_v47 = vadd.f32 %v5187_v35, %v13918_v55  ;;  %v5444_v45 = vpop.f32.mrb[183].mxu1  ;;  %v11638_v42 = vpop.eup %11637  ;;  %11657 = vtanh.f32 %v5437_v28 }
 0x743   : > { %v5445_v53 = vadd.f32 %v5444_v45, %v13918_v55  ;;  %v11640_v51 = vpop.eup %11639  ;;  %11659 = vtanh.f32 %v5186_v33  ;;  %5885 = vmatprep.mubr.f32.mxu0 %v11638_v42  ;;  %v5191_v50 = vpop.f32.mrb[184].mxu0 }
 0x744   : > { %v11642_v37 = vpop.eup %11641  ;;  %11661 = vtanh.f32 %v5188_v47  ;;  %6142 = vmatprep.mubr.f32.mxu1 %v11640_v51  ;;  %v5192_v38 = vadd.f32 %v5191_v50, %v13915_v41  ;;  %v5448_v39 = vpop.f32.mrb[184].mxu1  ;;  %5886 = vmatmul.mubr.f32.gmra.mrb[240].mxu0 %v11636_v49 }
 0x745   : > { %v5193_v40 = vpop.f32.mrb[185].mxu0  ;;  %v11644_v57 = vpop.eup %11643  ;;  %11663 = vtanh.f32 %v5445_v53  ;;  %6143 = vmatmul.mubr.f32.gmra.mrb[240].mxu1 %v11642_v37  ;;  %v5449_v61 = vadd.f32 %v5448_v39, %v13915_v41  ;;  %v7043_v37 = vld [vmem:[#allocation6 + $0x1018] sm:$0xff]  ;;  %v5665_v39 = vld [vmem:[#allocation7 + $0x6] ss:$8 sm:$0x3] }
 0x746   : > { %v5194_v58 = vadd.f32 %v5193_v40, %v13918_v55  ;;  %v5450_v59 = vpop.f32.mrb[185].mxu1  ;;  %v11646_v60 = vpop.eup %11645  ;;  %11665 = vtanh.f32 %v5443_v54  ;;  %v14049_v40 = vrot.slane %v5665_v39, %v13106_v46  ;;  %v14052_v56 = vrot.slane %v5665_v39, %v13108_v48  ;;  %v7050_v39 = vld [vmem:[#allocation6 + $0x1050] sm:$0xff] }
 0x747   : > { %v5451_v62 = vadd.f32 %v5450_v59, %v13918_v55  ;;  %v11648_v63 = vpop.eup %11647  ;;  %11667 = vtanh.f32 %v5192_v38  ;;  %5891 = vmatprep.mubr.f32.mxu0 %v11646_v60  ;;  %v5197_v1 = vpop.f32.mrb[186].mxu0  ;;  %v9579_v38 = vpack.c.bf16 %v7043_v37, %v7041_v36 }
 0x748   : > { %v11650_v2 = vpop.eup %11649  ;;  %11669 = vtanh.f32 %v5194_v58  ;;  %6148 = vmatprep.mubr.f32.mxu1 %v11648_v63  ;;  %v5198_v3 = vadd.f32 %v5197_v1, %v13915_v41  ;;  %v5454_v4 = vpop.f32.mrb[186].mxu1  ;;  %5892 = vmatmul.mubr.f32.gmra.mrb[242].mxu0 %v11644_v57 }
 0x749   : > { %v5199_v5 = vpop.f32.mrb[187].mxu0  ;;  %v11652_v6 = vpop.eup %11651  ;;  %11671 = vtanh.f32 %v5451_v62  ;;  %6149 = vmatmul.mubr.f32.gmra.mrb[242].mxu1 %v11650_v2  ;;  %v5455_v10 = vadd.f32 %v5454_v4, %v13915_v41  ;;  %9580 = vmatprep.subr.bf16.mxu0 %v9579_v38 }
 0x74a   : > { %v5200_v7 = vadd.f32 %v5199_v5, %v13918_v55  ;;  %v5456_v8 = vpop.f32.mrb[187].mxu1  ;;  %v11654_v9 = vpop.eup %11653  ;;  %11673 = vtanh.f32 %v5449_v61  ;;  %9644 = vmatprep.subr.bf16.mxu1 %v9579_v38  ;;  %v7048_v38 = vld [vmem:[#allocation6 + $0x1040] sm:$0xff] }
 0x74b   : > { %v5457_v11 = vadd.f32 %v5456_v8, %v13918_v55  ;;  %v11656_v12 = vpop.eup %11655  ;;  %11675 = vtanh.f32 %v5198_v3  ;;  %5897 = vmatprep.mubr.f32.mxu0 %v11654_v9  ;;  %v5203_v13 = vpop.f32.mrb[188].mxu0 }
 0x74c   : > { %v11658_v14 = vpop.eup %11657  ;;  %11677 = vtanh.f32 %v5200_v7  ;;  %6154 = vmatprep.mubr.f32.mxu1 %v11656_v12  ;;  %v5204_v15 = vadd.f32 %v5203_v13, %v13915_v41  ;;  %v5460_v16 = vpop.f32.mrb[188].mxu1  ;;  %5898 = vmatmul.mubr.f32.gmra.mrb[244].mxu0 %v11652_v6 }
 0x74d   : > { %v5205_v17 = vpop.f32.mrb[189].mxu0  ;;  %v11660_v18 = vpop.eup %11659  ;;  %11679 = vtanh.f32 %v5457_v11  ;;  %6155 = vmatmul.mubr.f32.gmra.mrb[244].mxu1 %v11658_v14  ;;  %v5461_v22 = vadd.f32 %v5460_v16, %v13915_v41 }
 0x74e   : > { %v5206_v19 = vadd.f32 %v5205_v17, %v13918_v55  ;;  %v5462_v20 = vpop.f32.mrb[189].mxu1  ;;  %v11662_v21 = vpop.eup %11661  ;;  %11681 = vtanh.f32 %v5455_v10 }
 0x74f   : > { %v5463_v23 = vadd.f32 %v5462_v20, %v13918_v55  ;;  %v11664_v24 = vpop.eup %11663  ;;  %11683 = vtanh.f32 %v5204_v15  ;;  %5903 = vmatprep.mubr.f32.mxu0 %v11662_v21  ;;  %v5209_v25 = vpop.f32.mrb[190].mxu0  ;;  %v7045_v21 = vld [vmem:[#allocation6 + $0x1028] sm:$0xff] }
 0x750   : > { %v11666_v26 = vpop.eup %11665  ;;  %11685 = vtanh.f32 %v5206_v19  ;;  %6160 = vmatprep.mubr.f32.mxu1 %v11664_v24  ;;  %v5210_v27 = vadd.f32 %v5209_v25, %v13915_v41  ;;  %v5466_v28 = vpop.f32.mrb[190].mxu1  ;;  %5904 = vmatmul.mubr.f32.gmra.mrb[246].mxu0 %v11660_v18  ;;  %v7040_v18 = vld [vmem:[#allocation6 + $0x1000] sm:$0xff]  ;;  %v7042_v19 = vld [vmem:[#allocation6 + $0x1010] sm:$0xff] }
 0x751   : > { %v5211_v29 = vpop.f32.mrb[191].mxu0  ;;  %v11668_v30 = vpop.eup %11667  ;;  %11687 = vtanh.f32 %v5463_v23  ;;  %6161 = vmatmul.mubr.f32.gmra.mrb[246].mxu1 %v11666_v26  ;;  %v5467_v34 = vadd.f32 %v5466_v28, %v13915_v41 }
 0x752   : > { %v5212_v31 = vadd.f32 %v5211_v29, %v13918_v55  ;;  %v5468_v32 = vpop.f32.mrb[191].mxu1  ;;  %v11670_v33 = vpop.eup %11669  ;;  %11689 = vtanh.f32 %v5461_v22  ;;  %v7047_v22 = vld [vmem:[#allocation6 + $0x1038] sm:$0xff]  ;;  %v9581_v29 = vpack.c.bf16 %v7042_v19, %v7040_v18 }
 0x753   : > { %v5469_v35 = vadd.f32 %v5468_v32, %v13918_v55  ;;  %v11672_v49 = vpop.eup %11671  ;;  %11691 = vtanh.f32 %v5210_v27  ;;  %5909 = vmatprep.mubr.f32.mxu0 %v11670_v33  ;;  %v9583_v33 = vpack.c.bf16 %v7047_v22, %v7045_v21 }
 0x754   : > { %v11674_v47 = vpop.eup %11673  ;;  %11693 = vtanh.f32 %v5212_v31  ;;  %6166 = vmatprep.mubr.f32.mxu1 %v11672_v49  ;;  %5910 = vmatmul.mubr.f32.gmra.mrb[248].mxu0 %v11668_v30 }
 0x755   : > { %v11676_v45 = vpop.eup %11675  ;;  %11695 = vtanh.f32 %v5469_v35  ;;  %6167 = vmatmul.mubr.f32.gmra.mrb[248].mxu1 %v11674_v47  ;;  %v7046_v35 = vld [vmem:[#allocation6 + $0x1030] sm:$0xff] }
 0x756   : > { %v11678_v44 = vpop.eup %11677  ;;  %11697 = vtanh.f32 %v5467_v34  ;;  %v7044_v34 = vld [vmem:[#allocation6 + $0x1020] sm:$0xff] }
 0x757   : > { %v11680_v43 = vpop.eup %11679  ;;  %5915 = vmatprep.mubr.f32.mxu0 %v11678_v44  ;;  %v7051_v44 = vld [vmem:[#allocation6 + $0x1058] sm:$0xff] }
 0x758   : > { %v11682_v42 = vpop.eup %11681  ;;  %6172 = vmatprep.mubr.f32.mxu1 %v11680_v43  ;;  %5916 = vmatmul.mubr.f32.gmra.mrb[250].mxu0 %v11676_v45  ;;  %v7049_v45 = vld [vmem:[#allocation6 + $0x1048] sm:$0xff] }
 0x759   : > { %v11684_v41 = vpop.eup %11683  ;;  %6173 = vmatmul.mubr.f32.gmra.mrb[250].mxu1 %v11682_v42  ;;  %v9587_v37 = vpack.c.bf16 %v7051_v44, %v7049_v45 }
 0x75a   : > { %v11686_v55 = vpop.eup %11685 }
 0x75b   : > { %v11688_v54 = vpop.eup %11687  ;;  %5921 = vmatprep.mubr.f32.mxu0 %v11686_v55 }
 0x75c   : > { %v11690_v53 = vpop.eup %11689  ;;  %6178 = vmatprep.mubr.f32.mxu1 %v11688_v54  ;;  %5922 = vmatmul.mubr.f32.gmra.mrb[252].mxu0 %v11684_v41 }
 0x75d   : > { %v11692_v52 = vpop.eup %11691  ;;  %6179 = vmatmul.mubr.f32.gmra.mrb[252].mxu1 %v11690_v53 }
 0x75e   : > { %v11694_v51 = vpop.eup %11693 }
 0x75f   : > { %v11696_v50 = vpop.eup %11695  ;;  %5927 = vmatprep.mubr.f32.mxu0 %v11694_v51  ;;  %v9585_v51 = vpack.c.bf16 %v7046_v35, %v7044_v34 }
 0x760   : > { %v11698_v0 = vpop.eup %11697  ;;  %6184 = vmatprep.mubr.f32.mxu1 %v11696_v50  ;;  %5928 = vmatmul.mubr.f32.gmra.mrb[254].mxu0 %v11692_v52 }
 0x761   : > { %6185 = vmatmul.mubr.f32.gmra.mrb[254].mxu1 %v11698_v0 }
 0x7b6   : > { %v5743_v57 = vpop.f32.mrb[192].mxu0 }
 0x7b7   : > { %v5744_v58 = vadd.f32 %v5743_v57, %v14049_v40  ;;  %v6000_v59 = vpop.f32.mrb[192].mxu1  ;;  %v5745_v60 = vpop.f32.mrb[193].mxu0 }
 0x7b8   : > { %v5746_v61 = vadd.f32 %v5745_v60, %v14052_v56  ;;  %v6002_v62 = vpop.f32.mrb[193].mxu1  ;;  %v6001_v63 = vadd.f32 %v6000_v59, %v14049_v40  ;;  %v7053_v59 = vld [vmem:[#allocation6 + $0x1068] sm:$0xff]  ;;  %v7055_v60 = vld [vmem:[#allocation6 + $0x1078] sm:$0xff] }
 0x7b9   : > { %v6003_v1 = vadd.f32 %v6002_v62, %v14052_v56  ;;  %11699 = vtanh.f32 %v5744_v58 }
 0x7ba   : > { %11701 = vtanh.f32 %v5746_v61 }
 0x7bb   : > { %v5749_v2 = vpop.f32.mrb[194].mxu0  ;;  %11703 = vtanh.f32 %v6003_v1 }
 0x7bc   : > { %v5750_v3 = vadd.f32 %v5749_v2, %v14049_v40  ;;  %v6006_v4 = vpop.f32.mrb[194].mxu1  ;;  %v5751_v5 = vpop.f32.mrb[195].mxu0  ;;  %11705 = vtanh.f32 %v6001_v63 }
 0x7bd   : > { %v5752_v6 = vadd.f32 %v5751_v5, %v14052_v56  ;;  %v6008_v7 = vpop.f32.mrb[195].mxu1  ;;  %v6007_v8 = vadd.f32 %v6006_v4, %v14049_v40  ;;  %v9589_v5 = vpack.c.bf16 %v7050_v39, %v7048_v38 }
 0x7be   : > { %v6009_v9 = vadd.f32 %v6008_v7, %v14052_v56  ;;  %11707 = vtanh.f32 %v5750_v3 }
 0x7bf   : > { %v5755_v10 = vpop.f32.mrb[196].mxu0  ;;  %11709 = vtanh.f32 %v5752_v6 }
 0x7c0   : > { %v5756_v11 = vadd.f32 %v5755_v10, %v14049_v40  ;;  %v6012_v12 = vpop.f32.mrb[196].mxu1  ;;  %v5757_v13 = vpop.f32.mrb[197].mxu0  ;;  %11711 = vtanh.f32 %v6009_v9  ;;  %v9591_v9 = vpack.c.bf16 %v7055_v60, %v7053_v59  ;;  %v7052_v10 = vld [vmem:[#allocation6 + $0x1060] sm:$0xff] }
 0x7c1   : > { %v5758_v14 = vadd.f32 %v5757_v13, %v14052_v56  ;;  %v6014_v15 = vpop.f32.mrb[197].mxu1  ;;  %11713 = vtanh.f32 %v6007_v8  ;;  %v6013_v16 = vadd.f32 %v6012_v12, %v14049_v40 }
 0x7c2   : > { %v6015_v17 = vadd.f32 %v6014_v15, %v14052_v56  ;;  %11715 = vtanh.f32 %v5756_v11  ;;  %v7054_v11 = vld [vmem:[#allocation6 + $0x1070] sm:$0xff]  ;;  %v7059_v15 = vld [vmem:[#allocation6 + $0x1098] sm:$0xff] }
 0x7c3   : > { %v5761_v20 = vpop.f32.mrb[198].mxu0  ;;  %11717 = vtanh.f32 %v5758_v14  ;;  %v11700_v26 = vpop.eup %11699  ;;  %v7057_v14 = vld [vmem:[#allocation6 + $0x1088] sm:$0xff] }
 0x7c4   : > { %v5762_v23 = vadd.f32 %v5761_v20, %v14049_v40  ;;  %v6018_v24 = vpop.f32.mrb[198].mxu1  ;;  %v5763_v25 = vpop.f32.mrb[199].mxu0  ;;  %11719 = vtanh.f32 %v6015_v17 }
 0x7c5   : > { %v5764_v27 = vadd.f32 %v5763_v25, %v14052_v56  ;;  %v6020_v28 = vpop.f32.mrb[199].mxu1  ;;  %v11702_v30 = vpop.eup %11701  ;;  %11721 = vtanh.f32 %v6013_v16  ;;  %v6019_v31 = vadd.f32 %v6018_v24, %v14049_v40 }
 0x7c6   : > { %v6021_v32 = vadd.f32 %v6020_v28, %v14052_v56  ;;  %v11704_v49 = vpop.eup %11703  ;;  %11723 = vtanh.f32 %v5762_v23  ;;  %6461 = vmatprep.mubr.f32.mxu0 %v11702_v30  ;;  %v9593_v23 = vpack.c.bf16 %v7054_v11, %v7052_v10  ;;  %v7056_v28 = vld [vmem:[#allocation6 + $0x1080] sm:$0xff] }
 0x7c7   : > { %v5767_v47 = vpop.f32.mrb[200].mxu0  ;;  %v11706_v43 = vpop.eup %11705  ;;  %11725 = vtanh.f32 %v5764_v27  ;;  %6718 = vmatprep.mubr.f32.mxu1 %v11704_v49  ;;  %6462 = vmatmul.mubr.f32.vlgmr.msra.gmra.mrb[0].mxu0 %v11700_v26  ;;  %v9595_v27 = vpack.c.bf16 %v7059_v15, %v7057_v14 }
 0x7c8   : > { %v5768_v42 = vadd.f32 %v5767_v47, %v14049_v40  ;;  %v6024_v41 = vpop.f32.mrb[200].mxu1  ;;  %v5769_v55 = vpop.f32.mrb[201].mxu0  ;;  %11727 = vtanh.f32 %v6021_v32  ;;  %6719 = vmatmul.mubr.f32.vlgmr.msra.gmra.mrb[0].mxu1 %v11706_v43  ;;  %9582 = vmatpush1.bf16.msra.mxu0 %v9581_v29  ;;  %v7061_v32 = vld [vmem:[#allocation6 + $0x10a8] sm:$0xff] }
 0x7c9   : > { %v11708_v54 = vpop.eup %11707  ;;  %v5770_v53 = vadd.f32 %v5769_v55, %v14052_v56  ;;  %v6026_v52 = vpop.f32.mrb[201].mxu1  ;;  %11729 = vtanh.f32 %v6019_v31  ;;  %v6025_v0 = vadd.f32 %v6024_v41, %v14049_v40  ;;  %9646 = vmatpush1.bf16.msra.mxu1 %v9581_v29  ;;  %9584 = vmatprep.subr.bf16.mxu0 %v9583_v33  ;;  %v7058_v29 = vld [vmem:[#allocation6 + $0x1090] sm:$0xff] }
 0x7ca   : > { %v11710_v50 = vpop.eup %11709  ;;  %v6027_v36 = vadd.f32 %v6026_v52, %v14052_v56  ;;  %11731 = vtanh.f32 %v5768_v42  ;;  %9648 = vmatprep.subr.bf16.mxu1 %v9583_v33  ;;  %v7063_v33 = vld [vmem:[#allocation6 + $0x10b8] sm:$0xff]  ;;  %v9597_v42 = vpack.c.bf16 %v7058_v29, %v7056_v28  ;;  %v7060_v52 = vld [vmem:[#allocation6 + $0x10a0] sm:$0xff] }
 0x7cb   : > { %v11712_v57 = vpop.eup %11711  ;;  %6467 = vmatprep.mubr.f32.mxu0 %v11710_v50  ;;  %v5773_v58 = vpop.f32.mrb[202].mxu0  ;;  %11733 = vtanh.f32 %v5770_v53  ;;  %v9599_v53 = vpack.c.bf16 %v7063_v33, %v7061_v32 }
 0x7cc   : > { %v11714_v61 = vpop.eup %11713  ;;  %6724 = vmatprep.mubr.f32.mxu1 %v11712_v57  ;;  %v5774_v62 = vadd.f32 %v5773_v58, %v14049_v40  ;;  %v6030_v63 = vpop.f32.mrb[202].mxu1  ;;  %6468 = vmatmul.mubr.f32.gmra.mrb[2].mxu0 %v11708_v54  ;;  %11735 = vtanh.f32 %v6027_v36  ;;  %v7065_v36 = vld [vmem:[#allocation6 + $0x10c8] sm:$0xff] }
 0x7cd   : > { %v5775_v1 = vpop.f32.mrb[203].mxu0  ;;  %v11716_v2 = vpop.eup %11715  ;;  %6725 = vmatmul.mubr.f32.gmra.mrb[2].mxu1 %v11714_v61  ;;  %9586 = vmatpush1.bf16.msra.mxu0 %v9585_v51  ;;  %11737 = vtanh.f32 %v6025_v0  ;;  %v6031_v7 = vadd.f32 %v6030_v63, %v14049_v40 }
 0x7ce   : > { %v5776_v3 = vadd.f32 %v5775_v1, %v14052_v56  ;;  %v6032_v4 = vpop.f32.mrb[203].mxu1  ;;  %v11718_v6 = vpop.eup %11717  ;;  %9650 = vmatpush1.bf16.msra.mxu1 %v9585_v51  ;;  %9588 = vmatprep.subr.bf16.mxu0 %v9587_v37  ;;  %11739 = vtanh.f32 %v5774_v62  ;;  %v7062_v51 = vld [vmem:[#allocation6 + $0x10b0] sm:$0xff] }
 0x7cf   : > { %v6033_v8 = vadd.f32 %v6032_v4, %v14052_v56  ;;  %v11720_v12 = vpop.eup %11719  ;;  %6473 = vmatprep.mubr.f32.mxu0 %v11718_v6  ;;  %v5779_v13 = vpop.f32.mrb[204].mxu0  ;;  %9652 = vmatprep.subr.bf16.mxu1 %v9587_v37  ;;  %v7067_v37 = vld [vmem:[#allocation6 + $0x10d8] sm:$0xff]  ;;  %v9601_v62 = vpack.c.bf16 %v7062_v51, %v7060_v52  ;;  %v7064_v4 = vld [vmem:[#allocation6 + $0x10c0] sm:$0xff] }
 0x7d0   : > { %v11722_v16 = vpop.eup %11721  ;;  %11741 = vtanh.f32 %v5776_v3  ;;  %6730 = vmatprep.mubr.f32.mxu1 %v11720_v12  ;;  %v5780_v17 = vadd.f32 %v5779_v13, %v14049_v40  ;;  %v6036_v18 = vpop.f32.mrb[204].mxu1  ;;  %6474 = vmatmul.mubr.f32.gmra.mrb[4].mxu0 %v11716_v2  ;;  %v9603_v3 = vpack.c.bf16 %v7067_v37, %v7065_v36 }
 0x7d1   : > { %v5781_v19 = vpop.f32.mrb[205].mxu0  ;;  %v11724_v20 = vpop.eup %11723  ;;  %11743 = vtanh.f32 %v6033_v8  ;;  %6731 = vmatmul.mubr.f32.gmra.mrb[4].mxu1 %v11722_v16  ;;  %9590 = vmatpush1.bf16.msra.mxu0 %v9589_v5  ;;  %v6037_v25 = vadd.f32 %v6036_v18, %v14049_v40  ;;  %v7069_v8 = vld [vmem:[#allocation6 + $0x10e8] sm:$0xff] }
 0x7d2   : > { %v5782_v21 = vadd.f32 %v5781_v19, %v14052_v56  ;;  %v6038_v22 = vpop.f32.mrb[205].mxu1  ;;  %v11726_v24 = vpop.eup %11725  ;;  %11745 = vtanh.f32 %v6031_v7  ;;  %9654 = vmatpush1.bf16.msra.mxu1 %v9589_v5  ;;  %9592 = vmatprep.subr.bf16.mxu0 %v9591_v9  ;;  %v7066_v5 = vld [vmem:[#allocation6 + $0x10d0] sm:$0xff] }
 0x7d3   : > { %v6039_v26 = vadd.f32 %v6038_v22, %v14052_v56  ;;  %v11728_v30 = vpop.eup %11727  ;;  %11747 = vtanh.f32 %v5780_v17  ;;  %6479 = vmatprep.mubr.f32.mxu0 %v11726_v24  ;;  %v5785_v31 = vpop.f32.mrb[206].mxu0  ;;  %9656 = vmatprep.subr.bf16.mxu1 %v9591_v9  ;;  %v7071_v9 = vld [vmem:[#allocation6 + $0x10f8] sm:$0xff]  ;;  %v9605_v17 = vpack.c.bf16 %v7066_v5, %v7064_v4  ;;  %v7068_v22 = vld [vmem:[#allocation6 + $0x10e0] sm:$0xff] }
 0x7d4   : > { %v11730_v34 = vpop.eup %11729  ;;  %11749 = vtanh.f32 %v5782_v21  ;;  %6736 = vmatprep.mubr.f32.mxu1 %v11728_v30  ;;  %v5786_v35 = vadd.f32 %v5785_v31, %v14049_v40  ;;  %v6042_v49 = vpop.f32.mrb[206].mxu1  ;;  %6480 = vmatmul.mubr.f32.gmra.mrb[6].mxu0 %v11724_v20  ;;  %v9607_v21 = vpack.c.bf16 %v7071_v9, %v7069_v8 }
 0x7d5   : > { %v5787_v47 = vpop.f32.mrb[207].mxu0  ;;  %v11732_v45 = vpop.eup %11731  ;;  %11751 = vtanh.f32 %v6039_v26  ;;  %6737 = vmatmul.mubr.f32.gmra.mrb[6].mxu1 %v11730_v34  ;;  %9594 = vmatpush1.bf16.msra.mxu0 %v9593_v23  ;;  %v6043_v55 = vadd.f32 %v6042_v49, %v14049_v40  ;;  %v7073_v26 = vld [vmem:[#allocation6 + $0x1108] sm:$0xff] }
 0x7d6   : > { %v5788_v44 = vadd.f32 %v5787_v47, %v14052_v56  ;;  %v6044_v43 = vpop.f32.mrb[207].mxu1  ;;  %v11734_v41 = vpop.eup %11733  ;;  %11753 = vtanh.f32 %v6037_v25  ;;  %9658 = vmatpush1.bf16.msra.mxu1 %v9593_v23  ;;  %9596 = vmatprep.subr.bf16.mxu0 %v9595_v27  ;;  %v7070_v23 = vld [vmem:[#allocation6 + $0x10f0] sm:$0xff] }
 0x7d7   : > { %v6045_v54 = vadd.f32 %v6044_v43, %v14052_v56  ;;  %v11736_v50 = vpop.eup %11735  ;;  %11755 = vtanh.f32 %v5786_v35  ;;  %6485 = vmatprep.mubr.f32.mxu0 %v11734_v41  ;;  %v5791_v0 = vpop.f32.mrb[208].mxu0  ;;  %9660 = vmatprep.subr.bf16.mxu1 %v9595_v27  ;;  %v7075_v27 = vld [vmem:[#allocation6 + $0x1118] sm:$0xff]  ;;  %v9609_v35 = vpack.c.bf16 %v7070_v23, %v7068_v22  ;;  %v7072_v43 = vld [vmem:[#allocation6 + $0x1100] sm:$0xff] }
 0x7d8   : > { %v11738_v38 = vpop.eup %11737  ;;  %11757 = vtanh.f32 %v5788_v44  ;;  %6742 = vmatprep.mubr.f32.mxu1 %v11736_v50  ;;  %v5792_v39 = vadd.f32 %v5791_v0, %v14049_v40  ;;  %v6048_v57 = vpop.f32.mrb[208].mxu1  ;;  %6486 = vmatmul.mubr.f32.gmra.mrb[8].mxu0 %v11732_v45  ;;  %v9611_v44 = vpack.c.bf16 %v7075_v27, %v7073_v26 }
 0x7d9   : > { %v5793_v58 = vpop.f32.mrb[209].mxu0  ;;  %v11740_v59 = vpop.eup %11739  ;;  %11759 = vtanh.f32 %v6045_v54  ;;  %6743 = vmatmul.mubr.f32.gmra.mrb[8].mxu1 %v11738_v38  ;;  %9598 = vmatpush1.bf16.msra.mxu0 %v9597_v42  ;;  %v6049_v1 = vadd.f32 %v6048_v57, %v14049_v40  ;;  %v7077_v54 = vld [vmem:[#allocation6 + $0x1128] sm:$0xff] }
 0x7da   : > { %v5794_v60 = vadd.f32 %v5793_v58, %v14052_v56  ;;  %v6050_v61 = vpop.f32.mrb[209].mxu1  ;;  %v11742_v63 = vpop.eup %11741  ;;  %11761 = vtanh.f32 %v6043_v55  ;;  %9662 = vmatpush1.bf16.msra.mxu1 %v9597_v42  ;;  %9600 = vmatprep.subr.bf16.mxu0 %v9599_v53  ;;  %v7074_v42 = vld [vmem:[#allocation6 + $0x1110] sm:$0xff] }
 0x7db   : > { %v6051_v2 = vadd.f32 %v6050_v61, %v14052_v56  ;;  %v11744_v6 = vpop.eup %11743  ;;  %11763 = vtanh.f32 %v5792_v39  ;;  %6491 = vmatprep.mubr.f32.mxu0 %v11742_v63  ;;  %v5797_v7 = vpop.f32.mrb[210].mxu0  ;;  %9664 = vmatprep.subr.bf16.mxu1 %v9599_v53  ;;  %v7079_v53 = vld [vmem:[#allocation6 + $0x1138] sm:$0xff]  ;;  %v9613_v39 = vpack.c.bf16 %v7074_v42, %v7072_v43  ;;  %v7076_v61 = vld [vmem:[#allocation6 + $0x1120] sm:$0xff] }
 0x7dc   : > { %v11746_v10 = vpop.eup %11745  ;;  %11765 = vtanh.f32 %v5794_v60  ;;  %6748 = vmatprep.mubr.f32.mxu1 %v11744_v6  ;;  %v5798_v11 = vadd.f32 %v5797_v7, %v14049_v40  ;;  %v6054_v12 = vpop.f32.mrb[210].mxu1  ;;  %6492 = vmatmul.mubr.f32.gmra.mrb[10].mxu0 %v11740_v59  ;;  %v9615_v60 = vpack.c.bf16 %v7079_v53, %v7077_v54 }
 0x7dd   : > { %v5799_v13 = vpop.f32.mrb[211].mxu0  ;;  %v11748_v14 = vpop.eup %11747  ;;  %11767 = vtanh.f32 %v6051_v2  ;;  %6749 = vmatmul.mubr.f32.gmra.mrb[10].mxu1 %v11746_v10  ;;  %9602 = vmatpush1.bf16.msra.mxu0 %v9601_v62  ;;  %v6055_v19 = vadd.f32 %v6054_v12, %v14049_v40  ;;  %v7081_v2 = vld [vmem:[#allocation6 + $0x1148] sm:$0xff] }
 0x7de   : > { %v5800_v15 = vadd.f32 %v5799_v13, %v14052_v56  ;;  %v6056_v16 = vpop.f32.mrb[211].mxu1  ;;  %v11750_v18 = vpop.eup %11749  ;;  %11769 = vtanh.f32 %v6049_v1  ;;  %9666 = vmatpush1.bf16.msra.mxu1 %v9601_v62  ;;  %9604 = vmatprep.subr.bf16.mxu0 %v9603_v3  ;;  %v7078_v62 = vld [vmem:[#allocation6 + $0x1130] sm:$0xff] }
 0x7df   : > { %v6057_v20 = vadd.f32 %v6056_v16, %v14052_v56  ;;  %v11752_v24 = vpop.eup %11751  ;;  %11771 = vtanh.f32 %v5798_v11  ;;  %6497 = vmatprep.mubr.f32.mxu0 %v11750_v18  ;;  %v5803_v25 = vpop.f32.mrb[212].mxu0  ;;  %9668 = vmatprep.subr.bf16.mxu1 %v9603_v3  ;;  %v7083_v3 = vld [vmem:[#allocation6 + $0x1158] sm:$0xff]  ;;  %v9617_v11 = vpack.c.bf16 %v7078_v62, %v7076_v61  ;;  %v7080_v16 = vld [vmem:[#allocation6 + $0x1140] sm:$0xff] }
 0x7e0   : > { %v11754_v28 = vpop.eup %11753  ;;  %11773 = vtanh.f32 %v5800_v15  ;;  %6754 = vmatprep.mubr.f32.mxu1 %v11752_v24  ;;  %v5804_v29 = vadd.f32 %v5803_v25, %v14049_v40  ;;  %v6060_v30 = vpop.f32.mrb[212].mxu1  ;;  %6498 = vmatmul.mubr.f32.gmra.mrb[12].mxu0 %v11748_v14  ;;  %v9619_v15 = vpack.c.bf16 %v7083_v3, %v7081_v2 }
 0x7e1   : > { %v5805_v31 = vpop.f32.mrb[213].mxu0  ;;  %v11756_v32 = vpop.eup %11755  ;;  %11775 = vtanh.f32 %v6057_v20  ;;  %6755 = vmatmul.mubr.f32.gmra.mrb[12].mxu1 %v11754_v28  ;;  %9606 = vmatpush1.bf16.msra.mxu0 %v9605_v17  ;;  %v6061_v47 = vadd.f32 %v6060_v30, %v14049_v40  ;;  %v7085_v20 = vld [vmem:[#allocation6 + $0x1168] sm:$0xff] }
 0x7e2   : > { %v5806_v33 = vadd.f32 %v5805_v31, %v14052_v56  ;;  %v6062_v34 = vpop.f32.mrb[213].mxu1  ;;  %v11758_v49 = vpop.eup %11757  ;;  %11777 = vtanh.f32 %v6055_v19  ;;  %9670 = vmatpush1.bf16.msra.mxu1 %v9605_v17  ;;  %9608 = vmatprep.subr.bf16.mxu0 %v9607_v21  ;;  %v7082_v17 = vld [vmem:[#allocation6 + $0x1150] sm:$0xff] }
 0x7e3   : > { %v6063_v45 = vadd.f32 %v6062_v34, %v14052_v56  ;;  %v11760_v41 = vpop.eup %11759  ;;  %11779 = vtanh.f32 %v5804_v29  ;;  %6503 = vmatprep.mubr.f32.mxu0 %v11758_v49  ;;  %v5809_v55 = vpop.f32.mrb[214].mxu0  ;;  %9672 = vmatprep.subr.bf16.mxu1 %v9607_v21  ;;  %v7087_v21 = vld [vmem:[#allocation6 + $0x1178] sm:$0xff]  ;;  %v9621_v29 = vpack.c.bf16 %v7082_v17, %v7080_v16  ;;  %v7084_v34 = vld [vmem:[#allocation6 + $0x1160] sm:$0xff] }
 0x7e4   : > { %v11762_v52 = vpop.eup %11761  ;;  %11781 = vtanh.f32 %v5806_v33  ;;  %6760 = vmatprep.mubr.f32.mxu1 %v11760_v41  ;;  %v5810_v51 = vadd.f32 %v5809_v55, %v14049_v40  ;;  %v6066_v50 = vpop.f32.mrb[214].mxu1  ;;  %6504 = vmatmul.mubr.f32.gmra.mrb[14].mxu0 %v11756_v32  ;;  %v9623_v33 = vpack.c.bf16 %v7087_v21, %v7085_v20 }
 0x7e5   : > { %v5811_v0 = vpop.f32.mrb[215].mxu0  ;;  %v11764_v36 = vpop.eup %11763  ;;  %11783 = vtanh.f32 %v6063_v45  ;;  %6761 = vmatmul.mubr.f32.gmra.mrb[14].mxu1 %v11762_v52  ;;  %9610 = vmatpush1.bf16.msra.mxu0 %v9609_v35  ;;  %v6067_v58 = vadd.f32 %v6066_v50, %v14049_v40  ;;  %v7089_v45 = vld [vmem:[#allocation6 + $0x1188] sm:$0xff] }
 0x7e6   : > { %v5812_v37 = vadd.f32 %v5811_v0, %v14052_v56  ;;  %v6068_v38 = vpop.f32.mrb[215].mxu1  ;;  %v11766_v57 = vpop.eup %11765  ;;  %11785 = vtanh.f32 %v6061_v47  ;;  %9674 = vmatpush1.bf16.msra.mxu1 %v9609_v35  ;;  %9612 = vmatprep.subr.bf16.mxu0 %v9611_v44  ;;  %v7086_v35 = vld [vmem:[#allocation6 + $0x1170] sm:$0xff] }
 0x7e7   : > { %v6069_v59 = vadd.f32 %v6068_v38, %v14052_v56  ;;  %v11768_v63 = vpop.eup %11767  ;;  %11787 = vtanh.f32 %v5810_v51  ;;  %6509 = vmatprep.mubr.f32.mxu0 %v11766_v57  ;;  %v5815_v1 = vpop.f32.mrb[216].mxu0  ;;  %9676 = vmatprep.subr.bf16.mxu1 %v9611_v44  ;;  %v7091_v44 = vld [vmem:[#allocation6 + $0x1198] sm:$0xff]  ;;  %v9625_v51 = vpack.c.bf16 %v7086_v35, %v7084_v34  ;;  %v7088_v38 = vld [vmem:[#allocation6 + $0x1180] sm:$0xff] }
 0x7e8   : > { %v11770_v4 = vpop.eup %11769  ;;  %11789 = vtanh.f32 %v5812_v37  ;;  %6766 = vmatprep.mubr.f32.mxu1 %v11768_v63  ;;  %v5816_v5 = vadd.f32 %v5815_v1, %v14049_v40  ;;  %v6072_v6 = vpop.f32.mrb[216].mxu1  ;;  %6510 = vmatmul.mubr.f32.gmra.mrb[16].mxu0 %v11764_v36  ;;  %v9627_v37 = vpack.c.bf16 %v7091_v44, %v7089_v45 }
 0x7e9   : > { %v5817_v7 = vpop.f32.mrb[217].mxu0  ;;  %v11772_v8 = vpop.eup %11771  ;;  %11791 = vtanh.f32 %v6069_v59  ;;  %6767 = vmatmul.mubr.f32.gmra.mrb[16].mxu1 %v11770_v4  ;;  %9614 = vmatpush1.bf16.msra.mxu0 %v9613_v39  ;;  %v6073_v13 = vadd.f32 %v6072_v6, %v14049_v40  ;;  %v7093_v59 = vld [vmem:[#allocation6 + $0x11a8] sm:$0xff] }
 0x7ea   : > { %v5818_v9 = vadd.f32 %v5817_v7, %v14052_v56  ;;  %v6074_v10 = vpop.f32.mrb[217].mxu1  ;;  %v11774_v12 = vpop.eup %11773  ;;  %11793 = vtanh.f32 %v6067_v58  ;;  %9678 = vmatpush1.bf16.msra.mxu1 %v9613_v39  ;;  %9616 = vmatprep.subr.bf16.mxu0 %v9615_v60  ;;  %v7090_v39 = vld [vmem:[#allocation6 + $0x1190] sm:$0xff] }
 0x7eb   : > { %v6075_v14 = vadd.f32 %v6074_v10, %v14052_v56  ;;  %v11776_v18 = vpop.eup %11775  ;;  %11795 = vtanh.f32 %v5816_v5  ;;  %6515 = vmatprep.mubr.f32.mxu0 %v11774_v12  ;;  %v5821_v19 = vpop.f32.mrb[218].mxu0  ;;  %9680 = vmatprep.subr.bf16.mxu1 %v9615_v60  ;;  %v7095_v60 = vld [vmem:[#allocation6 + $0x11b8] sm:$0xff]  ;;  %v9629_v5 = vpack.c.bf16 %v7090_v39, %v7088_v38  ;;  %v7092_v10 = vld [vmem:[#allocation6 + $0x11a0] sm:$0xff] }
 0x7ec   : > { %v11778_v22 = vpop.eup %11777  ;;  %11797 = vtanh.f32 %v5818_v9  ;;  %6772 = vmatprep.mubr.f32.mxu1 %v11776_v18  ;;  %v5822_v23 = vadd.f32 %v5821_v19, %v14049_v40  ;;  %v6078_v24 = vpop.f32.mrb[218].mxu1  ;;  %6516 = vmatmul.mubr.f32.gmra.mrb[18].mxu0 %v11772_v8  ;;  %v9631_v9 = vpack.c.bf16 %v7095_v60, %v7093_v59 }
 0x7ed   : > { %v5823_v25 = vpop.f32.mrb[219].mxu0  ;;  %v11780_v26 = vpop.eup %11779  ;;  %11799 = vtanh.f32 %v6075_v14  ;;  %6773 = vmatmul.mubr.f32.gmra.mrb[18].mxu1 %v11778_v22  ;;  %9618 = vmatpush1.bf16.msra.mxu0 %v9617_v11  ;;  %v6079_v31 = vadd.f32 %v6078_v24, %v14049_v40  ;;  %v7097_v14 = vld [vmem:[#allocation6 + $0x11c8] sm:$0xff] }
 0x7ee   : > { %v5824_v27 = vadd.f32 %v5823_v25, %v14052_v56  ;;  %v6080_v28 = vpop.f32.mrb[219].mxu1  ;;  %v11782_v30 = vpop.eup %11781  ;;  %11801 = vtanh.f32 %v6073_v13  ;;  %9682 = vmatpush1.bf16.msra.mxu1 %v9617_v11  ;;  %9620 = vmatprep.subr.bf16.mxu0 %v9619_v15  ;;  %v7094_v11 = vld [vmem:[#allocation6 + $0x11b0] sm:$0xff] }
 0x7ef   : > { %v6081_v32 = vadd.f32 %v6080_v28, %v14052_v56  ;;  %v11784_v49 = vpop.eup %11783  ;;  %11803 = vtanh.f32 %v5822_v23  ;;  %6521 = vmatprep.mubr.f32.mxu0 %v11782_v30  ;;  %v5827_v47 = vpop.f32.mrb[220].mxu0  ;;  %9684 = vmatprep.subr.bf16.mxu1 %v9619_v15  ;;  %v7099_v15 = vld [vmem:[#allocation6 + $0x11d8] sm:$0xff]  ;;  %v9633_v23 = vpack.c.bf16 %v7094_v11, %v7092_v10 }
 0x7f0   : > { %v11786_v43 = vpop.eup %11785  ;;  %11805 = vtanh.f32 %v5824_v27  ;;  %6778 = vmatprep.mubr.f32.mxu1 %v11784_v49  ;;  %v5828_v42 = vadd.f32 %v5827_v47, %v14049_v40  ;;  %v6084_v41 = vpop.f32.mrb[220].mxu1  ;;  %6522 = vmatmul.mubr.f32.gmra.mrb[20].mxu0 %v11780_v26  ;;  %v9635_v27 = vpack.c.bf16 %v7099_v15, %v7097_v14 }
 0x7f1   : > { %v5829_v55 = vpop.f32.mrb[221].mxu0  ;;  %v11788_v54 = vpop.eup %11787  ;;  %11807 = vtanh.f32 %v6081_v32  ;;  %6779 = vmatmul.mubr.f32.gmra.mrb[20].mxu1 %v11786_v43  ;;  %9622 = vmatpush1.bf16.msra.mxu0 %v9621_v29  ;;  %v6085_v0 = vadd.f32 %v6084_v41, %v14049_v40 }
 0x7f2   : > { %v5830_v53 = vadd.f32 %v5829_v55, %v14052_v56  ;;  %v6086_v52 = vpop.f32.mrb[221].mxu1  ;;  %v11790_v50 = vpop.eup %11789  ;;  %11809 = vtanh.f32 %v6079_v31  ;;  %9686 = vmatpush1.bf16.msra.mxu1 %v9621_v29  ;;  %9624 = vmatprep.subr.bf16.mxu0 %v9623_v33 }
 0x7f3   : > { %v6087_v36 = vadd.f32 %v6086_v52, %v14052_v56  ;;  %v11792_v57 = vpop.eup %11791  ;;  %11811 = vtanh.f32 %v5828_v42  ;;  %6527 = vmatprep.mubr.f32.mxu0 %v11790_v50  ;;  %v5833_v58 = vpop.f32.mrb[222].mxu0  ;;  %9688 = vmatprep.subr.bf16.mxu1 %v9623_v33 }
 0x7f4   : > { %v11794_v61 = vpop.eup %11793  ;;  %11813 = vtanh.f32 %v5830_v53  ;;  %6784 = vmatprep.mubr.f32.mxu1 %v11792_v57  ;;  %v5834_v62 = vadd.f32 %v5833_v58, %v14049_v40  ;;  %v6090_v63 = vpop.f32.mrb[222].mxu1  ;;  %6528 = vmatmul.mubr.f32.gmra.mrb[22].mxu0 %v11788_v54 }
 0x7f5   : > { %v5835_v1 = vpop.f32.mrb[223].mxu0  ;;  %v11796_v2 = vpop.eup %11795  ;;  %11815 = vtanh.f32 %v6087_v36  ;;  %6785 = vmatmul.mubr.f32.gmra.mrb[22].mxu1 %v11794_v61  ;;  %9626 = vmatpush1.bf16.msra.mxu0 %v9625_v51  ;;  %v6091_v7 = vadd.f32 %v6090_v63, %v14049_v40 }
 0x7f6   : > { %v5836_v3 = vadd.f32 %v5835_v1, %v14052_v56  ;;  %v6092_v4 = vpop.f32.mrb[223].mxu1  ;;  %v11798_v6 = vpop.eup %11797  ;;  %11817 = vtanh.f32 %v6085_v0  ;;  %9690 = vmatpush1.bf16.msra.mxu1 %v9625_v51  ;;  %9628 = vmatprep.subr.bf16.mxu0 %v9627_v37 }
 0x7f7   : > { %v6093_v8 = vadd.f32 %v6092_v4, %v14052_v56  ;;  %v11800_v12 = vpop.eup %11799  ;;  %11819 = vtanh.f32 %v5834_v62  ;;  %6533 = vmatprep.mubr.f32.mxu0 %v11798_v6  ;;  %v5839_v13 = vpop.f32.mrb[224].mxu0  ;;  %9692 = vmatprep.subr.bf16.mxu1 %v9627_v37 }
 0x7f8   : > { %v11802_v16 = vpop.eup %11801  ;;  %11821 = vtanh.f32 %v5836_v3  ;;  %6790 = vmatprep.mubr.f32.mxu1 %v11800_v12  ;;  %v5840_v17 = vadd.f32 %v5839_v13, %v14049_v40  ;;  %v6096_v18 = vpop.f32.mrb[224].mxu1  ;;  %6534 = vmatmul.mubr.f32.gmra.mrb[24].mxu0 %v11796_v2 }
 0x7f9   : > { %v5841_v19 = vpop.f32.mrb[225].mxu0  ;;  %v11804_v20 = vpop.eup %11803  ;;  %11823 = vtanh.f32 %v6093_v8  ;;  %6791 = vmatmul.mubr.f32.gmra.mrb[24].mxu1 %v11802_v16  ;;  %9630 = vmatpush1.bf16.msra.mxu0 %v9629_v5  ;;  %v6097_v25 = vadd.f32 %v6096_v18, %v14049_v40 }
 0x7fa   : > { %v5842_v21 = vadd.f32 %v5841_v19, %v14052_v56  ;;  %v6098_v22 = vpop.f32.mrb[225].mxu1  ;;  %v11806_v24 = vpop.eup %11805  ;;  %11825 = vtanh.f32 %v6091_v7  ;;  %9694 = vmatpush1.bf16.msra.mxu1 %v9629_v5  ;;  %9632 = vmatprep.subr.bf16.mxu0 %v9631_v9 }
 0x7fb   : > { %v6099_v26 = vadd.f32 %v6098_v22, %v14052_v56  ;;  %v11808_v28 = vpop.eup %11807  ;;  %11827 = vtanh.f32 %v5840_v17  ;;  %6539 = vmatprep.mubr.f32.mxu0 %v11806_v24  ;;  %v5845_v29 = vpop.f32.mrb[226].mxu0  ;;  %9696 = vmatprep.subr.bf16.mxu1 %v9631_v9 }
 0x7fc   : > { %v11810_v30 = vpop.eup %11809  ;;  %11829 = vtanh.f32 %v5842_v21  ;;  %6796 = vmatprep.mubr.f32.mxu1 %v11808_v28  ;;  %v5846_v31 = vadd.f32 %v5845_v29, %v14049_v40  ;;  %v6102_v32 = vpop.f32.mrb[226].mxu1  ;;  %6540 = vmatmul.mubr.f32.gmra.mrb[26].mxu0 %v11804_v20 }
 0x7fd   : > { %v5847_v33 = vpop.f32.mrb[227].mxu0  ;;  %v11812_v34 = vpop.eup %11811  ;;  %11831 = vtanh.f32 %v6099_v26  ;;  %6797 = vmatmul.mubr.f32.gmra.mrb[26].mxu1 %v11810_v30  ;;  %9634 = vmatpush1.bf16.msra.mxu0 %v9633_v23  ;;  %v6103_v45 = vadd.f32 %v6102_v32, %v14049_v40 }
 0x7fe   : > { %v5848_v35 = vadd.f32 %v5847_v33, %v14052_v56  ;;  %v6104_v49 = vpop.f32.mrb[227].mxu1  ;;  %v11814_v47 = vpop.eup %11813  ;;  %11833 = vtanh.f32 %v6097_v25  ;;  %9698 = vmatpush1.bf16.msra.mxu1 %v9633_v23  ;;  %9636 = vmatprep.subr.bf16.mxu0 %v9635_v27 }
 0x7ff   : > { %v6105_v44 = vadd.f32 %v6104_v49, %v14052_v56  ;;  %v11816_v43 = vpop.eup %11815  ;;  %11835 = vtanh.f32 %v5846_v31  ;;  %6545 = vmatprep.mubr.f32.mxu0 %v11814_v47  ;;  %v5851_v42 = vpop.f32.mrb[228].mxu0  ;;  %9700 = vmatprep.subr.bf16.mxu1 %v9635_v27 }
 0x800   : > { %v11818_v41 = vpop.eup %11817  ;;  %11837 = vtanh.f32 %v5848_v35  ;;  %6802 = vmatprep.mubr.f32.mxu1 %v11816_v43  ;;  %v5852_v55 = vadd.f32 %v5851_v42, %v14049_v40  ;;  %v6108_v54 = vpop.f32.mrb[228].mxu1  ;;  %6546 = vmatmul.mubr.f32.gmra.mrb[28].mxu0 %v11812_v34 }
 0x801   : > { %v5853_v53 = vpop.f32.mrb[229].mxu0  ;;  %v11820_v52 = vpop.eup %11819  ;;  %11839 = vtanh.f32 %v6105_v44  ;;  %6803 = vmatmul.mubr.f32.gmra.mrb[28].mxu1 %v11818_v41  ;;  %v6109_v36 = vadd.f32 %v6108_v54, %v14049_v40 }
 0x802   : > { %v5854_v51 = vadd.f32 %v5853_v53, %v14052_v56  ;;  %v6110_v50 = vpop.f32.mrb[229].mxu1  ;;  %v11822_v0 = vpop.eup %11821  ;;  %11841 = vtanh.f32 %v6103_v45 }
 0x803   : > { %v6111_v37 = vadd.f32 %v6110_v50, %v14052_v56  ;;  %v11824_v38 = vpop.eup %11823  ;;  %11843 = vtanh.f32 %v5852_v55  ;;  %6551 = vmatprep.mubr.f32.mxu0 %v11822_v0  ;;  %v5857_v39 = vpop.f32.mrb[230].mxu0 }
 0x804   : > { %v11826_v57 = vpop.eup %11825  ;;  %11845 = vtanh.f32 %v5854_v51  ;;  %6808 = vmatprep.mubr.f32.mxu1 %v11824_v38  ;;  %v5858_v58 = vadd.f32 %v5857_v39, %v14049_v40  ;;  %v6114_v59 = vpop.f32.mrb[230].mxu1  ;;  %6552 = vmatmul.mubr.f32.gmra.mrb[30].mxu0 %v11820_v52 }
 0x805   : > { %v5859_v60 = vpop.f32.mrb[231].mxu0  ;;  %v11828_v61 = vpop.eup %11827  ;;  %11847 = vtanh.f32 %v6111_v37  ;;  %6809 = vmatmul.mubr.f32.gmra.mrb[30].mxu1 %v11826_v57  ;;  %v6115_v2 = vadd.f32 %v6114_v59, %v14049_v40 }
 0x806   : > { %v5860_v62 = vadd.f32 %v5859_v60, %v14052_v56  ;;  %v6116_v63 = vpop.f32.mrb[231].mxu1  ;;  %v11830_v1 = vpop.eup %11829  ;;  %11849 = vtanh.f32 %v6109_v36 }
 0x807   : > { %v6117_v3 = vadd.f32 %v6116_v63, %v14052_v56  ;;  %v11832_v4 = vpop.eup %11831  ;;  %11851 = vtanh.f32 %v5858_v58  ;;  %6557 = vmatprep.mubr.f32.mxu0 %v11830_v1  ;;  %v5863_v5 = vpop.f32.mrb[232].mxu0 }
 0x808   : > { %v11834_v6 = vpop.eup %11833  ;;  %11853 = vtanh.f32 %v5860_v62  ;;  %6814 = vmatprep.mubr.f32.mxu1 %v11832_v4  ;;  %v5864_v7 = vadd.f32 %v5863_v5, %v14049_v40  ;;  %v6120_v8 = vpop.f32.mrb[232].mxu1  ;;  %6558 = vmatmul.mubr.f32.gmra.mrb[32].mxu0 %v11828_v61 }
 0x809   : > { %v5865_v9 = vpop.f32.mrb[233].mxu0  ;;  %v11836_v10 = vpop.eup %11835  ;;  %11855 = vtanh.f32 %v6117_v3  ;;  %6815 = vmatmul.mubr.f32.gmra.mrb[32].mxu1 %v11834_v6  ;;  %v6121_v14 = vadd.f32 %v6120_v8, %v14049_v40 }
 0x80a   : > { %v5866_v11 = vadd.f32 %v5865_v9, %v14052_v56  ;;  %v6122_v12 = vpop.f32.mrb[233].mxu1  ;;  %v11838_v13 = vpop.eup %11837  ;;  %11857 = vtanh.f32 %v6115_v2 }
 0x80b   : > { %v6123_v15 = vadd.f32 %v6122_v12, %v14052_v56  ;;  %v11840_v16 = vpop.eup %11839  ;;  %11859 = vtanh.f32 %v5864_v7  ;;  %6563 = vmatprep.mubr.f32.mxu0 %v11838_v13  ;;  %v5869_v17 = vpop.f32.mrb[234].mxu0 }
 0x80c   : > { %v11842_v18 = vpop.eup %11841  ;;  %11861 = vtanh.f32 %v5866_v11  ;;  %6820 = vmatprep.mubr.f32.mxu1 %v11840_v16  ;;  %v5870_v19 = vadd.f32 %v5869_v17, %v14049_v40  ;;  %v6126_v20 = vpop.f32.mrb[234].mxu1  ;;  %6564 = vmatmul.mubr.f32.gmra.mrb[34].mxu0 %v11836_v10 }
 0x80d   : > { %v5871_v21 = vpop.f32.mrb[235].mxu0  ;;  %v11844_v22 = vpop.eup %11843  ;;  %11863 = vtanh.f32 %v6123_v15  ;;  %6821 = vmatmul.mubr.f32.gmra.mrb[34].mxu1 %v11842_v18  ;;  %v6127_v26 = vadd.f32 %v6126_v20, %v14049_v40  ;;  %v7096_v18 = vld [vmem:[#allocation6 + $0x11c0] sm:$0xff] }
 0x80e   : > { %v5872_v23 = vadd.f32 %v5871_v21, %v14052_v56  ;;  %v6128_v24 = vpop.f32.mrb[235].mxu1  ;;  %v11846_v25 = vpop.eup %11845  ;;  %11865 = vtanh.f32 %v6121_v14 }
 0x80f   : > { %v6129_v27 = vadd.f32 %v6128_v24, %v14052_v56  ;;  %v11848_v28 = vpop.eup %11847  ;;  %11867 = vtanh.f32 %v5870_v19  ;;  %6569 = vmatprep.mubr.f32.mxu0 %v11846_v25  ;;  %v5875_v29 = vpop.f32.mrb[236].mxu0  ;;  %v7098_v19 = vld [vmem:[#allocation6 + $0x11d0] sm:$0xff] }
 0x810   : > { %v11850_v30 = vpop.eup %11849  ;;  %11869 = vtanh.f32 %v5872_v23  ;;  %6826 = vmatprep.mubr.f32.mxu1 %v11848_v28  ;;  %v5876_v31 = vadd.f32 %v5875_v29, %v14049_v40  ;;  %v6132_v32 = vpop.f32.mrb[236].mxu1  ;;  %6570 = vmatmul.mubr.f32.gmra.mrb[36].mxu0 %v11844_v22  ;;  %v9637_v24 = vpack.c.bf16 %v7098_v19, %v7096_v18 }
 0x811   : > { %v5877_v33 = vpop.f32.mrb[237].mxu0  ;;  %v11852_v34 = vpop.eup %11851  ;;  %11871 = vtanh.f32 %v6129_v27  ;;  %6827 = vmatmul.mubr.f32.gmra.mrb[36].mxu1 %v11850_v30  ;;  %v6133_v45 = vadd.f32 %v6132_v32, %v14049_v40 }
 0x812   : > { %v5878_v35 = vadd.f32 %v5877_v33, %v14052_v56  ;;  %v6134_v49 = vpop.f32.mrb[237].mxu1  ;;  %v11854_v47 = vpop.eup %11853  ;;  %11873 = vtanh.f32 %v6127_v26  ;;  %9638 = vmatpush1.bf16.msra.mxu0 %v9637_v24  ;;  %9702 = vmatpush1.bf16.msra.mxu1 %v9637_v24 }
 0x813   : > { %v6135_v44 = vadd.f32 %v6134_v49, %v14052_v56  ;;  %v11856_v43 = vpop.eup %11855  ;;  %11875 = vtanh.f32 %v5876_v31  ;;  %6575 = vmatprep.mubr.f32.mxu0 %v11854_v47  ;;  %v5881_v42 = vpop.f32.mrb[238].mxu0 }
 0x814   : > { %v11858_v41 = vpop.eup %11857  ;;  %11877 = vtanh.f32 %v5878_v35  ;;  %6832 = vmatprep.mubr.f32.mxu1 %v11856_v43  ;;  %v5882_v55 = vadd.f32 %v5881_v42, %v14049_v40  ;;  %v6138_v54 = vpop.f32.mrb[238].mxu1  ;;  %6576 = vmatmul.mubr.f32.gmra.mrb[38].mxu0 %v11852_v34  ;;  %v7101_v43 = vld [vmem:[#allocation6 + $0x11e8] sm:$0xff]  ;;  %v7103_v42 = vld [vmem:[#allocation6 + $0x11f8] sm:$0xff] }
 0x815   : > { %v5883_v53 = vpop.f32.mrb[239].mxu0  ;;  %v11860_v52 = vpop.eup %11859  ;;  %11879 = vtanh.f32 %v6135_v44  ;;  %6833 = vmatmul.mubr.f32.gmra.mrb[38].mxu1 %v11858_v41  ;;  %v6139_v36 = vadd.f32 %v6138_v54, %v14049_v40 }
 0x816   : > { %v5884_v51 = vadd.f32 %v5883_v53, %v14052_v56  ;;  %v6140_v50 = vpop.f32.mrb[239].mxu1  ;;  %v11862_v0 = vpop.eup %11861  ;;  %11881 = vtanh.f32 %v6133_v45  ;;  %v9639_v53 = vpack.c.bf16 %v7103_v42, %v7101_v43 }
 0x817   : > { %v6141_v37 = vadd.f32 %v6140_v50, %v14052_v56  ;;  %v11864_v38 = vpop.eup %11863  ;;  %11883 = vtanh.f32 %v5882_v55  ;;  %6581 = vmatprep.mubr.f32.mxu0 %v11862_v0  ;;  %v5887_v39 = vpop.f32.mrb[240].mxu0  ;;  %v7100_v50 = vld [vmem:[#allocation6 + $0x11e0] sm:$0xff]  ;;  %v7102_v0 = vld [vmem:[#allocation6 + $0x11f0] sm:$0xff] }
 0x818   : > { %v11866_v57 = vpop.eup %11865  ;;  %11885 = vtanh.f32 %v5884_v51  ;;  %6838 = vmatprep.mubr.f32.mxu1 %v11864_v38  ;;  %v5888_v58 = vadd.f32 %v5887_v39, %v14049_v40  ;;  %v6144_v59 = vpop.f32.mrb[240].mxu1  ;;  %6582 = vmatmul.mubr.f32.gmra.mrb[40].mxu0 %v11860_v52 }
 0x819   : > { %v5889_v60 = vpop.f32.mrb[241].mxu0  ;;  %v11868_v61 = vpop.eup %11867  ;;  %11887 = vtanh.f32 %v6141_v37  ;;  %6839 = vmatmul.mubr.f32.gmra.mrb[40].mxu1 %v11866_v57  ;;  %v6145_v2 = vadd.f32 %v6144_v59, %v14049_v40  ;;  %v9641_v57 = vpack.c.bf16 %v7102_v0, %v7100_v50  ;;  %9640 = vmatprep.subr.bf16.mxu0 %v9639_v53  ;;  %v7760_v0 = vld [vmem:[#allocation9 + $0x8] sm:$0xff] }
 0x81a   : > { %v5890_v62 = vadd.f32 %v5889_v60, %v14052_v56  ;;  %v6146_v63 = vpop.f32.mrb[241].mxu1  ;;  %v11870_v1 = vpop.eup %11869  ;;  %11889 = vtanh.f32 %v6139_v36  ;;  %9704 = vmatprep.subr.bf16.mxu1 %v9639_v53 }
 0x81b   : > { %v6147_v3 = vadd.f32 %v6146_v63, %v14052_v56  ;;  %v11872_v4 = vpop.eup %11871  ;;  %11891 = vtanh.f32 %v5888_v58  ;;  %6587 = vmatprep.mubr.f32.mxu0 %v11870_v1  ;;  %v5893_v5 = vpop.f32.mrb[242].mxu0  ;;  %9642 = vmatpush1.bf16.msra.mxu0 %v9641_v57 }
 0x81c   : > { %v11874_v6 = vpop.eup %11873  ;;  %11893 = vtanh.f32 %v5890_v62  ;;  %6844 = vmatprep.mubr.f32.mxu1 %v11872_v4  ;;  %v5894_v7 = vadd.f32 %v5893_v5, %v14049_v40  ;;  %v6150_v8 = vpop.f32.mrb[242].mxu1  ;;  %6588 = vmatmul.mubr.f32.gmra.mrb[42].mxu0 %v11868_v61 }
 0x81d   : > { %v5895_v9 = vpop.f32.mrb[243].mxu0  ;;  %v11876_v10 = vpop.eup %11875  ;;  %11895 = vtanh.f32 %v6147_v3  ;;  %6845 = vmatmul.mubr.f32.gmra.mrb[42].mxu1 %v11874_v6  ;;  %v6151_v14 = vadd.f32 %v6150_v8, %v14049_v40 }
 0x81e   : > { %v5896_v11 = vadd.f32 %v5895_v9, %v14052_v56  ;;  %v6152_v12 = vpop.f32.mrb[243].mxu1  ;;  %v11878_v13 = vpop.eup %11877  ;;  %11897 = vtanh.f32 %v6145_v2  ;;  %9706 = vmatpush1.bf16.msra.mxu1 %v9641_v57 }
 0x81f   : > { %v6153_v15 = vadd.f32 %v6152_v12, %v14052_v56  ;;  %v11880_v16 = vpop.eup %11879  ;;  %11899 = vtanh.f32 %v5894_v7  ;;  %6593 = vmatprep.mubr.f32.mxu0 %v11878_v13  ;;  %v5899_v17 = vpop.f32.mrb[244].mxu0 }
 0x820   : > { %v11882_v20 = vpop.eup %11881  ;;  %11901 = vtanh.f32 %v5896_v11  ;;  %6850 = vmatprep.mubr.f32.mxu1 %v11880_v16  ;;  %v5900_v21 = vadd.f32 %v5899_v17, %v14049_v40  ;;  %v6156_v22 = vpop.f32.mrb[244].mxu1  ;;  %6594 = vmatmul.mubr.f32.gmra.mrb[44].mxu0 %v11876_v10 }
 0x821   : > { %v5901_v23 = vpop.f32.mrb[245].mxu0  ;;  %v11884_v25 = vpop.eup %11883  ;;  %11903 = vtanh.f32 %v6153_v15  ;;  %6851 = vmatmul.mubr.f32.gmra.mrb[44].mxu1 %v11882_v20  ;;  %v6157_v29 = vadd.f32 %v6156_v22, %v14049_v40 }
 0x822   : > { %v5902_v26 = vadd.f32 %v5901_v23, %v14052_v56  ;;  %v6158_v27 = vpop.f32.mrb[245].mxu1  ;;  %v11886_v28 = vpop.eup %11885  ;;  %11905 = vtanh.f32 %v6151_v14 }
 0x823   : > { %v6159_v30 = vadd.f32 %v6158_v27, %v14052_v56  ;;  %v11888_v31 = vpop.eup %11887  ;;  %11907 = vtanh.f32 %v5900_v21  ;;  %6599 = vmatprep.mubr.f32.mxu0 %v11886_v28  ;;  %v5905_v32 = vpop.f32.mrb[246].mxu0 }
 0x824   : > { %v11890_v33 = vpop.eup %11889  ;;  %11909 = vtanh.f32 %v5902_v26  ;;  %6856 = vmatprep.mubr.f32.mxu1 %v11888_v31  ;;  %v5906_v34 = vadd.f32 %v5905_v32, %v14049_v40  ;;  %v6162_v35 = vpop.f32.mrb[246].mxu1  ;;  %6600 = vmatmul.mubr.f32.gmra.mrb[46].mxu0 %v11884_v25 }
 0x825   : > { %v5907_v49 = vpop.f32.mrb[247].mxu0  ;;  %v11892_v47 = vpop.eup %11891  ;;  %11911 = vtanh.f32 %v6159_v30  ;;  %6857 = vmatmul.mubr.f32.gmra.mrb[46].mxu1 %v11890_v33  ;;  %v6163_v55 = vadd.f32 %v6162_v35, %v14049_v40 }
 0x826   : > { %v5908_v45 = vadd.f32 %v5907_v49, %v14052_v56  ;;  %v6164_v44 = vpop.f32.mrb[247].mxu1  ;;  %v11894_v41 = vpop.eup %11893  ;;  %11913 = vtanh.f32 %v6157_v29 }
 0x827   : > { %v6165_v54 = vadd.f32 %v6164_v44, %v14052_v56  ;;  %v11896_v52 = vpop.eup %11895  ;;  %11915 = vtanh.f32 %v5906_v34  ;;  %6605 = vmatprep.mubr.f32.mxu0 %v11894_v41  ;;  %v5911_v51 = vpop.f32.mrb[248].mxu0 }
 0x828   : > { %v11898_v36 = vpop.eup %11897  ;;  %11917 = vtanh.f32 %v5908_v45  ;;  %6862 = vmatprep.mubr.f32.mxu1 %v11896_v52  ;;  %v5912_v37 = vadd.f32 %v5911_v51, %v14049_v40  ;;  %v6168_v38 = vpop.f32.mrb[248].mxu1  ;;  %6606 = vmatmul.mubr.f32.gmra.mrb[48].mxu0 %v11892_v47 }
 0x829   : > { %v5913_v39 = vpop.f32.mrb[249].mxu0  ;;  %v11900_v58 = vpop.eup %11899  ;;  %11919 = vtanh.f32 %v6165_v54  ;;  %6863 = vmatmul.mubr.f32.gmra.mrb[48].mxu1 %v11898_v36  ;;  %v6169_v62 = vadd.f32 %v6168_v38, %v14049_v40  ;;  %v7762_v36 = vld [vmem:[#allocation9 + $0x18] sm:$0xff]  ;;  %v6385_v38 = vld [vmem:[#allocation7 + $0x7] ss:$8 sm:$0x3] }
 0x82a   : > { %v5914_v59 = vadd.f32 %v5913_v39, %v14052_v56  ;;  %v6170_v60 = vpop.f32.mrb[249].mxu1  ;;  %v11902_v61 = vpop.eup %11901  ;;  %11921 = vtanh.f32 %v6163_v55  ;;  %v14183_v39 = vrot.slane %v6385_v38, %v13106_v46  ;;  %v14186_v57 = vrot.slane %v6385_v38, %v13108_v48  ;;  %v7769_v38 = vld [vmem:[#allocation9 + $0x50] sm:$0xff] }
 0x82b   : > { %v6171_v63 = vadd.f32 %v6170_v60, %v14052_v56  ;;  %v11904_v1 = vpop.eup %11903  ;;  %11923 = vtanh.f32 %v5912_v37  ;;  %6611 = vmatprep.mubr.f32.mxu0 %v11902_v61  ;;  %v5917_v2 = vpop.f32.mrb[250].mxu0  ;;  %v9707_v37 = vpack.c.bf16 %v7762_v36, %v7760_v0 }
 0x82c   : > { %v11906_v3 = vpop.eup %11905  ;;  %11925 = vtanh.f32 %v5914_v59  ;;  %6868 = vmatprep.mubr.f32.mxu1 %v11904_v1  ;;  %v5918_v4 = vadd.f32 %v5917_v2, %v14049_v40  ;;  %v6174_v5 = vpop.f32.mrb[250].mxu1  ;;  %6612 = vmatmul.mubr.f32.gmra.mrb[50].mxu0 %v11900_v58 }
 0x82d   : > { %v5919_v6 = vpop.f32.mrb[251].mxu0  ;;  %v11908_v7 = vpop.eup %11907  ;;  %11927 = vtanh.f32 %v6171_v63  ;;  %6869 = vmatmul.mubr.f32.gmra.mrb[50].mxu1 %v11906_v3  ;;  %v6175_v11 = vadd.f32 %v6174_v5, %v14049_v40  ;;  %9708 = vmatprep.subr.bf16.mxu0 %v9707_v37 }
 0x82e   : > { %v5920_v8 = vadd.f32 %v5919_v6, %v14052_v56  ;;  %v6176_v9 = vpop.f32.mrb[251].mxu1  ;;  %v11910_v10 = vpop.eup %11909  ;;  %11929 = vtanh.f32 %v6169_v62  ;;  %9772 = vmatprep.subr.bf16.mxu1 %v9707_v37  ;;  %v7767_v37 = vld [vmem:[#allocation9 + $0x40] sm:$0xff] }
 0x82f   : > { %v6177_v12 = vadd.f32 %v6176_v9, %v14052_v56  ;;  %v11912_v13 = vpop.eup %11911  ;;  %11931 = vtanh.f32 %v5918_v4  ;;  %6617 = vmatprep.mubr.f32.mxu0 %v11910_v10  ;;  %v5923_v14 = vpop.f32.mrb[252].mxu0 }
 0x830   : > { %v11914_v15 = vpop.eup %11913  ;;  %11933 = vtanh.f32 %v5920_v8  ;;  %6874 = vmatprep.mubr.f32.mxu1 %v11912_v13  ;;  %v5924_v16 = vadd.f32 %v5923_v14, %v14049_v40  ;;  %v6180_v17 = vpop.f32.mrb[252].mxu1  ;;  %6618 = vmatmul.mubr.f32.gmra.mrb[52].mxu0 %v11908_v7 }
 0x831   : > { %v5925_v18 = vpop.f32.mrb[253].mxu0  ;;  %v11916_v19 = vpop.eup %11915  ;;  %11935 = vtanh.f32 %v6177_v12  ;;  %6875 = vmatmul.mubr.f32.gmra.mrb[52].mxu1 %v11914_v15  ;;  %v6181_v23 = vadd.f32 %v6180_v17, %v14049_v40 }
 0x832   : > { %v5926_v20 = vadd.f32 %v5925_v18, %v14052_v56  ;;  %v6182_v21 = vpop.f32.mrb[253].mxu1  ;;  %v11918_v22 = vpop.eup %11917  ;;  %11937 = vtanh.f32 %v6175_v11 }
 0x833   : > { %v6183_v24 = vadd.f32 %v6182_v21, %v14052_v56  ;;  %v11920_v25 = vpop.eup %11919  ;;  %11939 = vtanh.f32 %v5924_v16  ;;  %6623 = vmatprep.mubr.f32.mxu0 %v11918_v22  ;;  %v5929_v26 = vpop.f32.mrb[254].mxu0  ;;  %v7764_v22 = vld [vmem:[#allocation9 + $0x28] sm:$0xff] }
 0x834   : > { %v11922_v27 = vpop.eup %11921  ;;  %11941 = vtanh.f32 %v5926_v20  ;;  %6880 = vmatprep.mubr.f32.mxu1 %v11920_v25  ;;  %v5930_v28 = vadd.f32 %v5929_v26, %v14049_v40  ;;  %v6186_v29 = vpop.f32.mrb[254].mxu1  ;;  %6624 = vmatmul.mubr.f32.gmra.mrb[54].mxu0 %v11916_v19  ;;  %v7759_v19 = vld [vmem:[#allocation9] sm:$0xff]  ;;  %v7761_v20 = vld [vmem:[#allocation9 + $0x10] sm:$0xff] }
 0x835   : > { %v5931_v30 = vpop.f32.mrb[255].mxu0  ;;  %v11924_v31 = vpop.eup %11923  ;;  %11943 = vtanh.f32 %v6183_v24  ;;  %6881 = vmatmul.mubr.f32.gmra.mrb[54].mxu1 %v11922_v27  ;;  %v6187_v35 = vadd.f32 %v6186_v29, %v14049_v40 }
 0x836   : > { %v5932_v32 = vadd.f32 %v5931_v30, %v14052_v56  ;;  %v6188_v33 = vpop.f32.mrb[255].mxu1  ;;  %v11926_v34 = vpop.eup %11925  ;;  %11945 = vtanh.f32 %v6181_v23  ;;  %v7766_v23 = vld [vmem:[#allocation9 + $0x38] sm:$0xff]  ;;  %v9709_v30 = vpack.c.bf16 %v7761_v20, %v7759_v19 }
 0x837   : > { %v6189_v49 = vadd.f32 %v6188_v33, %v14052_v56  ;;  %v11928_v47 = vpop.eup %11927  ;;  %11947 = vtanh.f32 %v5930_v28  ;;  %6629 = vmatprep.mubr.f32.mxu0 %v11926_v34  ;;  %v9711_v34 = vpack.c.bf16 %v7766_v23, %v7764_v22 }
 0x838   : > { %v11930_v45 = vpop.eup %11929  ;;  %11949 = vtanh.f32 %v5932_v32  ;;  %6886 = vmatprep.mubr.f32.mxu1 %v11928_v47  ;;  %6630 = vmatmul.mubr.f32.gmra.mrb[56].mxu0 %v11924_v31 }
 0x839   : > { %v11932_v44 = vpop.eup %11931  ;;  %11951 = vtanh.f32 %v6189_v49  ;;  %6887 = vmatmul.mubr.f32.gmra.mrb[56].mxu1 %v11930_v45  ;;  %v7765_v49 = vld [vmem:[#allocation9 + $0x30] sm:$0xff] }
 0x83a   : > { %v11934_v43 = vpop.eup %11933  ;;  %11953 = vtanh.f32 %v6187_v35  ;;  %v7763_v35 = vld [vmem:[#allocation9 + $0x20] sm:$0xff] }
 0x83b   : > { %v11936_v42 = vpop.eup %11935  ;;  %6635 = vmatprep.mubr.f32.mxu0 %v11934_v43  ;;  %v7770_v43 = vld [vmem:[#allocation9 + $0x58] sm:$0xff] }
 0x83c   : > { %v11938_v41 = vpop.eup %11937  ;;  %6892 = vmatprep.mubr.f32.mxu1 %v11936_v42  ;;  %6636 = vmatmul.mubr.f32.gmra.mrb[58].mxu0 %v11932_v44  ;;  %v7768_v44 = vld [vmem:[#allocation9 + $0x48] sm:$0xff] }
 0x83d   : > { %v11940_v40 = vpop.eup %11939  ;;  %6893 = vmatmul.mubr.f32.gmra.mrb[58].mxu1 %v11938_v41  ;;  %v9715_v36 = vpack.c.bf16 %v7770_v43, %v7768_v44 }
 0x83e   : > { %v11942_v56 = vpop.eup %11941 }
 0x83f   : > { %v11944_v55 = vpop.eup %11943  ;;  %6641 = vmatprep.mubr.f32.mxu0 %v11942_v56 }
 0x840   : > { %v11946_v54 = vpop.eup %11945  ;;  %6898 = vmatprep.mubr.f32.mxu1 %v11944_v55  ;;  %6642 = vmatmul.mubr.f32.gmra.mrb[60].mxu0 %v11940_v40 }
 0x841   : > { %v11948_v53 = vpop.eup %11947  ;;  %6899 = vmatmul.mubr.f32.gmra.mrb[60].mxu1 %v11946_v54 }
 0x842   : > { %v11950_v52 = vpop.eup %11949 }
 0x843   : > { %v11952_v51 = vpop.eup %11951  ;;  %6647 = vmatprep.mubr.f32.mxu0 %v11950_v52  ;;  %v9713_v52 = vpack.c.bf16 %v7765_v49, %v7763_v35 }
 0x844   : > { %v11954_v50 = vpop.eup %11953  ;;  %6904 = vmatprep.mubr.f32.mxu1 %v11952_v51  ;;  %6648 = vmatmul.mubr.f32.gmra.mrb[62].mxu0 %v11948_v53 }
 0x845   : > { %6905 = vmatmul.mubr.f32.gmra.mrb[62].mxu1 %v11954_v50 }
 0x89a   : > { %v6463_v58 = vpop.f32.mrb[0].mxu0 }
 0x89b   : > { %v6464_v59 = vadd.f32 %v6463_v58, %v14183_v39  ;;  %v6720_v60 = vpop.f32.mrb[0].mxu1  ;;  %v6465_v61 = vpop.f32.mrb[1].mxu0 }
 0x89c   : > { %v6466_v62 = vadd.f32 %v6465_v61, %v14186_v57  ;;  %v6722_v63 = vpop.f32.mrb[1].mxu1  ;;  %v6721_v1 = vadd.f32 %v6720_v60, %v14183_v39  ;;  %v7772_v60 = vld [vmem:[#allocation9 + $0x68] sm:$0xff]  ;;  %v7774_v61 = vld [vmem:[#allocation9 + $0x78] sm:$0xff] }
 0x89d   : > { %v6723_v2 = vadd.f32 %v6722_v63, %v14186_v57  ;;  %11955 = vtanh.f32 %v6464_v59 }
 0x89e   : > { %11957 = vtanh.f32 %v6466_v62 }
 0x89f   : > { %v6469_v3 = vpop.f32.mrb[2].mxu0  ;;  %11959 = vtanh.f32 %v6723_v2 }
 0x8a0   : > { %v6470_v4 = vadd.f32 %v6469_v3, %v14183_v39  ;;  %v6726_v5 = vpop.f32.mrb[2].mxu1  ;;  %v6471_v6 = vpop.f32.mrb[3].mxu0  ;;  %11961 = vtanh.f32 %v6721_v1 }
 0x8a1   : > { %v6472_v7 = vadd.f32 %v6471_v6, %v14186_v57  ;;  %v6728_v8 = vpop.f32.mrb[3].mxu1  ;;  %v6727_v9 = vadd.f32 %v6726_v5, %v14183_v39  ;;  %v9717_v6 = vpack.c.bf16 %v7769_v38, %v7767_v37 }
 0x8a2   : > { %v6729_v10 = vadd.f32 %v6728_v8, %v14186_v57  ;;  %11963 = vtanh.f32 %v6470_v4 }
 0x8a3   : > { %v6475_v11 = vpop.f32.mrb[4].mxu0  ;;  %11965 = vtanh.f32 %v6472_v7 }
 0x8a4   : > { %v6476_v12 = vadd.f32 %v6475_v11, %v14183_v39  ;;  %v6732_v13 = vpop.f32.mrb[4].mxu1  ;;  %v6477_v14 = vpop.f32.mrb[5].mxu0  ;;  %11967 = vtanh.f32 %v6729_v10  ;;  %v9719_v10 = vpack.c.bf16 %v7774_v61, %v7772_v60  ;;  %v7771_v11 = vld [vmem:[#allocation9 + $0x60] sm:$0xff] }
 0x8a5   : > { %v6478_v15 = vadd.f32 %v6477_v14, %v14186_v57  ;;  %v6734_v16 = vpop.f32.mrb[5].mxu1  ;;  %11969 = vtanh.f32 %v6727_v9  ;;  %v6733_v17 = vadd.f32 %v6732_v13, %v14183_v39 }
 0x8a6   : > { %v6735_v18 = vadd.f32 %v6734_v16, %v14186_v57  ;;  %11971 = vtanh.f32 %v6476_v12  ;;  %v7773_v12 = vld [vmem:[#allocation9 + $0x70] sm:$0xff]  ;;  %v7778_v16 = vld [vmem:[#allocation9 + $0x98] sm:$0xff] }
 0x8a7   : > { %v6481_v21 = vpop.f32.mrb[6].mxu0  ;;  %11973 = vtanh.f32 %v6478_v15  ;;  %v11956_v27 = vpop.eup %11955  ;;  %v7776_v15 = vld [vmem:[#allocation9 + $0x88] sm:$0xff] }
 0x8a8   : > { %v6482_v24 = vadd.f32 %v6481_v21, %v14183_v39  ;;  %v6738_v25 = vpop.f32.mrb[6].mxu1  ;;  %v6483_v26 = vpop.f32.mrb[7].mxu0  ;;  %11975 = vtanh.f32 %v6735_v18 }
 0x8a9   : > { %v6484_v28 = vadd.f32 %v6483_v26, %v14186_v57  ;;  %v6740_v29 = vpop.f32.mrb[7].mxu1  ;;  %v11958_v31 = vpop.eup %11957  ;;  %11977 = vtanh.f32 %v6733_v17  ;;  %v6739_v32 = vadd.f32 %v6738_v25, %v14183_v39 }
 0x8aa   : > { %v6741_v33 = vadd.f32 %v6740_v29, %v14186_v57  ;;  %v11960_v47 = vpop.eup %11959  ;;  %11979 = vtanh.f32 %v6482_v24  ;;  %7181 = vmatprep.mubr.f32.mxu0 %v11958_v31  ;;  %v9721_v24 = vpack.c.bf16 %v7773_v12, %v7771_v11  ;;  %v7775_v29 = vld [vmem:[#allocation9 + $0x80] sm:$0xff] }
 0x8ab   : > { %v6487_v45 = vpop.f32.mrb[8].mxu0  ;;  %v11962_v42 = vpop.eup %11961  ;;  %11981 = vtanh.f32 %v6484_v28  ;;  %7438 = vmatprep.mubr.f32.mxu1 %v11960_v47  ;;  %7182 = vmatmul.mubr.f32.vlgmr.msra.gmra.mrb[64].mxu0 %v11956_v27  ;;  %v9723_v28 = vpack.c.bf16 %v7778_v16, %v7776_v15 }
 0x8ac   : > { %v6488_v41 = vadd.f32 %v6487_v45, %v14183_v39  ;;  %v6744_v40 = vpop.f32.mrb[8].mxu1  ;;  %v6489_v56 = vpop.f32.mrb[9].mxu0  ;;  %11983 = vtanh.f32 %v6741_v33  ;;  %7439 = vmatmul.mubr.f32.vlgmr.msra.gmra.mrb[64].mxu1 %v11962_v42  ;;  %9710 = vmatpush1.bf16.msra.mxu0 %v9709_v30  ;;  %v7780_v33 = vld [vmem:[#allocation9 + $0xa8] sm:$0xff] }
 0x8ad   : > { %v11964_v55 = vpop.eup %11963  ;;  %v6490_v54 = vadd.f32 %v6489_v56, %v14186_v57  ;;  %v6746_v53 = vpop.f32.mrb[9].mxu1  ;;  %11985 = vtanh.f32 %v6739_v32  ;;  %v6745_v50 = vadd.f32 %v6744_v40, %v14183_v39  ;;  %9774 = vmatpush1.bf16.msra.mxu1 %v9709_v30  ;;  %9712 = vmatprep.subr.bf16.mxu0 %v9711_v34  ;;  %v7777_v30 = vld [vmem:[#allocation9 + $0x90] sm:$0xff] }
 0x8ae   : > { %v11966_v51 = vpop.eup %11965  ;;  %v6747_v0 = vadd.f32 %v6746_v53, %v14186_v57  ;;  %11987 = vtanh.f32 %v6488_v41  ;;  %9776 = vmatprep.subr.bf16.mxu1 %v9711_v34  ;;  %v7782_v34 = vld [vmem:[#allocation9 + $0xb8] sm:$0xff]  ;;  %v9725_v41 = vpack.c.bf16 %v7777_v30, %v7775_v29  ;;  %v7779_v53 = vld [vmem:[#allocation9 + $0xa0] sm:$0xff] }
 0x8af   : > { %v11968_v58 = vpop.eup %11967  ;;  %7187 = vmatprep.mubr.f32.mxu0 %v11966_v51  ;;  %v6493_v59 = vpop.f32.mrb[10].mxu0  ;;  %11989 = vtanh.f32 %v6490_v54  ;;  %v9727_v54 = vpack.c.bf16 %v7782_v34, %v7780_v33 }
 0x8b0   : > { %v11970_v62 = vpop.eup %11969  ;;  %7444 = vmatprep.mubr.f32.mxu1 %v11968_v58  ;;  %v6494_v63 = vadd.f32 %v6493_v59, %v14183_v39  ;;  %v6750_v1 = vpop.f32.mrb[10].mxu1  ;;  %7188 = vmatmul.mubr.f32.gmra.mrb[66].mxu0 %v11964_v55  ;;  %11991 = vtanh.f32 %v6747_v0  ;;  %v7784_v0 = vld [vmem:[#allocation9 + $0xc8] sm:$0xff] }
 0x8b1   : > { %v6495_v2 = vpop.f32.mrb[11].mxu0  ;;  %v11972_v3 = vpop.eup %11971  ;;  %7445 = vmatmul.mubr.f32.gmra.mrb[66].mxu1 %v11970_v62  ;;  %9714 = vmatpush1.bf16.msra.mxu0 %v9713_v52  ;;  %11993 = vtanh.f32 %v6745_v50  ;;  %v6751_v8 = vadd.f32 %v6750_v1, %v14183_v39 }
 0x8b2   : > { %v6496_v4 = vadd.f32 %v6495_v2, %v14186_v57  ;;  %v6752_v5 = vpop.f32.mrb[11].mxu1  ;;  %v11974_v7 = vpop.eup %11973  ;;  %9778 = vmatpush1.bf16.msra.mxu1 %v9713_v52  ;;  %9716 = vmatprep.subr.bf16.mxu0 %v9715_v36  ;;  %11995 = vtanh.f32 %v6494_v63  ;;  %v7781_v52 = vld [vmem:[#allocation9 + $0xb0] sm:$0xff] }
 0x8b3   : > { %v6753_v9 = vadd.f32 %v6752_v5, %v14186_v57  ;;  %v11976_v13 = vpop.eup %11975  ;;  %7193 = vmatprep.mubr.f32.mxu0 %v11974_v7  ;;  %v6499_v14 = vpop.f32.mrb[12].mxu0  ;;  %9780 = vmatprep.subr.bf16.mxu1 %v9715_v36  ;;  %v7786_v36 = vld [vmem:[#allocation9 + $0xd8] sm:$0xff]  ;;  %v9729_v63 = vpack.c.bf16 %v7781_v52, %v7779_v53  ;;  %v7783_v5 = vld [vmem:[#allocation9 + $0xc0] sm:$0xff] }
 0x8b4   : > { %v11978_v17 = vpop.eup %11977  ;;  %11997 = vtanh.f32 %v6496_v4  ;;  %7450 = vmatprep.mubr.f32.mxu1 %v11976_v13  ;;  %v6500_v18 = vadd.f32 %v6499_v14, %v14183_v39  ;;  %v6756_v19 = vpop.f32.mrb[12].mxu1  ;;  %7194 = vmatmul.mubr.f32.gmra.mrb[68].mxu0 %v11972_v3  ;;  %v9731_v4 = vpack.c.bf16 %v7786_v36, %v7784_v0 }
 0x8b5   : > { %v6501_v20 = vpop.f32.mrb[13].mxu0  ;;  %v11980_v21 = vpop.eup %11979  ;;  %11999 = vtanh.f32 %v6753_v9  ;;  %7451 = vmatmul.mubr.f32.gmra.mrb[68].mxu1 %v11978_v17  ;;  %9718 = vmatpush1.bf16.msra.mxu0 %v9717_v6  ;;  %v6757_v26 = vadd.f32 %v6756_v19, %v14183_v39  ;;  %v7788_v9 = vld [vmem:[#allocation9 + $0xe8] sm:$0xff] }
 0x8b6   : > { %v6502_v22 = vadd.f32 %v6501_v20, %v14186_v57  ;;  %v6758_v23 = vpop.f32.mrb[13].mxu1  ;;  %v11982_v25 = vpop.eup %11981  ;;  %12001 = vtanh.f32 %v6751_v8  ;;  %9782 = vmatpush1.bf16.msra.mxu1 %v9717_v6  ;;  %9720 = vmatprep.subr.bf16.mxu0 %v9719_v10  ;;  %v7785_v6 = vld [vmem:[#allocation9 + $0xd0] sm:$0xff] }
 0x8b7   : > { %v6759_v27 = vadd.f32 %v6758_v23, %v14186_v57  ;;  %v11984_v31 = vpop.eup %11983  ;;  %12003 = vtanh.f32 %v6500_v18  ;;  %7199 = vmatprep.mubr.f32.mxu0 %v11982_v25  ;;  %v6505_v32 = vpop.f32.mrb[14].mxu0  ;;  %9784 = vmatprep.subr.bf16.mxu1 %v9719_v10  ;;  %v7790_v10 = vld [vmem:[#allocation9 + $0xf8] sm:$0xff]  ;;  %v9733_v18 = vpack.c.bf16 %v7785_v6, %v7783_v5  ;;  %v7787_v23 = vld [vmem:[#allocation9 + $0xe0] sm:$0xff] }
 0x8b8   : > { %v11986_v35 = vpop.eup %11985  ;;  %12005 = vtanh.f32 %v6502_v22  ;;  %7456 = vmatprep.mubr.f32.mxu1 %v11984_v31  ;;  %v6506_v49 = vadd.f32 %v6505_v32, %v14183_v39  ;;  %v6762_v47 = vpop.f32.mrb[14].mxu1  ;;  %7200 = vmatmul.mubr.f32.gmra.mrb[70].mxu0 %v11980_v21  ;;  %v9735_v22 = vpack.c.bf16 %v7790_v10, %v7788_v9 }
 0x8b9   : > { %v6507_v45 = vpop.f32.mrb[15].mxu0  ;;  %v11988_v44 = vpop.eup %11987  ;;  %12007 = vtanh.f32 %v6759_v27  ;;  %7457 = vmatmul.mubr.f32.gmra.mrb[70].mxu1 %v11986_v35  ;;  %9722 = vmatpush1.bf16.msra.mxu0 %v9721_v24  ;;  %v6763_v56 = vadd.f32 %v6762_v47, %v14183_v39  ;;  %v7792_v27 = vld [vmem:[#allocation9 + $0x108] sm:$0xff] }
 0x8ba   : > { %v6508_v43 = vadd.f32 %v6507_v45, %v14186_v57  ;;  %v6764_v42 = vpop.f32.mrb[15].mxu1  ;;  %v11990_v40 = vpop.eup %11989  ;;  %12009 = vtanh.f32 %v6757_v26  ;;  %9786 = vmatpush1.bf16.msra.mxu1 %v9721_v24  ;;  %9724 = vmatprep.subr.bf16.mxu0 %v9723_v28  ;;  %v7789_v24 = vld [vmem:[#allocation9 + $0xf0] sm:$0xff] }
 0x8bb   : > { %v6765_v55 = vadd.f32 %v6764_v42, %v14186_v57  ;;  %v11992_v51 = vpop.eup %11991  ;;  %12011 = vtanh.f32 %v6506_v49  ;;  %7205 = vmatprep.mubr.f32.mxu0 %v11990_v40  ;;  %v6511_v50 = vpop.f32.mrb[16].mxu0  ;;  %9788 = vmatprep.subr.bf16.mxu1 %v9723_v28  ;;  %v7794_v28 = vld [vmem:[#allocation9 + $0x118] sm:$0xff]  ;;  %v9737_v49 = vpack.c.bf16 %v7789_v24, %v7787_v23  ;;  %v7791_v42 = vld [vmem:[#allocation9 + $0x100] sm:$0xff] }
 0x8bc   : > { %v11994_v37 = vpop.eup %11993  ;;  %12013 = vtanh.f32 %v6508_v43  ;;  %7462 = vmatprep.mubr.f32.mxu1 %v11992_v51  ;;  %v6512_v38 = vadd.f32 %v6511_v50, %v14183_v39  ;;  %v6768_v58 = vpop.f32.mrb[16].mxu1  ;;  %7206 = vmatmul.mubr.f32.gmra.mrb[72].mxu0 %v11988_v44  ;;  %v9739_v43 = vpack.c.bf16 %v7794_v28, %v7792_v27 }
 0x8bd   : > { %v6513_v59 = vpop.f32.mrb[17].mxu0  ;;  %v11996_v60 = vpop.eup %11995  ;;  %12015 = vtanh.f32 %v6765_v55  ;;  %7463 = vmatmul.mubr.f32.gmra.mrb[72].mxu1 %v11994_v37  ;;  %9726 = vmatpush1.bf16.msra.mxu0 %v9725_v41  ;;  %v6769_v2 = vadd.f32 %v6768_v58, %v14183_v39  ;;  %v7796_v55 = vld [vmem:[#allocation9 + $0x128] sm:$0xff] }
 0x8be   : > { %v6514_v61 = vadd.f32 %v6513_v59, %v14186_v57  ;;  %v6770_v62 = vpop.f32.mrb[17].mxu1  ;;  %v11998_v1 = vpop.eup %11997  ;;  %12017 = vtanh.f32 %v6763_v56  ;;  %9790 = vmatpush1.bf16.msra.mxu1 %v9725_v41  ;;  %9728 = vmatprep.subr.bf16.mxu0 %v9727_v54  ;;  %v7793_v41 = vld [vmem:[#allocation9 + $0x110] sm:$0xff] }
 0x8bf   : > { %v6771_v3 = vadd.f32 %v6770_v62, %v14186_v57  ;;  %v12000_v7 = vpop.eup %11999  ;;  %12019 = vtanh.f32 %v6512_v38  ;;  %7211 = vmatprep.mubr.f32.mxu0 %v11998_v1  ;;  %v6517_v8 = vpop.f32.mrb[18].mxu0  ;;  %9792 = vmatprep.subr.bf16.mxu1 %v9727_v54  ;;  %v7798_v54 = vld [vmem:[#allocation9 + $0x138] sm:$0xff]  ;;  %v9741_v38 = vpack.c.bf16 %v7793_v41, %v7791_v42  ;;  %v7795_v62 = vld [vmem:[#allocation9 + $0x120] sm:$0xff] }
 0x8c0   : > { %v12002_v11 = vpop.eup %12001  ;;  %12021 = vtanh.f32 %v6514_v61  ;;  %7468 = vmatprep.mubr.f32.mxu1 %v12000_v7  ;;  %v6518_v12 = vadd.f32 %v6517_v8, %v14183_v39  ;;  %v6774_v13 = vpop.f32.mrb[18].mxu1  ;;  %7212 = vmatmul.mubr.f32.gmra.mrb[74].mxu0 %v11996_v60  ;;  %v9743_v61 = vpack.c.bf16 %v7798_v54, %v7796_v55 }
 0x8c1   : > { %v6519_v14 = vpop.f32.mrb[19].mxu0  ;;  %v12004_v15 = vpop.eup %12003  ;;  %12023 = vtanh.f32 %v6771_v3  ;;  %7469 = vmatmul.mubr.f32.gmra.mrb[74].mxu1 %v12002_v11  ;;  %9730 = vmatpush1.bf16.msra.mxu0 %v9729_v63  ;;  %v6775_v20 = vadd.f32 %v6774_v13, %v14183_v39  ;;  %v7800_v3 = vld [vmem:[#allocation9 + $0x148] sm:$0xff] }
 0x8c2   : > { %v6520_v16 = vadd.f32 %v6519_v14, %v14186_v57  ;;  %v6776_v17 = vpop.f32.mrb[19].mxu1  ;;  %v12006_v19 = vpop.eup %12005  ;;  %12025 = vtanh.f32 %v6769_v2  ;;  %9794 = vmatpush1.bf16.msra.mxu1 %v9729_v63  ;;  %9732 = vmatprep.subr.bf16.mxu0 %v9731_v4  ;;  %v7797_v63 = vld [vmem:[#allocation9 + $0x130] sm:$0xff] }
 0x8c3   : > { %v6777_v21 = vadd.f32 %v6776_v17, %v14186_v57  ;;  %v12008_v25 = vpop.eup %12007  ;;  %12027 = vtanh.f32 %v6518_v12  ;;  %7217 = vmatprep.mubr.f32.mxu0 %v12006_v19  ;;  %v6523_v26 = vpop.f32.mrb[20].mxu0  ;;  %9796 = vmatprep.subr.bf16.mxu1 %v9731_v4  ;;  %v7802_v4 = vld [vmem:[#allocation9 + $0x158] sm:$0xff]  ;;  %v9745_v12 = vpack.c.bf16 %v7797_v63, %v7795_v62  ;;  %v7799_v17 = vld [vmem:[#allocation9 + $0x140] sm:$0xff] }
 0x8c4   : > { %v12010_v29 = vpop.eup %12009  ;;  %12029 = vtanh.f32 %v6520_v16  ;;  %7474 = vmatprep.mubr.f32.mxu1 %v12008_v25  ;;  %v6524_v30 = vadd.f32 %v6523_v26, %v14183_v39  ;;  %v6780_v31 = vpop.f32.mrb[20].mxu1  ;;  %7218 = vmatmul.mubr.f32.gmra.mrb[76].mxu0 %v12004_v15  ;;  %v9747_v16 = vpack.c.bf16 %v7802_v4, %v7800_v3 }
 0x8c5   : > { %v6525_v32 = vpop.f32.mrb[21].mxu0  ;;  %v12012_v33 = vpop.eup %12011  ;;  %12031 = vtanh.f32 %v6777_v21  ;;  %7475 = vmatmul.mubr.f32.gmra.mrb[76].mxu1 %v12010_v29  ;;  %9734 = vmatpush1.bf16.msra.mxu0 %v9733_v18  ;;  %v6781_v45 = vadd.f32 %v6780_v31, %v14183_v39  ;;  %v7804_v21 = vld [vmem:[#allocation9 + $0x168] sm:$0xff] }
 0x8c6   : > { %v6526_v34 = vadd.f32 %v6525_v32, %v14186_v57  ;;  %v6782_v35 = vpop.f32.mrb[21].mxu1  ;;  %v12014_v47 = vpop.eup %12013  ;;  %12033 = vtanh.f32 %v6775_v20  ;;  %9798 = vmatpush1.bf16.msra.mxu1 %v9733_v18  ;;  %9736 = vmatprep.subr.bf16.mxu0 %v9735_v22  ;;  %v7801_v18 = vld [vmem:[#allocation9 + $0x150] sm:$0xff] }
 0x8c7   : > { %v6783_v44 = vadd.f32 %v6782_v35, %v14186_v57  ;;  %v12016_v40 = vpop.eup %12015  ;;  %12035 = vtanh.f32 %v6524_v30  ;;  %7223 = vmatprep.mubr.f32.mxu0 %v12014_v47  ;;  %v6529_v56 = vpop.f32.mrb[22].mxu0  ;;  %9800 = vmatprep.subr.bf16.mxu1 %v9735_v22  ;;  %v7806_v22 = vld [vmem:[#allocation9 + $0x178] sm:$0xff]  ;;  %v9749_v30 = vpack.c.bf16 %v7801_v18, %v7799_v17  ;;  %v7803_v35 = vld [vmem:[#allocation9 + $0x160] sm:$0xff] }
 0x8c8   : > { %v12018_v53 = vpop.eup %12017  ;;  %12037 = vtanh.f32 %v6526_v34  ;;  %7480 = vmatprep.mubr.f32.mxu1 %v12016_v40  ;;  %v6530_v52 = vadd.f32 %v6529_v56, %v14183_v39  ;;  %v6786_v51 = vpop.f32.mrb[22].mxu1  ;;  %7224 = vmatmul.mubr.f32.gmra.mrb[78].mxu0 %v12012_v33  ;;  %v9751_v34 = vpack.c.bf16 %v7806_v22, %v7804_v21 }
 0x8c9   : > { %v6531_v50 = vpop.f32.mrb[23].mxu0  ;;  %v12020_v0 = vpop.eup %12019  ;;  %12039 = vtanh.f32 %v6783_v44  ;;  %7481 = vmatmul.mubr.f32.gmra.mrb[78].mxu1 %v12018_v53  ;;  %9738 = vmatpush1.bf16.msra.mxu0 %v9737_v49  ;;  %v6787_v59 = vadd.f32 %v6786_v51, %v14183_v39  ;;  %v7808_v44 = vld [vmem:[#allocation9 + $0x188] sm:$0xff] }
 0x8ca   : > { %v6532_v36 = vadd.f32 %v6531_v50, %v14186_v57  ;;  %v6788_v37 = vpop.f32.mrb[23].mxu1  ;;  %v12022_v58 = vpop.eup %12021  ;;  %12041 = vtanh.f32 %v6781_v45  ;;  %9802 = vmatpush1.bf16.msra.mxu1 %v9737_v49  ;;  %9740 = vmatprep.subr.bf16.mxu0 %v9739_v43  ;;  %v7805_v49 = vld [vmem:[#allocation9 + $0x170] sm:$0xff] }
 0x8cb   : > { %v6789_v60 = vadd.f32 %v6788_v37, %v14186_v57  ;;  %v12024_v1 = vpop.eup %12023  ;;  %12043 = vtanh.f32 %v6530_v52  ;;  %7229 = vmatprep.mubr.f32.mxu0 %v12022_v58  ;;  %v6535_v2 = vpop.f32.mrb[24].mxu0  ;;  %9804 = vmatprep.subr.bf16.mxu1 %v9739_v43  ;;  %v7810_v43 = vld [vmem:[#allocation9 + $0x198] sm:$0xff]  ;;  %v9753_v52 = vpack.c.bf16 %v7805_v49, %v7803_v35  ;;  %v7807_v37 = vld [vmem:[#allocation9 + $0x180] sm:$0xff] }
 0x8cc   : > { %v12026_v5 = vpop.eup %12025  ;;  %12045 = vtanh.f32 %v6532_v36  ;;  %7486 = vmatprep.mubr.f32.mxu1 %v12024_v1  ;;  %v6536_v6 = vadd.f32 %v6535_v2, %v14183_v39  ;;  %v6792_v7 = vpop.f32.mrb[24].mxu1  ;;  %7230 = vmatmul.mubr.f32.gmra.mrb[80].mxu0 %v12020_v0  ;;  %v9755_v36 = vpack.c.bf16 %v7810_v43, %v7808_v44 }
 0x8cd   : > { %v6537_v8 = vpop.f32.mrb[25].mxu0  ;;  %v12028_v9 = vpop.eup %12027  ;;  %12047 = vtanh.f32 %v6789_v60  ;;  %7487 = vmatmul.mubr.f32.gmra.mrb[80].mxu1 %v12026_v5  ;;  %9742 = vmatpush1.bf16.msra.mxu0 %v9741_v38  ;;  %v6793_v14 = vadd.f32 %v6792_v7, %v14183_v39  ;;  %v7812_v60 = vld [vmem:[#allocation9 + $0x1a8] sm:$0xff] }
 0x8ce   : > { %v6538_v10 = vadd.f32 %v6537_v8, %v14186_v57  ;;  %v6794_v11 = vpop.f32.mrb[25].mxu1  ;;  %v12030_v13 = vpop.eup %12029  ;;  %12049 = vtanh.f32 %v6787_v59  ;;  %9806 = vmatpush1.bf16.msra.mxu1 %v9741_v38  ;;  %9744 = vmatprep.subr.bf16.mxu0 %v9743_v61  ;;  %v7809_v38 = vld [vmem:[#allocation9 + $0x190] sm:$0xff] }
 0x8cf   : > { %v6795_v15 = vadd.f32 %v6794_v11, %v14186_v57  ;;  %v12032_v19 = vpop.eup %12031  ;;  %12051 = vtanh.f32 %v6536_v6  ;;  %7235 = vmatprep.mubr.f32.mxu0 %v12030_v13  ;;  %v6541_v20 = vpop.f32.mrb[26].mxu0  ;;  %9808 = vmatprep.subr.bf16.mxu1 %v9743_v61  ;;  %v7814_v61 = vld [vmem:[#allocation9 + $0x1b8] sm:$0xff]  ;;  %v9757_v6 = vpack.c.bf16 %v7809_v38, %v7807_v37  ;;  %v7811_v11 = vld [vmem:[#allocation9 + $0x1a0] sm:$0xff] }
 0x8d0   : > { %v12034_v23 = vpop.eup %12033  ;;  %12053 = vtanh.f32 %v6538_v10  ;;  %7492 = vmatprep.mubr.f32.mxu1 %v12032_v19  ;;  %v6542_v24 = vadd.f32 %v6541_v20, %v14183_v39  ;;  %v6798_v25 = vpop.f32.mrb[26].mxu1  ;;  %7236 = vmatmul.mubr.f32.gmra.mrb[82].mxu0 %v12028_v9  ;;  %v9759_v10 = vpack.c.bf16 %v7814_v61, %v7812_v60 }
 0x8d1   : > { %v6543_v26 = vpop.f32.mrb[27].mxu0  ;;  %v12036_v27 = vpop.eup %12035  ;;  %12055 = vtanh.f32 %v6795_v15  ;;  %7493 = vmatmul.mubr.f32.gmra.mrb[82].mxu1 %v12034_v23  ;;  %9746 = vmatpush1.bf16.msra.mxu0 %v9745_v12  ;;  %v6799_v32 = vadd.f32 %v6798_v25, %v14183_v39  ;;  %v7816_v15 = vld [vmem:[#allocation9 + $0x1c8] sm:$0xff] }
 0x8d2   : > { %v6544_v28 = vadd.f32 %v6543_v26, %v14186_v57  ;;  %v6800_v29 = vpop.f32.mrb[27].mxu1  ;;  %v12038_v31 = vpop.eup %12037  ;;  %12057 = vtanh.f32 %v6793_v14  ;;  %9810 = vmatpush1.bf16.msra.mxu1 %v9745_v12  ;;  %9748 = vmatprep.subr.bf16.mxu0 %v9747_v16  ;;  %v7813_v12 = vld [vmem:[#allocation9 + $0x1b0] sm:$0xff] }
 0x8d3   : > { %v6801_v33 = vadd.f32 %v6800_v29, %v14186_v57  ;;  %v12040_v47 = vpop.eup %12039  ;;  %12059 = vtanh.f32 %v6542_v24  ;;  %7241 = vmatprep.mubr.f32.mxu0 %v12038_v31  ;;  %v6547_v45 = vpop.f32.mrb[28].mxu0  ;;  %9812 = vmatprep.subr.bf16.mxu1 %v9747_v16  ;;  %v7818_v16 = vld [vmem:[#allocation9 + $0x1d8] sm:$0xff]  ;;  %v9761_v24 = vpack.c.bf16 %v7813_v12, %v7811_v11 }
 0x8d4   : > { %v12042_v42 = vpop.eup %12041  ;;  %12061 = vtanh.f32 %v6544_v28  ;;  %7498 = vmatprep.mubr.f32.mxu1 %v12040_v47  ;;  %v6548_v41 = vadd.f32 %v6547_v45, %v14183_v39  ;;  %v6804_v40 = vpop.f32.mrb[28].mxu1  ;;  %7242 = vmatmul.mubr.f32.gmra.mrb[84].mxu0 %v12036_v27  ;;  %v9763_v28 = vpack.c.bf16 %v7818_v16, %v7816_v15 }
 0x8d5   : > { %v6549_v56 = vpop.f32.mrb[29].mxu0  ;;  %v12044_v55 = vpop.eup %12043  ;;  %12063 = vtanh.f32 %v6801_v33  ;;  %7499 = vmatmul.mubr.f32.gmra.mrb[84].mxu1 %v12042_v42  ;;  %9750 = vmatpush1.bf16.msra.mxu0 %v9749_v30  ;;  %v6805_v50 = vadd.f32 %v6804_v40, %v14183_v39 }
 0x8d6   : > { %v6550_v54 = vadd.f32 %v6549_v56, %v14186_v57  ;;  %v6806_v53 = vpop.f32.mrb[29].mxu1  ;;  %v12046_v51 = vpop.eup %12045  ;;  %12065 = vtanh.f32 %v6799_v32  ;;  %9814 = vmatpush1.bf16.msra.mxu1 %v9749_v30  ;;  %9752 = vmatprep.subr.bf16.mxu0 %v9751_v34 }
 0x8d7   : > { %v6807_v0 = vadd.f32 %v6806_v53, %v14186_v57  ;;  %v12048_v58 = vpop.eup %12047  ;;  %12067 = vtanh.f32 %v6548_v41  ;;  %7247 = vmatprep.mubr.f32.mxu0 %v12046_v51  ;;  %v6553_v59 = vpop.f32.mrb[30].mxu0  ;;  %9816 = vmatprep.subr.bf16.mxu1 %v9751_v34 }
 0x8d8   : > { %v12050_v62 = vpop.eup %12049  ;;  %12069 = vtanh.f32 %v6550_v54  ;;  %7504 = vmatprep.mubr.f32.mxu1 %v12048_v58  ;;  %v6554_v63 = vadd.f32 %v6553_v59, %v14183_v39  ;;  %v6810_v1 = vpop.f32.mrb[30].mxu1  ;;  %7248 = vmatmul.mubr.f32.gmra.mrb[86].mxu0 %v12044_v55 }
 0x8d9   : > { %v6555_v2 = vpop.f32.mrb[31].mxu0  ;;  %v12052_v3 = vpop.eup %12051  ;;  %12071 = vtanh.f32 %v6807_v0  ;;  %7505 = vmatmul.mubr.f32.gmra.mrb[86].mxu1 %v12050_v62  ;;  %9754 = vmatpush1.bf16.msra.mxu0 %v9753_v52  ;;  %v6811_v8 = vadd.f32 %v6810_v1, %v14183_v39 }
 0x8da   : > { %v6556_v4 = vadd.f32 %v6555_v2, %v14186_v57  ;;  %v6812_v5 = vpop.f32.mrb[31].mxu1  ;;  %v12054_v7 = vpop.eup %12053  ;;  %12073 = vtanh.f32 %v6805_v50  ;;  %9818 = vmatpush1.bf16.msra.mxu1 %v9753_v52  ;;  %9756 = vmatprep.subr.bf16.mxu0 %v9755_v36 }
 0x8db   : > { %v6813_v9 = vadd.f32 %v6812_v5, %v14186_v57  ;;  %v12056_v13 = vpop.eup %12055  ;;  %12075 = vtanh.f32 %v6554_v63  ;;  %7253 = vmatprep.mubr.f32.mxu0 %v12054_v7  ;;  %v6559_v14 = vpop.f32.mrb[32].mxu0  ;;  %9820 = vmatprep.subr.bf16.mxu1 %v9755_v36 }
 0x8dc   : > { %v12058_v17 = vpop.eup %12057  ;;  %12077 = vtanh.f32 %v6556_v4  ;;  %7510 = vmatprep.mubr.f32.mxu1 %v12056_v13  ;;  %v6560_v18 = vadd.f32 %v6559_v14, %v14183_v39  ;;  %v6816_v19 = vpop.f32.mrb[32].mxu1  ;;  %7254 = vmatmul.mubr.f32.gmra.mrb[88].mxu0 %v12052_v3 }
 0x8dd   : > { %v6561_v20 = vpop.f32.mrb[33].mxu0  ;;  %v12060_v21 = vpop.eup %12059  ;;  %12079 = vtanh.f32 %v6813_v9  ;;  %7511 = vmatmul.mubr.f32.gmra.mrb[88].mxu1 %v12058_v17  ;;  %9758 = vmatpush1.bf16.msra.mxu0 %v9757_v6  ;;  %v6817_v26 = vadd.f32 %v6816_v19, %v14183_v39 }
 0x8de   : > { %v6562_v22 = vadd.f32 %v6561_v20, %v14186_v57  ;;  %v6818_v23 = vpop.f32.mrb[33].mxu1  ;;  %v12062_v25 = vpop.eup %12061  ;;  %12081 = vtanh.f32 %v6811_v8  ;;  %9822 = vmatpush1.bf16.msra.mxu1 %v9757_v6  ;;  %9760 = vmatprep.subr.bf16.mxu0 %v9759_v10 }
 0x8df   : > { %v6819_v27 = vadd.f32 %v6818_v23, %v14186_v57  ;;  %v12064_v29 = vpop.eup %12063  ;;  %12083 = vtanh.f32 %v6560_v18  ;;  %7259 = vmatprep.mubr.f32.mxu0 %v12062_v25  ;;  %v6565_v30 = vpop.f32.mrb[34].mxu0  ;;  %9824 = vmatprep.subr.bf16.mxu1 %v9759_v10 }
 0x8e0   : > { %v12066_v31 = vpop.eup %12065  ;;  %12085 = vtanh.f32 %v6562_v22  ;;  %7516 = vmatprep.mubr.f32.mxu1 %v12064_v29  ;;  %v6566_v32 = vadd.f32 %v6565_v30, %v14183_v39  ;;  %v6822_v33 = vpop.f32.mrb[34].mxu1  ;;  %7260 = vmatmul.mubr.f32.gmra.mrb[90].mxu0 %v12060_v21 }
 0x8e1   : > { %v6567_v34 = vpop.f32.mrb[35].mxu0  ;;  %v12068_v35 = vpop.eup %12067  ;;  %12087 = vtanh.f32 %v6819_v27  ;;  %7517 = vmatmul.mubr.f32.gmra.mrb[90].mxu1 %v12066_v31  ;;  %9762 = vmatpush1.bf16.msra.mxu0 %v9761_v24  ;;  %v6823_v44 = vadd.f32 %v6822_v33, %v14183_v39 }
 0x8e2   : > { %v6568_v49 = vadd.f32 %v6567_v34, %v14186_v57  ;;  %v6824_v47 = vpop.f32.mrb[35].mxu1  ;;  %v12070_v45 = vpop.eup %12069  ;;  %12089 = vtanh.f32 %v6817_v26  ;;  %9826 = vmatpush1.bf16.msra.mxu1 %v9761_v24  ;;  %9764 = vmatprep.subr.bf16.mxu0 %v9763_v28 }
 0x8e3   : > { %v6825_v43 = vadd.f32 %v6824_v47, %v14186_v57  ;;  %v12072_v42 = vpop.eup %12071  ;;  %12091 = vtanh.f32 %v6566_v32  ;;  %7265 = vmatprep.mubr.f32.mxu0 %v12070_v45  ;;  %v6571_v41 = vpop.f32.mrb[36].mxu0  ;;  %9828 = vmatprep.subr.bf16.mxu1 %v9763_v28 }
 0x8e4   : > { %v12074_v40 = vpop.eup %12073  ;;  %12093 = vtanh.f32 %v6568_v49  ;;  %7522 = vmatprep.mubr.f32.mxu1 %v12072_v42  ;;  %v6572_v56 = vadd.f32 %v6571_v41, %v14183_v39  ;;  %v6828_v55 = vpop.f32.mrb[36].mxu1  ;;  %7266 = vmatmul.mubr.f32.gmra.mrb[92].mxu0 %v12068_v35 }
 0x8e5   : > { %v6573_v54 = vpop.f32.mrb[37].mxu0  ;;  %v12076_v53 = vpop.eup %12075  ;;  %12095 = vtanh.f32 %v6825_v43  ;;  %7523 = vmatmul.mubr.f32.gmra.mrb[92].mxu1 %v12074_v40  ;;  %v6829_v0 = vadd.f32 %v6828_v55, %v14183_v39 }
 0x8e6   : > { %v6574_v52 = vadd.f32 %v6573_v54, %v14186_v57  ;;  %v6830_v51 = vpop.f32.mrb[37].mxu1  ;;  %v12078_v50 = vpop.eup %12077  ;;  %12097 = vtanh.f32 %v6823_v44 }
 0x8e7   : > { %v6831_v36 = vadd.f32 %v6830_v51, %v14186_v57  ;;  %v12080_v37 = vpop.eup %12079  ;;  %12099 = vtanh.f32 %v6572_v56  ;;  %7271 = vmatprep.mubr.f32.mxu0 %v12078_v50  ;;  %v6577_v38 = vpop.f32.mrb[38].mxu0 }
 0x8e8   : > { %v12082_v58 = vpop.eup %12081  ;;  %12101 = vtanh.f32 %v6574_v52  ;;  %7528 = vmatprep.mubr.f32.mxu1 %v12080_v37  ;;  %v6578_v59 = vadd.f32 %v6577_v38, %v14183_v39  ;;  %v6834_v60 = vpop.f32.mrb[38].mxu1  ;;  %7272 = vmatmul.mubr.f32.gmra.mrb[94].mxu0 %v12076_v53 }
 0x8e9   : > { %v6579_v61 = vpop.f32.mrb[39].mxu0  ;;  %v12084_v62 = vpop.eup %12083  ;;  %12103 = vtanh.f32 %v6831_v36  ;;  %7529 = vmatmul.mubr.f32.gmra.mrb[94].mxu1 %v12082_v58  ;;  %v6835_v3 = vadd.f32 %v6834_v60, %v14183_v39 }
 0x8ea   : > { %v6580_v63 = vadd.f32 %v6579_v61, %v14186_v57  ;;  %v6836_v1 = vpop.f32.mrb[39].mxu1  ;;  %v12086_v2 = vpop.eup %12085  ;;  %12105 = vtanh.f32 %v6829_v0 }
 0x8eb   : > { %v6837_v4 = vadd.f32 %v6836_v1, %v14186_v57  ;;  %v12088_v5 = vpop.eup %12087  ;;  %12107 = vtanh.f32 %v6578_v59  ;;  %7277 = vmatprep.mubr.f32.mxu0 %v12086_v2  ;;  %v6583_v6 = vpop.f32.mrb[40].mxu0 }
 0x8ec   : > { %v12090_v7 = vpop.eup %12089  ;;  %12109 = vtanh.f32 %v6580_v63  ;;  %7534 = vmatprep.mubr.f32.mxu1 %v12088_v5  ;;  %v6584_v8 = vadd.f32 %v6583_v6, %v14183_v39  ;;  %v6840_v9 = vpop.f32.mrb[40].mxu1  ;;  %7278 = vmatmul.mubr.f32.gmra.mrb[96].mxu0 %v12084_v62 }
 0x8ed   : > { %v6585_v10 = vpop.f32.mrb[41].mxu0  ;;  %v12092_v11 = vpop.eup %12091  ;;  %12111 = vtanh.f32 %v6837_v4  ;;  %7535 = vmatmul.mubr.f32.gmra.mrb[96].mxu1 %v12090_v7  ;;  %v6841_v15 = vadd.f32 %v6840_v9, %v14183_v39 }
 0x8ee   : > { %v6586_v12 = vadd.f32 %v6585_v10, %v14186_v57  ;;  %v6842_v13 = vpop.f32.mrb[41].mxu1  ;;  %v12094_v14 = vpop.eup %12093  ;;  %12113 = vtanh.f32 %v6835_v3 }
 0x8ef   : > { %v6843_v16 = vadd.f32 %v6842_v13, %v14186_v57  ;;  %v12096_v17 = vpop.eup %12095  ;;  %12115 = vtanh.f32 %v6584_v8  ;;  %7283 = vmatprep.mubr.f32.mxu0 %v12094_v14  ;;  %v6589_v18 = vpop.f32.mrb[42].mxu0 }
 0x8f0   : > { %v12098_v19 = vpop.eup %12097  ;;  %12117 = vtanh.f32 %v6586_v12  ;;  %7540 = vmatprep.mubr.f32.mxu1 %v12096_v17  ;;  %v6590_v20 = vadd.f32 %v6589_v18, %v14183_v39  ;;  %v6846_v21 = vpop.f32.mrb[42].mxu1  ;;  %7284 = vmatmul.mubr.f32.gmra.mrb[98].mxu0 %v12092_v11 }
 0x8f1   : > { %v6591_v22 = vpop.f32.mrb[43].mxu0  ;;  %v12100_v23 = vpop.eup %12099  ;;  %12119 = vtanh.f32 %v6843_v16  ;;  %7541 = vmatmul.mubr.f32.gmra.mrb[98].mxu1 %v12098_v19  ;;  %v6847_v27 = vadd.f32 %v6846_v21, %v14183_v39  ;;  %v7815_v19 = vld [vmem:[#allocation9 + $0x1c0] sm:$0xff] }
 0x8f2   : > { %v6592_v24 = vadd.f32 %v6591_v22, %v14186_v57  ;;  %v6848_v25 = vpop.f32.mrb[43].mxu1  ;;  %v12102_v26 = vpop.eup %12101  ;;  %12121 = vtanh.f32 %v6841_v15 }
 0x8f3   : > { %v6849_v28 = vadd.f32 %v6848_v25, %v14186_v57  ;;  %v12104_v29 = vpop.eup %12103  ;;  %12123 = vtanh.f32 %v6590_v20  ;;  %7289 = vmatprep.mubr.f32.mxu0 %v12102_v26  ;;  %v6595_v30 = vpop.f32.mrb[44].mxu0  ;;  %v7817_v20 = vld [vmem:[#allocation9 + $0x1d0] sm:$0xff] }
 0x8f4   : > { %v12106_v31 = vpop.eup %12105  ;;  %12125 = vtanh.f32 %v6592_v24  ;;  %7546 = vmatprep.mubr.f32.mxu1 %v12104_v29  ;;  %v6596_v32 = vadd.f32 %v6595_v30, %v14183_v39  ;;  %v6852_v33 = vpop.f32.mrb[44].mxu1  ;;  %7290 = vmatmul.mubr.f32.gmra.mrb[100].mxu0 %v12100_v23  ;;  %v9765_v25 = vpack.c.bf16 %v7817_v20, %v7815_v19 }
 0x8f5   : > { %v6597_v34 = vpop.f32.mrb[45].mxu0  ;;  %v12108_v35 = vpop.eup %12107  ;;  %12127 = vtanh.f32 %v6849_v28  ;;  %7547 = vmatmul.mubr.f32.gmra.mrb[100].mxu1 %v12106_v31  ;;  %v6853_v44 = vadd.f32 %v6852_v33, %v14183_v39 }
 0x8f6   : > { %v6598_v49 = vadd.f32 %v6597_v34, %v14186_v57  ;;  %v6854_v47 = vpop.f32.mrb[45].mxu1  ;;  %v12110_v45 = vpop.eup %12109  ;;  %12129 = vtanh.f32 %v6847_v27  ;;  %9766 = vmatpush1.bf16.msra.mxu0 %v9765_v25  ;;  %9830 = vmatpush1.bf16.msra.mxu1 %v9765_v25 }
 0x8f7   : > { %v6855_v43 = vadd.f32 %v6854_v47, %v14186_v57  ;;  %v12112_v42 = vpop.eup %12111  ;;  %12131 = vtanh.f32 %v6596_v32  ;;  %7295 = vmatprep.mubr.f32.mxu0 %v12110_v45  ;;  %v6601_v41 = vpop.f32.mrb[46].mxu0 }
 0x8f8   : > { %v12114_v40 = vpop.eup %12113  ;;  %12133 = vtanh.f32 %v6598_v49  ;;  %7552 = vmatprep.mubr.f32.mxu1 %v12112_v42  ;;  %v6602_v56 = vadd.f32 %v6601_v41, %v14183_v39  ;;  %v6858_v55 = vpop.f32.mrb[46].mxu1  ;;  %7296 = vmatmul.mubr.f32.gmra.mrb[102].mxu0 %v12108_v35  ;;  %v7820_v42 = vld [vmem:[#allocation9 + $0x1e8] sm:$0xff]  ;;  %v7822_v41 = vld [vmem:[#allocation9 + $0x1f8] sm:$0xff] }
 0x8f9   : > { %v6603_v54 = vpop.f32.mrb[47].mxu0  ;;  %v12116_v53 = vpop.eup %12115  ;;  %12135 = vtanh.f32 %v6855_v43  ;;  %7553 = vmatmul.mubr.f32.gmra.mrb[102].mxu1 %v12114_v40  ;;  %v6859_v0 = vadd.f32 %v6858_v55, %v14183_v39 }
 0x8fa   : > { %v6604_v52 = vadd.f32 %v6603_v54, %v14186_v57  ;;  %v6860_v51 = vpop.f32.mrb[47].mxu1  ;;  %v12118_v50 = vpop.eup %12117  ;;  %12137 = vtanh.f32 %v6853_v44  ;;  %v9767_v54 = vpack.c.bf16 %v7822_v41, %v7820_v42 }
 0x8fb   : > { %v6861_v36 = vadd.f32 %v6860_v51, %v14186_v57  ;;  %v12120_v37 = vpop.eup %12119  ;;  %12139 = vtanh.f32 %v6602_v56  ;;  %7301 = vmatprep.mubr.f32.mxu0 %v12118_v50  ;;  %v6607_v38 = vpop.f32.mrb[48].mxu0  ;;  %v7819_v51 = vld [vmem:[#allocation9 + $0x1e0] sm:$0xff]  ;;  %v7821_v50 = vld [vmem:[#allocation9 + $0x1f0] sm:$0xff] }
 0x8fc   : > { %v12122_v58 = vpop.eup %12121  ;;  %12141 = vtanh.f32 %v6604_v52  ;;  %7558 = vmatprep.mubr.f32.mxu1 %v12120_v37  ;;  %v6608_v59 = vadd.f32 %v6607_v38, %v14183_v39  ;;  %v6864_v60 = vpop.f32.mrb[48].mxu1  ;;  %7302 = vmatmul.mubr.f32.gmra.mrb[104].mxu0 %v12116_v53 }
 0x8fd   : > { %v6609_v61 = vpop.f32.mrb[49].mxu0  ;;  %v12124_v62 = vpop.eup %12123  ;;  %12143 = vtanh.f32 %v6861_v36  ;;  %7559 = vmatmul.mubr.f32.gmra.mrb[104].mxu1 %v12122_v58  ;;  %v6865_v3 = vadd.f32 %v6864_v60, %v14183_v39  ;;  %v9769_v58 = vpack.c.bf16 %v7821_v50, %v7819_v51  ;;  %9768 = vmatprep.subr.bf16.mxu0 %v9767_v54  ;;  %v7105_v50 = vld [vmem:[#allocation7 + $0x10] ss:$8 sm:$0x3] }
 0x8fe   : > { %v6610_v63 = vadd.f32 %v6609_v61, %v14186_v57  ;;  %v6866_v1 = vpop.f32.mrb[49].mxu1  ;;  %v12126_v2 = vpop.eup %12125  ;;  %12145 = vtanh.f32 %v6859_v0  ;;  %9832 = vmatprep.subr.bf16.mxu1 %v9767_v54 }
 0x8ff   : > { %v6867_v4 = vadd.f32 %v6866_v1, %v14186_v57  ;;  %v12128_v5 = vpop.eup %12127  ;;  %12147 = vtanh.f32 %v6608_v59  ;;  %7307 = vmatprep.mubr.f32.mxu0 %v12126_v2  ;;  %v6613_v6 = vpop.f32.mrb[50].mxu0  ;;  %9770 = vmatpush1.bf16.msra.mxu0 %v9769_v58 }
 0x900   : > { %v12130_v7 = vpop.eup %12129  ;;  %12149 = vtanh.f32 %v6610_v63  ;;  %7564 = vmatprep.mubr.f32.mxu1 %v12128_v5  ;;  %v6614_v8 = vadd.f32 %v6613_v6, %v14183_v39  ;;  %v6870_v9 = vpop.f32.mrb[50].mxu1  ;;  %7308 = vmatmul.mubr.f32.gmra.mrb[106].mxu0 %v12124_v62 }
 0x901   : > { %v6615_v10 = vpop.f32.mrb[51].mxu0  ;;  %v12132_v11 = vpop.eup %12131  ;;  %12151 = vtanh.f32 %v6867_v4  ;;  %7565 = vmatmul.mubr.f32.gmra.mrb[106].mxu1 %v12130_v7  ;;  %v6871_v15 = vadd.f32 %v6870_v9, %v14183_v39 }
 0x902   : > { %v6616_v12 = vadd.f32 %v6615_v10, %v14186_v57  ;;  %v6872_v13 = vpop.f32.mrb[51].mxu1  ;;  %v12134_v14 = vpop.eup %12133  ;;  %12153 = vtanh.f32 %v6865_v3  ;;  %9834 = vmatpush1.bf16.msra.mxu1 %v9769_v58 }
 0x903   : > { %v6873_v16 = vadd.f32 %v6872_v13, %v14186_v57  ;;  %v12136_v17 = vpop.eup %12135  ;;  %12155 = vtanh.f32 %v6614_v8  ;;  %7313 = vmatprep.mubr.f32.mxu0 %v12134_v14  ;;  %v6619_v18 = vpop.f32.mrb[52].mxu0 }
 0x904   : > { %v12138_v21 = vpop.eup %12137  ;;  %12157 = vtanh.f32 %v6616_v12  ;;  %7570 = vmatprep.mubr.f32.mxu1 %v12136_v17  ;;  %v6620_v22 = vadd.f32 %v6619_v18, %v14183_v39  ;;  %v6876_v23 = vpop.f32.mrb[52].mxu1  ;;  %7314 = vmatmul.mubr.f32.gmra.mrb[108].mxu0 %v12132_v11 }
 0x905   : > { %v6621_v24 = vpop.f32.mrb[53].mxu0  ;;  %v12140_v26 = vpop.eup %12139  ;;  %12159 = vtanh.f32 %v6873_v16  ;;  %7571 = vmatmul.mubr.f32.gmra.mrb[108].mxu1 %v12138_v21  ;;  %v6877_v30 = vadd.f32 %v6876_v23, %v14183_v39 }
 0x906   : > { %v6622_v27 = vadd.f32 %v6621_v24, %v14186_v57  ;;  %v6878_v28 = vpop.f32.mrb[53].mxu1  ;;  %v12142_v29 = vpop.eup %12141  ;;  %12161 = vtanh.f32 %v6871_v15 }
 0x907   : > { %v6879_v31 = vadd.f32 %v6878_v28, %v14186_v57  ;;  %v12144_v32 = vpop.eup %12143  ;;  %12163 = vtanh.f32 %v6620_v22  ;;  %7319 = vmatprep.mubr.f32.mxu0 %v12142_v29  ;;  %v6625_v33 = vpop.f32.mrb[54].mxu0 }
 0x908   : > { %v12146_v34 = vpop.eup %12145  ;;  %12165 = vtanh.f32 %v6622_v27  ;;  %7576 = vmatprep.mubr.f32.mxu1 %v12144_v32  ;;  %v6626_v35 = vadd.f32 %v6625_v33, %v14183_v39  ;;  %v6882_v49 = vpop.f32.mrb[54].mxu1  ;;  %7320 = vmatmul.mubr.f32.gmra.mrb[110].mxu0 %v12140_v26 }
 0x909   : > { %v6627_v47 = vpop.f32.mrb[55].mxu0  ;;  %v12148_v45 = vpop.eup %12147  ;;  %12167 = vtanh.f32 %v6879_v31  ;;  %7577 = vmatmul.mubr.f32.gmra.mrb[110].mxu1 %v12146_v34  ;;  %v6883_v56 = vadd.f32 %v6882_v49, %v14183_v39 }
 0x90a   : > { %v6628_v44 = vadd.f32 %v6627_v47, %v14186_v57  ;;  %v6884_v43 = vpop.f32.mrb[55].mxu1  ;;  %v12150_v40 = vpop.eup %12149  ;;  %12169 = vtanh.f32 %v6877_v30 }
 0x90b   : > { %v6885_v55 = vadd.f32 %v6884_v43, %v14186_v57  ;;  %v12152_v53 = vpop.eup %12151  ;;  %12171 = vtanh.f32 %v6626_v35  ;;  %7325 = vmatprep.mubr.f32.mxu0 %v12150_v40  ;;  %v6631_v52 = vpop.f32.mrb[56].mxu0 }
 0x90c   : > { %v12154_v0 = vpop.eup %12153  ;;  %12173 = vtanh.f32 %v6628_v44  ;;  %7582 = vmatprep.mubr.f32.mxu1 %v12152_v53  ;;  %v6632_v36 = vadd.f32 %v6631_v52, %v14183_v39  ;;  %v6888_v37 = vpop.f32.mrb[56].mxu1  ;;  %7326 = vmatmul.mubr.f32.gmra.mrb[112].mxu0 %v12148_v45 }
 0x90d   : > { %v6633_v38 = vpop.f32.mrb[57].mxu0  ;;  %v12156_v59 = vpop.eup %12155  ;;  %12175 = vtanh.f32 %v6885_v55  ;;  %7583 = vmatmul.mubr.f32.gmra.mrb[112].mxu1 %v12154_v0  ;;  %v6889_v63 = vadd.f32 %v6888_v37, %v14183_v39  ;;  %v14317_v0 = vrot.slane %v7105_v50, %v13106_v46 }
 0x90e   : > { %v6634_v60 = vadd.f32 %v6633_v38, %v14186_v57  ;;  %v6890_v61 = vpop.f32.mrb[57].mxu1  ;;  %v12158_v62 = vpop.eup %12157  ;;  %12177 = vtanh.f32 %v6883_v56 }
 0x90f   : > { %v6891_v1 = vadd.f32 %v6890_v61, %v14186_v57  ;;  %v12160_v2 = vpop.eup %12159  ;;  %12179 = vtanh.f32 %v6632_v36  ;;  %7331 = vmatprep.mubr.f32.mxu0 %v12158_v62  ;;  %v6637_v3 = vpop.f32.mrb[58].mxu0  ;;  %v14320_v36 = vrot.slane %v7105_v50, %v13108_v48 }
 0x910   : > { %v12162_v4 = vpop.eup %12161  ;;  %12181 = vtanh.f32 %v6634_v60  ;;  %7588 = vmatprep.mubr.f32.mxu1 %v12160_v2  ;;  %v6638_v5 = vadd.f32 %v6637_v3, %v14183_v39  ;;  %v6894_v6 = vpop.f32.mrb[58].mxu1  ;;  %7332 = vmatmul.mubr.f32.gmra.mrb[114].mxu0 %v12156_v59 }
 0x911   : > { %v6639_v7 = vpop.f32.mrb[59].mxu0  ;;  %v12164_v8 = vpop.eup %12163  ;;  %12183 = vtanh.f32 %v6891_v1  ;;  %7589 = vmatmul.mubr.f32.gmra.mrb[114].mxu1 %v12162_v4  ;;  %v6895_v12 = vadd.f32 %v6894_v6, %v14183_v39 }
 0x912   : > { %v6640_v9 = vadd.f32 %v6639_v7, %v14186_v57  ;;  %v6896_v10 = vpop.f32.mrb[59].mxu1  ;;  %v12166_v11 = vpop.eup %12165  ;;  %12185 = vtanh.f32 %v6889_v63 }
 0x913   : > { %v6897_v13 = vadd.f32 %v6896_v10, %v14186_v57  ;;  %v12168_v14 = vpop.eup %12167  ;;  %12187 = vtanh.f32 %v6638_v5  ;;  %7337 = vmatprep.mubr.f32.mxu0 %v12166_v11  ;;  %v6643_v15 = vpop.f32.mrb[60].mxu0 }
 0x914   : > { %v12170_v16 = vpop.eup %12169  ;;  %12189 = vtanh.f32 %v6640_v9  ;;  %7594 = vmatprep.mubr.f32.mxu1 %v12168_v14  ;;  %v6644_v17 = vadd.f32 %v6643_v15, %v14183_v39  ;;  %v6900_v18 = vpop.f32.mrb[60].mxu1  ;;  %7338 = vmatmul.mubr.f32.gmra.mrb[116].mxu0 %v12164_v8 }
 0x915   : > { %v6645_v19 = vpop.f32.mrb[61].mxu0  ;;  %v12172_v20 = vpop.eup %12171  ;;  %12191 = vtanh.f32 %v6897_v13  ;;  %7595 = vmatmul.mubr.f32.gmra.mrb[116].mxu1 %v12170_v16  ;;  %v6901_v24 = vadd.f32 %v6900_v18, %v14183_v39 }
 0x916   : > { %v6646_v21 = vadd.f32 %v6645_v19, %v14186_v57  ;;  %v6902_v22 = vpop.f32.mrb[61].mxu1  ;;  %v12174_v23 = vpop.eup %12173  ;;  %12193 = vtanh.f32 %v6895_v12 }
 0x917   : > { %v6903_v25 = vadd.f32 %v6902_v22, %v14186_v57  ;;  %v12176_v26 = vpop.eup %12175  ;;  %12195 = vtanh.f32 %v6644_v17  ;;  %7343 = vmatprep.mubr.f32.mxu0 %v12174_v23  ;;  %v6649_v27 = vpop.f32.mrb[62].mxu0 }
 0x918   : > { %v12178_v28 = vpop.eup %12177  ;;  %12197 = vtanh.f32 %v6646_v21  ;;  %7600 = vmatprep.mubr.f32.mxu1 %v12176_v26  ;;  %v6650_v29 = vadd.f32 %v6649_v27, %v14183_v39  ;;  %v6906_v30 = vpop.f32.mrb[62].mxu1  ;;  %7344 = vmatmul.mubr.f32.gmra.mrb[118].mxu0 %v12172_v20 }
 0x919   : > { %v6651_v31 = vpop.f32.mrb[63].mxu0  ;;  %v12180_v32 = vpop.eup %12179  ;;  %12199 = vtanh.f32 %v6903_v25  ;;  %7601 = vmatmul.mubr.f32.gmra.mrb[118].mxu1 %v12178_v28  ;;  %v6907_v49 = vadd.f32 %v6906_v30, %v14183_v39 }
 0x91a   : > { %v6652_v33 = vadd.f32 %v6651_v31, %v14186_v57  ;;  %v6908_v34 = vpop.f32.mrb[63].mxu1  ;;  %v12182_v35 = vpop.eup %12181  ;;  %12201 = vtanh.f32 %v6901_v24 }
 0x91b   : > { %v6909_v47 = vadd.f32 %v6908_v34, %v14186_v57  ;;  %v12184_v45 = vpop.eup %12183  ;;  %12203 = vtanh.f32 %v6650_v29  ;;  %7349 = vmatprep.mubr.f32.mxu0 %v12182_v35 }
 0x91c   : > { %v12186_v44 = vpop.eup %12185  ;;  %12205 = vtanh.f32 %v6652_v33  ;;  %7606 = vmatprep.mubr.f32.mxu1 %v12184_v45  ;;  %7350 = vmatmul.mubr.f32.gmra.mrb[120].mxu0 %v12180_v32 }
 0x91d   : > { %v12188_v43 = vpop.eup %12187  ;;  %12207 = vtanh.f32 %v6909_v47  ;;  %7607 = vmatmul.mubr.f32.gmra.mrb[120].mxu1 %v12186_v44 }
 0x91e   : > { %v12190_v42 = vpop.eup %12189  ;;  %12209 = vtanh.f32 %v6907_v49 }
 0x91f   : > { %v12192_v41 = vpop.eup %12191  ;;  %7355 = vmatprep.mubr.f32.mxu0 %v12190_v42 }
 0x920   : > { %v12194_v40 = vpop.eup %12193  ;;  %7612 = vmatprep.mubr.f32.mxu1 %v12192_v41  ;;  %7356 = vmatmul.mubr.f32.gmra.mrb[122].mxu0 %v12188_v43 }
 0x921   : > { %v12196_v39 = vpop.eup %12195  ;;  %7613 = vmatmul.mubr.f32.gmra.mrb[122].mxu1 %v12194_v40 }
 0x922   : > { %v12198_v57 = vpop.eup %12197 }
 0x923   : > { %v12200_v56 = vpop.eup %12199  ;;  %7361 = vmatprep.mubr.f32.mxu0 %v12198_v57 }
 0x924   : > { %v12202_v55 = vpop.eup %12201  ;;  %7618 = vmatprep.mubr.f32.mxu1 %v12200_v56  ;;  %7362 = vmatmul.mubr.f32.gmra.mrb[124].mxu0 %v12196_v39 }
 0x925   : > { %v12204_v54 = vpop.eup %12203  ;;  %7619 = vmatmul.mubr.f32.gmra.mrb[124].mxu1 %v12202_v55 }
 0x926   : > { %v12206_v53 = vpop.eup %12205 }
 0x927   : > { %v12208_v52 = vpop.eup %12207  ;;  %7367 = vmatprep.mubr.f32.mxu0 %v12206_v53 }
 0x928   : > { %v12210_v51 = vpop.eup %12209  ;;  %7624 = vmatprep.mubr.f32.mxu1 %v12208_v52  ;;  %7368 = vmatmul.mubr.f32.gmra.mrb[126].mxu0 %v12204_v54 }
 0x929   : > { %7625 = vmatmul.mubr.f32.gmra.mrb[126].mxu1 %v12210_v51 }
 0x97e   : > { %v7183_v37 = vpop.f32.mrb[64].mxu0 }
 0x97f   : > { %v7184_v38 = vadd.f32 %v7183_v37, %v14317_v0  ;;  %v7440_v58 = vpop.f32.mrb[64].mxu1  ;;  %v7185_v59 = vpop.f32.mrb[65].mxu0 }
 0x980   : > { %v7186_v60 = vadd.f32 %v7185_v59, %v14320_v36  ;;  %v7442_v61 = vpop.f32.mrb[65].mxu1  ;;  %v7441_v62 = vadd.f32 %v7440_v58, %v14317_v0 }
 0x981   : > { %v7443_v63 = vadd.f32 %v7442_v61, %v14320_v36  ;;  %12211 = vtanh.f32 %v7184_v38 }
 0x982   : > { %12213 = vtanh.f32 %v7186_v60 }
 0x983   : > { %v7189_v1 = vpop.f32.mrb[66].mxu0  ;;  %12215 = vtanh.f32 %v7443_v63 }
 0x984   : > { %v7190_v2 = vadd.f32 %v7189_v1, %v14317_v0  ;;  %v7446_v3 = vpop.f32.mrb[66].mxu1  ;;  %v7191_v48 = vpop.f32.mrb[67].mxu0  ;;  %12217 = vtanh.f32 %v7441_v62 }
 0x985   : > { %v7192_v4 = vadd.f32 %v7191_v48, %v14320_v36  ;;  %v7448_v5 = vpop.f32.mrb[67].mxu1  ;;  %v7447_v6 = vadd.f32 %v7446_v3, %v14317_v0 }
 0x986   : > { %v7449_v7 = vadd.f32 %v7448_v5, %v14320_v36  ;;  %12219 = vtanh.f32 %v7190_v2 }
 0x987   : > { %v7195_v8 = vpop.f32.mrb[68].mxu0  ;;  %12221 = vtanh.f32 %v7192_v4 }
 0x988   : > { %v7196_v9 = vadd.f32 %v7195_v8, %v14317_v0  ;;  %v7452_v10 = vpop.f32.mrb[68].mxu1  ;;  %v7197_v11 = vpop.f32.mrb[69].mxu0  ;;  %12223 = vtanh.f32 %v7449_v7 }
 0x989   : > { %v7198_v12 = vadd.f32 %v7197_v11, %v14320_v36  ;;  %v7454_v13 = vpop.f32.mrb[69].mxu1  ;;  %12225 = vtanh.f32 %v7447_v6  ;;  %v7453_v14 = vadd.f32 %v7452_v10, %v14317_v0 }
 0x98a   : > { %v7455_v15 = vadd.f32 %v7454_v13, %v14320_v36  ;;  %12227 = vtanh.f32 %v7196_v9 }
 0x98b   : > { %v7201_v16 = vpop.f32.mrb[70].mxu0  ;;  %12229 = vtanh.f32 %v7198_v12  ;;  %v12212_v20 = vpop.eup %12211 }
 0x98c   : > { %v7202_v17 = vadd.f32 %v7201_v16, %v14317_v0  ;;  %v7458_v18 = vpop.f32.mrb[70].mxu1  ;;  %v7203_v19 = vpop.f32.mrb[71].mxu0  ;;  %12231 = vtanh.f32 %v7455_v15 }
 0x98d   : > { %v7204_v21 = vadd.f32 %v7203_v19, %v14320_v36  ;;  %v7460_v22 = vpop.f32.mrb[71].mxu1  ;;  %v12214_v23 = vpop.eup %12213  ;;  %12233 = vtanh.f32 %v7453_v14  ;;  %v7459_v24 = vadd.f32 %v7458_v18, %v14317_v0 }
 0x98e   : > { %v7461_v25 = vadd.f32 %v7460_v22, %v14320_v36  ;;  %v12216_v26 = vpop.eup %12215  ;;  %12235 = vtanh.f32 %v7202_v17  ;;  %7894 = vmatprep.mubr.f32.mxu0 %v12214_v23 }
 0x98f   : > { %v7207_v27 = vpop.f32.mrb[72].mxu0  ;;  %v12218_v28 = vpop.eup %12217  ;;  %12237 = vtanh.f32 %v7204_v21  ;;  %8119 = vmatprep.mubr.f32.mxu1 %v12216_v26  ;;  %7895 = vmatmul.mubr.f32.vlgmr.msra.gmra.mrb[128].mxu0 %v12212_v20 }
 0x990   : > { %v7208_v29 = vadd.f32 %v7207_v27, %v14317_v0  ;;  %v7464_v30 = vpop.f32.mrb[72].mxu1  ;;  %v7209_v31 = vpop.f32.mrb[73].mxu0  ;;  %12239 = vtanh.f32 %v7461_v25  ;;  %8120 = vmatmul.mubr.f32.vlgmr.msra.gmra.mrb[128].mxu1 %v12218_v28 }
 0x991   : > { %v12220_v32 = vpop.eup %12219  ;;  %v7210_v33 = vadd.f32 %v7209_v31, %v14320_v36  ;;  %v7466_v34 = vpop.f32.mrb[73].mxu1  ;;  %12241 = vtanh.f32 %v7459_v24  ;;  %v7465_v49 = vadd.f32 %v7464_v30, %v14317_v0 }
 0x992   : > { %v12222_v35 = vpop.eup %12221  ;;  %v7467_v47 = vadd.f32 %v7466_v34, %v14320_v36  ;;  %12243 = vtanh.f32 %v7208_v29 }
 0x993   : > { %v12224_v45 = vpop.eup %12223  ;;  %7899 = vmatprep.mubr.f32.mxu0 %v12222_v35  ;;  %v7213_v44 = vpop.f32.mrb[74].mxu0  ;;  %12245 = vtanh.f32 %v7210_v33 }
 0x994   : > { %v12226_v43 = vpop.eup %12225  ;;  %8124 = vmatprep.mubr.f32.mxu1 %v12224_v45  ;;  %v7214_v42 = vadd.f32 %v7213_v44, %v14317_v0  ;;  %v7470_v41 = vpop.f32.mrb[74].mxu1  ;;  %7900 = vmatmul.mubr.f32.gmra.mrb[130].mxu0 %v12220_v32  ;;  %12247 = vtanh.f32 %v7467_v47 }
 0x995   : > { %v7215_v40 = vpop.f32.mrb[75].mxu0  ;;  %v12228_v39 = vpop.eup %12227  ;;  %8125 = vmatmul.mubr.f32.gmra.mrb[130].mxu1 %v12226_v43  ;;  %12249 = vtanh.f32 %v7465_v49  ;;  %v7471_v54 = vadd.f32 %v7470_v41, %v14317_v0 }
 0x996   : > { %v7216_v57 = vadd.f32 %v7215_v40, %v14320_v36  ;;  %v7472_v56 = vpop.f32.mrb[75].mxu1  ;;  %v12230_v55 = vpop.eup %12229  ;;  %12251 = vtanh.f32 %v7214_v42 }
 0x997   : > { %v7473_v53 = vadd.f32 %v7472_v56, %v14320_v36  ;;  %v12232_v52 = vpop.eup %12231  ;;  %7904 = vmatprep.mubr.f32.mxu0 %v12230_v55  ;;  %v7219_v51 = vpop.f32.mrb[76].mxu0 }
 0x998   : > { %v12234_v50 = vpop.eup %12233  ;;  %12253 = vtanh.f32 %v7216_v57  ;;  %8129 = vmatprep.mubr.f32.mxu1 %v12232_v52  ;;  %v7220_v37 = vadd.f32 %v7219_v51, %v14317_v0  ;;  %v7476_v38 = vpop.f32.mrb[76].mxu1  ;;  %7905 = vmatmul.mubr.f32.gmra.mrb[132].mxu0 %v12228_v39 }
 0x999   : > { %v7221_v58 = vpop.f32.mrb[77].mxu0  ;;  %v12236_v59 = vpop.eup %12235  ;;  %12255 = vtanh.f32 %v7473_v53  ;;  %8130 = vmatmul.mubr.f32.gmra.mrb[132].mxu1 %v12234_v50  ;;  %v7477_v63 = vadd.f32 %v7476_v38, %v14317_v0 }
 0x99a   : > { %v7222_v60 = vadd.f32 %v7221_v58, %v14320_v36  ;;  %v7478_v61 = vpop.f32.mrb[77].mxu1  ;;  %v12238_v62 = vpop.eup %12237  ;;  %12257 = vtanh.f32 %v7471_v54 }
 0x99b   : > { %v7479_v1 = vadd.f32 %v7478_v61, %v14320_v36  ;;  %v12240_v2 = vpop.eup %12239  ;;  %12259 = vtanh.f32 %v7220_v37  ;;  %7909 = vmatprep.mubr.f32.mxu0 %v12238_v62  ;;  %v7225_v3 = vpop.f32.mrb[78].mxu0 }
 0x99c   : > { %v12242_v48 = vpop.eup %12241  ;;  %12261 = vtanh.f32 %v7222_v60  ;;  %8134 = vmatprep.mubr.f32.mxu1 %v12240_v2  ;;  %v7226_v4 = vadd.f32 %v7225_v3, %v14317_v0  ;;  %v7482_v5 = vpop.f32.mrb[78].mxu1  ;;  %7910 = vmatmul.mubr.f32.gmra.mrb[134].mxu0 %v12236_v59 }
 0x99d   : > { %v7227_v6 = vpop.f32.mrb[79].mxu0  ;;  %v12244_v7 = vpop.eup %12243  ;;  %12263 = vtanh.f32 %v7479_v1  ;;  %8135 = vmatmul.mubr.f32.gmra.mrb[134].mxu1 %v12242_v48  ;;  %v7483_v11 = vadd.f32 %v7482_v5, %v14317_v0 }
 0x99e   : > { %v7228_v8 = vadd.f32 %v7227_v6, %v14320_v36  ;;  %v7484_v9 = vpop.f32.mrb[79].mxu1  ;;  %v12246_v10 = vpop.eup %12245  ;;  %12265 = vtanh.f32 %v7477_v63 }
 0x99f   : > { %v7485_v12 = vadd.f32 %v7484_v9, %v14320_v36  ;;  %v12248_v13 = vpop.eup %12247  ;;  %12267 = vtanh.f32 %v7226_v4  ;;  %7914 = vmatprep.mubr.f32.mxu0 %v12246_v10  ;;  %v7231_v14 = vpop.f32.mrb[80].mxu0 }
 0x9a0   : > { %v12250_v15 = vpop.eup %12249  ;;  %12269 = vtanh.f32 %v7228_v8  ;;  %8139 = vmatprep.mubr.f32.mxu1 %v12248_v13  ;;  %v7232_v16 = vadd.f32 %v7231_v14, %v14317_v0  ;;  %v7488_v17 = vpop.f32.mrb[80].mxu1  ;;  %7915 = vmatmul.mubr.f32.gmra.mrb[136].mxu0 %v12244_v7 }
 0x9a1   : > { %v7233_v18 = vpop.f32.mrb[81].mxu0  ;;  %v12252_v19 = vpop.eup %12251  ;;  %12271 = vtanh.f32 %v7485_v12  ;;  %8140 = vmatmul.mubr.f32.gmra.mrb[136].mxu1 %v12250_v15  ;;  %v7489_v23 = vadd.f32 %v7488_v17, %v14317_v0 }
 0x9a2   : > { %v7234_v20 = vadd.f32 %v7233_v18, %v14320_v36  ;;  %v7490_v21 = vpop.f32.mrb[81].mxu1  ;;  %v12254_v22 = vpop.eup %12253  ;;  %12273 = vtanh.f32 %v7483_v11 }
 0x9a3   : > { %v7491_v24 = vadd.f32 %v7490_v21, %v14320_v36  ;;  %v12256_v25 = vpop.eup %12255  ;;  %12275 = vtanh.f32 %v7232_v16  ;;  %7919 = vmatprep.mubr.f32.mxu0 %v12254_v22  ;;  %v7237_v26 = vpop.f32.mrb[82].mxu0 }
 0x9a4   : > { %v12258_v27 = vpop.eup %12257  ;;  %12277 = vtanh.f32 %v7234_v20  ;;  %8144 = vmatprep.mubr.f32.mxu1 %v12256_v25  ;;  %v7238_v28 = vadd.f32 %v7237_v26, %v14317_v0  ;;  %v7494_v29 = vpop.f32.mrb[82].mxu1  ;;  %7920 = vmatmul.mubr.f32.gmra.mrb[138].mxu0 %v12252_v19 }
 0x9a5   : > { %v7239_v30 = vpop.f32.mrb[83].mxu0  ;;  %v12260_v31 = vpop.eup %12259  ;;  %12279 = vtanh.f32 %v7491_v24  ;;  %8145 = vmatmul.mubr.f32.gmra.mrb[138].mxu1 %v12258_v27  ;;  %v7495_v35 = vadd.f32 %v7494_v29, %v14317_v0 }
 0x9a6   : > { %v7240_v32 = vadd.f32 %v7239_v30, %v14320_v36  ;;  %v7496_v33 = vpop.f32.mrb[83].mxu1  ;;  %v12262_v34 = vpop.eup %12261  ;;  %12281 = vtanh.f32 %v7489_v23 }
 0x9a7   : > { %v7497_v49 = vadd.f32 %v7496_v33, %v14320_v36  ;;  %v12264_v47 = vpop.eup %12263  ;;  %12283 = vtanh.f32 %v7238_v28  ;;  %7924 = vmatprep.mubr.f32.mxu0 %v12262_v34  ;;  %v7243_v45 = vpop.f32.mrb[84].mxu0 }
 0x9a8   : > { %v12266_v44 = vpop.eup %12265  ;;  %12285 = vtanh.f32 %v7240_v32  ;;  %8149 = vmatprep.mubr.f32.mxu1 %v12264_v47  ;;  %v7244_v43 = vadd.f32 %v7243_v45, %v14317_v0  ;;  %v7500_v42 = vpop.f32.mrb[84].mxu1  ;;  %7925 = vmatmul.mubr.f32.gmra.mrb[140].mxu0 %v12260_v31 }
 0x9a9   : > { %v7245_v41 = vpop.f32.mrb[85].mxu0  ;;  %v12268_v40 = vpop.eup %12267  ;;  %12287 = vtanh.f32 %v7497_v49  ;;  %8150 = vmatmul.mubr.f32.gmra.mrb[140].mxu1 %v12266_v44  ;;  %v7501_v55 = vadd.f32 %v7500_v42, %v14317_v0 }
 0x9aa   : > { %v7246_v39 = vadd.f32 %v7245_v41, %v14320_v36  ;;  %v7502_v57 = vpop.f32.mrb[85].mxu1  ;;  %v12270_v56 = vpop.eup %12269  ;;  %12289 = vtanh.f32 %v7495_v35 }
 0x9ab   : > { %v7503_v54 = vadd.f32 %v7502_v57, %v14320_v36  ;;  %v12272_v53 = vpop.eup %12271  ;;  %12291 = vtanh.f32 %v7244_v43  ;;  %7929 = vmatprep.mubr.f32.mxu0 %v12270_v56  ;;  %v7249_v52 = vpop.f32.mrb[86].mxu0 }
 0x9ac   : > { %v12274_v51 = vpop.eup %12273  ;;  %12293 = vtanh.f32 %v7246_v39  ;;  %8154 = vmatprep.mubr.f32.mxu1 %v12272_v53  ;;  %v7250_v50 = vadd.f32 %v7249_v52, %v14317_v0  ;;  %v7506_v37 = vpop.f32.mrb[86].mxu1  ;;  %7930 = vmatmul.mubr.f32.gmra.mrb[142].mxu0 %v12268_v40 }
 0x9ad   : > { %v7251_v38 = vpop.f32.mrb[87].mxu0  ;;  %v12276_v58 = vpop.eup %12275  ;;  %12295 = vtanh.f32 %v7503_v54  ;;  %8155 = vmatmul.mubr.f32.gmra.mrb[142].mxu1 %v12274_v51  ;;  %v7507_v62 = vadd.f32 %v7506_v37, %v14317_v0 }
 0x9ae   : > { %v7252_v59 = vadd.f32 %v7251_v38, %v14320_v36  ;;  %v7508_v60 = vpop.f32.mrb[87].mxu1  ;;  %v12278_v61 = vpop.eup %12277  ;;  %12297 = vtanh.f32 %v7501_v55 }
 0x9af   : > { %v7509_v63 = vadd.f32 %v7508_v60, %v14320_v36  ;;  %v12280_v1 = vpop.eup %12279  ;;  %12299 = vtanh.f32 %v7250_v50  ;;  %7934 = vmatprep.mubr.f32.mxu0 %v12278_v61  ;;  %v7255_v2 = vpop.f32.mrb[88].mxu0 }
 0x9b0   : > { %v12282_v3 = vpop.eup %12281  ;;  %12301 = vtanh.f32 %v7252_v59  ;;  %8159 = vmatprep.mubr.f32.mxu1 %v12280_v1  ;;  %v7256_v48 = vadd.f32 %v7255_v2, %v14317_v0  ;;  %v7512_v4 = vpop.f32.mrb[88].mxu1  ;;  %7935 = vmatmul.mubr.f32.gmra.mrb[144].mxu0 %v12276_v58 }
 0x9b1   : > { %v7257_v5 = vpop.f32.mrb[89].mxu0  ;;  %v12284_v6 = vpop.eup %12283  ;;  %12303 = vtanh.f32 %v7509_v63  ;;  %8160 = vmatmul.mubr.f32.gmra.mrb[144].mxu1 %v12282_v3  ;;  %v7513_v10 = vadd.f32 %v7512_v4, %v14317_v0 }
 0x9b2   : > { %v7258_v7 = vadd.f32 %v7257_v5, %v14320_v36  ;;  %v7514_v8 = vpop.f32.mrb[89].mxu1  ;;  %v12286_v9 = vpop.eup %12285  ;;  %12305 = vtanh.f32 %v7507_v62 }
 0x9b3   : > { %v7515_v11 = vadd.f32 %v7514_v8, %v14320_v36  ;;  %v12288_v12 = vpop.eup %12287  ;;  %12307 = vtanh.f32 %v7256_v48  ;;  %7939 = vmatprep.mubr.f32.mxu0 %v12286_v9  ;;  %v7261_v13 = vpop.f32.mrb[90].mxu0 }
 0x9b4   : > { %v12290_v14 = vpop.eup %12289  ;;  %12309 = vtanh.f32 %v7258_v7  ;;  %8164 = vmatprep.mubr.f32.mxu1 %v12288_v12  ;;  %v7262_v15 = vadd.f32 %v7261_v13, %v14317_v0  ;;  %v7518_v16 = vpop.f32.mrb[90].mxu1  ;;  %7940 = vmatmul.mubr.f32.gmra.mrb[146].mxu0 %v12284_v6 }
 0x9b5   : > { %v7263_v17 = vpop.f32.mrb[91].mxu0  ;;  %v12292_v18 = vpop.eup %12291  ;;  %12311 = vtanh.f32 %v7515_v11  ;;  %8165 = vmatmul.mubr.f32.gmra.mrb[146].mxu1 %v12290_v14  ;;  %v7519_v22 = vadd.f32 %v7518_v16, %v14317_v0 }
 0x9b6   : > { %v7264_v19 = vadd.f32 %v7263_v17, %v14320_v36  ;;  %v7520_v20 = vpop.f32.mrb[91].mxu1  ;;  %v12294_v21 = vpop.eup %12293  ;;  %12313 = vtanh.f32 %v7513_v10 }
 0x9b7   : > { %v7521_v23 = vadd.f32 %v7520_v20, %v14320_v36  ;;  %v12296_v24 = vpop.eup %12295  ;;  %12315 = vtanh.f32 %v7262_v15  ;;  %7944 = vmatprep.mubr.f32.mxu0 %v12294_v21  ;;  %v7267_v25 = vpop.f32.mrb[92].mxu0 }
 0x9b8   : > { %v12298_v26 = vpop.eup %12297  ;;  %12317 = vtanh.f32 %v7264_v19  ;;  %8169 = vmatprep.mubr.f32.mxu1 %v12296_v24  ;;  %v7268_v27 = vadd.f32 %v7267_v25, %v14317_v0  ;;  %v7524_v28 = vpop.f32.mrb[92].mxu1  ;;  %7945 = vmatmul.mubr.f32.gmra.mrb[148].mxu0 %v12292_v18 }
 0x9b9   : > { %v7269_v29 = vpop.f32.mrb[93].mxu0  ;;  %v12300_v30 = vpop.eup %12299  ;;  %12319 = vtanh.f32 %v7521_v23  ;;  %8170 = vmatmul.mubr.f32.gmra.mrb[148].mxu1 %v12298_v26  ;;  %v7525_v34 = vadd.f32 %v7524_v28, %v14317_v0 }
 0x9ba   : > { %v7270_v31 = vadd.f32 %v7269_v29, %v14320_v36  ;;  %v7526_v32 = vpop.f32.mrb[93].mxu1  ;;  %v12302_v33 = vpop.eup %12301  ;;  %12321 = vtanh.f32 %v7519_v22 }
 0x9bb   : > { %v7527_v35 = vadd.f32 %v7526_v32, %v14320_v36  ;;  %v12304_v49 = vpop.eup %12303  ;;  %12323 = vtanh.f32 %v7268_v27  ;;  %7949 = vmatprep.mubr.f32.mxu0 %v12302_v33  ;;  %v7273_v47 = vpop.f32.mrb[94].mxu0 }
 0x9bc   : > { %v12306_v45 = vpop.eup %12305  ;;  %12325 = vtanh.f32 %v7270_v31  ;;  %8174 = vmatprep.mubr.f32.mxu1 %v12304_v49  ;;  %v7274_v44 = vadd.f32 %v7273_v47, %v14317_v0  ;;  %v7530_v43 = vpop.f32.mrb[94].mxu1  ;;  %7950 = vmatmul.mubr.f32.gmra.mrb[150].mxu0 %v12300_v30 }
 0x9bd   : > { %v7275_v42 = vpop.f32.mrb[95].mxu0  ;;  %v12308_v41 = vpop.eup %12307  ;;  %12327 = vtanh.f32 %v7527_v35  ;;  %8175 = vmatmul.mubr.f32.gmra.mrb[150].mxu1 %v12306_v45  ;;  %v7531_v56 = vadd.f32 %v7530_v43, %v14317_v0 }
 0x9be   : > { %v7276_v40 = vadd.f32 %v7275_v42, %v14320_v36  ;;  %v7532_v39 = vpop.f32.mrb[95].mxu1  ;;  %v12310_v57 = vpop.eup %12309  ;;  %12329 = vtanh.f32 %v7525_v34 }
 0x9bf   : > { %v7533_v55 = vadd.f32 %v7532_v39, %v14320_v36  ;;  %v12312_v54 = vpop.eup %12311  ;;  %12331 = vtanh.f32 %v7274_v44  ;;  %7954 = vmatprep.mubr.f32.mxu0 %v12310_v57  ;;  %v7279_v53 = vpop.f32.mrb[96].mxu0 }
 0x9c0   : > { %v12314_v52 = vpop.eup %12313  ;;  %12333 = vtanh.f32 %v7276_v40  ;;  %8179 = vmatprep.mubr.f32.mxu1 %v12312_v54  ;;  %v7280_v51 = vadd.f32 %v7279_v53, %v14317_v0  ;;  %v7536_v50 = vpop.f32.mrb[96].mxu1  ;;  %7955 = vmatmul.mubr.f32.gmra.mrb[152].mxu0 %v12308_v41 }
 0x9c1   : > { %v7281_v37 = vpop.f32.mrb[97].mxu0  ;;  %v12316_v38 = vpop.eup %12315  ;;  %12335 = vtanh.f32 %v7533_v55  ;;  %8180 = vmatmul.mubr.f32.gmra.mrb[152].mxu1 %v12314_v52  ;;  %v7537_v61 = vadd.f32 %v7536_v50, %v14317_v0 }
 0x9c2   : > { %v7282_v58 = vadd.f32 %v7281_v37, %v14320_v36  ;;  %v7538_v59 = vpop.f32.mrb[97].mxu1  ;;  %v12318_v60 = vpop.eup %12317  ;;  %12337 = vtanh.f32 %v7531_v56 }
 0x9c3   : > { %v7539_v62 = vadd.f32 %v7538_v59, %v14320_v36  ;;  %v12320_v63 = vpop.eup %12319  ;;  %12339 = vtanh.f32 %v7280_v51  ;;  %7959 = vmatprep.mubr.f32.mxu0 %v12318_v60  ;;  %v7285_v1 = vpop.f32.mrb[98].mxu0 }
 0x9c4   : > { %v12322_v2 = vpop.eup %12321  ;;  %12341 = vtanh.f32 %v7282_v58  ;;  %8184 = vmatprep.mubr.f32.mxu1 %v12320_v63  ;;  %v7286_v3 = vadd.f32 %v7285_v1, %v14317_v0  ;;  %v7542_v48 = vpop.f32.mrb[98].mxu1  ;;  %7960 = vmatmul.mubr.f32.gmra.mrb[154].mxu0 %v12316_v38 }
 0x9c5   : > { %v7287_v4 = vpop.f32.mrb[99].mxu0  ;;  %v12324_v5 = vpop.eup %12323  ;;  %12343 = vtanh.f32 %v7539_v62  ;;  %8185 = vmatmul.mubr.f32.gmra.mrb[154].mxu1 %v12322_v2  ;;  %v7543_v9 = vadd.f32 %v7542_v48, %v14317_v0 }
 0x9c6   : > { %v7288_v6 = vadd.f32 %v7287_v4, %v14320_v36  ;;  %v7544_v7 = vpop.f32.mrb[99].mxu1  ;;  %v12326_v8 = vpop.eup %12325  ;;  %12345 = vtanh.f32 %v7537_v61 }
 0x9c7   : > { %v7545_v10 = vadd.f32 %v7544_v7, %v14320_v36  ;;  %v12328_v11 = vpop.eup %12327  ;;  %12347 = vtanh.f32 %v7286_v3  ;;  %7964 = vmatprep.mubr.f32.mxu0 %v12326_v8  ;;  %v7291_v12 = vpop.f32.mrb[100].mxu0 }
 0x9c8   : > { %v12330_v13 = vpop.eup %12329  ;;  %12349 = vtanh.f32 %v7288_v6  ;;  %8189 = vmatprep.mubr.f32.mxu1 %v12328_v11  ;;  %v7292_v14 = vadd.f32 %v7291_v12, %v14317_v0  ;;  %v7548_v15 = vpop.f32.mrb[100].mxu1  ;;  %7965 = vmatmul.mubr.f32.gmra.mrb[156].mxu0 %v12324_v5 }
 0x9c9   : > { %v7293_v16 = vpop.f32.mrb[101].mxu0  ;;  %v12332_v17 = vpop.eup %12331  ;;  %12351 = vtanh.f32 %v7545_v10  ;;  %8190 = vmatmul.mubr.f32.gmra.mrb[156].mxu1 %v12330_v13  ;;  %v7549_v21 = vadd.f32 %v7548_v15, %v14317_v0 }
 0x9ca   : > { %v7294_v18 = vadd.f32 %v7293_v16, %v14320_v36  ;;  %v7550_v19 = vpop.f32.mrb[101].mxu1  ;;  %v12334_v20 = vpop.eup %12333  ;;  %12353 = vtanh.f32 %v7543_v9 }
 0x9cb   : > { %v7551_v22 = vadd.f32 %v7550_v19, %v14320_v36  ;;  %v12336_v23 = vpop.eup %12335  ;;  %12355 = vtanh.f32 %v7292_v14  ;;  %7969 = vmatprep.mubr.f32.mxu0 %v12334_v20  ;;  %v7297_v24 = vpop.f32.mrb[102].mxu0 }
 0x9cc   : > { %v12338_v25 = vpop.eup %12337  ;;  %12357 = vtanh.f32 %v7294_v18  ;;  %8194 = vmatprep.mubr.f32.mxu1 %v12336_v23  ;;  %v7298_v26 = vadd.f32 %v7297_v24, %v14317_v0  ;;  %v7554_v27 = vpop.f32.mrb[102].mxu1  ;;  %7970 = vmatmul.mubr.f32.gmra.mrb[158].mxu0 %v12332_v17 }
 0x9cd   : > { %v7299_v28 = vpop.f32.mrb[103].mxu0  ;;  %v12340_v29 = vpop.eup %12339  ;;  %12359 = vtanh.f32 %v7551_v22  ;;  %8195 = vmatmul.mubr.f32.gmra.mrb[158].mxu1 %v12338_v25  ;;  %v7555_v33 = vadd.f32 %v7554_v27, %v14317_v0 }
 0x9ce   : > { %v7300_v30 = vadd.f32 %v7299_v28, %v14320_v36  ;;  %v7556_v31 = vpop.f32.mrb[103].mxu1  ;;  %v12342_v32 = vpop.eup %12341  ;;  %12361 = vtanh.f32 %v7549_v21 }
 0x9cf   : > { %v7557_v34 = vadd.f32 %v7556_v31, %v14320_v36  ;;  %v12344_v35 = vpop.eup %12343  ;;  %12363 = vtanh.f32 %v7298_v26  ;;  %7974 = vmatprep.mubr.f32.mxu0 %v12342_v32  ;;  %v7303_v49 = vpop.f32.mrb[104].mxu0 }
 0x9d0   : > { %v12346_v47 = vpop.eup %12345  ;;  %12365 = vtanh.f32 %v7300_v30  ;;  %8199 = vmatprep.mubr.f32.mxu1 %v12344_v35  ;;  %v7304_v45 = vadd.f32 %v7303_v49, %v14317_v0  ;;  %v7560_v44 = vpop.f32.mrb[104].mxu1  ;;  %7975 = vmatmul.mubr.f32.gmra.mrb[160].mxu0 %v12340_v29 }
 0x9d1   : > { %v7305_v43 = vpop.f32.mrb[105].mxu0  ;;  %v12348_v42 = vpop.eup %12347  ;;  %12367 = vtanh.f32 %v7557_v34  ;;  %8200 = vmatmul.mubr.f32.gmra.mrb[160].mxu1 %v12346_v47  ;;  %v7561_v57 = vadd.f32 %v7560_v44, %v14317_v0 }
 0x9d2   : > { %v7306_v41 = vadd.f32 %v7305_v43, %v14320_v36  ;;  %v7562_v40 = vpop.f32.mrb[105].mxu1  ;;  %v12350_v39 = vpop.eup %12349  ;;  %12369 = vtanh.f32 %v7555_v33 }
 0x9d3   : > { %v7563_v56 = vadd.f32 %v7562_v40, %v14320_v36  ;;  %v12352_v55 = vpop.eup %12351  ;;  %12371 = vtanh.f32 %v7304_v45  ;;  %7979 = vmatprep.mubr.f32.mxu0 %v12350_v39  ;;  %v7309_v54 = vpop.f32.mrb[106].mxu0 }
 0x9d4   : > { %v12354_v53 = vpop.eup %12353  ;;  %12373 = vtanh.f32 %v7306_v41  ;;  %8204 = vmatprep.mubr.f32.mxu1 %v12352_v55  ;;  %v7310_v52 = vadd.f32 %v7309_v54, %v14317_v0  ;;  %v7566_v51 = vpop.f32.mrb[106].mxu1  ;;  %7980 = vmatmul.mubr.f32.gmra.mrb[162].mxu0 %v12348_v42 }
 0x9d5   : > { %v7311_v50 = vpop.f32.mrb[107].mxu0  ;;  %v12356_v37 = vpop.eup %12355  ;;  %12375 = vtanh.f32 %v7563_v56  ;;  %8205 = vmatmul.mubr.f32.gmra.mrb[162].mxu1 %v12354_v53  ;;  %v7567_v60 = vadd.f32 %v7566_v51, %v14317_v0 }
 0x9d6   : > { %v7312_v38 = vadd.f32 %v7311_v50, %v14320_v36  ;;  %v7568_v58 = vpop.f32.mrb[107].mxu1  ;;  %v12358_v59 = vpop.eup %12357  ;;  %12377 = vtanh.f32 %v7561_v57 }
 0x9d7   : > { %v7569_v61 = vadd.f32 %v7568_v58, %v14320_v36  ;;  %v12360_v62 = vpop.eup %12359  ;;  %12379 = vtanh.f32 %v7310_v52  ;;  %7984 = vmatprep.mubr.f32.mxu0 %v12358_v59  ;;  %v7315_v63 = vpop.f32.mrb[108].mxu0 }
 0x9d8   : > { %v12362_v1 = vpop.eup %12361  ;;  %12381 = vtanh.f32 %v7312_v38  ;;  %8209 = vmatprep.mubr.f32.mxu1 %v12360_v62  ;;  %v7316_v2 = vadd.f32 %v7315_v63, %v14317_v0  ;;  %v7572_v3 = vpop.f32.mrb[108].mxu1  ;;  %7985 = vmatmul.mubr.f32.gmra.mrb[164].mxu0 %v12356_v37 }
 0x9d9   : > { %v7317_v48 = vpop.f32.mrb[109].mxu0  ;;  %v12364_v4 = vpop.eup %12363  ;;  %12383 = vtanh.f32 %v7569_v61  ;;  %8210 = vmatmul.mubr.f32.gmra.mrb[164].mxu1 %v12362_v1  ;;  %v7573_v8 = vadd.f32 %v7572_v3, %v14317_v0 }
 0x9da   : > { %v7318_v5 = vadd.f32 %v7317_v48, %v14320_v36  ;;  %v7574_v6 = vpop.f32.mrb[109].mxu1  ;;  %v12366_v7 = vpop.eup %12365  ;;  %12385 = vtanh.f32 %v7567_v60 }
 0x9db   : > { %v7575_v9 = vadd.f32 %v7574_v6, %v14320_v36  ;;  %v12368_v10 = vpop.eup %12367  ;;  %12387 = vtanh.f32 %v7316_v2  ;;  %7989 = vmatprep.mubr.f32.mxu0 %v12366_v7  ;;  %v7321_v11 = vpop.f32.mrb[110].mxu0 }
 0x9dc   : > { %v12370_v12 = vpop.eup %12369  ;;  %12389 = vtanh.f32 %v7318_v5  ;;  %8214 = vmatprep.mubr.f32.mxu1 %v12368_v10  ;;  %v7322_v13 = vadd.f32 %v7321_v11, %v14317_v0  ;;  %v7578_v14 = vpop.f32.mrb[110].mxu1  ;;  %7990 = vmatmul.mubr.f32.gmra.mrb[166].mxu0 %v12364_v4 }
 0x9dd   : > { %v7323_v15 = vpop.f32.mrb[111].mxu0  ;;  %v12372_v16 = vpop.eup %12371  ;;  %12391 = vtanh.f32 %v7575_v9  ;;  %8215 = vmatmul.mubr.f32.gmra.mrb[166].mxu1 %v12370_v12  ;;  %v7579_v20 = vadd.f32 %v7578_v14, %v14317_v0 }
 0x9de   : > { %v7324_v17 = vadd.f32 %v7323_v15, %v14320_v36  ;;  %v7580_v18 = vpop.f32.mrb[111].mxu1  ;;  %v12374_v19 = vpop.eup %12373  ;;  %12393 = vtanh.f32 %v7573_v8 }
 0x9df   : > { %v7581_v21 = vadd.f32 %v7580_v18, %v14320_v36  ;;  %v12376_v22 = vpop.eup %12375  ;;  %12395 = vtanh.f32 %v7322_v13  ;;  %7994 = vmatprep.mubr.f32.mxu0 %v12374_v19  ;;  %v7327_v23 = vpop.f32.mrb[112].mxu0 }
 0x9e0   : > { %v12378_v24 = vpop.eup %12377  ;;  %12397 = vtanh.f32 %v7324_v17  ;;  %8219 = vmatprep.mubr.f32.mxu1 %v12376_v22  ;;  %v7328_v25 = vadd.f32 %v7327_v23, %v14317_v0  ;;  %v7584_v26 = vpop.f32.mrb[112].mxu1  ;;  %7995 = vmatmul.mubr.f32.gmra.mrb[168].mxu0 %v12372_v16 }
 0x9e1   : > { %v7329_v27 = vpop.f32.mrb[113].mxu0  ;;  %v12380_v28 = vpop.eup %12379  ;;  %12399 = vtanh.f32 %v7581_v21  ;;  %8220 = vmatmul.mubr.f32.gmra.mrb[168].mxu1 %v12378_v24  ;;  %v7585_v32 = vadd.f32 %v7584_v26, %v14317_v0 }
 0x9e2   : > { %v7330_v29 = vadd.f32 %v7329_v27, %v14320_v36  ;;  %v7586_v30 = vpop.f32.mrb[113].mxu1  ;;  %v12382_v31 = vpop.eup %12381  ;;  %12401 = vtanh.f32 %v7579_v20 }
 0x9e3   : > { %v7587_v33 = vadd.f32 %v7586_v30, %v14320_v36  ;;  %v12384_v34 = vpop.eup %12383  ;;  %12403 = vtanh.f32 %v7328_v25  ;;  %7999 = vmatprep.mubr.f32.mxu0 %v12382_v31  ;;  %v7333_v35 = vpop.f32.mrb[114].mxu0 }
 0x9e4   : > { %v12386_v49 = vpop.eup %12385  ;;  %12405 = vtanh.f32 %v7330_v29  ;;  %8224 = vmatprep.mubr.f32.mxu1 %v12384_v34  ;;  %v7334_v47 = vadd.f32 %v7333_v35, %v14317_v0  ;;  %v7590_v45 = vpop.f32.mrb[114].mxu1  ;;  %8000 = vmatmul.mubr.f32.gmra.mrb[170].mxu0 %v12380_v28 }
 0x9e5   : > { %v7335_v44 = vpop.f32.mrb[115].mxu0  ;;  %v12388_v43 = vpop.eup %12387  ;;  %12407 = vtanh.f32 %v7587_v33  ;;  %8225 = vmatmul.mubr.f32.gmra.mrb[170].mxu1 %v12386_v49  ;;  %v7591_v39 = vadd.f32 %v7590_v45, %v14317_v0 }
 0x9e6   : > { %v7336_v42 = vadd.f32 %v7335_v44, %v14320_v36  ;;  %v7592_v41 = vpop.f32.mrb[115].mxu1  ;;  %v12390_v40 = vpop.eup %12389  ;;  %12409 = vtanh.f32 %v7585_v32 }
 0x9e7   : > { %v7593_v57 = vadd.f32 %v7592_v41, %v14320_v36  ;;  %v12392_v56 = vpop.eup %12391  ;;  %12411 = vtanh.f32 %v7334_v47  ;;  %8004 = vmatprep.mubr.f32.mxu0 %v12390_v40  ;;  %v7339_v55 = vpop.f32.mrb[116].mxu0 }
 0x9e8   : > { %v12394_v54 = vpop.eup %12393  ;;  %12413 = vtanh.f32 %v7336_v42  ;;  %8229 = vmatprep.mubr.f32.mxu1 %v12392_v56  ;;  %v7340_v53 = vadd.f32 %v7339_v55, %v14317_v0  ;;  %v7596_v52 = vpop.f32.mrb[116].mxu1  ;;  %8005 = vmatmul.mubr.f32.gmra.mrb[172].mxu0 %v12388_v43 }
 0x9e9   : > { %v7341_v51 = vpop.f32.mrb[117].mxu0  ;;  %v12396_v50 = vpop.eup %12395  ;;  %12415 = vtanh.f32 %v7593_v57  ;;  %8230 = vmatmul.mubr.f32.gmra.mrb[172].mxu1 %v12394_v54  ;;  %v7597_v59 = vadd.f32 %v7596_v52, %v14317_v0 }
 0x9ea   : > { %v7342_v37 = vadd.f32 %v7341_v51, %v14320_v36  ;;  %v7598_v38 = vpop.f32.mrb[117].mxu1  ;;  %v12398_v58 = vpop.eup %12397  ;;  %12417 = vtanh.f32 %v7591_v39 }
 0x9eb   : > { %v7599_v60 = vadd.f32 %v7598_v38, %v14320_v36  ;;  %v12400_v61 = vpop.eup %12399  ;;  %12419 = vtanh.f32 %v7340_v53  ;;  %8009 = vmatprep.mubr.f32.mxu0 %v12398_v58  ;;  %v7345_v62 = vpop.f32.mrb[118].mxu0 }
 0x9ec   : > { %v12402_v63 = vpop.eup %12401  ;;  %12421 = vtanh.f32 %v7342_v37  ;;  %8234 = vmatprep.mubr.f32.mxu1 %v12400_v61  ;;  %v7346_v1 = vadd.f32 %v7345_v62, %v14317_v0  ;;  %v7602_v2 = vpop.f32.mrb[118].mxu1  ;;  %8010 = vmatmul.mubr.f32.gmra.mrb[174].mxu0 %v12396_v50 }
 0x9ed   : > { %v7347_v3 = vpop.f32.mrb[119].mxu0  ;;  %v12404_v48 = vpop.eup %12403  ;;  %12423 = vtanh.f32 %v7599_v60  ;;  %8235 = vmatmul.mubr.f32.gmra.mrb[174].mxu1 %v12402_v63  ;;  %v7603_v7 = vadd.f32 %v7602_v2, %v14317_v0 }
 0x9ee   : > { %v7348_v4 = vadd.f32 %v7347_v3, %v14320_v36  ;;  %v7604_v5 = vpop.f32.mrb[119].mxu1  ;;  %v12406_v6 = vpop.eup %12405  ;;  %12425 = vtanh.f32 %v7597_v59 }
 0x9ef   : > { %v7605_v8 = vadd.f32 %v7604_v5, %v14320_v36  ;;  %v12408_v9 = vpop.eup %12407  ;;  %12427 = vtanh.f32 %v7346_v1  ;;  %8014 = vmatprep.mubr.f32.mxu0 %v12406_v6  ;;  %v7351_v10 = vpop.f32.mrb[120].mxu0 }
 0x9f0   : > { %v12410_v11 = vpop.eup %12409  ;;  %12429 = vtanh.f32 %v7348_v4  ;;  %8239 = vmatprep.mubr.f32.mxu1 %v12408_v9  ;;  %v7352_v12 = vadd.f32 %v7351_v10, %v14317_v0  ;;  %v7608_v13 = vpop.f32.mrb[120].mxu1  ;;  %8015 = vmatmul.mubr.f32.gmra.mrb[176].mxu0 %v12404_v48 }
 0x9f1   : > { %v7353_v14 = vpop.f32.mrb[121].mxu0  ;;  %v12412_v15 = vpop.eup %12411  ;;  %12431 = vtanh.f32 %v7605_v8  ;;  %8240 = vmatmul.mubr.f32.gmra.mrb[176].mxu1 %v12410_v11  ;;  %v7609_v19 = vadd.f32 %v7608_v13, %v14317_v0  ;;  %v7823_v8 = vld [vmem:[#allocation10] sm:$0x3] }
 0x9f2   : > { %v7354_v16 = vadd.f32 %v7353_v14, %v14320_v36  ;;  %v7610_v17 = vpop.f32.mrb[121].mxu1  ;;  %v12414_v18 = vpop.eup %12413  ;;  %12433 = vtanh.f32 %v7603_v7  ;;  %v14451_v9 = vrot.slane %v7823_v8, %v13106_v46 }
 0x9f3   : > { %v7611_v20 = vadd.f32 %v7610_v17, %v14320_v36  ;;  %v12416_v21 = vpop.eup %12415  ;;  %12435 = vtanh.f32 %v7352_v12  ;;  %8019 = vmatprep.mubr.f32.mxu0 %v12414_v18  ;;  %v7357_v22 = vpop.f32.mrb[122].mxu0 }
 0x9f4   : > { %v12418_v23 = vpop.eup %12417  ;;  %12437 = vtanh.f32 %v7354_v16  ;;  %8244 = vmatprep.mubr.f32.mxu1 %v12416_v21  ;;  %v7358_v24 = vadd.f32 %v7357_v22, %v14317_v0  ;;  %v7614_v25 = vpop.f32.mrb[122].mxu1  ;;  %8020 = vmatmul.mubr.f32.gmra.mrb[178].mxu0 %v12412_v15 }
 0x9f5   : > { %v7359_v26 = vpop.f32.mrb[123].mxu0  ;;  %v12420_v27 = vpop.eup %12419  ;;  %12439 = vtanh.f32 %v7611_v20  ;;  %8245 = vmatmul.mubr.f32.gmra.mrb[178].mxu1 %v12418_v23  ;;  %v7615_v31 = vadd.f32 %v7614_v25, %v14317_v0 }
 0x9f6   : > { %v7360_v28 = vadd.f32 %v7359_v26, %v14320_v36  ;;  %v7616_v29 = vpop.f32.mrb[123].mxu1  ;;  %v12422_v30 = vpop.eup %12421  ;;  %12441 = vtanh.f32 %v7609_v19 }
 0x9f7   : > { %v7617_v32 = vadd.f32 %v7616_v29, %v14320_v36  ;;  %v12424_v33 = vpop.eup %12423  ;;  %12443 = vtanh.f32 %v7358_v24  ;;  %8024 = vmatprep.mubr.f32.mxu0 %v12422_v30  ;;  %v7363_v34 = vpop.f32.mrb[124].mxu0 }
 0x9f8   : > { %v12426_v35 = vpop.eup %12425  ;;  %12445 = vtanh.f32 %v7360_v28  ;;  %8249 = vmatprep.mubr.f32.mxu1 %v12424_v33  ;;  %v7364_v49 = vadd.f32 %v7363_v34, %v14317_v0  ;;  %v7620_v47 = vpop.f32.mrb[124].mxu1  ;;  %8025 = vmatmul.mubr.f32.gmra.mrb[180].mxu0 %v12420_v27 }
 0x9f9   : > { %v7365_v45 = vpop.f32.mrb[125].mxu0  ;;  %v12428_v44 = vpop.eup %12427  ;;  %12447 = vtanh.f32 %v7617_v32  ;;  %8250 = vmatmul.mubr.f32.gmra.mrb[180].mxu1 %v12426_v35  ;;  %v7621_v40 = vadd.f32 %v7620_v47, %v14317_v0 }
 0x9fa   : > { %v7366_v43 = vadd.f32 %v7365_v45, %v14320_v36  ;;  %v7622_v42 = vpop.f32.mrb[125].mxu1  ;;  %v12430_v41 = vpop.eup %12429  ;;  %12449 = vtanh.f32 %v7615_v31 }
 0x9fb   : > { %v7623_v39 = vadd.f32 %v7622_v42, %v14320_v36  ;;  %v12432_v57 = vpop.eup %12431  ;;  %12451 = vtanh.f32 %v7364_v49  ;;  %8029 = vmatprep.mubr.f32.mxu0 %v12430_v41  ;;  %v7369_v56 = vpop.f32.mrb[126].mxu0 }
 0x9fc   : > { %v12434_v55 = vpop.eup %12433  ;;  %12453 = vtanh.f32 %v7366_v43  ;;  %8254 = vmatprep.mubr.f32.mxu1 %v12432_v57  ;;  %v7370_v54 = vadd.f32 %v7369_v56, %v14317_v0  ;;  %v7626_v53 = vpop.f32.mrb[126].mxu1  ;;  %8030 = vmatmul.mubr.f32.gmra.mrb[182].mxu0 %v12428_v44 }
 0x9fd   : > { %v7371_v52 = vpop.f32.mrb[127].mxu0  ;;  %v12436_v51 = vpop.eup %12435  ;;  %12455 = vtanh.f32 %v7623_v39  ;;  %8255 = vmatmul.mubr.f32.gmra.mrb[182].mxu1 %v12434_v55  ;;  %v7627_v58 = vadd.f32 %v7626_v53, %v14317_v0 }
 0x9fe   : > { %v7372_v50 = vadd.f32 %v7371_v52, %v14320_v36  ;;  %v7628_v37 = vpop.f32.mrb[127].mxu1  ;;  %v12438_v38 = vpop.eup %12437  ;;  %12457 = vtanh.f32 %v7621_v40 }
 0x9ff   : > { %v7629_v59 = vadd.f32 %v7628_v37, %v14320_v36  ;;  %v12440_v60 = vpop.eup %12439  ;;  %12459 = vtanh.f32 %v7370_v54  ;;  %8034 = vmatprep.mubr.f32.mxu0 %v12438_v38 }
 0xa00   : > { %v12442_v61 = vpop.eup %12441  ;;  %12461 = vtanh.f32 %v7372_v50  ;;  %8259 = vmatprep.mubr.f32.mxu1 %v12440_v60  ;;  %8035 = vmatmul.mubr.f32.gmra.mrb[184].mxu0 %v12436_v51 }
 0xa01   : > { %v12444_v62 = vpop.eup %12443  ;;  %12463 = vtanh.f32 %v7629_v59  ;;  %8260 = vmatmul.mubr.f32.gmra.mrb[184].mxu1 %v12442_v61 }
 0xa02   : > { %v12446_v63 = vpop.eup %12445  ;;  %12465 = vtanh.f32 %v7627_v58 }
 0xa03   : > { %v12448_v1 = vpop.eup %12447  ;;  %8039 = vmatprep.mubr.f32.mxu0 %v12446_v63 }
 0xa04   : > { %v12450_v2 = vpop.eup %12449  ;;  %8264 = vmatprep.mubr.f32.mxu1 %v12448_v1  ;;  %8040 = vmatmul.mubr.f32.gmra.mrb[186].mxu0 %v12444_v62 }
 0xa05   : > { %v12452_v0 = vpop.eup %12451  ;;  %8265 = vmatmul.mubr.f32.gmra.mrb[186].mxu1 %v12450_v2 }
 0xa06   : > { %v12454_v36 = vpop.eup %12453 }
 0xa07   : > { %v12456_v3 = vpop.eup %12455  ;;  %8044 = vmatprep.mubr.f32.mxu0 %v12454_v36 }
 0xa08   : > { %v12458_v48 = vpop.eup %12457  ;;  %8269 = vmatprep.mubr.f32.mxu1 %v12456_v3  ;;  %8045 = vmatmul.mubr.f32.gmra.mrb[188].mxu0 %v12452_v0 }
 0xa09   : > { %v12460_v4 = vpop.eup %12459  ;;  %8270 = vmatmul.mubr.f32.gmra.mrb[188].mxu1 %v12458_v48 }
 0xa0a   : > { %v12462_v5 = vpop.eup %12461 }
 0xa0b   : > { %v12464_v6 = vpop.eup %12463  ;;  %8049 = vmatprep.mubr.f32.mxu0 %v12462_v5 }
 0xa0c   : > { %v12466_v7 = vpop.eup %12465  ;;  %8274 = vmatprep.mubr.f32.mxu1 %v12464_v6  ;;  %8050 = vmatmul.mubr.f32.gmra.mrb[190].mxu0 %v12460_v4 }
 0xa0d   : > { %8275 = vmatmul.mubr.f32.gmra.mrb[190].mxu1 %v12466_v7 }
 0xa62   : > { %v7896_v10 = vpop.f32.mrb[128].mxu0 }
 0xa63   : > { %v7897_v11 = vadd.f32 %v7896_v10, %v14451_v9  ;;  %v8121_v12 = vpop.f32.mrb[128].mxu1  ;;  %v7898_v13 = vpop.f32.mrb[129].mxu0 }
 0xa64   : > { %v8122_v14 = vadd.f32 %v8121_v12, %v14451_v9  ;;  %v8123_v15 = vpop.f32.mrb[129].mxu1 }
 0xa65   : > { %8280 = vst.msk [vmem:[%s14458_s30] sm:$0xff] %vm414_vm0, %v7897_v11 }
 0xa66   : > { %8312 = vst.msk [vmem:[%s14458_s30 + $0x100] sm:$0xff] %vm414_vm0, %v8122_v14 }
 0xa67   : > { %v7901_v46 = vpop.f32.mrb[130].mxu0 }
 0xa68   : > { %v7902_v16 = vadd.f32 %v7901_v46, %v14451_v9  ;;  %v8126_v17 = vpop.f32.mrb[130].mxu1  ;;  %v7903_v18 = vpop.f32.mrb[131].mxu0 }
 0xa69   : > { %v8127_v19 = vadd.f32 %v8126_v17, %v14451_v9  ;;  %v8128_v20 = vpop.f32.mrb[131].mxu1 }
 0xa6a   : > { %8281 = vst.msk [vmem:[%s14458_s30 + $0x8] sm:$0xff] %vm414_vm0, %v7902_v16 }
 0xa6b   : > { %8313 = vst.msk [vmem:[%s14458_s30 + $0x108] sm:$0xff] %vm414_vm0, %v8127_v19  ;;  %v7906_v21 = vpop.f32.mrb[132].mxu0 }
 0xa6c   : > { %v7907_v22 = vadd.f32 %v7906_v21, %v14451_v9  ;;  %v8131_v23 = vpop.f32.mrb[132].mxu1  ;;  %v7908_v24 = vpop.f32.mrb[133].mxu0 }
 0xa6d   : > { %v8132_v25 = vadd.f32 %v8131_v23, %v14451_v9  ;;  %v8133_v26 = vpop.f32.mrb[133].mxu1 }
 0xa6e   : > { %8282 = vst.msk [vmem:[%s14458_s30 + $0x10] sm:$0xff] %vm414_vm0, %v7907_v22 }
 0xa6f   : > { %8314 = vst.msk [vmem:[%s14458_s30 + $0x110] sm:$0xff] %vm414_vm0, %v8132_v25  ;;  %v7911_v27 = vpop.f32.mrb[134].mxu0 }
 0xa70   : > { %v7912_v28 = vadd.f32 %v7911_v27, %v14451_v9  ;;  %v8136_v29 = vpop.f32.mrb[134].mxu1  ;;  %v7913_v30 = vpop.f32.mrb[135].mxu0 }
 0xa71   : > { %v8137_v31 = vadd.f32 %v8136_v29, %v14451_v9  ;;  %v8138_v32 = vpop.f32.mrb[135].mxu1 }
 0xa72   : > { %8283 = vst.msk [vmem:[%s14458_s30 + $0x18] sm:$0xff] %vm414_vm0, %v7912_v28 }
 0xa73   : > { %8315 = vst.msk [vmem:[%s14458_s30 + $0x118] sm:$0xff] %vm414_vm0, %v8137_v31  ;;  %v7916_v33 = vpop.f32.mrb[136].mxu0 }
 0xa74   : > { %v7917_v34 = vadd.f32 %v7916_v33, %v14451_v9  ;;  %v8141_v35 = vpop.f32.mrb[136].mxu1  ;;  %v7918_v49 = vpop.f32.mrb[137].mxu0 }
 0xa75   : > { %v8142_v47 = vadd.f32 %v8141_v35, %v14451_v9  ;;  %v8143_v45 = vpop.f32.mrb[137].mxu1 }
 0xa76   : > { %8284 = vst.msk [vmem:[%s14458_s30 + $0x20] sm:$0xff] %vm414_vm0, %v7917_v34 }
 0xa77   : > { %8316 = vst.msk [vmem:[%s14458_s30 + $0x120] sm:$0xff] %vm414_vm0, %v8142_v47  ;;  %v7921_v44 = vpop.f32.mrb[138].mxu0 }
 0xa78   : > { %v7922_v43 = vadd.f32 %v7921_v44, %v14451_v9  ;;  %v8146_v42 = vpop.f32.mrb[138].mxu1  ;;  %v7923_v41 = vpop.f32.mrb[139].mxu0 }
 0xa79   : > { %v8147_v40 = vadd.f32 %v8146_v42, %v14451_v9  ;;  %v8148_v39 = vpop.f32.mrb[139].mxu1 }
 0xa7a   : > { %8285 = vst.msk [vmem:[%s14458_s30 + $0x28] sm:$0xff] %vm414_vm0, %v7922_v43 }
 0xa7b   : > { %8317 = vst.msk [vmem:[%s14458_s30 + $0x128] sm:$0xff] %vm414_vm0, %v8147_v40  ;;  %v7926_v57 = vpop.f32.mrb[140].mxu0 }
 0xa7c   : > { %v7927_v56 = vadd.f32 %v7926_v57, %v14451_v9  ;;  %v8151_v55 = vpop.f32.mrb[140].mxu1  ;;  %v7928_v54 = vpop.f32.mrb[141].mxu0 }
 0xa7d   : > { %v8152_v53 = vadd.f32 %v8151_v55, %v14451_v9  ;;  %v8153_v52 = vpop.f32.mrb[141].mxu1 }
 0xa7e   : > { %8286 = vst.msk [vmem:[%s14458_s30 + $0x30] sm:$0xff] %vm414_vm0, %v7927_v56 }
 0xa7f   : > { %8318 = vst.msk [vmem:[%s14458_s30 + $0x130] sm:$0xff] %vm414_vm0, %v8152_v53  ;;  %v7931_v51 = vpop.f32.mrb[142].mxu0 }
 0xa80   : > { %v7932_v50 = vadd.f32 %v7931_v51, %v14451_v9  ;;  %v8156_v37 = vpop.f32.mrb[142].mxu1  ;;  %v7933_v38 = vpop.f32.mrb[143].mxu0 }
 0xa81   : > { %v8157_v58 = vadd.f32 %v8156_v37, %v14451_v9  ;;  %v8158_v59 = vpop.f32.mrb[143].mxu1 }
 0xa82   : > { %8287 = vst.msk [vmem:[%s14458_s30 + $0x38] sm:$0xff] %vm414_vm0, %v7932_v50 }
 0xa83   : > { %8319 = vst.msk [vmem:[%s14458_s30 + $0x138] sm:$0xff] %vm414_vm0, %v8157_v58  ;;  %v7936_v60 = vpop.f32.mrb[144].mxu0 }
 0xa84   : > { %v7937_v61 = vadd.f32 %v7936_v60, %v14451_v9  ;;  %v8161_v62 = vpop.f32.mrb[144].mxu1  ;;  %v7938_v63 = vpop.f32.mrb[145].mxu0 }
 0xa85   : > { %v8162_v1 = vadd.f32 %v8161_v62, %v14451_v9  ;;  %v8163_v2 = vpop.f32.mrb[145].mxu1 }
 0xa86   : > { %8288 = vst.msk [vmem:[%s14458_s30 + $0x40] sm:$0xff] %vm414_vm0, %v7937_v61 }
 0xa87   : > { %8320 = vst.msk [vmem:[%s14458_s30 + $0x140] sm:$0xff] %vm414_vm0, %v8162_v1  ;;  %v7941_v0 = vpop.f32.mrb[146].mxu0 }
 0xa88   : > { %v7942_v36 = vadd.f32 %v7941_v0, %v14451_v9  ;;  %v8166_v3 = vpop.f32.mrb[146].mxu1  ;;  %v7943_v48 = vpop.f32.mrb[147].mxu0 }
 0xa89   : > { %v8167_v4 = vadd.f32 %v8166_v3, %v14451_v9  ;;  %v8168_v5 = vpop.f32.mrb[147].mxu1 }
 0xa8a   : > { %8289 = vst.msk [vmem:[%s14458_s30 + $0x48] sm:$0xff] %vm414_vm0, %v7942_v36 }
 0xa8b   : > { %8321 = vst.msk [vmem:[%s14458_s30 + $0x148] sm:$0xff] %vm414_vm0, %v8167_v4  ;;  %v7946_v6 = vpop.f32.mrb[148].mxu0 }
 0xa8c   : > { %v7947_v7 = vadd.f32 %v7946_v6, %v14451_v9  ;;  %v8171_v8 = vpop.f32.mrb[148].mxu1  ;;  %v7948_v10 = vpop.f32.mrb[149].mxu0 }
 0xa8d   : > { %v8172_v11 = vadd.f32 %v8171_v8, %v14451_v9  ;;  %v8173_v12 = vpop.f32.mrb[149].mxu1 }
 0xa8e   : > { %8290 = vst.msk [vmem:[%s14458_s30 + $0x50] sm:$0xff] %vm414_vm0, %v7947_v7 }
 0xa8f   : > { %8322 = vst.msk [vmem:[%s14458_s30 + $0x150] sm:$0xff] %vm414_vm0, %v8172_v11  ;;  %v7951_v13 = vpop.f32.mrb[150].mxu0 }
 0xa90   : > { %v7952_v14 = vadd.f32 %v7951_v13, %v14451_v9  ;;  %v8176_v15 = vpop.f32.mrb[150].mxu1  ;;  %v7953_v46 = vpop.f32.mrb[151].mxu0 }
 0xa91   : > { %v8177_v16 = vadd.f32 %v8176_v15, %v14451_v9  ;;  %v8178_v17 = vpop.f32.mrb[151].mxu1 }
 0xa92   : > { %8291 = vst.msk [vmem:[%s14458_s30 + $0x58] sm:$0xff] %vm414_vm0, %v7952_v14 }
 0xa93   : > { %8323 = vst.msk [vmem:[%s14458_s30 + $0x158] sm:$0xff] %vm414_vm0, %v8177_v16  ;;  %v7956_v18 = vpop.f32.mrb[152].mxu0 }
 0xa94   : > { %v7957_v19 = vadd.f32 %v7956_v18, %v14451_v9  ;;  %v8181_v20 = vpop.f32.mrb[152].mxu1  ;;  %v7958_v21 = vpop.f32.mrb[153].mxu0 }
 0xa95   : > { %v8182_v22 = vadd.f32 %v8181_v20, %v14451_v9  ;;  %v8183_v23 = vpop.f32.mrb[153].mxu1 }
 0xa96   : > { %8292 = vst.msk [vmem:[%s14458_s30 + $0x60] sm:$0xff] %vm414_vm0, %v7957_v19 }
 0xa97   : > { %8324 = vst.msk [vmem:[%s14458_s30 + $0x160] sm:$0xff] %vm414_vm0, %v8182_v22  ;;  %v7961_v24 = vpop.f32.mrb[154].mxu0 }
 0xa98   : > { %v7962_v25 = vadd.f32 %v7961_v24, %v14451_v9  ;;  %v8186_v26 = vpop.f32.mrb[154].mxu1  ;;  %v7963_v27 = vpop.f32.mrb[155].mxu0 }
 0xa99   : > { %v8187_v28 = vadd.f32 %v8186_v26, %v14451_v9  ;;  %v8188_v29 = vpop.f32.mrb[155].mxu1 }
 0xa9a   : > { %8293 = vst.msk [vmem:[%s14458_s30 + $0x68] sm:$0xff] %vm414_vm0, %v7962_v25 }
 0xa9b   : > { %8325 = vst.msk [vmem:[%s14458_s30 + $0x168] sm:$0xff] %vm414_vm0, %v8187_v28  ;;  %v7966_v30 = vpop.f32.mrb[156].mxu0 }
 0xa9c   : > { %v7967_v31 = vadd.f32 %v7966_v30, %v14451_v9  ;;  %v8191_v32 = vpop.f32.mrb[156].mxu1  ;;  %v7968_v33 = vpop.f32.mrb[157].mxu0 }
 0xa9d   : > { %v8192_v34 = vadd.f32 %v8191_v32, %v14451_v9  ;;  %v8193_v35 = vpop.f32.mrb[157].mxu1 }
 0xa9e   : > { %8294 = vst.msk [vmem:[%s14458_s30 + $0x70] sm:$0xff] %vm414_vm0, %v7967_v31 }
 0xa9f   : > { %8326 = vst.msk [vmem:[%s14458_s30 + $0x170] sm:$0xff] %vm414_vm0, %v8192_v34  ;;  %v7971_v49 = vpop.f32.mrb[158].mxu0 }
 0xaa0   : > { %v7972_v47 = vadd.f32 %v7971_v49, %v14451_v9  ;;  %v8196_v45 = vpop.f32.mrb[158].mxu1  ;;  %v7973_v44 = vpop.f32.mrb[159].mxu0 }
 0xaa1   : > { %v8197_v43 = vadd.f32 %v8196_v45, %v14451_v9  ;;  %v8198_v42 = vpop.f32.mrb[159].mxu1 }
 0xaa2   : > { %8295 = vst.msk [vmem:[%s14458_s30 + $0x78] sm:$0xff] %vm414_vm0, %v7972_v47 }
 0xaa3   : > { %8327 = vst.msk [vmem:[%s14458_s30 + $0x178] sm:$0xff] %vm414_vm0, %v8197_v43  ;;  %v7976_v41 = vpop.f32.mrb[160].mxu0 }
 0xaa4   : > { %v7977_v40 = vadd.f32 %v7976_v41, %v14451_v9  ;;  %v8201_v39 = vpop.f32.mrb[160].mxu1  ;;  %v7978_v57 = vpop.f32.mrb[161].mxu0 }
 0xaa5   : > { %v8202_v56 = vadd.f32 %v8201_v39, %v14451_v9  ;;  %v8203_v55 = vpop.f32.mrb[161].mxu1 }
 0xaa6   : > { %8296 = vst.msk [vmem:[%s14458_s30 + $0x80] sm:$0xff] %vm414_vm0, %v7977_v40 }
 0xaa7   : > { %8328 = vst.msk [vmem:[%s14458_s30 + $0x180] sm:$0xff] %vm414_vm0, %v8202_v56  ;;  %v7981_v54 = vpop.f32.mrb[162].mxu0 }
 0xaa8   : > { %v7982_v53 = vadd.f32 %v7981_v54, %v14451_v9  ;;  %v8206_v52 = vpop.f32.mrb[162].mxu1  ;;  %v7983_v51 = vpop.f32.mrb[163].mxu0 }
 0xaa9   : > { %v8207_v50 = vadd.f32 %v8206_v52, %v14451_v9  ;;  %v8208_v37 = vpop.f32.mrb[163].mxu1 }
 0xaaa   : > { %8297 = vst.msk [vmem:[%s14458_s30 + $0x88] sm:$0xff] %vm414_vm0, %v7982_v53 }
 0xaab   : > { %8329 = vst.msk [vmem:[%s14458_s30 + $0x188] sm:$0xff] %vm414_vm0, %v8207_v50  ;;  %v7986_v38 = vpop.f32.mrb[164].mxu0 }
 0xaac   : > { %v7987_v58 = vadd.f32 %v7986_v38, %v14451_v9  ;;  %v8211_v59 = vpop.f32.mrb[164].mxu1  ;;  %v7988_v60 = vpop.f32.mrb[165].mxu0 }
 0xaad   : > { %v8212_v61 = vadd.f32 %v8211_v59, %v14451_v9  ;;  %v8213_v62 = vpop.f32.mrb[165].mxu1 }
 0xaae   : > { %8298 = vst.msk [vmem:[%s14458_s30 + $0x90] sm:$0xff] %vm414_vm0, %v7987_v58 }
 0xaaf   : > { %8330 = vst.msk [vmem:[%s14458_s30 + $0x190] sm:$0xff] %vm414_vm0, %v8212_v61  ;;  %v7991_v63 = vpop.f32.mrb[166].mxu0 }
 0xab0   : > { %v7992_v1 = vadd.f32 %v7991_v63, %v14451_v9  ;;  %v8216_v2 = vpop.f32.mrb[166].mxu1  ;;  %v7993_v0 = vpop.f32.mrb[167].mxu0 }
 0xab1   : > { %v8217_v36 = vadd.f32 %v8216_v2, %v14451_v9  ;;  %v8218_v3 = vpop.f32.mrb[167].mxu1 }
 0xab2   : > { %8299 = vst.msk [vmem:[%s14458_s30 + $0x98] sm:$0xff] %vm414_vm0, %v7992_v1 }
 0xab3   : > { %8331 = vst.msk [vmem:[%s14458_s30 + $0x198] sm:$0xff] %vm414_vm0, %v8217_v36  ;;  %v7996_v48 = vpop.f32.mrb[168].mxu0 }
 0xab4   : > { %v7997_v4 = vadd.f32 %v7996_v48, %v14451_v9  ;;  %v8221_v5 = vpop.f32.mrb[168].mxu1  ;;  %v7998_v6 = vpop.f32.mrb[169].mxu0 }
 0xab5   : > { %v8222_v7 = vadd.f32 %v8221_v5, %v14451_v9  ;;  %v8223_v8 = vpop.f32.mrb[169].mxu1 }
 0xab6   : > { %8300 = vst.msk [vmem:[%s14458_s30 + $0xa0] sm:$0xff] %vm414_vm0, %v7997_v4 }
 0xab7   : > { %8332 = vst.msk [vmem:[%s14458_s30 + $0x1a0] sm:$0xff] %vm414_vm0, %v8222_v7  ;;  %v8001_v10 = vpop.f32.mrb[170].mxu0 }
 0xab8   : > { %v8002_v11 = vadd.f32 %v8001_v10, %v14451_v9  ;;  %v8226_v12 = vpop.f32.mrb[170].mxu1  ;;  %v8003_v13 = vpop.f32.mrb[171].mxu0 }
 0xab9   : > { %v8227_v14 = vadd.f32 %v8226_v12, %v14451_v9  ;;  %v8228_v15 = vpop.f32.mrb[171].mxu1 }
 0xaba   : > { %8301 = vst.msk [vmem:[%s14458_s30 + $0xa8] sm:$0xff] %vm414_vm0, %v8002_v11 }
 0xabb   : > { %8333 = vst.msk [vmem:[%s14458_s30 + $0x1a8] sm:$0xff] %vm414_vm0, %v8227_v14  ;;  %v8006_v46 = vpop.f32.mrb[172].mxu0 }
 0xabc   : > { %v8007_v16 = vadd.f32 %v8006_v46, %v14451_v9  ;;  %v8231_v17 = vpop.f32.mrb[172].mxu1  ;;  %v8008_v18 = vpop.f32.mrb[173].mxu0 }
 0xabd   : > { %v8232_v19 = vadd.f32 %v8231_v17, %v14451_v9  ;;  %v8233_v20 = vpop.f32.mrb[173].mxu1 }
 0xabe   : > { %8302 = vst.msk [vmem:[%s14458_s30 + $0xb0] sm:$0xff] %vm414_vm0, %v8007_v16 }
 0xabf   : > { %8334 = vst.msk [vmem:[%s14458_s30 + $0x1b0] sm:$0xff] %vm414_vm0, %v8232_v19  ;;  %v8011_v21 = vpop.f32.mrb[174].mxu0 }
 0xac0   : > { %v8012_v22 = vadd.f32 %v8011_v21, %v14451_v9  ;;  %v8236_v23 = vpop.f32.mrb[174].mxu1  ;;  %v8013_v24 = vpop.f32.mrb[175].mxu0 }
 0xac1   : > { %v8237_v25 = vadd.f32 %v8236_v23, %v14451_v9  ;;  %v8238_v26 = vpop.f32.mrb[175].mxu1 }
 0xac2   : > { %8303 = vst.msk [vmem:[%s14458_s30 + $0xb8] sm:$0xff] %vm414_vm0, %v8012_v22 }
 0xac3   : > { %8335 = vst.msk [vmem:[%s14458_s30 + $0x1b8] sm:$0xff] %vm414_vm0, %v8237_v25  ;;  %v8016_v27 = vpop.f32.mrb[176].mxu0 }
 0xac4   : > { %v8017_v28 = vadd.f32 %v8016_v27, %v14451_v9  ;;  %v8241_v29 = vpop.f32.mrb[176].mxu1  ;;  %v8018_v30 = vpop.f32.mrb[177].mxu0 }
 0xac5   : > { %v8242_v31 = vadd.f32 %v8241_v29, %v14451_v9  ;;  %v8243_v32 = vpop.f32.mrb[177].mxu1 }
 0xac6   : > { %8304 = vst.msk [vmem:[%s14458_s30 + $0xc0] sm:$0xff] %vm414_vm0, %v8017_v28 }
 0xac7   : > { %8336 = vst.msk [vmem:[%s14458_s30 + $0x1c0] sm:$0xff] %vm414_vm0, %v8242_v31  ;;  %v8021_v33 = vpop.f32.mrb[178].mxu0 }
 0xac8   : > { %v8022_v34 = vadd.f32 %v8021_v33, %v14451_v9  ;;  %v8246_v35 = vpop.f32.mrb[178].mxu1  ;;  %v8023_v49 = vpop.f32.mrb[179].mxu0 }
 0xac9   : > { %v8247_v47 = vadd.f32 %v8246_v35, %v14451_v9  ;;  %v8248_v45 = vpop.f32.mrb[179].mxu1 }
 0xaca   : > { %8305 = vst.msk [vmem:[%s14458_s30 + $0xc8] sm:$0xff] %vm414_vm0, %v8022_v34 }
 0xacb   : > { %8337 = vst.msk [vmem:[%s14458_s30 + $0x1c8] sm:$0xff] %vm414_vm0, %v8247_v47  ;;  %v8026_v44 = vpop.f32.mrb[180].mxu0 }
 0xacc   : > { %v8027_v43 = vadd.f32 %v8026_v44, %v14451_v9  ;;  %v8251_v42 = vpop.f32.mrb[180].mxu1  ;;  %v8028_v41 = vpop.f32.mrb[181].mxu0 }
 0xacd   : > { %v8252_v40 = vadd.f32 %v8251_v42, %v14451_v9  ;;  %v8253_v39 = vpop.f32.mrb[181].mxu1 }
 0xace   : > { %8306 = vst.msk [vmem:[%s14458_s30 + $0xd0] sm:$0xff] %vm414_vm0, %v8027_v43 }
 0xacf   : > { %8338 = vst.msk [vmem:[%s14458_s30 + $0x1d0] sm:$0xff] %vm414_vm0, %v8252_v40  ;;  %v8031_v57 = vpop.f32.mrb[182].mxu0 }
 0xad0   : > { %v8032_v56 = vadd.f32 %v8031_v57, %v14451_v9  ;;  %v8256_v55 = vpop.f32.mrb[182].mxu1  ;;  %v8033_v54 = vpop.f32.mrb[183].mxu0 }
 0xad1   : > { %v8257_v53 = vadd.f32 %v8256_v55, %v14451_v9  ;;  %v8258_v52 = vpop.f32.mrb[183].mxu1 }
 0xad2   : > { %8307 = vst.msk [vmem:[%s14458_s30 + $0xd8] sm:$0xff] %vm414_vm0, %v8032_v56 }
 0xad3   : > { %8339 = vst.msk [vmem:[%s14458_s30 + $0x1d8] sm:$0xff] %vm414_vm0, %v8257_v53  ;;  %v8036_v51 = vpop.f32.mrb[184].mxu0 }
 0xad4   : > { %v8037_v50 = vadd.f32 %v8036_v51, %v14451_v9  ;;  %v8261_v37 = vpop.f32.mrb[184].mxu1  ;;  %v8038_v38 = vpop.f32.mrb[185].mxu0 }
 0xad5   : > { %v8262_v58 = vadd.f32 %v8261_v37, %v14451_v9  ;;  %v8263_v59 = vpop.f32.mrb[185].mxu1 }
 0xad6   : > { %8308 = vst.msk [vmem:[%s14458_s30 + $0xe0] sm:$0xff] %vm414_vm0, %v8037_v50 }
 0xad7   : > { %8340 = vst.msk [vmem:[%s14458_s30 + $0x1e0] sm:$0xff] %vm414_vm0, %v8262_v58  ;;  %v8041_v60 = vpop.f32.mrb[186].mxu0 }
 0xad8   : > { %v8042_v61 = vadd.f32 %v8041_v60, %v14451_v9  ;;  %v8266_v62 = vpop.f32.mrb[186].mxu1  ;;  %v8043_v63 = vpop.f32.mrb[187].mxu0 }
 0xad9   : > { %v8267_v1 = vadd.f32 %v8266_v62, %v14451_v9  ;;  %v8268_v2 = vpop.f32.mrb[187].mxu1 }
 0xada   : > { %8309 = vst.msk [vmem:[%s14458_s30 + $0xe8] sm:$0xff] %vm414_vm0, %v8042_v61 }
 0xadb   : > { %8341 = vst.msk [vmem:[%s14458_s30 + $0x1e8] sm:$0xff] %vm414_vm0, %v8267_v1  ;;  %v8046_v0 = vpop.f32.mrb[188].mxu0 }
 0xadc   : > { %v8047_v36 = vadd.f32 %v8046_v0, %v14451_v9  ;;  %v8271_v3 = vpop.f32.mrb[188].mxu1  ;;  %v8048_v48 = vpop.f32.mrb[189].mxu0 }
 0xadd   : > { %v8272_v4 = vadd.f32 %v8271_v3, %v14451_v9  ;;  %v8273_v5 = vpop.f32.mrb[189].mxu1 }
 0xade   : > { %8310 = vst.msk [vmem:[%s14458_s30 + $0xf0] sm:$0xff] %vm414_vm0, %v8047_v36 }
 0xadf   : > { %8342 = vst.msk [vmem:[%s14458_s30 + $0x1f0] sm:$0xff] %vm414_vm0, %v8272_v4  ;;  %v8051_v6 = vpop.f32.mrb[190].mxu0 }
 0xae0   : > { %v8052_v7 = vadd.f32 %v8051_v6, %v14451_v9  ;;  %v8276_v8 = vpop.f32.mrb[190].mxu1  ;;  %v8053_v10 = vpop.f32.mrb[191].mxu0 }
 0xae1   : > { %v8277_v11 = vadd.f32 %v8276_v8, %v14451_v9  ;;  %v8278_v12 = vpop.f32.mrb[191].mxu1 }
 0xae2   : > { %8311 = vst.msk [vmem:[%s14458_s30 + $0xf8] sm:$0xff] %vm414_vm0, %v8052_v7 }
 0xae3   : > { %8343 = vst.msk [vmem:[%s14458_s30 + $0x1f8] sm:$0xff] %vm414_vm0, %v8277_v11 }
 0xae4 PF: > { %s21_s24 = sadd.s32 1, %s12657_s24  }
 0xae5   : > { %p18_p7 = scmp.ge.s32.totalorder %s21_s24, 4  }
 0xae7   :  { %20 = sbr.rel (!%p18_p7) target bundleno = 4 (0x4), region = 119 }
 0xaee   :  { %8366 = vsyncpa [#allocation3], 1 }
 0xaef   :  { %8368 = vsyncpa [#allocation3 + $0x1], 1 }
 0xaf0   :  { %8369 = vsyncpa [#allocation5], 1 }
 0xaf1   :  { %8370 = vsyncpa [#allocation8], 1 }
 0xaf2   :  { %8371 = vsyncpa [#allocation11], 1 }

</bundles_post_ra>
